<compile_context>
chip_gen: v7x
topology: tpu7x:2x2x1
jax: 0.10.0
libtpu: 0.0.40
codegen_flags: <defaults>
</compile_context>

<pallas_src>
import jax
import jax.numpy as jnp
from jax.experimental import pallas as pl
from jax.experimental.pallas import tpu as pltpu

EPS = 1e-3


def _bn_kernel(x_ref, gamma_ref, beta_ref, o_ref):
    # x_ref:     (N, TC, R)  -- R = H*W, TC = channel tile
    # gamma_ref: (TC, 1)
    # beta_ref:  (TC, 1)
    x = x_ref[...].astype(jnp.float32)
    n = x.shape[0] * x.shape[2]

    # Two-pass mean/variance (avoids E[x^2]-mean^2 cancellation); both
    # reductions are over the batch axis and the 49-wide lane axis -> cheap.
    mean = jnp.sum(x, axis=(0, 2), keepdims=True) * (1.0 / n)      # (1, TC, 1)
    d = x - mean
    var = jnp.sum(d * d, axis=(0, 2), keepdims=True) * (1.0 / n)   # biased var

    inv = jax.lax.rsqrt(var + EPS)                                  # (1, TC, 1)

    # Fold normalization + affine into per-channel scale/bias:
    #   y = (x - mean) * inv * gamma + beta  ==  x * scale + bias
    scale = inv * gamma_ref[...]                                    # (1, TC, 1)
    bias = beta_ref[...] - mean * scale                             # (1, TC, 1)

    o_ref[...] = (x * scale + bias).astype(o_ref.dtype)


def batchnorm2d(x_nchw, gamma, beta, *, tile_c=None):
    """Training-mode BatchNorm2d: normalize with per-channel batch statistics."""
    N, C, H, W = x_nchw.shape
    R = H * W

    if tile_c is None:
        # Prefer 2 parallel grid steps (one per TensorCore on v7x); fall back
        # to a single full-channel block otherwise.
        half = C // 2
        tile_c = half if (C % 2 == 0 and half % 8 == 0) else C
    assert C % tile_c == 0, "channel count must be a multiple of tile_c"
    assert tile_c == C or tile_c % 8 == 0, "channel tile must be sublane-aligned"

    # NCHW -> (N, C, H*W): contiguous reshape, no data movement.
    x3d = x_nchw.reshape(N, C, R)
    gamma2d = gamma.reshape(C, 1).astype(jnp.float32)
    beta2d = beta.reshape(C, 1).astype(jnp.float32)

    grid = (C // tile_c,)
    out3d = pl.pallas_call(
        _bn_kernel,
        out_shape=jax.ShapeDtypeStruct((N, C, R), x_nchw.dtype),
        grid_spec=pltpu.PrefetchScalarGridSpec(
            num_scalar_prefetch=0,
            grid=grid,
            in_specs=[
                pl.BlockSpec((N, tile_c, R), lambda j: (0, j, 0)),
                pl.BlockSpec((tile_c, 1), lambda j: (j, 0)),
                pl.BlockSpec((tile_c, 1), lambda j: (j, 0)),
            ],
            out_specs=pl.BlockSpec((N, tile_c, R), lambda j: (0, j, 0)),
        ),
        compiler_params=pltpu.CompilerParams(
            dimension_semantics=("parallel",),
        ),
    )(x3d, gamma2d, beta2d)

    return out3d.reshape(N, C, H, W)


def batchnorm2d_ref(x_nchw, gamma, beta):
    x = x_nchw.astype(jnp.float32)
    mean = jnp.mean(x, axis=(0, 2, 3), keepdims=True)
    var = jnp.mean((x - mean) ** 2, axis=(0, 2, 3), keepdims=True)
    g = gamma.reshape(1, -1, 1, 1)
    b = beta.reshape(1, -1, 1, 1)
    return (x - mean) * jax.lax.rsqrt(var + EPS) * g + b


if __name__ == "__main__":
    key = jax.random.PRNGKey(0)
    kx, kg, kb = jax.random.split(key, 3)

    # Shape consistent with the module: x700 = randn([1, 2304, 7, 7])
    N, C, H, W = 1, 2304, 7, 7
    x = jax.random.normal(kx, (N, C, H, W), dtype=jnp.float32)

    # Deterministic (non-trivial) affine parameters for BatchNorm2d(2304).
    gamma = 1.0 + 0.1 * jax.random.normal(kg, (C,), dtype=jnp.float32)
    beta = 0.1 * jax.random.normal(kb, (C,), dtype=jnp.float32)

    out = batchnorm2d(x, gamma, beta)
    out = jax.block_until_ready(out)

    ref = batchnorm2d_ref(x, gamma, beta)
    assert out.shape == (N, C, H, W)
    assert jnp.allclose(out, ref, atol=1e-4, rtol=1e-4)

    print("KERNEL_OK")
</pallas_src>

<mosaic_0001>
module attributes {stable_mosaic.version = 11 : i64} {
  func.func @_bn_kernel(%arg0: i32, %arg1: memref<1x1152x49xf32, #tpu.memory_space<vmem>>, %arg2: memref<1152x1xf32, #tpu.memory_space<vmem>>, %arg3: memref<1152x1xf32, #tpu.memory_space<vmem>>, %arg4: memref<1x1152x49xf32, #tpu.memory_space<vmem>>) attributes {dimension_semantics = [#tpu.dimension_semantics<parallel>], iteration_bounds = array<i64: 2>, scalar_prefetch = 0 : i64, scratch_operands = 0 : i64, tpu.core_type = #tpu.core_type<tc>, window_params = [{transform_indices = @transform_0, window_bounds = array<i64: 1, 1152, 49>}, {transform_indices = @transform_1, window_bounds = array<i64: 1152, 1>}, {transform_indices = @transform_2, window_bounds = array<i64: 1152, 1>}, {transform_indices = @transform_3, window_bounds = array<i64: 1, 1152, 49>}]} {
    %c0 = arith.constant 0 : index
    %c0_0 = arith.constant 0 : index
    %c0_1 = arith.constant 0 : index
    %0 = vector.load %arg1[%c0, %c0_0, %c0_1] : memref<1x1152x49xf32, #tpu.memory_space<vmem>>, vector<1x1152x49xf32>
    %cst = arith.constant dense<0.000000e+00> : vector<1152xf32>
    %1 = vector.multi_reduction <add>, %0, %cst [0, 2] : vector<1x1152x49xf32> to vector<1152xf32>
    %2 = vector.shape_cast %1 : vector<1152xf32> to vector<1x1152x1xf32>
    %cst_2 = arith.constant 0.0204081628 : f32
    %3 = vector.broadcast %cst_2 : f32 to vector<1x1152x1xf32>
    %4 = arith.mulf %2, %3 : vector<1x1152x1xf32>
    %5 = vector.broadcast %4 : vector<1x1152x1xf32> to vector<1x1152x49xf32>
    %6 = arith.subf %0, %5 : vector<1x1152x49xf32>
    %7 = arith.mulf %6, %6 : vector<1x1152x49xf32>
    %cst_3 = arith.constant dense<0.000000e+00> : vector<1152xf32>
    %8 = vector.multi_reduction <add>, %7, %cst_3 [0, 2] : vector<1x1152x49xf32> to vector<1152xf32>
    %9 = vector.shape_cast %8 : vector<1152xf32> to vector<1x1152x1xf32>
    %cst_4 = arith.constant 0.0204081628 : f32
    %10 = vector.broadcast %cst_4 : f32 to vector<1x1152x1xf32>
    %11 = arith.mulf %9, %10 : vector<1x1152x1xf32>
    %cst_5 = arith.constant 1.000000e-03 : f32
    %12 = vector.broadcast %cst_5 : f32 to vector<1x1152x1xf32>
    %13 = arith.addf %11, %12 : vector<1x1152x1xf32>
    %14 = math.rsqrt %13 : vector<1x1152x1xf32>
    %c0_6 = arith.constant 0 : index
    %c0_7 = arith.constant 0 : index
    %15 = vector.load %arg2[%c0_6, %c0_7] : memref<1152x1xf32, #tpu.memory_space<vmem>>, vector<1152x1xf32>
    %16 = vector.shape_cast %15 : vector<1152x1xf32> to vector<1x1152x1xf32>
    %17 = arith.mulf %14, %16 : vector<1x1152x1xf32>
    %c0_8 = arith.constant 0 : index
    %c0_9 = arith.constant 0 : index
    %18 = vector.load %arg3[%c0_8, %c0_9] : memref<1152x1xf32, #tpu.memory_space<vmem>>, vector<1152x1xf32>
    %19 = arith.mulf %4, %17 : vector<1x1152x1xf32>
    %20 = vector.shape_cast %18 : vector<1152x1xf32> to vector<1x1152x1xf32>
    %21 = arith.subf %20, %19 : vector<1x1152x1xf32>
    %22 = vector.broadcast %17 : vector<1x1152x1xf32> to vector<1x1152x49xf32>
    %23 = arith.mulf %0, %22 : vector<1x1152x49xf32>
    %24 = vector.broadcast %21 : vector<1x1152x1xf32> to vector<1x1152x49xf32>
    %25 = arith.addf %23, %24 : vector<1x1152x49xf32>
    %c0_10 = arith.constant 0 : index
    %c0_11 = arith.constant 0 : index
    %c0_12 = arith.constant 0 : index
    %26 = vector.load %arg4[%c0_10, %c0_11, %c0_12] : memref<1x1152x49xf32, #tpu.memory_space<vmem>>, vector<1x1152x49xf32>
    tpu.vector_store %arg4[%c0_10, %c0_11, %c0_12], %25 {strides = array<i32>} : memref<1x1152x49xf32, #tpu.memory_space<vmem>>, vector<1x1152x49xf32>,
    return
  }
  func.func @transform_0(%arg0: i32) -> (i32, i32, i32) {
    %c0_i32 = arith.constant 0 : i32
    %c0_i32_0 = arith.constant 0 : i32
    %c0_i32_1 = arith.constant 0 : i32
    return %c0_i32, %arg0, %c0_i32_0 : i32, i32, i32
  }
  func.func @transform_1(%arg0: i32) -> (i32, i32) {
    %c0_i32 = arith.constant 0 : i32
    %c0_i32_0 = arith.constant 0 : i32
    return %arg0, %c0_i32 : i32, i32
  }
  func.func @transform_2(%arg0: i32) -> (i32, i32) {
    %c0_i32 = arith.constant 0 : i32
    %c0_i32_0 = arith.constant 0 : i32
    return %arg0, %c0_i32 : i32, i32
  }
  func.func @transform_3(%arg0: i32) -> (i32, i32, i32) {
    %c0_i32 = arith.constant 0 : i32
    %c0_i32_0 = arith.constant 0 : i32
    %c0_i32_1 = arith.constant 0 : i32
    return %c0_i32, %arg0, %c0_i32_0 : i32, i32, i32
  }
}

</mosaic_0001>

<bundles_post_ra>
// kernel: tpu_custom_call.1
= control target key start
LH: loop header
LB: loop body
LE: loop exit
PB: predicated region body
PF: predicated region fallthrough
CT: control target
= control target key end

     0   :  { %s5384_s12 = smov 0   ;;  %s9183_s0 = inlined_call_operand.vmem [shape: f32[1,2304,49], index: 0, kind: input, shape index: {}]   ;;  %s9184_s1 = inlined_call_operand.vmem [shape: f32[2304,1], index: 1, kind: input, shape index: {}]   ;;  %s9185_s2 = inlined_call_operand.vmem [shape: f32[2304,1], index: 2, kind: input, shape index: {}]   ;;  %s9186_s3 = inlined_call_operand.vmem [shape: f32[1,2304,49], index: 3, kind: output, shape index: {}]  }
   0x1 LB: > { %s4763_s13 = sadd.s32 4294967295, %s5361_s12   ;;  %p4767_p0 = scmp.ge.s32.totalorder %s5361_s12, 1  ;;  %s5361_s12 = sphi %s5384_s12, %s13_s12  }
   0x2   : > { %p160_p1 = scmp.lt.s32.totalorder %s5361_s12, 3 }
   0x4   : > { %p161_p2 = pnand %p4767_p0, %p160_p1 }
   0x6   : > { %164 = sbr.rel (%p161_p2) target bundleno = 1327 (0x52f), region = 32 }
   0xd   : > { %s194_s14 = smul.u32 144, %s4763_s13  ;;  %vm362_vm0 = vcmask 400384  }
   0xf   : > { %p195_p3 = scmp.lt.s32.totalorder %s194_s14, 287 }
  0x11   : > { %s10387_s14 = smov (!%p195_p3, %s194_s14), 287 }
  0x12   : > { %s5392_s15 = sshll.u32 %s10387_s14, 3 }
  0x13   : > { %s5398_s18 = scalar_lea.vmem %s9183_s0, %s5392_s15  ;;  %s7025_s21 = scalar_lea.vmem %s9184_s1, %s5392_s15 }
  0x14   : > { %v5401_v0 = vld [vmem:[%s5398_s18 + $0x10] sm:$0xff]  ;;  %v5404_v1 = vld [vmem:[%s5398_s18] sm:$0xff]  ;;  %v5407_v2 = vld [vmem:[%s5398_s18 + $0x18] sm:$0xff]  ;;  %s7996_s24 = scalar_lea.vmem %s9185_s2, %s5392_s15  ;;  %s8352_s27 = scalar_lea.vmem %s9186_s3, %s5392_s15 }
  0x15   : > { %v369_v3 = vsel %vm362_vm0, %v5401_v0, 0.0  ;;  %v363_v4 = vsel %vm362_vm0, %v5404_v1, 0.0  ;;  %v5414_v5 = vld [vmem:[%s5398_s18 + $0x8] sm:$0xff]  ;;  %v372_v6 = vsel %vm362_vm0, %v5407_v2, 0.0  ;;  %v5424_v9 = vld [vmem:[%s5398_s18 + $0x20] sm:$0xff]  ;;  %v225_v12 = vld [vmem:[%s5398_s18 + $0x38] sm:$0xff] }
  0x16   : > { %370 = vadd.xlane.f32.xlu1 %v369_v3  ;;  %364 = vadd.xlane.f32.xlu0 %v363_v4  ;;  %v366_v7 = vsel %vm362_vm0, %v5414_v5, 0.0  ;;  %v5421_v8 = vld [vmem:[%s5398_s18 + $0x28] sm:$0xff]  ;;  %v375_v11 = vsel %vm362_vm0, %v5424_v9, 0.0  ;;  %v224_v13 = vld [vmem:[%s5398_s18 + $0x30] sm:$0xff]  ;;  %v384_v14 = vsel %vm362_vm0, %v225_v12, 0.0  ;;  %v226_v17 = vld [vmem:[%s5398_s18 + $0x40] sm:$0xff] }
  0x17   : > { %v378_v10 = vsel %vm362_vm0, %v5421_v8, 0.0  ;;  %v381_v15 = vsel %vm362_vm0, %v224_v13, 0.0  ;;  %v227_v16 = vld [vmem:[%s5398_s18 + $0x48] sm:$0xff]  ;;  %v387_v19 = vsel %vm362_vm0, %v226_v17, 0.0  ;;  %v229_v20 = vld [vmem:[%s5398_s18 + $0x58] sm:$0xff]  ;;  %v228_v21 = vld [vmem:[%s5398_s18 + $0x50] sm:$0xff] }
  0x18   : > { %v390_v18 = vsel %vm362_vm0, %v227_v16, 0.0  ;;  %v396_v22 = vsel %vm362_vm0, %v229_v20, 0.0  ;;  %v393_v23 = vsel %vm362_vm0, %v228_v21, 0.0  ;;  %v231_v24 = vld [vmem:[%s5398_s18 + $0x68] sm:$0xff]  ;;  %v230_v25 = vld [vmem:[%s5398_s18 + $0x60] sm:$0xff]  ;;  %v233_v28 = vld [vmem:[%s5398_s18 + $0x78] sm:$0xff] }
  0x19   : > { %v402_v26 = vsel %vm362_vm0, %v231_v24, 0.0  ;;  %v399_v27 = vsel %vm362_vm0, %v230_v25, 0.0  ;;  %v232_v29 = vld [vmem:[%s5398_s18 + $0x70] sm:$0xff]  ;;  %v408_v30 = vsel %vm362_vm0, %v233_v28, 0.0  ;;  %v235_v32 = vld [vmem:[%s5398_s18 + $0x88] sm:$0xff]  ;;  %v234_v33 = vld [vmem:[%s5398_s18 + $0x80] sm:$0xff] }
  0x1a   : > { %373 = vadd.xlane.f32.xlu1 %v372_v6  ;;  %367 = vadd.xlane.f32.xlu0 %v366_v7  ;;  %v405_v31 = vsel %vm362_vm0, %v232_v29, 0.0  ;;  %v414_v34 = vsel %vm362_vm0, %v235_v32, 0.0  ;;  %v411_v35 = vsel %vm362_vm0, %v234_v33, 0.0  ;;  %v237_v36 = vld [vmem:[%s5398_s18 + $0x98] sm:$0xff]  ;;  %v236_v37 = vld [vmem:[%s5398_s18 + $0x90] sm:$0xff]  ;;  %v239_v40 = vld [vmem:[%s5398_s18 + $0xa8] sm:$0xff] }
  0x1b   : > { %v420_v38 = vsel %vm362_vm0, %v237_v36, 0.0  ;;  %v417_v39 = vsel %vm362_vm0, %v236_v37, 0.0  ;;  %v238_v41 = vld [vmem:[%s5398_s18 + $0xa0] sm:$0xff]  ;;  %v426_v42 = vsel %vm362_vm0, %v239_v40, 0.0  ;;  %v241_v44 = vld [vmem:[%s5398_s18 + $0xb8] sm:$0xff]  ;;  %v240_v45 = vld [vmem:[%s5398_s18 + $0xb0] sm:$0xff] }
  0x1c   : > { %v423_v43 = vsel %vm362_vm0, %v238_v41, 0.0  ;;  %v432_v46 = vsel %vm362_vm0, %v241_v44, 0.0  ;;  %v429_v47 = vsel %vm362_vm0, %v240_v45, 0.0  ;;  %v243_v48 = vld [vmem:[%s5398_s18 + $0xc8] sm:$0xff]  ;;  %v242_v49 = vld [vmem:[%s5398_s18 + $0xc0] sm:$0xff]  ;;  %v245_v52 = vld [vmem:[%s5398_s18 + $0xd8] sm:$0xff] }
  0x1d   : > { %v438_v50 = vsel %vm362_vm0, %v243_v48, 0.0  ;;  %v435_v51 = vsel %vm362_vm0, %v242_v49, 0.0  ;;  %v244_v53 = vld [vmem:[%s5398_s18 + $0xd0] sm:$0xff]  ;;  %v444_v54 = vsel %vm362_vm0, %v245_v52, 0.0  ;;  %v247_v56 = vld [vmem:[%s5398_s18 + $0xe8] sm:$0xff]  ;;  %v246_v57 = vld [vmem:[%s5398_s18 + $0xe0] sm:$0xff] }
  0x1e   : > { %379 = vadd.xlane.f32.xlu1 %v378_v10  ;;  %376 = vadd.xlane.f32.xlu0 %v375_v11  ;;  %v441_v55 = vsel %vm362_vm0, %v244_v53, 0.0  ;;  %v450_v58 = vsel %vm362_vm0, %v247_v56, 0.0  ;;  %v447_v59 = vsel %vm362_vm0, %v246_v57, 0.0  ;;  %v249_v60 = vld [vmem:[%s5398_s18 + $0xf8] sm:$0xff]  ;;  %v248_v61 = vld [vmem:[%s5398_s18 + $0xf0] sm:$0xff]  ;;  %v251_v3 = vld [vmem:[%s5398_s18 + $0x108] sm:$0xff] }
  0x1f   : > { %v456_v62 = vsel %vm362_vm0, %v249_v60, 0.0  ;;  %v453_v63 = vsel %vm362_vm0, %v248_v61, 0.0  ;;  %v250_v4 = vld [vmem:[%s5398_s18 + $0x100] sm:$0xff]  ;;  %v462_v6 = vsel %vm362_vm0, %v251_v3, 0.0  ;;  %v253_v10 = vld [vmem:[%s5398_s18 + $0x118] sm:$0xff]  ;;  %v252_v11 = vld [vmem:[%s5398_s18 + $0x110] sm:$0xff] }
  0x20   : > { %v459_v7 = vsel %vm362_vm0, %v250_v4, 0.0  ;;  %v468_v12 = vsel %vm362_vm0, %v253_v10, 0.0  ;;  %v465_v13 = vsel %vm362_vm0, %v252_v11, 0.0 }
  0x22   : > { %385 = vadd.xlane.f32.xlu1 %v384_v14  ;;  %382 = vadd.xlane.f32.xlu0 %v381_v15  ;;  %v255_v14 = vld [vmem:[%s5398_s18 + $0x128] sm:$0xff]  ;;  %v254_v15 = vld [vmem:[%s5398_s18 + $0x120] sm:$0xff] }
  0x23   : > { %v474_v16 = vsel %vm362_vm0, %v255_v14, 0.0  ;;  %v471_v17 = vsel %vm362_vm0, %v254_v15, 0.0 }
  0x26   : > { %391 = vadd.xlane.f32.xlu1 %v390_v18  ;;  %388 = vadd.xlane.f32.xlu0 %v387_v19  ;;  %v257_v18 = vld [vmem:[%s5398_s18 + $0x138] sm:$0xff]  ;;  %v256_v19 = vld [vmem:[%s5398_s18 + $0x130] sm:$0xff] }
  0x27   : > { %v480_v20 = vsel %vm362_vm0, %v257_v18, 0.0  ;;  %v477_v21 = vsel %vm362_vm0, %v256_v19, 0.0 }
  0x2a   : > { %397 = vadd.xlane.f32.xlu1 %v396_v22  ;;  %394 = vadd.xlane.f32.xlu0 %v393_v23  ;;  %v259_v22 = vld [vmem:[%s5398_s18 + $0x148] sm:$0xff]  ;;  %v258_v23 = vld [vmem:[%s5398_s18 + $0x140] sm:$0xff] }
  0x2b   : > { %v486_v24 = vsel %vm362_vm0, %v259_v22, 0.0  ;;  %v483_v25 = vsel %vm362_vm0, %v258_v23, 0.0 }
  0x2e   : > { %403 = vadd.xlane.f32.xlu1 %v402_v26  ;;  %400 = vadd.xlane.f32.xlu0 %v399_v27  ;;  %v261_v26 = vld [vmem:[%s5398_s18 + $0x158] sm:$0xff]  ;;  %v260_v27 = vld [vmem:[%s5398_s18 + $0x150] sm:$0xff] }
  0x2f   : > { %v492_v28 = vsel %vm362_vm0, %v261_v26, 0.0  ;;  %v489_v29 = vsel %vm362_vm0, %v260_v27, 0.0 }
  0x32   : > { %409 = vadd.xlane.f32.xlu1 %v408_v30  ;;  %406 = vadd.xlane.f32.xlu0 %v405_v31  ;;  %v263_v30 = vld [vmem:[%s5398_s18 + $0x168] sm:$0xff]  ;;  %v262_v31 = vld [vmem:[%s5398_s18 + $0x160] sm:$0xff] }
  0x33   : > { %v498_v32 = vsel %vm362_vm0, %v263_v30, 0.0  ;;  %v495_v33 = vsel %vm362_vm0, %v262_v31, 0.0 }
  0x36   : > { %415 = vadd.xlane.f32.xlu1 %v414_v34  ;;  %412 = vadd.xlane.f32.xlu0 %v411_v35  ;;  %v265_v34 = vld [vmem:[%s5398_s18 + $0x178] sm:$0xff]  ;;  %v264_v35 = vld [vmem:[%s5398_s18 + $0x170] sm:$0xff] }
  0x37   : > { %v504_v36 = vsel %vm362_vm0, %v265_v34, 0.0  ;;  %v501_v37 = vsel %vm362_vm0, %v264_v35, 0.0  ;;  %v293_v34 = vld [vmem:[%s5398_s18 + $0x258] sm:$0xff]  ;;  %v292_v35 = vld [vmem:[%s5398_s18 + $0x250] sm:$0xff] }
  0x3a   : > { %421 = vadd.xlane.f32.xlu1 %v420_v38  ;;  %418 = vadd.xlane.f32.xlu0 %v417_v39  ;;  %v267_v38 = vld [vmem:[%s5398_s18 + $0x188] sm:$0xff]  ;;  %v266_v39 = vld [vmem:[%s5398_s18 + $0x180] sm:$0xff] }
  0x3b   : > { %v510_v40 = vsel %vm362_vm0, %v267_v38, 0.0  ;;  %v507_v41 = vsel %vm362_vm0, %v266_v39, 0.0  ;;  %v588_v38 = vsel %vm362_vm0, %v293_v34, 0.0  ;;  %v585_v39 = vsel %vm362_vm0, %v292_v35, 0.0 }
  0x3e   : > { %427 = vadd.xlane.f32.xlu1 %v426_v42  ;;  %424 = vadd.xlane.f32.xlu0 %v423_v43  ;;  %v269_v42 = vld [vmem:[%s5398_s18 + $0x198] sm:$0xff]  ;;  %v268_v43 = vld [vmem:[%s5398_s18 + $0x190] sm:$0xff] }
  0x3f   : > { %v516_v44 = vsel %vm362_vm0, %v269_v42, 0.0  ;;  %v513_v45 = vsel %vm362_vm0, %v268_v43, 0.0 }
  0x42   : > { %433 = vadd.xlane.f32.xlu1 %v432_v46  ;;  %430 = vadd.xlane.f32.xlu0 %v429_v47  ;;  %v271_v46 = vld [vmem:[%s5398_s18 + $0x1a8] sm:$0xff]  ;;  %v270_v47 = vld [vmem:[%s5398_s18 + $0x1a0] sm:$0xff] }
  0x43   : > { %v522_v48 = vsel %vm362_vm0, %v271_v46, 0.0  ;;  %v519_v49 = vsel %vm362_vm0, %v270_v47, 0.0  ;;  %v297_v46 = vld [vmem:[%s5398_s18 + $0x278] sm:$0xff]  ;;  %v296_v47 = vld [vmem:[%s5398_s18 + $0x270] sm:$0xff] }
  0x46   : > { %439 = vadd.xlane.f32.xlu1 %v438_v50  ;;  %436 = vadd.xlane.f32.xlu0 %v435_v51  ;;  %v273_v50 = vld [vmem:[%s5398_s18 + $0x1b8] sm:$0xff]  ;;  %v272_v51 = vld [vmem:[%s5398_s18 + $0x1b0] sm:$0xff] }
  0x47   : > { %v528_v52 = vsel %vm362_vm0, %v273_v50, 0.0  ;;  %v525_v53 = vsel %vm362_vm0, %v272_v51, 0.0  ;;  %v600_v50 = vsel %vm362_vm0, %v297_v46, 0.0  ;;  %v597_v51 = vsel %vm362_vm0, %v296_v47, 0.0 }
  0x4a   : > { %445 = vadd.xlane.f32.xlu1 %v444_v54  ;;  %442 = vadd.xlane.f32.xlu0 %v441_v55  ;;  %v275_v54 = vld [vmem:[%s5398_s18 + $0x1c8] sm:$0xff]  ;;  %v274_v55 = vld [vmem:[%s5398_s18 + $0x1c0] sm:$0xff] }
  0x4b   : > { %v534_v56 = vsel %vm362_vm0, %v275_v54, 0.0  ;;  %v531_v57 = vsel %vm362_vm0, %v274_v55, 0.0 }
  0x4e   : > { %451 = vadd.xlane.f32.xlu1 %v450_v58  ;;  %448 = vadd.xlane.f32.xlu0 %v447_v59  ;;  %v277_v58 = vld [vmem:[%s5398_s18 + $0x1d8] sm:$0xff]  ;;  %v276_v59 = vld [vmem:[%s5398_s18 + $0x1d0] sm:$0xff] }
  0x4f   : > { %v540_v60 = vsel %vm362_vm0, %v277_v58, 0.0  ;;  %v537_v61 = vsel %vm362_vm0, %v276_v59, 0.0  ;;  %v301_v58 = vld [vmem:[%s5398_s18 + $0x298] sm:$0xff]  ;;  %v300_v59 = vld [vmem:[%s5398_s18 + $0x290] sm:$0xff] }
  0x52   : > { %457 = vadd.xlane.f32.xlu1 %v456_v62  ;;  %454 = vadd.xlane.f32.xlu0 %v453_v63  ;;  %v279_v62 = vld [vmem:[%s5398_s18 + $0x1e8] sm:$0xff]  ;;  %v278_v63 = vld [vmem:[%s5398_s18 + $0x1e0] sm:$0xff] }
  0x53   : > { %v546_v3 = vsel %vm362_vm0, %v279_v62, 0.0  ;;  %v543_v4 = vsel %vm362_vm0, %v278_v63, 0.0  ;;  %v612_v62 = vsel %vm362_vm0, %v301_v58, 0.0  ;;  %v609_v63 = vsel %vm362_vm0, %v300_v59, 0.0  ;;  %v317_v58 = vld [vmem:[%s5398_s18 + $0x318] sm:$0xff]  ;;  %v316_v59 = vld [vmem:[%s5398_s18 + $0x310] sm:$0xff] }
  0x56   : > { %463 = vadd.xlane.f32.xlu1 %v462_v6  ;;  %460 = vadd.xlane.f32.xlu0 %v459_v7  ;;  %v281_v6 = vld [vmem:[%s5398_s18 + $0x1f8] sm:$0xff]  ;;  %v280_v7 = vld [vmem:[%s5398_s18 + $0x1f0] sm:$0xff] }
  0x57   : > { %v552_v10 = vsel %vm362_vm0, %v281_v6, 0.0  ;;  %v549_v11 = vsel %vm362_vm0, %v280_v7, 0.0 }
  0x5a   : > { %469 = vadd.xlane.f32.xlu1 %v468_v12  ;;  %466 = vadd.xlane.f32.xlu0 %v465_v13  ;;  %v283_v12 = vld [vmem:[%s5398_s18 + $0x208] sm:$0xff]  ;;  %v282_v13 = vld [vmem:[%s5398_s18 + $0x200] sm:$0xff] }
  0x5b   : > { %v558_v14 = vsel %vm362_vm0, %v283_v12, 0.0  ;;  %v555_v15 = vsel %vm362_vm0, %v282_v13, 0.0  ;;  %v305_v12 = vld [vmem:[%s5398_s18 + $0x2b8] sm:$0xff]  ;;  %v304_v13 = vld [vmem:[%s5398_s18 + $0x2b0] sm:$0xff] }
  0x5e   : > { %475 = vadd.xlane.f32.xlu1 %v474_v16  ;;  %472 = vadd.xlane.f32.xlu0 %v471_v17  ;;  %v285_v16 = vld [vmem:[%s5398_s18 + $0x218] sm:$0xff]  ;;  %v284_v17 = vld [vmem:[%s5398_s18 + $0x210] sm:$0xff] }
  0x5f   : > { %v564_v18 = vsel %vm362_vm0, %v285_v16, 0.0  ;;  %v561_v19 = vsel %vm362_vm0, %v284_v17, 0.0  ;;  %v624_v16 = vsel %vm362_vm0, %v305_v12, 0.0  ;;  %v621_v17 = vsel %vm362_vm0, %v304_v13, 0.0 }
  0x62   : > { %481 = vadd.xlane.f32.xlu1 %v480_v20  ;;  %478 = vadd.xlane.f32.xlu0 %v477_v21  ;;  %v287_v20 = vld [vmem:[%s5398_s18 + $0x228] sm:$0xff]  ;;  %v286_v21 = vld [vmem:[%s5398_s18 + $0x220] sm:$0xff] }
  0x63   : > { %v570_v22 = vsel %vm362_vm0, %v287_v20, 0.0  ;;  %v567_v23 = vsel %vm362_vm0, %v286_v21, 0.0 }
  0x66   : > { %487 = vadd.xlane.f32.xlu1 %v486_v24  ;;  %484 = vadd.xlane.f32.xlu0 %v483_v25  ;;  %v289_v24 = vld [vmem:[%s5398_s18 + $0x238] sm:$0xff]  ;;  %v288_v25 = vld [vmem:[%s5398_s18 + $0x230] sm:$0xff] }
  0x67   : > { %v576_v26 = vsel %vm362_vm0, %v289_v24, 0.0  ;;  %v573_v27 = vsel %vm362_vm0, %v288_v25, 0.0  ;;  %v309_v24 = vld [vmem:[%s5398_s18 + $0x2d8] sm:$0xff]  ;;  %v308_v25 = vld [vmem:[%s5398_s18 + $0x2d0] sm:$0xff] }
  0x6a   : > { %493 = vadd.xlane.f32.xlu1 %v492_v28  ;;  %490 = vadd.xlane.f32.xlu0 %v489_v29  ;;  %v291_v28 = vld [vmem:[%s5398_s18 + $0x248] sm:$0xff]  ;;  %v290_v29 = vld [vmem:[%s5398_s18 + $0x240] sm:$0xff] }
  0x6e   : > { %499 = vadd.xlane.f32.xlu1 %v498_v32  ;;  %496 = vadd.xlane.f32.xlu0 %v495_v33  ;;  %v582_v32 = vsel %vm362_vm0, %v291_v28, 0.0  ;;  %v579_v33 = vsel %vm362_vm0, %v290_v29, 0.0  ;;  %v636_v28 = vsel %vm362_vm0, %v309_v24, 0.0  ;;  %v633_v29 = vsel %vm362_vm0, %v308_v25, 0.0 }
  0x72   : > { %505 = vadd.xlane.f32.xlu1 %v504_v36  ;;  %502 = vadd.xlane.f32.xlu0 %v501_v37 }
  0x76   : > { %511 = vadd.xlane.f32.xlu1 %v510_v40  ;;  %508 = vadd.xlane.f32.xlu0 %v507_v41  ;;  %v295_v40 = vld [vmem:[%s5398_s18 + $0x268] sm:$0xff]  ;;  %v294_v41 = vld [vmem:[%s5398_s18 + $0x260] sm:$0xff] }
  0x7a   : > { %517 = vadd.xlane.f32.xlu1 %v516_v44  ;;  %514 = vadd.xlane.f32.xlu0 %v513_v45  ;;  %v594_v44 = vsel %vm362_vm0, %v295_v40, 0.0  ;;  %v591_v45 = vsel %vm362_vm0, %v294_v41, 0.0  ;;  %v313_v40 = vld [vmem:[%s5398_s18 + $0x2f8] sm:$0xff]  ;;  %v312_v41 = vld [vmem:[%s5398_s18 + $0x2f0] sm:$0xff] }
  0x7b   : > { %v648_v46 = vsel %vm362_vm0, %v313_v40, 0.0  ;;  %v645_v47 = vsel %vm362_vm0, %v312_v41, 0.0  ;;  %v325_v40 = vld [vmem:[%s5398_s18 + $0x358] sm:$0xff]  ;;  %v324_v41 = vld [vmem:[%s5398_s18 + $0x350] sm:$0xff] }
  0x7e   : > { %523 = vadd.xlane.f32.xlu1 %v522_v48  ;;  %520 = vadd.xlane.f32.xlu0 %v519_v49 }
  0x82   : > { %529 = vadd.xlane.f32.xlu1 %v528_v52  ;;  %526 = vadd.xlane.f32.xlu0 %v525_v53  ;;  %v299_v52 = vld [vmem:[%s5398_s18 + $0x288] sm:$0xff]  ;;  %v298_v53 = vld [vmem:[%s5398_s18 + $0x280] sm:$0xff] }
  0x86   : > { %535 = vadd.xlane.f32.xlu1 %v534_v56  ;;  %532 = vadd.xlane.f32.xlu0 %v531_v57  ;;  %v606_v56 = vsel %vm362_vm0, %v299_v52, 0.0  ;;  %v603_v57 = vsel %vm362_vm0, %v298_v53, 0.0 }
  0x8a   : > { %541 = vadd.xlane.f32.xlu1 %v540_v60  ;;  %538 = vadd.xlane.f32.xlu0 %v537_v61 }
  0x8e   : > { %547 = vadd.xlane.f32.xlu1 %v546_v3  ;;  %544 = vadd.xlane.f32.xlu0 %v543_v4  ;;  %v303_v3 = vld [vmem:[%s5398_s18 + $0x2a8] sm:$0xff]  ;;  %v302_v4 = vld [vmem:[%s5398_s18 + $0x2a0] sm:$0xff] }
  0x92   : > { %553 = vadd.xlane.f32.xlu1 %v552_v10  ;;  %550 = vadd.xlane.f32.xlu0 %v549_v11  ;;  %v618_v10 = vsel %vm362_vm0, %v303_v3, 0.0  ;;  %v615_v11 = vsel %vm362_vm0, %v302_v4, 0.0  ;;  %v660_v3 = vsel %vm362_vm0, %v317_v58, 0.0  ;;  %v657_v4 = vsel %vm362_vm0, %v316_v59, 0.0 }
  0x96   : > { %559 = vadd.xlane.f32.xlu1 %v558_v14  ;;  %556 = vadd.xlane.f32.xlu0 %v555_v15 }
  0x9a   : > { %565 = vadd.xlane.f32.xlu1 %v564_v18  ;;  %562 = vadd.xlane.f32.xlu0 %v561_v19  ;;  %v307_v18 = vld [vmem:[%s5398_s18 + $0x2c8] sm:$0xff]  ;;  %v306_v19 = vld [vmem:[%s5398_s18 + $0x2c0] sm:$0xff] }
  0x9e   : > { %571 = vadd.xlane.f32.xlu1 %v570_v22  ;;  %568 = vadd.xlane.f32.xlu0 %v567_v23  ;;  %v630_v22 = vsel %vm362_vm0, %v307_v18, 0.0  ;;  %v627_v23 = vsel %vm362_vm0, %v306_v19, 0.0  ;;  %v321_v18 = vld [vmem:[%s5398_s18 + $0x338] sm:$0xff]  ;;  %v320_v19 = vld [vmem:[%s5398_s18 + $0x330] sm:$0xff] }
  0x9f   : > { %v672_v24 = vsel %vm362_vm0, %v321_v18, 0.0  ;;  %v669_v25 = vsel %vm362_vm0, %v320_v19, 0.0 }
  0xa2   : > { %577 = vadd.xlane.f32.xlu1 %v576_v26  ;;  %574 = vadd.xlane.f32.xlu0 %v573_v27 }
  0xa3   : > { %v5564_v30 = vpop.xlane.xlu1 %370  ;;  %v5566_v31 = vpop.xlane.xlu0 %364 }
  0xa6   : > { %583 = vadd.xlane.f32.xlu1 %v582_v32  ;;  %580 = vadd.xlane.f32.xlu0 %v579_v33  ;;  %v311_v32 = vld [vmem:[%s5398_s18 + $0x2e8] sm:$0xff]  ;;  %v310_v33 = vld [vmem:[%s5398_s18 + $0x2e0] sm:$0xff] }
  0xa7   : > { %v5572_v36 = vpop.xlane.xlu1 %373  ;;  %v5574_v37 = vpop.xlane.xlu0 %367 }
  0xaa   : > { %589 = vadd.xlane.f32.xlu1 %v588_v38  ;;  %586 = vadd.xlane.f32.xlu0 %v585_v39  ;;  %v642_v38 = vsel %vm362_vm0, %v311_v32, 0.0  ;;  %v639_v39 = vsel %vm362_vm0, %v310_v33, 0.0 }
  0xab   : > { %v5580_v42 = vpop.xlane.xlu1 %379  ;;  %v5582_v43 = vpop.xlane.xlu0 %376 }
  0xae   : > { %595 = vadd.xlane.f32.xlu1 %v594_v44  ;;  %592 = vadd.xlane.f32.xlu0 %v591_v45 }
  0xaf   : > { %v5588_v48 = vpop.xlane.xlu1 %385  ;;  %v5590_v49 = vpop.xlane.xlu0 %382 }
  0xb2   : > { %601 = vadd.xlane.f32.xlu1 %v600_v50  ;;  %598 = vadd.xlane.f32.xlu0 %v597_v51  ;;  %v315_v50 = vld [vmem:[%s5398_s18 + $0x308] sm:$0xff]  ;;  %v314_v51 = vld [vmem:[%s5398_s18 + $0x300] sm:$0xff] }
  0xb3   : > { %v5596_v54 = vpop.xlane.xlu1 %391  ;;  %v5598_v55 = vpop.xlane.xlu0 %388 }
  0xb6   : > { %607 = vadd.xlane.f32.xlu1 %v606_v56  ;;  %604 = vadd.xlane.f32.xlu0 %v603_v57  ;;  %v654_v56 = vsel %vm362_vm0, %v315_v50, 0.0  ;;  %v651_v57 = vsel %vm362_vm0, %v314_v51, 0.0  ;;  %v684_v50 = vsel %vm362_vm0, %v325_v40, 0.0  ;;  %v681_v51 = vsel %vm362_vm0, %v324_v41, 0.0  ;;  %v333_v40 = vld [vmem:[%s5398_s18 + $0x398] sm:$0xff]  ;;  %v332_v41 = vld [vmem:[%s5398_s18 + $0x390] sm:$0xff] }
  0xb7   : > { %v5604_v60 = vpop.xlane.xlu1 %397  ;;  %v5606_v61 = vpop.xlane.xlu0 %394 }
  0xba   : > { %613 = vadd.xlane.f32.xlu1 %v612_v62  ;;  %610 = vadd.xlane.f32.xlu0 %v609_v63 }
  0xbb   : > { %v5612_v6 = vpop.xlane.xlu1 %403  ;;  %v5614_v7 = vpop.xlane.xlu0 %400 }
  0xbe   : > { %619 = vadd.xlane.f32.xlu1 %v618_v10  ;;  %616 = vadd.xlane.f32.xlu0 %v615_v11  ;;  %v319_v10 = vld [vmem:[%s5398_s18 + $0x328] sm:$0xff]  ;;  %v318_v11 = vld [vmem:[%s5398_s18 + $0x320] sm:$0xff] }
  0xbf   : > { %v5620_v14 = vpop.xlane.xlu1 %409  ;;  %v5622_v15 = vpop.xlane.xlu0 %406 }
  0xc2   : > { %625 = vadd.xlane.f32.xlu1 %v624_v16  ;;  %622 = vadd.xlane.f32.xlu0 %v621_v17  ;;  %v666_v16 = vsel %vm362_vm0, %v319_v10, 0.0  ;;  %v663_v17 = vsel %vm362_vm0, %v318_v11, 0.0  ;;  %v329_v10 = vld [vmem:[%s5398_s18 + $0x378] sm:$0xff]  ;;  %v328_v11 = vld [vmem:[%s5398_s18 + $0x370] sm:$0xff] }
  0xc3   : > { %v5628_v20 = vpop.xlane.xlu1 %415  ;;  %v5630_v21 = vpop.xlane.xlu0 %412  ;;  %v696_v18 = vsel %vm362_vm0, %v329_v10, 0.0  ;;  %v693_v19 = vsel %vm362_vm0, %v328_v11, 0.0 }
  0xc6   : > { %631 = vadd.xlane.f32.xlu1 %v630_v22  ;;  %628 = vadd.xlane.f32.xlu0 %v627_v23 }
  0xc7   : > { %v5636_v26 = vpop.xlane.xlu1 %421  ;;  %v5638_v27 = vpop.xlane.xlu0 %418 }
  0xca   : > { %637 = vadd.xlane.f32.xlu1 %v636_v28  ;;  %634 = vadd.xlane.f32.xlu0 %v633_v29  ;;  %v323_v28 = vld [vmem:[%s5398_s18 + $0x348] sm:$0xff]  ;;  %v322_v29 = vld [vmem:[%s5398_s18 + $0x340] sm:$0xff] }
  0xcb   : > { %v5644_v34 = vpop.xlane.xlu1 %427  ;;  %v5646_v35 = vpop.xlane.xlu0 %424 }
  0xce   : > { %643 = vadd.xlane.f32.xlu1 %v642_v38  ;;  %640 = vadd.xlane.f32.xlu0 %v639_v39  ;;  %v678_v38 = vsel %vm362_vm0, %v323_v28, 0.0  ;;  %v675_v39 = vsel %vm362_vm0, %v322_v29, 0.0 }
  0xcf   : > { %v5652_v44 = vpop.xlane.xlu1 %433  ;;  %v5654_v45 = vpop.xlane.xlu0 %430 }
  0xd2   : > { %649 = vadd.xlane.f32.xlu1 %v648_v46  ;;  %646 = vadd.xlane.f32.xlu0 %v645_v47 }
  0xd3   : > { %v5660_v52 = vpop.xlane.xlu1 %439  ;;  %v5662_v53 = vpop.xlane.xlu0 %436 }
  0xd6   : > { %655 = vadd.xlane.f32.xlu1 %v654_v56  ;;  %652 = vadd.xlane.f32.xlu0 %v651_v57  ;;  %v327_v56 = vld [vmem:[%s5398_s18 + $0x368] sm:$0xff]  ;;  %v326_v57 = vld [vmem:[%s5398_s18 + $0x360] sm:$0xff] }
  0xd7   : > { %v5668_v62 = vpop.xlane.xlu1 %445  ;;  %v5670_v63 = vpop.xlane.xlu0 %442 }
  0xda   : > { %661 = vadd.xlane.f32.xlu1 %v660_v3  ;;  %658 = vadd.xlane.f32.xlu0 %v657_v4  ;;  %v690_v3 = vsel %vm362_vm0, %v327_v56, 0.0  ;;  %v687_v4 = vsel %vm362_vm0, %v326_v57, 0.0  ;;  %v708_v56 = vsel %vm362_vm0, %v333_v40, 0.0  ;;  %v705_v57 = vsel %vm362_vm0, %v332_v41, 0.0 }
  0xdb   : > { %v5676_v12 = vpop.xlane.xlu1 %451  ;;  %v5678_v13 = vpop.xlane.xlu0 %448 }
  0xde   : > { %667 = vadd.xlane.f32.xlu1 %v666_v16  ;;  %664 = vadd.xlane.f32.xlu0 %v663_v17 }
  0xdf   : > { %v5684_v22 = vpop.xlane.xlu1 %457  ;;  %v5686_v23 = vpop.xlane.xlu0 %454 }
  0xe2   : > { %673 = vadd.xlane.f32.xlu1 %v672_v24  ;;  %670 = vadd.xlane.f32.xlu0 %v669_v25  ;;  %v331_v24 = vld [vmem:[%s5398_s18 + $0x388] sm:$0xff]  ;;  %v330_v25 = vld [vmem:[%s5398_s18 + $0x380] sm:$0xff] }
  0xe3   : > { %v5692_v32 = vpop.xlane.xlu1 %463  ;;  %v5694_v33 = vpop.xlane.xlu0 %460 }
  0xe6   : > { %679 = vadd.xlane.f32.xlu1 %v678_v38  ;;  %676 = vadd.xlane.f32.xlu0 %v675_v39  ;;  %v702_v38 = vsel %vm362_vm0, %v331_v24, 0.0  ;;  %v699_v39 = vsel %vm362_vm0, %v330_v25, 0.0  ;;  %v337_v24 = vld [vmem:[%s5398_s18 + $0x3b8] sm:$0xff]  ;;  %v336_v25 = vld [vmem:[%s5398_s18 + $0x3b0] sm:$0xff] }
  0xe7   : > { %v5700_v46 = vpop.xlane.xlu1 %469  ;;  %v5702_v47 = vpop.xlane.xlu0 %466  ;;  %v720_v40 = vsel %vm362_vm0, %v337_v24, 0.0  ;;  %v717_v41 = vsel %vm362_vm0, %v336_v25, 0.0 }
  0xea   : > { %685 = vadd.xlane.f32.xlu1 %v684_v50  ;;  %682 = vadd.xlane.f32.xlu0 %v681_v51 }
  0xeb   : > { %v5708_v58 = vpop.xlane.xlu1 %475  ;;  %v5710_v59 = vpop.xlane.xlu0 %472 }
  0xee   : > { %691 = vadd.xlane.f32.xlu1 %v690_v3  ;;  %688 = vadd.xlane.f32.xlu0 %v687_v4  ;;  %v335_v3 = vld [vmem:[%s5398_s18 + $0x3a8] sm:$0xff]  ;;  %v334_v4 = vld [vmem:[%s5398_s18 + $0x3a0] sm:$0xff] }
  0xef   : > { %v5716_v16 = vpop.xlane.xlu1 %481  ;;  %v5718_v17 = vpop.xlane.xlu0 %478 }
  0xf2   : > { %697 = vadd.xlane.f32.xlu1 %v696_v18  ;;  %694 = vadd.xlane.f32.xlu0 %v693_v19  ;;  %v714_v18 = vsel %vm362_vm0, %v335_v3, 0.0  ;;  %v711_v19 = vsel %vm362_vm0, %v334_v4, 0.0 }
  0xf3   : > { %v5724_v28 = vpop.xlane.xlu1 %487  ;;  %v5726_v29 = vpop.xlane.xlu0 %484 }
  0xf6   : > { %703 = vadd.xlane.f32.xlu1 %v702_v38  ;;  %700 = vadd.xlane.f32.xlu0 %v699_v39 }
  0xf7   : > { %v5732_v50 = vpop.xlane.xlu1 %493  ;;  %v5734_v51 = vpop.xlane.xlu0 %490 }
  0xfa   : > { %709 = vadd.xlane.f32.xlu1 %v708_v56  ;;  %706 = vadd.xlane.f32.xlu0 %v705_v57  ;;  %v339_v56 = vld [vmem:[%s5398_s18 + $0x3c8] sm:$0xff]  ;;  %v338_v57 = vld [vmem:[%s5398_s18 + $0x3c0] sm:$0xff] }
  0xfb   : > { %v5740_v10 = vpop.xlane.xlu1 %499  ;;  %v5742_v11 = vpop.xlane.xlu0 %496 }
  0xfe   : > { %715 = vadd.xlane.f32.xlu1 %v714_v18  ;;  %712 = vadd.xlane.f32.xlu0 %v711_v19  ;;  %v726_v18 = vsel %vm362_vm0, %v339_v56, 0.0  ;;  %v723_v19 = vsel %vm362_vm0, %v338_v57, 0.0 }
  0xff   : > { %v5748_v38 = vpop.xlane.xlu1 %505  ;;  %v5750_v39 = vpop.xlane.xlu0 %502 }
 0x100   : > { %9436 = vst [vmem:[#allocation2_spill] sm:$0xff] %v5748_v38  ;;  %9437 = vst [vmem:[#allocation3_spill] sm:$0xff] %v5750_v39  ;;  %v341_v38 = vld [vmem:[%s5398_s18 + $0x3d8] sm:$0xff]  ;;  %v340_v39 = vld [vmem:[%s5398_s18 + $0x3d0] sm:$0xff] }
 0x102   : > { %721 = vadd.xlane.f32.xlu1 %v720_v40  ;;  %718 = vadd.xlane.f32.xlu0 %v717_v41  ;;  %v732_v40 = vsel %vm362_vm0, %v341_v38, 0.0  ;;  %v729_v41 = vsel %vm362_vm0, %v340_v39, 0.0 }
 0x103   : > { %v5756_v3 = vpop.xlane.xlu1 %511  ;;  %v5758_v4 = vpop.xlane.xlu0 %508 }
 0x104   : > { %9438 = vst [vmem:[#allocation4_spill] sm:$0xff] %v5756_v3  ;;  %9439 = vst [vmem:[#allocation5_spill] sm:$0xff] %v5758_v4  ;;  %v343_v3 = vld [vmem:[%s5398_s18 + $0x3e8] sm:$0xff]  ;;  %v342_v4 = vld [vmem:[%s5398_s18 + $0x3e0] sm:$0xff] }
 0x106   : > { %727 = vadd.xlane.f32.xlu1 %v726_v18  ;;  %724 = vadd.xlane.f32.xlu0 %v723_v19  ;;  %v738_v18 = vsel %vm362_vm0, %v343_v3, 0.0  ;;  %v735_v19 = vsel %vm362_vm0, %v342_v4, 0.0 }
 0x107   : > { %v5764_v24 = vpop.xlane.xlu1 %517  ;;  %v5766_v25 = vpop.xlane.xlu0 %514 }
 0x108   : > { %9440 = vst [vmem:[#allocation6_spill] sm:$0xff] %v5764_v24  ;;  %9441 = vst [vmem:[#allocation7_spill] sm:$0xff] %v5766_v25  ;;  %v345_v24 = vld [vmem:[%s5398_s18 + $0x3f8] sm:$0xff]  ;;  %v344_v25 = vld [vmem:[%s5398_s18 + $0x3f0] sm:$0xff] }
 0x10a   : > { %733 = vadd.xlane.f32.xlu1 %v732_v40  ;;  %730 = vadd.xlane.f32.xlu0 %v729_v41  ;;  %v744_v40 = vsel %vm362_vm0, %v345_v24, 0.0  ;;  %v741_v41 = vsel %vm362_vm0, %v344_v25, 0.0 }
 0x10b   : > { %v5772_v56 = vpop.xlane.xlu1 %523  ;;  %v5774_v57 = vpop.xlane.xlu0 %520 }
 0x10c   : > { %9442 = vst [vmem:[#allocation8_spill] sm:$0xff] %v5772_v56  ;;  %9443 = vst [vmem:[#allocation9_spill] sm:$0xff] %v5774_v57  ;;  %v347_v56 = vld [vmem:[%s5398_s18 + $0x408] sm:$0xff]  ;;  %v346_v57 = vld [vmem:[%s5398_s18 + $0x400] sm:$0xff] }
 0x10e   : > { %739 = vadd.xlane.f32.xlu1 %v738_v18  ;;  %736 = vadd.xlane.f32.xlu0 %v735_v19  ;;  %v750_v18 = vsel %vm362_vm0, %v347_v56, 0.0  ;;  %v747_v19 = vsel %vm362_vm0, %v346_v57, 0.0 }
 0x10f   : > { %v5780_v38 = vpop.xlane.xlu1 %529  ;;  %v5782_v39 = vpop.xlane.xlu0 %526 }
 0x110   : > { %9444 = vst [vmem:[#allocation10_spill] sm:$0xff] %v5780_v38  ;;  %9445 = vst [vmem:[#allocation11_spill] sm:$0xff] %v5782_v39  ;;  %v349_v38 = vld [vmem:[%s5398_s18 + $0x418] sm:$0xff]  ;;  %v348_v39 = vld [vmem:[%s5398_s18 + $0x410] sm:$0xff] }
 0x112   : > { %745 = vadd.xlane.f32.xlu1 %v744_v40  ;;  %742 = vadd.xlane.f32.xlu0 %v741_v41  ;;  %v756_v40 = vsel %vm362_vm0, %v349_v38, 0.0  ;;  %v753_v41 = vsel %vm362_vm0, %v348_v39, 0.0 }
 0x113   : > { %v5788_v3 = vpop.xlane.xlu1 %535  ;;  %v5790_v4 = vpop.xlane.xlu0 %532 }
 0x114   : > { %9446 = vst [vmem:[#allocation12_spill] sm:$0xff] %v5788_v3  ;;  %9447 = vst [vmem:[#allocation13_spill] sm:$0xff] %v5790_v4  ;;  %v351_v3 = vld [vmem:[%s5398_s18 + $0x428] sm:$0xff]  ;;  %v350_v4 = vld [vmem:[%s5398_s18 + $0x420] sm:$0xff] }
 0x116   : > { %751 = vadd.xlane.f32.xlu1 %v750_v18  ;;  %748 = vadd.xlane.f32.xlu0 %v747_v19  ;;  %v762_v18 = vsel %vm362_vm0, %v351_v3, 0.0  ;;  %v759_v19 = vsel %vm362_vm0, %v350_v4, 0.0 }
 0x117   : > { %v5796_v24 = vpop.xlane.xlu1 %541  ;;  %v5798_v25 = vpop.xlane.xlu0 %538 }
 0x118   : > { %9448 = vst [vmem:[#allocation14_spill] sm:$0xff] %v5796_v24  ;;  %9449 = vst [vmem:[#allocation15_spill] sm:$0xff] %v5798_v25  ;;  %v353_v24 = vld [vmem:[%s5398_s18 + $0x438] sm:$0xff]  ;;  %v352_v25 = vld [vmem:[%s5398_s18 + $0x430] sm:$0xff] }
 0x11a   : > { %757 = vadd.xlane.f32.xlu1 %v756_v40  ;;  %754 = vadd.xlane.f32.xlu0 %v753_v41  ;;  %v768_v40 = vsel %vm362_vm0, %v353_v24, 0.0  ;;  %v765_v41 = vsel %vm362_vm0, %v352_v25, 0.0 }
 0x11b   : > { %v5804_v56 = vpop.xlane.xlu1 %547  ;;  %v5806_v57 = vpop.xlane.xlu0 %544 }
 0x11c   : > { %9450 = vst [vmem:[#allocation16_spill] sm:$0xff] %v5804_v56  ;;  %9451 = vst [vmem:[#allocation17_spill] sm:$0xff] %v5806_v57  ;;  %v355_v56 = vld [vmem:[%s5398_s18 + $0x448] sm:$0xff]  ;;  %v354_v57 = vld [vmem:[%s5398_s18 + $0x440] sm:$0xff] }
 0x11e   : > { %763 = vadd.xlane.f32.xlu1 %v762_v18  ;;  %760 = vadd.xlane.f32.xlu0 %v759_v19  ;;  %v774_v18 = vsel %vm362_vm0, %v355_v56, 0.0  ;;  %v771_v19 = vsel %vm362_vm0, %v354_v57, 0.0  ;;  %v359_v56 = vld [vmem:[%s5398_s18 + $0x468] sm:$0xff]  ;;  %v5840_v57 = vmul.f32 0.020408163, %v5574_v37  ;;  %v361_v37 = vld [vmem:[%s5398_s18 + $0x478] sm:$0xff] }
 0x11f   : > { %v5812_v38 = vpop.xlane.xlu1 %553  ;;  %v5814_v39 = vpop.xlane.xlu0 %550 }
 0x120   : > { %9452 = vst [vmem:[#allocation18_spill] sm:$0xff] %v5812_v38  ;;  %9453 = vst [vmem:[#allocation19_spill] sm:$0xff] %v5814_v39  ;;  %v357_v38 = vld [vmem:[%s5398_s18 + $0x458] sm:$0xff]  ;;  %v356_v39 = vld [vmem:[%s5398_s18 + $0x450] sm:$0xff] }
 0x121   : > { %9459 = vst [vmem:[#allocation25_spill] sm:$0xff] %v5840_v57 }
 0x122   : > { %769 = vadd.xlane.f32.xlu1 %v768_v40  ;;  %766 = vadd.xlane.f32.xlu0 %v765_v41  ;;  %v780_v40 = vsel %vm362_vm0, %v357_v38, 0.0  ;;  %v777_v41 = vsel %vm362_vm0, %v356_v39, 0.0  ;;  %v5849_v39 = vmul.f32 0.020408163, %v5564_v30  ;;  %v792_v30 = vsel %vm362_vm0, %v361_v37, 0.0 }
 0x123   : > { %v5820_v3 = vpop.xlane.xlu1 %559  ;;  %v5822_v4 = vpop.xlane.xlu0 %556 }
 0x124   : > { %9454 = vst [vmem:[#allocation20_spill] sm:$0xff] %v5820_v3  ;;  %9455 = vst [vmem:[#allocation21_spill] sm:$0xff] %v5822_v4  ;;  %v5835_v4 = vmul.f32 0.020408163, %v5566_v31  ;;  %v358_v3 = vld [vmem:[%s5398_s18 + $0x460] sm:$0xff] }
 0x125   : > { %v783_v38 = vsel %vm362_vm0, %v358_v3, 0.0  ;;  %9461 = vst [vmem:[#allocation27_spill] sm:$0xff] %v5849_v39 }
 0x126   : > { %775 = vadd.xlane.f32.xlu1 %v774_v18  ;;  %772 = vadd.xlane.f32.xlu0 %v771_v19  ;;  %9458 = vst [vmem:[#allocation24_spill] sm:$0xff] %v5835_v4  ;;  %v939_v31 = vsub.f32 %v5404_v1, %v5835_v4  ;;  %v941_v1 = vsub.f32 %v5401_v0, %v5849_v39  ;;  %v5871_v4 = vmul.f32 0.020408163, %v5580_v42 }
 0x127   : > { %v5828_v24 = vpop.xlane.xlu1 %565  ;;  %v5830_v25 = vpop.xlane.xlu0 %562 }
 0x128   : > { %9456 = vst [vmem:[#allocation22_spill] sm:$0xff] %v5828_v24  ;;  %9457 = vst [vmem:[#allocation23_spill] sm:$0xff] %v5830_v25  ;;  %v786_v25 = vsel %vm362_vm0, %v359_v56, 0.0  ;;  %v5854_v24 = vmul.f32 0.020408163, %v5572_v36  ;;  %v944_v0 = vsub.f32 %v5421_v8, %v5871_v4  ;;  %v1085_v42 = vmul.f32 %v941_v1, %v941_v1 }
 0x129   : > { %9463 = vst [vmem:[#allocation29_spill] sm:$0xff] %v5871_v4  ;;  %v5897_v1 = vmul.f32 0.020408163, %v5596_v54 }
 0x12a   : > { %781 = vadd.xlane.f32.xlu1 %v780_v40  ;;  %778 = vadd.xlane.f32.xlu0 %v777_v41  ;;  %9462 = vst [vmem:[#allocation28_spill] sm:$0xff] %v5854_v24  ;;  %v360_v40 = vld [vmem:[%s5398_s18 + $0x470] sm:$0xff]  ;;  %v940_v41 = vsub.f32 %v5414_v5, %v5840_v57  ;;  %v942_v36 = vsub.f32 %v5407_v2, %v5854_v24 }
 0x12b   : > { %v5842_v18 = vpop.xlane.xlu1 %571  ;;  %v5844_v19 = vpop.xlane.xlu0 %568  ;;  %v789_v3 = vsel %vm362_vm0, %v360_v40, 0.0  ;;  %v1083_v5 = vmul.f32 %v939_v31, %v939_v31  ;;  %v5886_v31 = vmul.f32 0.020408163, %v5588_v48  ;;  %9467 = vst [vmem:[#allocation33_spill] sm:$0xff] %v5897_v1 }
 0x12c   : > { %9460 = vst [vmem:[#allocation26_spill] sm:$0xff] %v5844_v19  ;;  %v1086_v40 = vmul.f32 %v942_v36, %v942_v36  ;;  %v5073_v36 = vld [vmem:[%s5398_s18 + $0x38] sm:$0xff] }
 0x12d   : > { %v1227_v2 = vsel %vm362_vm0, %v1083_v5, 0.0  ;;  %9465 = vst [vmem:[#allocation31_spill] sm:$0xff] %v5886_v31  ;;  %v946_v5 = vsub.f32 %v5073_v36, %v5886_v31  ;;  %v5917_v36 = vmul.f32 0.020408163, %v5604_v60  ;;  %v5078_v60 = vld [vmem:[%s5398_s18 + $0x50] sm:$0xff] }
 0x12e   : > { %787 = vadd.xlane.f32.xlu1 %v786_v25  ;;  %784 = vadd.xlane.f32.xlu0 %v783_v38  ;;  %v5874_v25 = vmul.f32 0.020408163, %v5582_v43  ;;  %v1084_v38 = vmul.f32 %v940_v41, %v940_v41  ;;  %v5889_v41 = vmul.f32 0.020408163, %v5590_v49  ;;  %v1236_v48 = vsel %vm362_vm0, %v1086_v40, 0.0 }
 0x12f   : > { %v5860_v19 = vpop.xlane.xlu1 %577  ;;  %v5862_v56 = vpop.xlane.xlu0 %574  ;;  %v1233_v49 = vsel %vm362_vm0, %v1085_v42, 0.0  ;;  %v5076_v42 = vld [vmem:[%s5398_s18 + $0x40] sm:$0xff]  ;;  %9469 = vst [vmem:[#allocation35_spill] sm:$0xff] %v5917_v36 }
 0x130   : > { %9464 = vst [vmem:[#allocation30_spill] sm:$0xff] %v5874_v25  ;;  %v943_v43 = vsub.f32 %v5424_v9, %v5874_v25  ;;  %9466 = vst [vmem:[#allocation32_spill] sm:$0xff] %v5889_v41  ;;  %v5900_v9 = vmul.f32 0.020408163, %v5598_v55  ;;  %v5075_v55 = vld [vmem:[%s5398_s18 + $0x48] sm:$0xff] }
 0x131   : > { %v948_v40 = vsub.f32 %v5075_v55, %v5897_v1  ;;  %v5077_v1 = vld [vmem:[%s5398_s18 + $0x58] sm:$0xff] }
 0x132   : > { %793 = vadd.xlane.f32.xlu1 %v792_v30  ;;  %790 = vadd.xlane.f32.xlu0 %v789_v3  ;;  %v1230_v30 = vsel %vm362_vm0, %v1084_v38, 0.0  ;;  %9468 = vst [vmem:[#allocation34_spill] sm:$0xff] %v5900_v9  ;;  %v5074_v38 = vld [vmem:[%s5398_s18 + $0x30] sm:$0xff]  ;;  %v1087_v25 = vmul.f32 %v943_v43, %v943_v43  ;;  %v947_v4 = vsub.f32 %v5076_v42, %v5900_v9 }
 0x133   : > { %v5876_v57 = vpop.xlane.xlu1 %583  ;;  %v5878_v37 = vpop.xlane.xlu0 %580  ;;  %v950_v42 = vsub.f32 %v5077_v1, %v5917_v36  ;;  %v1092_v9 = vmul.f32 %v948_v40, %v948_v40 }
 0x135   : > { %v1254_v40 = vsel %vm362_vm0, %v1092_v9, 0.0 }
 0x136   : > { %1231 = vadd.xlane.f32.xlu1 %v1230_v30  ;;  %1228 = vadd.xlane.f32.xlu0 %v1227_v2  ;;  %v945_v2 = vsub.f32 %v5074_v38, %v5889_v41  ;;  %v1088_v30 = vmul.f32 %v944_v0, %v944_v0  ;;  %v5920_v0 = vmul.f32 0.020408163, %v5606_v61 }
 0x137   : > { %v5892_v8 = vpop.xlane.xlu1 %589  ;;  %v5894_v3 = vpop.xlane.xlu0 %586 }
 0x138   : > { %9470 = vst [vmem:[#allocation36_spill] sm:$0xff] %v5920_v0  ;;  %v1242_v43 = vsel %vm362_vm0, %v1088_v30, 0.0  ;;  %v1089_v38 = vmul.f32 %v945_v2, %v945_v2  ;;  %v949_v61 = vsub.f32 %v5078_v60, %v5920_v0  ;;  %v1091_v30 = vmul.f32 %v947_v4, %v947_v4  ;;  %v5079_v0 = vld [vmem:[%s5398_s18 + $0x68] sm:$0xff] }
 0x139   : > { %v1094_v60 = vmul.f32 %v950_v42, %v950_v42 }
 0x13a   : > { %1237 = vadd.xlane.f32.xlu1 %v1236_v48  ;;  %1234 = vadd.xlane.f32.xlu0 %v1233_v49  ;;  %v1239_v48 = vsel %vm362_vm0, %v1087_v25, 0.0  ;;  %v1090_v49 = vmul.f32 %v946_v5, %v946_v5  ;;  %v5933_v25 = vmul.f32 0.020408163, %v5612_v6  ;;  %v5936_v5 = vmul.f32 0.020408163, %v5614_v7 }
 0x13b   : > { %v5908_v54 = vpop.xlane.xlu1 %595  ;;  %v5910_v39 = vpop.xlane.xlu0 %592  ;;  %v1251_v4 = vsel %vm362_vm0, %v1091_v30, 0.0  ;;  %v1093_v6 = vmul.f32 %v949_v61, %v949_v61  ;;  %v5961_v61 = vmul.f32 0.020408163, %v5628_v20 }
 0x13c   : > { %9471 = vst [vmem:[#allocation37_spill] sm:$0xff] %v5933_v25  ;;  %9472 = vst [vmem:[#allocation38_spill] sm:$0xff] %v5936_v5  ;;  %v1248_v2 = vsel %vm362_vm0, %v1090_v49, 0.0  ;;  %v952_v7 = vsub.f32 %v5079_v0, %v5933_v25  ;;  %v5080_v49 = vld [vmem:[%s5398_s18 + $0x60] sm:$0xff]  ;;  %v5964_v0 = vmul.f32 0.020408163, %v5630_v21 }
 0x13d   : > { %9475 = vst [vmem:[#allocation41_spill] sm:$0xff] %v5961_v61  ;;  %v1257_v30 = vsel %vm362_vm0, %v1093_v6, 0.0  ;;  %v5083_v21 = vld [vmem:[%s5398_s18 + $0x88] sm:$0xff]  ;;  %v5084_v6 = vld [vmem:[%s5398_s18 + $0x80] sm:$0xff] }
 0x13e   : > { %1243 = vadd.xlane.f32.xlu1 %v1242_v43  ;;  %1240 = vadd.xlane.f32.xlu0 %v1239_v48  ;;  %v1245_v43 = vsel %vm362_vm0, %v1089_v38, 0.0  ;;  %v951_v38 = vsub.f32 %v5080_v49, %v5936_v5  ;;  %9476 = vst [vmem:[#allocation42_spill] sm:$0xff] %v5964_v0  ;;  %v1096_v5 = vmul.f32 %v952_v7, %v952_v7  ;;  %v5984_v7 = vmul.f32 0.020408163, %v5638_v27 }
 0x13f   : > { %v5924_v41 = vpop.xlane.xlu1 %601  ;;  %v5926_v55 = vpop.xlane.xlu0 %598  ;;  %v955_v31 = vsub.f32 %v5084_v6, %v5964_v0 }
 0x140   : > { %v1095_v25 = vmul.f32 %v951_v38, %v951_v38  ;;  %9478 = vst [vmem:[#allocation44_spill] sm:$0xff] %v5984_v7  ;;  %v1266_v38 = vsel %vm362_vm0, %v1096_v5, 0.0 }
 0x141   : > { %v1099_v5 = vmul.f32 %v955_v31, %v955_v31 }
 0x142   : > { %1249 = vadd.xlane.f32.xlu1 %v1248_v2  ;;  %1246 = vadd.xlane.f32.xlu0 %v1245_v43  ;;  %v5951_v2 = vmul.f32 0.020408163, %v5620_v14  ;;  %v5954_v43 = vmul.f32 0.020408163, %v5622_v15  ;;  %v1260_v14 = vsel %vm362_vm0, %v1094_v60, 0.0  ;;  %v5081_v15 = vld [vmem:[%s5398_s18 + $0x78] sm:$0xff]  ;;  %v956_v60 = vsub.f32 %v5083_v21, %v5961_v61 }
 0x143   : > { %v5940_v1 = vpop.xlane.xlu1 %607  ;;  %v5942_v48 = vpop.xlane.xlu0 %604  ;;  %v5085_v61 = vld [vmem:[%s5398_s18 + $0x98] sm:$0xff]  ;;  %v1275_v31 = vsel %vm362_vm0, %v1099_v5, 0.0 }
 0x144   : > { %9473 = vst [vmem:[#allocation39_spill] sm:$0xff] %v5951_v2  ;;  %9474 = vst [vmem:[#allocation40_spill] sm:$0xff] %v5954_v43  ;;  %v1100_v0 = vmul.f32 %v956_v60, %v956_v60 }
 0x146   : > { %1255 = vadd.xlane.f32.xlu1 %v1254_v40  ;;  %1252 = vadd.xlane.f32.xlu0 %v1251_v4  ;;  %v954_v40 = vsub.f32 %v5081_v15, %v5951_v2  ;;  %v5082_v4 = vld [vmem:[%s5398_s18 + $0x70] sm:$0xff]  ;;  %v5981_v15 = vmul.f32 0.020408163, %v5636_v26  ;;  %v1278_v60 = vsel %vm362_vm0, %v1100_v0, 0.0 }
 0x147   : > { %v5956_v9 = vpop.xlane.xlu1 %613  ;;  %v5958_v42 = vpop.xlane.xlu0 %610  ;;  %v953_v49 = vsub.f32 %v5082_v4, %v5954_v43  ;;  %v5086_v26 = vld [vmem:[%s5398_s18 + $0x90] sm:$0xff] }
 0x148   : > { %9477 = vst [vmem:[#allocation43_spill] sm:$0xff] %v5981_v15  ;;  %v958_v6 = vsub.f32 %v5085_v61, %v5981_v15  ;;  %v957_v27 = vsub.f32 %v5086_v26, %v5984_v7  ;;  %v5087_v7 = vld [vmem:[%s5398_s18 + $0xa8] sm:$0xff] }
 0x149   : > { %v1097_v4 = vmul.f32 %v953_v49, %v953_v49 }
 0x14a   : > { %1261 = vadd.xlane.f32.xlu1 %v1260_v14  ;;  %1258 = vadd.xlane.f32.xlu0 %v1257_v30  ;;  %v1263_v14 = vsel %vm362_vm0, %v1095_v25, 0.0  ;;  %v1098_v30 = vmul.f32 %v954_v40, %v954_v40  ;;  %v5997_v25 = vmul.f32 0.020408163, %v5644_v34  ;;  %v6000_v40 = vmul.f32 0.020408163, %v5646_v35 }
 0x14b   : > { %v5972_v20 = vpop.xlane.xlu1 %619  ;;  %v5974_v36 = vpop.xlane.xlu0 %616  ;;  %v1102_v26 = vmul.f32 %v958_v6, %v958_v6  ;;  %v1101_v34 = vmul.f32 %v957_v27, %v957_v27  ;;  %v6025_v27 = vmul.f32 0.020408163, %v5660_v52 }
 0x14c   : > { %9479 = vst [vmem:[#allocation45_spill] sm:$0xff] %v5997_v25  ;;  %9480 = vst [vmem:[#allocation46_spill] sm:$0xff] %v6000_v40  ;;  %v1272_v49 = vsel %vm362_vm0, %v1098_v30, 0.0  ;;  %v960_v35 = vsub.f32 %v5087_v7, %v5997_v25  ;;  %v5088_v30 = vld [vmem:[%s5398_s18 + $0xa0] sm:$0xff]  ;;  %v6028_v7 = vmul.f32 0.020408163, %v5662_v53 }
 0x14d   : > { %9483 = vst [vmem:[#allocation49_spill] sm:$0xff] %v6025_v27  ;;  %v1281_v5 = vsel %vm362_vm0, %v1101_v34, 0.0  ;;  %v5091_v53 = vld [vmem:[%s5398_s18 + $0xc8] sm:$0xff]  ;;  %v5092_v34 = vld [vmem:[%s5398_s18 + $0xc0] sm:$0xff] }
 0x14e   : > { %1267 = vadd.xlane.f32.xlu1 %v1266_v38  ;;  %1264 = vadd.xlane.f32.xlu0 %v1263_v14  ;;  %v1269_v38 = vsel %vm362_vm0, %v1097_v4, 0.0  ;;  %v959_v4 = vsub.f32 %v5088_v30, %v6000_v40  ;;  %9484 = vst [vmem:[#allocation50_spill] sm:$0xff] %v6028_v7  ;;  %v1104_v40 = vmul.f32 %v960_v35, %v960_v35  ;;  %v6048_v35 = vmul.f32 0.020408163, %v5670_v63 }
 0x14f   : > { %v5988_v43 = vpop.xlane.xlu1 %625  ;;  %v5990_v21 = vpop.xlane.xlu0 %622  ;;  %v963_v2 = vsub.f32 %v5092_v34, %v6028_v7 }
 0x150   : > { %v1103_v25 = vmul.f32 %v959_v4, %v959_v4  ;;  %9486 = vst [vmem:[#allocation52_spill] sm:$0xff] %v6048_v35  ;;  %v1290_v4 = vsel %vm362_vm0, %v1104_v40, 0.0 }
 0x151   : > { %v1107_v40 = vmul.f32 %v963_v2, %v963_v2 }
 0x152   : > { %1273 = vadd.xlane.f32.xlu1 %v1272_v49  ;;  %1270 = vadd.xlane.f32.xlu0 %v1269_v38  ;;  %v6015_v49 = vmul.f32 0.020408163, %v5652_v44  ;;  %v6018_v38 = vmul.f32 0.020408163, %v5654_v45  ;;  %v1284_v44 = vsel %vm362_vm0, %v1102_v26, 0.0  ;;  %v5089_v45 = vld [vmem:[%s5398_s18 + $0xb8] sm:$0xff]  ;;  %v964_v26 = vsub.f32 %v5091_v53, %v6025_v27 }
 0x153   : > { %v6004_v61 = vpop.xlane.xlu1 %631  ;;  %v6006_v14 = vpop.xlane.xlu0 %628  ;;  %v5093_v27 = vld [vmem:[%s5398_s18 + $0xd8] sm:$0xff]  ;;  %v1299_v2 = vsel %vm362_vm0, %v1107_v40, 0.0 }
 0x154   : > { %9481 = vst [vmem:[#allocation47_spill] sm:$0xff] %v6015_v49  ;;  %9482 = vst [vmem:[#allocation48_spill] sm:$0xff] %v6018_v38  ;;  %v1108_v7 = vmul.f32 %v964_v26, %v964_v26 }
 0x156   : > { %1279 = vadd.xlane.f32.xlu1 %v1278_v60  ;;  %1276 = vadd.xlane.f32.xlu0 %v1275_v31  ;;  %v962_v60 = vsub.f32 %v5089_v45, %v6015_v49  ;;  %v5090_v31 = vld [vmem:[%s5398_s18 + $0xb0] sm:$0xff]  ;;  %v6045_v45 = vmul.f32 0.020408163, %v5668_v62  ;;  %v1302_v26 = vsel %vm362_vm0, %v1108_v7, 0.0 }
 0x157   : > { %v6020_v0 = vpop.xlane.xlu1 %637  ;;  %v6022_v6 = vpop.xlane.xlu0 %634  ;;  %v961_v30 = vsub.f32 %v5090_v31, %v6018_v38  ;;  %v5094_v62 = vld [vmem:[%s5398_s18 + $0xd0] sm:$0xff] }
 0x158   : > { %9485 = vst [vmem:[#allocation51_spill] sm:$0xff] %v6045_v45  ;;  %v966_v34 = vsub.f32 %v5093_v27, %v6045_v45  ;;  %v965_v63 = vsub.f32 %v5094_v62, %v6048_v35  ;;  %v5095_v35 = vld [vmem:[%s5398_s18 + $0xe8] sm:$0xff] }
 0x159   : > { %v1105_v31 = vmul.f32 %v961_v30, %v961_v30 }
 0x15a   : > { %1285 = vadd.xlane.f32.xlu1 %v1284_v44  ;;  %1282 = vadd.xlane.f32.xlu0 %v1281_v5  ;;  %v1287_v44 = vsel %vm362_vm0, %v1103_v25, 0.0  ;;  %v1106_v5 = vmul.f32 %v962_v60, %v962_v60  ;;  %v6061_v25 = vmul.f32 0.020408163, %v5676_v12  ;;  %v6064_v60 = vmul.f32 0.020408163, %v5678_v13 }
 0x15b   : > { %v6036_v52 = vpop.xlane.xlu1 %643  ;;  %v6038_v15 = vpop.xlane.xlu0 %640  ;;  %v1110_v62 = vmul.f32 %v966_v34, %v966_v34  ;;  %v1109_v12 = vmul.f32 %v965_v63, %v965_v63  ;;  %v6089_v63 = vmul.f32 0.020408163, %v5692_v32 }
 0x15c   : > { %9487 = vst [vmem:[#allocation53_spill] sm:$0xff] %v6061_v25  ;;  %9488 = vst [vmem:[#allocation54_spill] sm:$0xff] %v6064_v60  ;;  %v1296_v30 = vsel %vm362_vm0, %v1106_v5, 0.0  ;;  %v968_v13 = vsub.f32 %v5095_v35, %v6061_v25  ;;  %v5096_v5 = vld [vmem:[%s5398_s18 + $0xe0] sm:$0xff]  ;;  %v6092_v35 = vmul.f32 0.020408163, %v5694_v33 }
 0x15d   : > { %9491 = vst [vmem:[#allocation57_spill] sm:$0xff] %v6089_v63  ;;  %v1305_v40 = vsel %vm362_vm0, %v1109_v12, 0.0  ;;  %v5099_v33 = vld [vmem:[%s5398_s18 + $0x108] sm:$0xff]  ;;  %v5100_v12 = vld [vmem:[%s5398_s18 + $0x100] sm:$0xff] }
 0x15e   : > { %1291 = vadd.xlane.f32.xlu1 %v1290_v4  ;;  %1288 = vadd.xlane.f32.xlu0 %v1287_v44  ;;  %v1293_v4 = vsel %vm362_vm0, %v1105_v31, 0.0  ;;  %v967_v31 = vsub.f32 %v5096_v5, %v6064_v60  ;;  %9492 = vst [vmem:[#allocation58_spill] sm:$0xff] %v6092_v35  ;;  %v1112_v60 = vmul.f32 %v968_v13, %v968_v13  ;;  %v6112_v13 = vmul.f32 0.020408163, %v5702_v47 }
 0x15f   : > { %v6052_v38 = vpop.xlane.xlu1 %649  ;;  %v6054_v53 = vpop.xlane.xlu0 %646  ;;  %v971_v49 = vsub.f32 %v5100_v12, %v6092_v35 }
 0x160   : > { %v1111_v25 = vmul.f32 %v967_v31, %v967_v31  ;;  %9494 = vst [vmem:[#allocation60_spill] sm:$0xff] %v6112_v13  ;;  %v1314_v31 = vsel %vm362_vm0, %v1112_v60, 0.0 }
 0x161   : > { %v1115_v60 = vmul.f32 %v971_v49, %v971_v49 }
 0x162   : > { %1297 = vadd.xlane.f32.xlu1 %v1296_v30  ;;  %1294 = vadd.xlane.f32.xlu0 %v1293_v4  ;;  %v6079_v30 = vmul.f32 0.020408163, %v5684_v22  ;;  %v6082_v4 = vmul.f32 0.020408163, %v5686_v23  ;;  %v1308_v22 = vsel %vm362_vm0, %v1110_v62, 0.0  ;;  %v5097_v23 = vld [vmem:[%s5398_s18 + $0xf8] sm:$0xff]  ;;  %v972_v62 = vsub.f32 %v5099_v33, %v6089_v63 }
 0x163   : > { %v6068_v27 = vpop.xlane.xlu1 %655  ;;  %v6070_v44 = vpop.xlane.xlu0 %652  ;;  %v5101_v63 = vld [vmem:[%s5398_s18 + $0x118] sm:$0xff]  ;;  %v1323_v49 = vsel %vm362_vm0, %v1115_v60, 0.0 }
 0x164   : > { %9489 = vst [vmem:[#allocation55_spill] sm:$0xff] %v6079_v30  ;;  %9490 = vst [vmem:[#allocation56_spill] sm:$0xff] %v6082_v4  ;;  %v1116_v35 = vmul.f32 %v972_v62, %v972_v62 }
 0x166   : > { %1303 = vadd.xlane.f32.xlu1 %v1302_v26  ;;  %1300 = vadd.xlane.f32.xlu0 %v1299_v2  ;;  %v970_v26 = vsub.f32 %v5097_v23, %v6079_v30  ;;  %v5098_v2 = vld [vmem:[%s5398_s18 + $0xf0] sm:$0xff]  ;;  %v6109_v23 = vmul.f32 0.020408163, %v5700_v46  ;;  %v1326_v62 = vsel %vm362_vm0, %v1116_v35, 0.0 }
 0x167   : > { %v6084_v7 = vpop.xlane.xlu1 %661  ;;  %v6086_v34 = vpop.xlane.xlu0 %658  ;;  %v969_v5 = vsub.f32 %v5098_v2, %v6082_v4  ;;  %v5102_v46 = vld [vmem:[%s5398_s18 + $0x110] sm:$0xff] }
 0x168   : > { %9493 = vst [vmem:[#allocation59_spill] sm:$0xff] %v6109_v23  ;;  %v974_v12 = vsub.f32 %v5101_v63, %v6109_v23  ;;  %v973_v47 = vsub.f32 %v5102_v46, %v6112_v13  ;;  %v5103_v13 = vld [vmem:[%s5398_s18 + $0x128] sm:$0xff] }
 0x169   : > { %v1113_v2 = vmul.f32 %v969_v5, %v969_v5 }
 0x16a   : > { %1309 = vadd.xlane.f32.xlu1 %v1308_v22  ;;  %1306 = vadd.xlane.f32.xlu0 %v1305_v40  ;;  %v1311_v22 = vsel %vm362_vm0, %v1111_v25, 0.0  ;;  %v1114_v40 = vmul.f32 %v970_v26, %v970_v26  ;;  %v6125_v25 = vmul.f32 0.020408163, %v5708_v58  ;;  %v6128_v26 = vmul.f32 0.020408163, %v5710_v59 }
 0x16b   : > { %v6100_v32 = vpop.xlane.xlu1 %667  ;;  %v6102_v45 = vpop.xlane.xlu0 %664  ;;  %v1118_v46 = vmul.f32 %v974_v12, %v974_v12  ;;  %v1117_v58 = vmul.f32 %v973_v47, %v973_v47  ;;  %v6153_v47 = vmul.f32 0.020408163, %v5724_v28 }
 0x16c   : > { %9495 = vst [vmem:[#allocation61_spill] sm:$0xff] %v6125_v25  ;;  %9496 = vst [vmem:[#allocation62_spill] sm:$0xff] %v6128_v26  ;;  %v1320_v5 = vsel %vm362_vm0, %v1114_v40, 0.0  ;;  %v976_v59 = vsub.f32 %v5103_v13, %v6125_v25  ;;  %v5104_v40 = vld [vmem:[%s5398_s18 + $0x120] sm:$0xff]  ;;  %v6156_v13 = vmul.f32 0.020408163, %v5726_v29 }
 0x16d   : > { %9499 = vst [vmem:[#allocation65_spill] sm:$0xff] %v6153_v47  ;;  %v1329_v60 = vsel %vm362_vm0, %v1117_v58, 0.0  ;;  %v5107_v29 = vld [vmem:[%s5398_s18 + $0x148] sm:$0xff]  ;;  %v5108_v58 = vld [vmem:[%s5398_s18 + $0x140] sm:$0xff] }
 0x16e   : > { %1315 = vadd.xlane.f32.xlu1 %v1314_v31  ;;  %1312 = vadd.xlane.f32.xlu0 %v1311_v22  ;;  %v1317_v31 = vsel %vm362_vm0, %v1113_v2, 0.0  ;;  %v975_v2 = vsub.f32 %v5104_v40, %v6128_v26  ;;  %9500 = vst [vmem:[#allocation66_spill] sm:$0xff] %v6156_v13  ;;  %v1120_v26 = vmul.f32 %v976_v59, %v976_v59  ;;  %v6176_v59 = vmul.f32 0.020408163, %v5734_v51 }
 0x16f   : > { %v6116_v4 = vpop.xlane.xlu1 %673  ;;  %v6118_v33 = vpop.xlane.xlu0 %670  ;;  %v979_v30 = vsub.f32 %v5108_v58, %v6156_v13 }
 0x170   : > { %v1119_v25 = vmul.f32 %v975_v2, %v975_v2  ;;  %9502 = vst [vmem:[#allocation68_spill] sm:$0xff] %v6176_v59  ;;  %v1338_v2 = vsel %vm362_vm0, %v1120_v26, 0.0 }
 0x171   : > { %v1123_v26 = vmul.f32 %v979_v30, %v979_v30 }
 0x172   : > { %1321 = vadd.xlane.f32.xlu1 %v1320_v5  ;;  %1318 = vadd.xlane.f32.xlu0 %v1317_v31  ;;  %v6143_v5 = vmul.f32 0.020408163, %v5716_v16  ;;  %v6146_v31 = vmul.f32 0.020408163, %v5718_v17  ;;  %v1332_v16 = vsel %vm362_vm0, %v1118_v46, 0.0  ;;  %v5105_v17 = vld [vmem:[%s5398_s18 + $0x138] sm:$0xff]  ;;  %v980_v46 = vsub.f32 %v5107_v29, %v6153_v47 }
 0x173   : > { %v6132_v63 = vpop.xlane.xlu1 %679  ;;  %v6134_v22 = vpop.xlane.xlu0 %676  ;;  %v5109_v47 = vld [vmem:[%s5398_s18 + $0x158] sm:$0xff]  ;;  %v1347_v30 = vsel %vm362_vm0, %v1123_v26, 0.0 }
 0x174   : > { %9497 = vst [vmem:[#allocation63_spill] sm:$0xff] %v6143_v5  ;;  %9498 = vst [vmem:[#allocation64_spill] sm:$0xff] %v6146_v31  ;;  %v1124_v13 = vmul.f32 %v980_v46, %v980_v46 }
 0x176   : > { %1327 = vadd.xlane.f32.xlu1 %v1326_v62  ;;  %1324 = vadd.xlane.f32.xlu0 %v1323_v49  ;;  %v978_v62 = vsub.f32 %v5105_v17, %v6143_v5  ;;  %v5106_v49 = vld [vmem:[%s5398_s18 + $0x130] sm:$0xff]  ;;  %v6173_v17 = vmul.f32 0.020408163, %v5732_v50  ;;  %v1350_v46 = vsel %vm362_vm0, %v1124_v13, 0.0 }
 0x177   : > { %v6148_v35 = vpop.xlane.xlu1 %685  ;;  %v6150_v12 = vpop.xlane.xlu0 %682  ;;  %v977_v40 = vsub.f32 %v5106_v49, %v6146_v31  ;;  %v5110_v50 = vld [vmem:[%s5398_s18 + $0x150] sm:$0xff] }
 0x178   : > { %9501 = vst [vmem:[#allocation67_spill] sm:$0xff] %v6173_v17  ;;  %v982_v58 = vsub.f32 %v5109_v47, %v6173_v17  ;;  %v981_v51 = vsub.f32 %v5110_v50, %v6176_v59  ;;  %v5111_v59 = vld [vmem:[%s5398_s18 + $0x168] sm:$0xff] }
 0x179   : > { %v1121_v49 = vmul.f32 %v977_v40, %v977_v40  ;;  %v9508_v17 = vld [vmem:[#allocation3_spill] sm:$0xff] }
 0x17a   : > { %1333 = vadd.xlane.f32.xlu1 %v1332_v16  ;;  %1330 = vadd.xlane.f32.xlu0 %v1329_v60  ;;  %v1335_v16 = vsel %vm362_vm0, %v1119_v25, 0.0  ;;  %v1122_v60 = vmul.f32 %v978_v62, %v978_v62  ;;  %v6189_v25 = vmul.f32 0.020408163, %v5740_v10  ;;  %v6192_v62 = vmul.f32 0.020408163, %v5742_v11 }
 0x17b   : > { %v6164_v28 = vpop.xlane.xlu1 %691  ;;  %v6166_v23 = vpop.xlane.xlu0 %688  ;;  %v1126_v50 = vmul.f32 %v982_v58, %v982_v58  ;;  %v1125_v10 = vmul.f32 %v981_v51, %v981_v51  ;;  %v6210_v5 = vmul.f32 0.020408163, %v9508_v17  ;;  %v9512_v51 = vld [vmem:[#allocation4_spill] sm:$0xff]  ;;  %v5113_v17 = vld [vmem:[%s5398_s18 + $0x178] sm:$0xff] }
 0x17c   : > { %9503 = vst [vmem:[#allocation69_spill] sm:$0xff] %v6189_v25  ;;  %9504 = vst [vmem:[#allocation70_spill] sm:$0xff] %v6192_v62  ;;  %v1344_v40 = vsel %vm362_vm0, %v1122_v60, 0.0  ;;  %v984_v11 = vsub.f32 %v5111_v59, %v6189_v25  ;;  %v5112_v60 = vld [vmem:[%s5398_s18 + $0x160] sm:$0xff]  ;;  %v6217_v26 = vmul.f32 0.020408163, %v9512_v51 }
 0x17d   : > { %9509 = vst [vmem:[#allocation3_spill] sm:$0xff] %v6210_v5  ;;  %v9514_v59 = vld [vmem:[#allocation5_spill] sm:$0xff] }
 0x17e   : > { %1339 = vadd.xlane.f32.xlu1 %v1338_v2  ;;  %1336 = vadd.xlane.f32.xlu0 %v1335_v16  ;;  %v1341_v2 = vsel %vm362_vm0, %v1121_v49, 0.0  ;;  %v983_v49 = vsub.f32 %v5112_v60, %v6192_v62  ;;  %9513 = vst [vmem:[#allocation4_spill] sm:$0xff] %v6217_v26  ;;  %v6220_v25 = vmul.f32 0.020408163, %v9514_v59  ;;  %v1356_v60 = vsel %vm362_vm0, %v1126_v50, 0.0  ;;  %v5115_v59 = vld [vmem:[%s5398_s18 + $0x188] sm:$0xff] }
 0x17f   : > { %v6180_v31 = vpop.xlane.xlu1 %697  ;;  %v6182_v29 = vpop.xlane.xlu0 %694  ;;  %v1128_v24 = vmul.f32 %v984_v11, %v984_v11  ;;  %v988_v50 = vsub.f32 %v5115_v59, %v6217_v26  ;;  %v5117_v26 = vld [vmem:[%s5398_s18 + $0x198] sm:$0xff] }
 0x180   : > { %9515 = vst [vmem:[#allocation5_spill] sm:$0xff] %v6220_v25 }
 0x182   : > { %1345 = vadd.xlane.f32.xlu1 %v1344_v40  ;;  %1342 = vadd.xlane.f32.xlu0 %v1341_v2  ;;  %v9506_v40 = vld [vmem:[#allocation2_spill] sm:$0xff] }
 0x183   : > { %v6196_v47 = vpop.xlane.xlu1 %703  ;;  %v6198_v16 = vpop.xlane.xlu0 %700  ;;  %v6207_v2 = vmul.f32 0.020408163, %v9506_v40  ;;  %v1353_v40 = vsel %vm362_vm0, %v1125_v10, 0.0  ;;  %v5116_v10 = vld [vmem:[%s5398_s18 + $0x180] sm:$0xff] }
 0x184   : > { %9505 = vst [vmem:[#allocation71_spill] sm:$0xff] %v6198_v16  ;;  %v987_v16 = vsub.f32 %v5116_v10, %v6220_v25  ;;  %v1132_v25 = vmul.f32 %v988_v50, %v988_v50 }
 0x185   : > { %9507 = vst [vmem:[#allocation2_spill] sm:$0xff] %v6207_v2 }
 0x186   : > { %1351 = vadd.xlane.f32.xlu1 %v1350_v46  ;;  %1348 = vadd.xlane.f32.xlu0 %v1347_v30  ;;  %v986_v46 = vsub.f32 %v5113_v17, %v6207_v2  ;;  %v5114_v30 = vld [vmem:[%s5398_s18 + $0x170] sm:$0xff]  ;;  %v9518_v17 = vld [vmem:[#allocation6_spill] sm:$0xff]  ;;  %v1374_v50 = vsel %vm362_vm0, %v1132_v25, 0.0 }
 0x187   : > { %v6212_v13 = vpop.xlane.xlu1 %709  ;;  %v6214_v58 = vpop.xlane.xlu0 %706  ;;  %v985_v62 = vsub.f32 %v5114_v30, %v6210_v5  ;;  %v6237_v2 = vmul.f32 0.020408163, %v9518_v17  ;;  %v9520_v30 = vld [vmem:[#allocation7_spill] sm:$0xff]  ;;  %v5118_v17 = vld [vmem:[%s5398_s18 + $0x190] sm:$0xff] }
 0x188   : > { %9510 = vst [vmem:[#allocation72_spill] sm:$0xff] %v6212_v13  ;;  %9511 = vst [vmem:[#allocation73_spill] sm:$0xff] %v6214_v58  ;;  %v1127_v13 = vmul.f32 %v983_v49, %v983_v49  ;;  %v6240_v11 = vmul.f32 0.020408163, %v9520_v30  ;;  %v1362_v49 = vsel %vm362_vm0, %v1128_v24, 0.0  ;;  %v1131_v24 = vmul.f32 %v987_v16, %v987_v16 }
 0x189   : > { %9519 = vst [vmem:[#allocation6_spill] sm:$0xff] %v6237_v2  ;;  %v1129_v5 = vmul.f32 %v985_v62, %v985_v62  ;;  %v990_v10 = vsub.f32 %v5117_v26, %v6237_v2  ;;  %v9526_v62 = vld [vmem:[#allocation9_spill] sm:$0xff] }
 0x18a   : > { %1357 = vadd.xlane.f32.xlu1 %v1356_v60  ;;  %1354 = vadd.xlane.f32.xlu0 %v1353_v40  ;;  %9521 = vst [vmem:[#allocation7_spill] sm:$0xff] %v6240_v11  ;;  %v1359_v60 = vsel %vm362_vm0, %v1127_v13, 0.0  ;;  %v1130_v40 = vmul.f32 %v986_v46, %v986_v46  ;;  %v989_v30 = vsub.f32 %v5118_v17, %v6240_v11  ;;  %v6256_v46 = vmul.f32 0.020408163, %v9526_v62  ;;  %v5119_v11 = vld [vmem:[%s5398_s18 + $0x1a8] sm:$0xff] }
 0x18b   : > { %v6228_v51 = vpop.xlane.xlu1 %715  ;;  %v6230_v58 = vpop.xlane.xlu0 %712  ;;  %v1371_v16 = vsel %vm362_vm0, %v1131_v24, 0.0  ;;  %v1134_v17 = vmul.f32 %v990_v10, %v990_v10 }
 0x18c   : > { %9516 = vst [vmem:[#allocation74_spill] sm:$0xff] %v6228_v51  ;;  %9517 = vst [vmem:[#allocation75_spill] sm:$0xff] %v6230_v58  ;;  %v9524_v51 = vld [vmem:[#allocation8_spill] sm:$0xff] }
 0x18d   : > { %v6253_v13 = vmul.f32 0.020408163, %v9524_v51  ;;  %9527 = vst [vmem:[#allocation9_spill] sm:$0xff] %v6256_v46  ;;  %v1133_v51 = vmul.f32 %v989_v30, %v989_v30  ;;  %v9536_v30 = vld [vmem:[#allocation12_spill] sm:$0xff] }
 0x18e   : > { %1363 = vadd.xlane.f32.xlu1 %v1362_v49  ;;  %1360 = vadd.xlane.f32.xlu0 %v1359_v60  ;;  %v1368_v49 = vsel %vm362_vm0, %v1130_v40, 0.0  ;;  %v1365_v60 = vsel %vm362_vm0, %v1129_v5, 0.0  ;;  %v5120_v40 = vld [vmem:[%s5398_s18 + $0x1a0] sm:$0xff]  ;;  %v6281_v24 = vmul.f32 0.020408163, %v9536_v30 }
 0x18f   : > { %v6244_v58 = vpop.xlane.xlu1 %721  ;;  %v6246_v59 = vpop.xlane.xlu0 %718  ;;  %9525 = vst [vmem:[#allocation8_spill] sm:$0xff] %v6253_v13  ;;  %v992_v62 = vsub.f32 %v5119_v11, %v6253_v13  ;;  %v991_v5 = vsub.f32 %v5120_v40, %v6256_v46  ;;  %v9538_v11 = vld [vmem:[#allocation13_spill] sm:$0xff]  ;;  %v1380_v40 = vsel %vm362_vm0, %v1134_v17, 0.0 }
 0x190   : > { %9522 = vst [vmem:[#allocation76_spill] sm:$0xff] %v6244_v58  ;;  %9523 = vst [vmem:[#allocation77_spill] sm:$0xff] %v6246_v59  ;;  %v6284_v13 = vmul.f32 0.020408163, %v9538_v11  ;;  %v5123_v11 = vld [vmem:[%s5398_s18 + $0x1c8] sm:$0xff] }
 0x191   : > { %9537 = vst [vmem:[#allocation12_spill] sm:$0xff] %v6281_v24  ;;  %v996_v17 = vsub.f32 %v5123_v11, %v6281_v24  ;;  %v5125_v24 = vld [vmem:[%s5398_s18 + $0x1d8] sm:$0xff] }
 0x192   : > { %1369 = vadd.xlane.f32.xlu1 %v1368_v49  ;;  %1366 = vadd.xlane.f32.xlu0 %v1365_v60  ;;  %v9530_v49 = vld [vmem:[#allocation10_spill] sm:$0xff]  ;;  %9539 = vst [vmem:[#allocation13_spill] sm:$0xff] %v6284_v13 }
 0x193   : > { %v6260_v26 = vpop.xlane.xlu1 %727  ;;  %v6262_v2 = vpop.xlane.xlu0 %724  ;;  %v6271_v60 = vmul.f32 0.020408163, %v9530_v49  ;;  %v1377_v49 = vsel %vm362_vm0, %v1133_v51, 0.0  ;;  %v5124_v51 = vld [vmem:[%s5398_s18 + $0x1c0] sm:$0xff] }
 0x194   : > { %9528 = vst [vmem:[#allocation78_spill] sm:$0xff] %v6260_v26  ;;  %9529 = vst [vmem:[#allocation79_spill] sm:$0xff] %v6262_v2  ;;  %v9532_v26 = vld [vmem:[#allocation11_spill] sm:$0xff]  ;;  %v1135_v2 = vmul.f32 %v991_v5, %v991_v5  ;;  %v995_v58 = vsub.f32 %v5124_v51, %v6284_v13  ;;  %v1140_v13 = vmul.f32 %v996_v17, %v996_v17 }
 0x195   : > { %9531 = vst [vmem:[#allocation10_spill] sm:$0xff] %v6271_v60  ;;  %v6274_v59 = vmul.f32 0.020408163, %v9532_v26  ;;  %v5121_v26 = vld [vmem:[%s5398_s18 + $0x1b8] sm:$0xff] }
 0x196   : > { %1375 = vadd.xlane.f32.xlu1 %v1374_v50  ;;  %1372 = vadd.xlane.f32.xlu0 %v1371_v16  ;;  %v994_v50 = vsub.f32 %v5121_v26, %v6271_v60  ;;  %v5122_v16 = vld [vmem:[%s5398_s18 + $0x1b0] sm:$0xff]  ;;  %v9542_v26 = vld [vmem:[#allocation14_spill] sm:$0xff]  ;;  %v1398_v17 = vsel %vm362_vm0, %v1140_v13, 0.0 }
 0x197   : > { %9533 = vst [vmem:[#allocation11_spill] sm:$0xff] %v6274_v59  ;;  %v6276_v25 = vpop.xlane.xlu1 %733  ;;  %v6278_v10 = vpop.xlane.xlu0 %730  ;;  %v993_v46 = vsub.f32 %v5122_v16, %v6274_v59  ;;  %v6301_v60 = vmul.f32 0.020408163, %v9542_v26  ;;  %v9544_v16 = vld [vmem:[#allocation15_spill] sm:$0xff]  ;;  %v5126_v26 = vld [vmem:[%s5398_s18 + $0x1d0] sm:$0xff] }
 0x198   : > { %9534 = vst [vmem:[#allocation80_spill] sm:$0xff] %v6276_v25  ;;  %9535 = vst [vmem:[#allocation81_spill] sm:$0xff] %v6278_v10  ;;  %v1136_v25 = vmul.f32 %v992_v62, %v992_v62  ;;  %v6304_v62 = vmul.f32 0.020408163, %v9544_v16 }
 0x199   : > { %9543 = vst [vmem:[#allocation14_spill] sm:$0xff] %v6301_v60  ;;  %v1137_v59 = vmul.f32 %v993_v46, %v993_v46  ;;  %v998_v51 = vsub.f32 %v5125_v24, %v6301_v60  ;;  %v9550_v46 = vld [vmem:[#allocation17_spill] sm:$0xff] }
 0x19a   : > { %1381 = vadd.xlane.f32.xlu1 %v1380_v40  ;;  %1378 = vadd.xlane.f32.xlu0 %v1377_v49  ;;  %9545 = vst [vmem:[#allocation15_spill] sm:$0xff] %v6304_v62  ;;  %v1386_v5 = vsel %vm362_vm0, %v1136_v25, 0.0  ;;  %v1383_v40 = vsel %vm362_vm0, %v1135_v2, 0.0  ;;  %v1138_v49 = vmul.f32 %v994_v50, %v994_v50  ;;  %v997_v16 = vsub.f32 %v5126_v26, %v6304_v62  ;;  %v5127_v62 = vld [vmem:[%s5398_s18 + $0x1e8] sm:$0xff] }
 0x19b   : > { %v6292_v30 = vpop.xlane.xlu1 %739  ;;  %v6294_v10 = vpop.xlane.xlu0 %736  ;;  %v1139_v25 = vmul.f32 %v995_v58, %v995_v58  ;;  %v6320_v50 = vmul.f32 0.020408163, %v9550_v46  ;;  %v1142_v26 = vmul.f32 %v998_v51, %v998_v51 }
 0x19c   : > { %9540 = vst [vmem:[#allocation82_spill] sm:$0xff] %v6292_v30  ;;  %9541 = vst [vmem:[#allocation83_spill] sm:$0xff] %v6294_v10  ;;  %v9548_v30 = vld [vmem:[#allocation16_spill] sm:$0xff] }
 0x19d   : > { %v6317_v2 = vmul.f32 0.020408163, %v9548_v30  ;;  %9551 = vst [vmem:[#allocation17_spill] sm:$0xff] %v6320_v50  ;;  %v1395_v58 = vsel %vm362_vm0, %v1139_v25, 0.0  ;;  %v1141_v30 = vmul.f32 %v997_v16, %v997_v16  ;;  %v9560_v16 = vld [vmem:[#allocation20_spill] sm:$0xff] }
 0x19e   : > { %1387 = vadd.xlane.f32.xlu1 %v1386_v5  ;;  %1384 = vadd.xlane.f32.xlu0 %v1383_v40  ;;  %v1392_v5 = vsel %vm362_vm0, %v1138_v49, 0.0  ;;  %v1389_v40 = vsel %vm362_vm0, %v1137_v59, 0.0  ;;  %v5128_v49 = vld [vmem:[%s5398_s18 + $0x1e0] sm:$0xff]  ;;  %v6345_v25 = vmul.f32 0.020408163, %v9560_v16 }
 0x19f   : > { %v6308_v10 = vpop.xlane.xlu1 %745  ;;  %v6310_v11 = vpop.xlane.xlu0 %742  ;;  %9549 = vst [vmem:[#allocation16_spill] sm:$0xff] %v6317_v2  ;;  %v1000_v46 = vsub.f32 %v5127_v62, %v6317_v2  ;;  %v999_v59 = vsub.f32 %v5128_v49, %v6320_v50  ;;  %v9562_v62 = vld [vmem:[#allocation21_spill] sm:$0xff]  ;;  %v1404_v49 = vsel %vm362_vm0, %v1142_v26, 0.0 }
 0x1a0   : > { %9546 = vst [vmem:[#allocation84_spill] sm:$0xff] %v6308_v10  ;;  %9547 = vst [vmem:[#allocation85_spill] sm:$0xff] %v6310_v11  ;;  %v6348_v2 = vmul.f32 0.020408163, %v9562_v62  ;;  %v5131_v62 = vld [vmem:[%s5398_s18 + $0x208] sm:$0xff] }
 0x1a1   : > { %9561 = vst [vmem:[#allocation20_spill] sm:$0xff] %v6345_v25  ;;  %v1004_v26 = vsub.f32 %v5131_v62, %v6345_v25  ;;  %v5133_v25 = vld [vmem:[%s5398_s18 + $0x218] sm:$0xff] }
 0x1a2   : > { %1393 = vadd.xlane.f32.xlu1 %v1392_v5  ;;  %1390 = vadd.xlane.f32.xlu0 %v1389_v40  ;;  %v9554_v5 = vld [vmem:[#allocation18_spill] sm:$0xff]  ;;  %9563 = vst [vmem:[#allocation21_spill] sm:$0xff] %v6348_v2 }
 0x1a3   : > { %v6324_v24 = vpop.xlane.xlu1 %751  ;;  %v6326_v60 = vpop.xlane.xlu0 %748  ;;  %v6335_v40 = vmul.f32 0.020408163, %v9554_v5  ;;  %v1401_v5 = vsel %vm362_vm0, %v1141_v30, 0.0  ;;  %v5132_v30 = vld [vmem:[%s5398_s18 + $0x200] sm:$0xff] }
 0x1a4   : > { %9552 = vst [vmem:[#allocation86_spill] sm:$0xff] %v6324_v24  ;;  %9553 = vst [vmem:[#allocation87_spill] sm:$0xff] %v6326_v60  ;;  %v9556_v24 = vld [vmem:[#allocation19_spill] sm:$0xff]  ;;  %v1143_v60 = vmul.f32 %v999_v59, %v999_v59  ;;  %v1003_v10 = vsub.f32 %v5132_v30, %v6348_v2  ;;  %v1148_v2 = vmul.f32 %v1004_v26, %v1004_v26 }
 0x1a5   : > { %9555 = vst [vmem:[#allocation18_spill] sm:$0xff] %v6335_v40  ;;  %v6338_v11 = vmul.f32 0.020408163, %v9556_v24  ;;  %v5129_v24 = vld [vmem:[%s5398_s18 + $0x1f8] sm:$0xff] }
 0x1a6   : > { %1399 = vadd.xlane.f32.xlu1 %v1398_v17  ;;  %1396 = vadd.xlane.f32.xlu0 %v1395_v58  ;;  %v1002_v17 = vsub.f32 %v5129_v24, %v6335_v40  ;;  %v5130_v58 = vld [vmem:[%s5398_s18 + $0x1f0] sm:$0xff]  ;;  %v9565_v24 = vld [vmem:[#allocation22_spill] sm:$0xff]  ;;  %v1422_v26 = vsel %vm362_vm0, %v1148_v2, 0.0 }
 0x1a7   : > { %9557 = vst [vmem:[#allocation19_spill] sm:$0xff] %v6338_v11  ;;  %v6340_v13 = vpop.xlane.xlu1 %757  ;;  %v6342_v51 = vpop.xlane.xlu0 %754  ;;  %v1001_v50 = vsub.f32 %v5130_v58, %v6338_v11  ;;  %v6365_v40 = vmul.f32 0.020408163, %v9565_v24  ;;  %v9567_v58 = vld [vmem:[#allocation23_spill] sm:$0xff]  ;;  %v5134_v24 = vld [vmem:[%s5398_s18 + $0x210] sm:$0xff] }
 0x1a8   : > { %9558 = vst [vmem:[#allocation88_spill] sm:$0xff] %v6340_v13  ;;  %9559 = vst [vmem:[#allocation89_spill] sm:$0xff] %v6342_v51  ;;  %v1144_v13 = vmul.f32 %v1000_v46, %v1000_v46  ;;  %v6368_v46 = vmul.f32 0.020408163, %v9567_v58 }
 0x1a9   : > { %9566 = vst [vmem:[#allocation22_spill] sm:$0xff] %v6365_v40  ;;  %v1145_v11 = vmul.f32 %v1001_v50, %v1001_v50  ;;  %v1006_v30 = vsub.f32 %v5133_v25, %v6365_v40  ;;  %v9570_v50 = vld [vmem:[#allocation26_spill] sm:$0xff] }
 0x1aa   : > { %1405 = vadd.xlane.f32.xlu1 %v1404_v49  ;;  %1402 = vadd.xlane.f32.xlu0 %v1401_v5  ;;  %9568 = vst [vmem:[#allocation23_spill] sm:$0xff] %v6368_v46  ;;  %v1410_v59 = vsel %vm362_vm0, %v1144_v13, 0.0  ;;  %v1407_v49 = vsel %vm362_vm0, %v1143_v60, 0.0  ;;  %v1146_v5 = vmul.f32 %v1002_v17, %v1002_v17  ;;  %v1005_v58 = vsub.f32 %v5134_v24, %v6368_v46  ;;  %v5135_v46 = vld [vmem:[%s5398_s18 + $0x228] sm:$0xff] }
 0x1ab   : > { %v6356_v16 = vpop.xlane.xlu1 %763  ;;  %v6358_v51 = vpop.xlane.xlu0 %760  ;;  %v1147_v13 = vmul.f32 %v1003_v10, %v1003_v10  ;;  %v6381_v60 = vmul.f32 0.020408163, %v5842_v18  ;;  %v6384_v17 = vmul.f32 0.020408163, %v9570_v50  ;;  %v1150_v24 = vmul.f32 %v1006_v30, %v1006_v30 }
 0x1ac   : > { %9564 = vst [vmem:[#allocation90_spill] sm:$0xff] %v6358_v51  ;;  %v1149_v18 = vmul.f32 %v1005_v58, %v1005_v58  ;;  %v6409_v58 = vmul.f32 0.020408163, %v5876_v57 }
 0x1ad   : > { %9569 = vst [vmem:[#allocation91_spill] sm:$0xff] %v6381_v60  ;;  %9571 = vst [vmem:[#allocation26_spill] sm:$0xff] %v6384_v17  ;;  %v1419_v10 = vsel %vm362_vm0, %v1147_v13, 0.0  ;;  %v1008_v50 = vsub.f32 %v5135_v46, %v6381_v60  ;;  %v6412_v46 = vmul.f32 0.020408163, %v5878_v37  ;;  %v5139_v37 = vld [vmem:[%s5398_s18 + $0x248] sm:$0xff] }
 0x1ae   : > { %1411 = vadd.xlane.f32.xlu1 %v1410_v59  ;;  %1408 = vadd.xlane.f32.xlu0 %v1407_v49  ;;  %v1416_v59 = vsel %vm362_vm0, %v1146_v5, 0.0  ;;  %v1413_v49 = vsel %vm362_vm0, %v1145_v11, 0.0  ;;  %v5136_v5 = vld [vmem:[%s5398_s18 + $0x220] sm:$0xff]  ;;  %9576 = vst [vmem:[#allocation96_spill] sm:$0xff] %v6409_v58  ;;  %v1425_v13 = vsel %vm362_vm0, %v1149_v18, 0.0 }
 0x1af   : > { %v6372_v51 = vpop.xlane.xlu1 %769  ;;  %v6374_v62 = vpop.xlane.xlu0 %766  ;;  %v1007_v11 = vsub.f32 %v5136_v5, %v6384_v17  ;;  %9577 = vst [vmem:[#allocation97_spill] sm:$0xff] %v6412_v46  ;;  %v1152_v17 = vmul.f32 %v1008_v50, %v1008_v50  ;;  %v5140_v18 = vld [vmem:[%s5398_s18 + $0x240] sm:$0xff]  ;;  %v6432_v50 = vmul.f32 0.020408163, %v5894_v3 }
 0x1b1   : > { %v1151_v60 = vmul.f32 %v1007_v11, %v1007_v11  ;;  %9579 = vst [vmem:[#allocation99_spill] sm:$0xff] %v6432_v50  ;;  %v1434_v11 = vsel %vm362_vm0, %v1152_v17, 0.0 }
 0x1b2   : > { %1417 = vadd.xlane.f32.xlu1 %v1416_v59  ;;  %1414 = vadd.xlane.f32.xlu0 %v1413_v49  ;;  %v6399_v59 = vmul.f32 0.020408163, %v5860_v19  ;;  %v6402_v49 = vmul.f32 0.020408163, %v5862_v56  ;;  %v1428_v19 = vsel %vm362_vm0, %v1150_v24, 0.0  ;;  %v5137_v56 = vld [vmem:[%s5398_s18 + $0x238] sm:$0xff]  ;;  %v1012_v24 = vsub.f32 %v5139_v37, %v6409_v58 }
 0x1b3   : > { %v6388_v25 = vpop.xlane.xlu1 %775  ;;  %v6390_v40 = vpop.xlane.xlu0 %772  ;;  %v5141_v58 = vld [vmem:[%s5398_s18 + $0x258] sm:$0xff] }
 0x1b4   : > { %9572 = vst [vmem:[#allocation92_spill] sm:$0xff] %v6399_v59  ;;  %9573 = vst [vmem:[#allocation93_spill] sm:$0xff] %v6402_v49 }
 0x1b6   : > { %1423 = vadd.xlane.f32.xlu1 %v1422_v26  ;;  %1420 = vadd.xlane.f32.xlu0 %v1419_v10  ;;  %v1010_v26 = vsub.f32 %v5137_v56, %v6399_v59  ;;  %v5138_v10 = vld [vmem:[%s5398_s18 + $0x230] sm:$0xff]  ;;  %v6429_v56 = vmul.f32 0.020408163, %v5892_v8 }
 0x1b7   : > { %v6404_v2 = vpop.xlane.xlu1 %781  ;;  %v6406_v30 = vpop.xlane.xlu0 %778  ;;  %v1009_v5 = vsub.f32 %v5138_v10, %v6402_v49  ;;  %v5142_v8 = vld [vmem:[%s5398_s18 + $0x250] sm:$0xff] }
 0x1b8   : > { %9574 = vst [vmem:[#allocation94_spill] sm:$0xff] %v6404_v2  ;;  %9575 = vst [vmem:[#allocation95_spill] sm:$0xff] %v6406_v30  ;;  %v1011_v2 = vsub.f32 %v5140_v18, %v6412_v46  ;;  %v1014_v18 = vsub.f32 %v5141_v58, %v6429_v56  ;;  %v1013_v3 = vsub.f32 %v5142_v8, %v6432_v50  ;;  %v5143_v50 = vld [vmem:[%s5398_s18 + $0x268] sm:$0xff] }
 0x1b9   : > { %9578 = vst [vmem:[#allocation98_spill] sm:$0xff] %v6429_v56  ;;  %v1153_v10 = vmul.f32 %v1009_v5, %v1009_v5  ;;  %v1156_v46 = vmul.f32 %v1012_v24, %v1012_v24 }
 0x1ba   : > { %1429 = vadd.xlane.f32.xlu1 %v1428_v19  ;;  %1426 = vadd.xlane.f32.xlu0 %v1425_v13  ;;  %v1431_v19 = vsel %vm362_vm0, %v1151_v60, 0.0  ;;  %v1154_v13 = vmul.f32 %v1010_v26, %v1010_v26  ;;  %v1155_v17 = vmul.f32 %v1011_v2, %v1011_v2  ;;  %v6445_v60 = vmul.f32 0.020408163, %v5908_v54 }
 0x1bb   : > { %v6420_v57 = vpop.xlane.xlu1 %787  ;;  %v6422_v30 = vpop.xlane.xlu0 %784  ;;  %v6448_v26 = vmul.f32 0.020408163, %v5910_v39  ;;  %v1446_v24 = vsel %vm362_vm0, %v1156_v46, 0.0  ;;  %v1158_v8 = vmul.f32 %v1014_v18, %v1014_v18  ;;  %v1157_v54 = vmul.f32 %v1013_v3, %v1013_v3 }
 0x1bc   : > { %9580 = vst [vmem:[#allocation100_spill] sm:$0xff] %v6445_v60  ;;  %v1440_v5 = vsel %vm362_vm0, %v1154_v13, 0.0  ;;  %v1443_v2 = vsel %vm362_vm0, %v1155_v17, 0.0  ;;  %v1016_v39 = vsub.f32 %v5143_v50, %v6445_v60  ;;  %v5144_v13 = vld [vmem:[%s5398_s18 + $0x260] sm:$0xff]  ;;  %v6473_v3 = vmul.f32 0.020408163, %v5940_v1 }
 0x1bd   : > { %9581 = vst [vmem:[#allocation101_spill] sm:$0xff] %v6448_v26  ;;  %v6476_v50 = vmul.f32 0.020408163, %v5942_v48  ;;  %v1449_v17 = vsel %vm362_vm0, %v1157_v54, 0.0  ;;  %v5147_v48 = vld [vmem:[%s5398_s18 + $0x288] sm:$0xff]  ;;  %v5148_v54 = vld [vmem:[%s5398_s18 + $0x280] sm:$0xff] }
 0x1be   : > { %1435 = vadd.xlane.f32.xlu1 %v1434_v11  ;;  %1432 = vadd.xlane.f32.xlu0 %v1431_v19  ;;  %v1437_v11 = vsel %vm362_vm0, %v1153_v10, 0.0  ;;  %v1015_v10 = vsub.f32 %v5144_v13, %v6448_v26  ;;  %9584 = vst [vmem:[#allocation104_spill] sm:$0xff] %v6473_v3  ;;  %v1160_v26 = vmul.f32 %v1016_v39, %v1016_v39  ;;  %v6496_v39 = vmul.f32 0.020408163, %v5958_v42 }
 0x1bf   : > { %v6436_v49 = vpop.xlane.xlu1 %793  ;;  %v6438_v37 = vpop.xlane.xlu0 %790  ;;  %9585 = vst [vmem:[#allocation105_spill] sm:$0xff] %v6476_v50  ;;  %v1019_v59 = vsub.f32 %v5148_v54, %v6476_v50 }
 0x1c0   : > { %v1159_v60 = vmul.f32 %v1015_v10, %v1015_v10  ;;  %9587 = vst [vmem:[#allocation107_spill] sm:$0xff] %v6496_v39  ;;  %v1458_v10 = vsel %vm362_vm0, %v1160_v26, 0.0 }
 0x1c1   : > { %v1163_v26 = vmul.f32 %v1019_v59, %v1019_v59 }
 0x1c2   : > { %1441 = vadd.xlane.f32.xlu1 %v1440_v5  ;;  %1438 = vadd.xlane.f32.xlu0 %v1437_v11  ;;  %v6463_v5 = vmul.f32 0.020408163, %v5924_v41  ;;  %v6466_v11 = vmul.f32 0.020408163, %v5926_v55  ;;  %v1452_v41 = vsel %vm362_vm0, %v1158_v8, 0.0  ;;  %v5145_v55 = vld [vmem:[%s5398_s18 + $0x278] sm:$0xff]  ;;  %v1020_v8 = vsub.f32 %v5147_v48, %v6473_v3 }
 0x1c3   : > { %v6452_v58 = vpop.xlane.xlu1 %1231  ;;  %v6454_v19 = vpop.xlane.xlu0 %1228  ;;  %v5149_v3 = vld [vmem:[%s5398_s18 + $0x298] sm:$0xff]  ;;  %v1467_v59 = vsel %vm362_vm0, %v1163_v26, 0.0 }
 0x1c4   : > { %9582 = vst [vmem:[#allocation102_spill] sm:$0xff] %v6463_v5  ;;  %9583 = vst [vmem:[#allocation103_spill] sm:$0xff] %v6466_v11  ;;  %v1164_v50 = vmul.f32 %v1020_v8, %v1020_v8 }
 0x1c6   : > { %1447 = vadd.xlane.f32.xlu1 %v1446_v24  ;;  %1444 = vadd.xlane.f32.xlu0 %v1443_v2  ;;  %v1018_v24 = vsub.f32 %v5145_v55, %v6463_v5  ;;  %v5146_v2 = vld [vmem:[%s5398_s18 + $0x270] sm:$0xff]  ;;  %v6493_v55 = vmul.f32 0.020408163, %v5956_v9  ;;  %v1470_v8 = vsel %vm362_vm0, %v1164_v50, 0.0 }
 0x1c7   : > { %v6468_v46 = vpop.xlane.xlu1 %1237  ;;  %v6470_v18 = vpop.xlane.xlu0 %1234  ;;  %v1017_v13 = vsub.f32 %v5146_v2, %v6466_v11  ;;  %v5150_v9 = vld [vmem:[%s5398_s18 + $0x290] sm:$0xff] }
 0x1c8   : > { %9586 = vst [vmem:[#allocation106_spill] sm:$0xff] %v6493_v55  ;;  %v1022_v54 = vsub.f32 %v5149_v3, %v6493_v55  ;;  %v1021_v42 = vsub.f32 %v5150_v9, %v6496_v39  ;;  %v5151_v39 = vld [vmem:[%s5398_s18 + $0x2a8] sm:$0xff] }
 0x1c9   : > { %v1161_v2 = vmul.f32 %v1017_v13, %v1017_v13 }
 0x1ca   : > { %1453 = vadd.xlane.f32.xlu1 %v1452_v41  ;;  %1450 = vadd.xlane.f32.xlu0 %v1449_v17  ;;  %v1455_v41 = vsel %vm362_vm0, %v1159_v60, 0.0  ;;  %v1162_v17 = vmul.f32 %v1018_v24, %v1018_v24  ;;  %v6509_v60 = vmul.f32 0.020408163, %v5972_v20  ;;  %v6512_v24 = vmul.f32 0.020408163, %v5974_v36 }
 0x1cb   : > { %v6484_v1 = vpop.xlane.xlu1 %1243  ;;  %v6486_v56 = vpop.xlane.xlu0 %1240  ;;  %v1166_v9 = vmul.f32 %v1022_v54, %v1022_v54  ;;  %v1165_v20 = vmul.f32 %v1021_v42, %v1021_v42  ;;  %v6537_v42 = vmul.f32 0.020408163, %v6004_v61 }
 0x1cc   : > { %9588 = vst [vmem:[#allocation108_spill] sm:$0xff] %v6509_v60  ;;  %9589 = vst [vmem:[#allocation109_spill] sm:$0xff] %v6512_v24  ;;  %v1464_v13 = vsel %vm362_vm0, %v1162_v17, 0.0  ;;  %v1024_v36 = vsub.f32 %v5151_v39, %v6509_v60  ;;  %v5152_v17 = vld [vmem:[%s5398_s18 + $0x2a0] sm:$0xff]  ;;  %v6540_v39 = vmul.f32 0.020408163, %v6006_v14 }
 0x1cd   : > { %9592 = vst [vmem:[#allocation112_spill] sm:$0xff] %v6537_v42  ;;  %v1473_v26 = vsel %vm362_vm0, %v1165_v20, 0.0  ;;  %v5155_v14 = vld [vmem:[%s5398_s18 + $0x2c8] sm:$0xff]  ;;  %v5156_v20 = vld [vmem:[%s5398_s18 + $0x2c0] sm:$0xff] }
 0x1ce   : > { %1459 = vadd.xlane.f32.xlu1 %v1458_v10  ;;  %1456 = vadd.xlane.f32.xlu0 %v1455_v41  ;;  %v1461_v10 = vsel %vm362_vm0, %v1161_v2, 0.0  ;;  %v1023_v2 = vsub.f32 %v5152_v17, %v6512_v24  ;;  %9593 = vst [vmem:[#allocation113_spill] sm:$0xff] %v6540_v39  ;;  %v1168_v24 = vmul.f32 %v1024_v36, %v1024_v36  ;;  %v6560_v36 = vmul.f32 0.020408163, %v6022_v6 }
 0x1cf   : > { %v6500_v11 = vpop.xlane.xlu1 %1249  ;;  %v6502_v48 = vpop.xlane.xlu0 %1246  ;;  %v1027_v5 = vsub.f32 %v5156_v20, %v6540_v39 }
 0x1d0   : > { %v1167_v60 = vmul.f32 %v1023_v2, %v1023_v2  ;;  %9595 = vst [vmem:[#allocation115_spill] sm:$0xff] %v6560_v36  ;;  %v1482_v2 = vsel %vm362_vm0, %v1168_v24, 0.0  ;;  %v6573_v24 = vmul.f32 0.020408163, %v6036_v52 }
 0x1d2   : > { %1465 = vadd.xlane.f32.xlu1 %v1464_v13  ;;  %1462 = vadd.xlane.f32.xlu0 %v1461_v10  ;;  %v6527_v13 = vmul.f32 0.020408163, %v5988_v43  ;;  %v6530_v10 = vmul.f32 0.020408163, %v5990_v21  ;;  %v1476_v43 = vsel %vm362_vm0, %v1166_v9, 0.0  ;;  %v5153_v21 = vld [vmem:[%s5398_s18 + $0x2b8] sm:$0xff]  ;;  %v1028_v9 = vsub.f32 %v5155_v14, %v6537_v42 }
 0x1d3   : > { %v6516_v3 = vpop.xlane.xlu1 %1255  ;;  %v6518_v41 = vpop.xlane.xlu0 %1252  ;;  %v5157_v42 = vld [vmem:[%s5398_s18 + $0x2d8] sm:$0xff]  ;;  %9596 = vst [vmem:[#allocation116_spill] sm:$0xff] %v6573_v24 }
 0x1d4   : > { %9590 = vst [vmem:[#allocation110_spill] sm:$0xff] %v6527_v13  ;;  %9591 = vst [vmem:[#allocation111_spill] sm:$0xff] %v6530_v10  ;;  %v1172_v6 = vmul.f32 %v1028_v9, %v1028_v9  ;;  %v5363_v9 = vmov 0  }
 0x1d5   : > { %4784 = vset.pattern.permute.xlu1 %v5363_v9  ;;  %4783 = vset.pattern.permute.xlu0 %v5363_v9 }
 0x1d6   : > { %1471 = vadd.xlane.f32.xlu1 %v1470_v8  ;;  %1468 = vadd.xlane.f32.xlu0 %v1467_v59  ;;  %v1026_v8 = vsub.f32 %v5153_v21, %v6527_v13  ;;  %v5154_v59 = vld [vmem:[%s5398_s18 + $0x2b0] sm:$0xff]  ;;  %v6557_v21 = vmul.f32 0.020408163, %v6020_v0  ;;  %v1171_v13 = vmul.f32 %v1027_v5, %v1027_v5  ;;  %v1494_v52 = vsel %vm362_vm0, %v1172_v6, 0.0 }
 0x1d7   : > { %v6532_v50 = vpop.xlane.xlu1 %1261  ;;  %v6534_v54 = vpop.xlane.xlu0 %1258  ;;  %v1025_v17 = vsub.f32 %v5154_v59, %v6530_v10  ;;  %v5158_v0 = vld [vmem:[%s5398_s18 + $0x2d0] sm:$0xff] }
 0x1d8   : > { %9594 = vst [vmem:[#allocation114_spill] sm:$0xff] %v6557_v21  ;;  %v1030_v20 = vsub.f32 %v5157_v42, %v6557_v21  ;;  %v1029_v39 = vsub.f32 %v5158_v0, %v6560_v36  ;;  %v1491_v5 = vsel %vm362_vm0, %v1171_v13, 0.0  ;;  %v5159_v0 = vld [vmem:[%s5398_s18 + $0x2e8] sm:$0xff]  ;;  %v6594_v36 = vmul.f32 0.020408163, %v6054_v53  ;;  %v5161_v53 = vld [vmem:[%s5398_s18 + $0x2f8] sm:$0xff] }
 0x1d9   : > { %v1169_v59 = vmul.f32 %v1025_v17, %v1025_v17 }
 0x1da   : > { %1477 = vadd.xlane.f32.xlu1 %v1476_v43  ;;  %1474 = vadd.xlane.f32.xlu0 %v1473_v26  ;;  %v1479_v43 = vsel %vm362_vm0, %v1167_v60, 0.0  ;;  %v1170_v26 = vmul.f32 %v1026_v8, %v1026_v8  ;;  %v6576_v60 = vmul.f32 0.020408163, %v6038_v15  ;;  %v1174_v15 = vmul.f32 %v1030_v20, %v1030_v20  ;;  %9599 = vst [vmem:[#allocation119_spill] sm:$0xff] %v6594_v36 }
 0x1db   : > { %v6548_v61 = vpop.xlane.xlu1 %1267  ;;  %v6550_v55 = vpop.xlane.xlu0 %1264  ;;  %v1485_v17 = vsel %vm362_vm0, %v1169_v59, 0.0  ;;  %v5160_v59 = vld [vmem:[%s5398_s18 + $0x2e0] sm:$0xff]  ;;  %v6604_v20 = vmul.f32 0.020408163, %v6070_v44  ;;  %v5163_v44 = vld [vmem:[%s5398_s18 + $0x308] sm:$0xff] }
 0x1dc   : > { %9597 = vst [vmem:[#allocation117_spill] sm:$0xff] %v6576_v60  ;;  %v1488_v8 = vsel %vm362_vm0, %v1170_v26, 0.0  ;;  %v1032_v26 = vsub.f32 %v5159_v0, %v6573_v24 }
 0x1dd   : > { %9601 = vst [vmem:[#allocation121_spill] sm:$0xff] %v6604_v20 }
 0x1de   : > { %1483 = vadd.xlane.f32.xlu1 %v1482_v2  ;;  %1480 = vadd.xlane.f32.xlu0 %v1479_v43  ;;  %v1173_v43 = vmul.f32 %v1029_v39, %v1029_v39  ;;  %v6601_v39 = vmul.f32 0.020408163, %v6068_v27 }
 0x1df   : > { %v6564_v10 = vpop.xlane.xlu1 %1273  ;;  %v6566_v14 = vpop.xlane.xlu0 %1270 }
 0x1e0   : > { %9600 = vst [vmem:[#allocation120_spill] sm:$0xff] %v6601_v39  ;;  %v1497_v9 = vsel %vm362_vm0, %v1173_v43, 0.0  ;;  %v5164_v43 = vld [vmem:[%s5398_s18 + $0x300] sm:$0xff] }
 0x1e1   : > { %v1035_v21 = vsub.f32 %v5164_v43, %v6604_v20 }
 0x1e2   : > { %1489 = vadd.xlane.f32.xlu1 %v1488_v8  ;;  %1486 = vadd.xlane.f32.xlu0 %v1485_v17  ;;  %v1031_v8 = vsub.f32 %v5160_v59, %v6576_v60  ;;  %v6591_v17 = vmul.f32 0.020408163, %v6052_v38  ;;  %v1500_v38 = vsel %vm362_vm0, %v1174_v15, 0.0  ;;  %v1176_v59 = vmul.f32 %v1032_v26, %v1032_v26 }
 0x1e3   : > { %v6580_v42 = vpop.xlane.xlu1 %1279  ;;  %v6582_v2 = vpop.xlane.xlu0 %1276  ;;  %v1036_v15 = vsub.f32 %v5163_v44, %v6601_v39  ;;  %v6624_v26 = vmul.f32 0.020408163, %v6086_v34  ;;  %v5165_v39 = vld [vmem:[%s5398_s18 + $0x318] sm:$0xff] }
 0x1e4   : > { %9598 = vst [vmem:[#allocation118_spill] sm:$0xff] %v6591_v17  ;;  %v1175_v60 = vmul.f32 %v1031_v8, %v1031_v8  ;;  %v1506_v8 = vsel %vm362_vm0, %v1176_v59, 0.0  ;;  %v1179_v59 = vmul.f32 %v1035_v21, %v1035_v21 }
 0x1e5   : > { %9603 = vst [vmem:[#allocation123_spill] sm:$0xff] %v6624_v26  ;;  %v1180_v20 = vmul.f32 %v1036_v15, %v1036_v15 }
 0x1e6   : > { %1495 = vadd.xlane.f32.xlu1 %v1494_v52  ;;  %1492 = vadd.xlane.f32.xlu0 %v1491_v5  ;;  %v1034_v52 = vsub.f32 %v5161_v53, %v6591_v17  ;;  %v5162_v5 = vld [vmem:[%s5398_s18 + $0x2f0] sm:$0xff]  ;;  %v6621_v53 = vmul.f32 0.020408163, %v6084_v7  ;;  %v1515_v21 = vsel %vm362_vm0, %v1179_v59, 0.0 }
 0x1e7   : > { %v6596_v6 = vpop.xlane.xlu1 %1285  ;;  %v6598_v13 = vpop.xlane.xlu0 %1282  ;;  %v1033_v0 = vsub.f32 %v5162_v5, %v6594_v36  ;;  %v5166_v7 = vld [vmem:[%s5398_s18 + $0x310] sm:$0xff]  ;;  %v1518_v15 = vsel %vm362_vm0, %v1180_v20, 0.0 }
 0x1e8   : > { %9602 = vst [vmem:[#allocation122_spill] sm:$0xff] %v6621_v53  ;;  %v1038_v43 = vsub.f32 %v5165_v39, %v6621_v53  ;;  %v1037_v34 = vsub.f32 %v5166_v7, %v6624_v26  ;;  %v5167_v26 = vld [vmem:[%s5398_s18 + $0x328] sm:$0xff] }
 0x1e9   : > { %v1177_v5 = vmul.f32 %v1033_v0, %v1033_v0 }
 0x1ea   : > { %1501 = vadd.xlane.f32.xlu1 %v1500_v38  ;;  %1498 = vadd.xlane.f32.xlu0 %v1497_v9  ;;  %v1503_v38 = vsel %vm362_vm0, %v1175_v60, 0.0  ;;  %v1178_v9 = vmul.f32 %v1034_v52, %v1034_v52  ;;  %v6637_v60 = vmul.f32 0.020408163, %v6100_v32  ;;  %v6640_v52 = vmul.f32 0.020408163, %v6102_v45 }
 0x1eb   : > { %v6612_v27 = vpop.xlane.xlu1 %1291  ;;  %v6614_v24 = vpop.xlane.xlu0 %1288  ;;  %v1182_v7 = vmul.f32 %v1038_v43, %v1038_v43  ;;  %v1181_v32 = vmul.f32 %v1037_v34, %v1037_v34  ;;  %v6665_v34 = vmul.f32 0.020408163, %v6132_v63 }
 0x1ec   : > { %9604 = vst [vmem:[#allocation124_spill] sm:$0xff] %v6637_v60  ;;  %9605 = vst [vmem:[#allocation125_spill] sm:$0xff] %v6640_v52  ;;  %v1512_v0 = vsel %vm362_vm0, %v1178_v9, 0.0  ;;  %v1040_v45 = vsub.f32 %v5167_v26, %v6637_v60  ;;  %v5168_v9 = vld [vmem:[%s5398_s18 + $0x320] sm:$0xff]  ;;  %v6668_v26 = vmul.f32 0.020408163, %v6134_v22 }
 0x1ed   : > { %9608 = vst [vmem:[#allocation128_spill] sm:$0xff] %v6665_v34  ;;  %v1521_v59 = vsel %vm362_vm0, %v1181_v32, 0.0  ;;  %v5171_v22 = vld [vmem:[%s5398_s18 + $0x348] sm:$0xff]  ;;  %v5172_v32 = vld [vmem:[%s5398_s18 + $0x340] sm:$0xff] }
 0x1ee   : > { %1507 = vadd.xlane.f32.xlu1 %v1506_v8  ;;  %1504 = vadd.xlane.f32.xlu0 %v1503_v38  ;;  %v1509_v8 = vsel %vm362_vm0, %v1177_v5, 0.0  ;;  %v1039_v5 = vsub.f32 %v5168_v9, %v6640_v52  ;;  %9609 = vst [vmem:[#allocation129_spill] sm:$0xff] %v6668_v26  ;;  %v1184_v52 = vmul.f32 %v1040_v45, %v1040_v45  ;;  %v6688_v45 = vmul.f32 0.020408163, %v6150_v12 }
 0x1ef   : > { %v6628_v36 = vpop.xlane.xlu1 %1297  ;;  %v6630_v44 = vpop.xlane.xlu0 %1294  ;;  %v1043_v17 = vsub.f32 %v5172_v32, %v6668_v26 }
 0x1f0   : > { %v1183_v60 = vmul.f32 %v1039_v5, %v1039_v5  ;;  %9611 = vst [vmem:[#allocation131_spill] sm:$0xff] %v6688_v45  ;;  %v1530_v5 = vsel %vm362_vm0, %v1184_v52, 0.0 }
 0x1f1   : > { %v1187_v52 = vmul.f32 %v1043_v17, %v1043_v17 }
 0x1f2   : > { %1513 = vadd.xlane.f32.xlu1 %v1512_v0  ;;  %1510 = vadd.xlane.f32.xlu0 %v1509_v8  ;;  %v6655_v0 = vmul.f32 0.020408163, %v6116_v4  ;;  %v6658_v8 = vmul.f32 0.020408163, %v6118_v33  ;;  %v1524_v4 = vsel %vm362_vm0, %v1182_v7, 0.0  ;;  %v5169_v33 = vld [vmem:[%s5398_s18 + $0x338] sm:$0xff]  ;;  %v1044_v7 = vsub.f32 %v5171_v22, %v6665_v34 }
 0x1f3   : > { %v6644_v39 = vpop.xlane.xlu1 %1303  ;;  %v6646_v38 = vpop.xlane.xlu0 %1300  ;;  %v5173_v34 = vld [vmem:[%s5398_s18 + $0x358] sm:$0xff]  ;;  %v1539_v17 = vsel %vm362_vm0, %v1187_v52, 0.0 }
 0x1f4   : > { %9606 = vst [vmem:[#allocation126_spill] sm:$0xff] %v6655_v0  ;;  %9607 = vst [vmem:[#allocation127_spill] sm:$0xff] %v6658_v8  ;;  %v1188_v26 = vmul.f32 %v1044_v7, %v1044_v7 }
 0x1f6   : > { %1519 = vadd.xlane.f32.xlu1 %v1518_v15  ;;  %1516 = vadd.xlane.f32.xlu0 %v1515_v21  ;;  %v1042_v15 = vsub.f32 %v5169_v33, %v6655_v0  ;;  %v5170_v21 = vld [vmem:[%s5398_s18 + $0x330] sm:$0xff]  ;;  %v6685_v33 = vmul.f32 0.020408163, %v6148_v35  ;;  %v1542_v7 = vsel %vm362_vm0, %v1188_v26, 0.0 }
 0x1f7   : > { %v6660_v20 = vpop.xlane.xlu1 %1309  ;;  %v6662_v43 = vpop.xlane.xlu0 %1306  ;;  %v1041_v9 = vsub.f32 %v5170_v21, %v6658_v8  ;;  %v5174_v35 = vld [vmem:[%s5398_s18 + $0x350] sm:$0xff] }
 0x1f8   : > { %9610 = vst [vmem:[#allocation130_spill] sm:$0xff] %v6685_v33  ;;  %v1046_v32 = vsub.f32 %v5173_v34, %v6685_v33  ;;  %v1045_v12 = vsub.f32 %v5174_v35, %v6688_v45  ;;  %v5175_v45 = vld [vmem:[%s5398_s18 + $0x368] sm:$0xff] }
 0x1f9   : > { %v1185_v21 = vmul.f32 %v1041_v9, %v1041_v9 }
 0x1fa   : > { %1525 = vadd.xlane.f32.xlu1 %v1524_v4  ;;  %1522 = vadd.xlane.f32.xlu0 %v1521_v59  ;;  %v1527_v4 = vsel %vm362_vm0, %v1183_v60, 0.0  ;;  %v1186_v59 = vmul.f32 %v1042_v15, %v1042_v15  ;;  %v6701_v60 = vmul.f32 0.020408163, %v6164_v28  ;;  %v6704_v15 = vmul.f32 0.020408163, %v6166_v23 }
 0x1fb   : > { %v6676_v63 = vpop.xlane.xlu1 %1315  ;;  %v6678_v53 = vpop.xlane.xlu0 %1312  ;;  %v1190_v35 = vmul.f32 %v1046_v32, %v1046_v32  ;;  %v1189_v28 = vmul.f32 %v1045_v12, %v1045_v12  ;;  %v6729_v12 = vmul.f32 0.020408163, %v6196_v47 }
 0x1fc   : > { %9613 = vst [vmem:[#allocation133_spill] sm:$0xff] %v6701_v60  ;;  %9614 = vst [vmem:[#allocation134_spill] sm:$0xff] %v6704_v15  ;;  %v1536_v9 = vsel %vm362_vm0, %v1186_v59, 0.0  ;;  %v1048_v23 = vsub.f32 %v5175_v45, %v6701_v60  ;;  %v5176_v59 = vld [vmem:[%s5398_s18 + $0x360] sm:$0xff]  ;;  %v9620_v45 = vld [vmem:[#allocation71_spill] sm:$0xff] }
 0x1fd   : > { %9619 = vst [vmem:[#allocation139_spill] sm:$0xff] %v6729_v12  ;;  %v6732_v52 = vmul.f32 0.020408163, %v9620_v45  ;;  %v5179_v45 = vld [vmem:[%s5398_s18 + $0x388] sm:$0xff] }
 0x1fe   : > { %1531 = vadd.xlane.f32.xlu1 %v1530_v5  ;;  %1528 = vadd.xlane.f32.xlu0 %v1527_v4  ;;  %v1533_v5 = vsel %vm362_vm0, %v1185_v21, 0.0  ;;  %v1047_v21 = vsub.f32 %v5176_v59, %v6704_v15  ;;  %v1545_v59 = vsel %vm362_vm0, %v1189_v28, 0.0  ;;  %v1192_v60 = vmul.f32 %v1048_v23, %v1048_v23  ;;  %v5180_v28 = vld [vmem:[%s5398_s18 + $0x380] sm:$0xff] }
 0x1ff   : > { %v6692_v8 = vpop.xlane.xlu1 %1321  ;;  %v6694_v22 = vpop.xlane.xlu0 %1318  ;;  %9621 = vst [vmem:[#allocation71_spill] sm:$0xff] %v6732_v52 }
 0x200   : > { %9612 = vst [vmem:[#allocation132_spill] sm:$0xff] %v6694_v22  ;;  %v1191_v33 = vmul.f32 %v1047_v21, %v1047_v21  ;;  %v1554_v21 = vsel %vm362_vm0, %v1192_v60, 0.0 }
 0x202   : > { %1537 = vadd.xlane.f32.xlu1 %v1536_v9  ;;  %1534 = vadd.xlane.f32.xlu0 %v1533_v5  ;;  %v6719_v9 = vmul.f32 0.020408163, %v6180_v31  ;;  %v6722_v5 = vmul.f32 0.020408163, %v6182_v29  ;;  %v1548_v31 = vsel %vm362_vm0, %v1190_v35, 0.0  ;;  %v5177_v29 = vld [vmem:[%s5398_s18 + $0x378] sm:$0xff]  ;;  %v1052_v35 = vsub.f32 %v5179_v45, %v6729_v12 }
 0x203   : > { %v6708_v34 = vpop.xlane.xlu1 %1327  ;;  %v6710_v4 = vpop.xlane.xlu0 %1324  ;;  %v5181_v12 = vld [vmem:[%s5398_s18 + $0x398] sm:$0xff] }
 0x204   : > { %9615 = vst [vmem:[#allocation135_spill] sm:$0xff] %v6710_v4  ;;  %9616 = vst [vmem:[#allocation136_spill] sm:$0xff] %v6719_v9  ;;  %v9628_v4 = vld [vmem:[#allocation74_spill] sm:$0xff] }
 0x205   : > { %9617 = vst [vmem:[#allocation137_spill] sm:$0xff] %v6722_v5 }
 0x206   : > { %1543 = vadd.xlane.f32.xlu1 %v1542_v7  ;;  %1540 = vadd.xlane.f32.xlu0 %v1539_v17  ;;  %v1050_v7 = vsub.f32 %v5177_v29, %v6719_v9  ;;  %v5178_v17 = vld [vmem:[%s5398_s18 + $0x370] sm:$0xff] }
 0x207   : > { %v6724_v26 = vpop.xlane.xlu1 %1333  ;;  %v6726_v32 = vpop.xlane.xlu0 %1330  ;;  %v1049_v15 = vsub.f32 %v5178_v17, %v6722_v5  ;;  %v9623_v29 = vld [vmem:[#allocation72_spill] sm:$0xff]  ;;  %v9625_v17 = vld [vmem:[#allocation73_spill] sm:$0xff] }
 0x208   : > { %9618 = vst [vmem:[#allocation138_spill] sm:$0xff] %v6726_v32  ;;  %v1051_v32 = vsub.f32 %v5180_v28, %v6732_v52  ;;  %v6749_v9 = vmul.f32 0.020408163, %v9623_v29  ;;  %v6752_v23 = vmul.f32 0.020408163, %v9625_v17  ;;  %v5182_v29 = vld [vmem:[%s5398_s18 + $0x390] sm:$0xff]  ;;  %v1196_v52 = vmul.f32 %v1052_v35, %v1052_v35 }
 0x209   : > { %v1193_v5 = vmul.f32 %v1049_v15, %v1049_v15  ;;  %v9630_v15 = vld [vmem:[#allocation75_spill] sm:$0xff] }
 0x20a   : > { %1549 = vadd.xlane.f32.xlu1 %v1548_v31  ;;  %1546 = vadd.xlane.f32.xlu0 %v1545_v59  ;;  %9624 = vst [vmem:[#allocation72_spill] sm:$0xff] %v6749_v9  ;;  %9626 = vst [vmem:[#allocation73_spill] sm:$0xff] %v6752_v23  ;;  %v1551_v31 = vsel %vm362_vm0, %v1191_v33, 0.0  ;;  %v1194_v59 = vmul.f32 %v1050_v7, %v1050_v7  ;;  %v1054_v28 = vsub.f32 %v5181_v12, %v6749_v9 }
 0x20b   : > { %v6740_v47 = vpop.xlane.xlu1 %1339  ;;  %v6742_v0 = vpop.xlane.xlu0 %1336  ;;  %v1053_v17 = vsub.f32 %v5182_v29, %v6752_v23  ;;  %v1195_v60 = vmul.f32 %v1051_v32, %v1051_v32  ;;  %v6765_v33 = vmul.f32 0.020408163, %v9628_v4  ;;  %v6768_v7 = vmul.f32 0.020408163, %v9630_v15  ;;  %v5183_v23 = vld [vmem:[%s5398_s18 + $0x3a8] sm:$0xff] }
 0x20c   : > { %9622 = vst [vmem:[#allocation140_spill] sm:$0xff] %v6742_v0  ;;  %v1566_v35 = vsel %vm362_vm0, %v1196_v52, 0.0  ;;  %v1198_v29 = vmul.f32 %v1054_v28, %v1054_v28 }
 0x20d   : > { %9629 = vst [vmem:[#allocation74_spill] sm:$0xff] %v6765_v33  ;;  %9631 = vst [vmem:[#allocation75_spill] sm:$0xff] %v6768_v7  ;;  %v1563_v32 = vsel %vm362_vm0, %v1195_v60, 0.0  ;;  %v1197_v4 = vmul.f32 %v1053_v17, %v1053_v17  ;;  %v1056_v15 = vsub.f32 %v5183_v23, %v6765_v33  ;;  %v9640_v17 = vld [vmem:[#allocation78_spill] sm:$0xff]  ;;  %v9642_v23 = vld [vmem:[#allocation79_spill] sm:$0xff] }
 0x20e   : > { %1555 = vadd.xlane.f32.xlu1 %v1554_v21  ;;  %1552 = vadd.xlane.f32.xlu0 %v1551_v31  ;;  %v1560_v21 = vsel %vm362_vm0, %v1194_v59, 0.0  ;;  %v1557_v31 = vsel %vm362_vm0, %v1193_v5, 0.0  ;;  %v5184_v59 = vld [vmem:[%s5398_s18 + $0x3a0] sm:$0xff]  ;;  %v6793_v60 = vmul.f32 0.020408163, %v9640_v17 }
 0x20f   : > { %v6756_v0 = vpop.xlane.xlu1 %1345  ;;  %v6758_v45 = vpop.xlane.xlu0 %1342  ;;  %v1055_v5 = vsub.f32 %v5184_v59, %v6768_v7  ;;  %v6796_v33 = vmul.f32 0.020408163, %v9642_v23  ;;  %v1572_v59 = vsel %vm362_vm0, %v1198_v29, 0.0  ;;  %v5187_v23 = vld [vmem:[%s5398_s18 + $0x3c8] sm:$0xff] }
 0x210   : > { %9627 = vst [vmem:[#allocation141_spill] sm:$0xff] %v6758_v45  ;;  %v9636_v45 = vld [vmem:[#allocation77_spill] sm:$0xff]  ;;  %9641 = vst [vmem:[#allocation78_spill] sm:$0xff] %v6793_v60  ;;  %v1060_v29 = vsub.f32 %v5187_v23, %v6793_v60 }
 0x211   : > { %9643 = vst [vmem:[#allocation79_spill] sm:$0xff] %v6796_v33  ;;  %v5189_v60 = vld [vmem:[%s5398_s18 + $0x3d8] sm:$0xff] }
 0x212   : > { %1561 = vadd.xlane.f32.xlu1 %v1560_v21  ;;  %1558 = vadd.xlane.f32.xlu0 %v1557_v31  ;;  %v9634_v21 = vld [vmem:[#allocation76_spill] sm:$0xff] }
 0x213   : > { %v6772_v12 = vpop.xlane.xlu1 %1351  ;;  %v6774_v9 = vpop.xlane.xlu0 %1348  ;;  %v6783_v31 = vmul.f32 0.020408163, %v9634_v21  ;;  %v1569_v21 = vsel %vm362_vm0, %v1197_v4, 0.0  ;;  %v5188_v4 = vld [vmem:[%s5398_s18 + $0x3c0] sm:$0xff] }
 0x214   : > { %9632 = vst [vmem:[#allocation142_spill] sm:$0xff] %v6772_v12  ;;  %9633 = vst [vmem:[#allocation143_spill] sm:$0xff] %v6774_v9  ;;  %v6786_v12 = vmul.f32 0.020408163, %v9636_v45  ;;  %v5185_v45 = vld [vmem:[%s5398_s18 + $0x3b8] sm:$0xff]  ;;  %v1200_v9 = vmul.f32 %v1056_v15, %v1056_v15  ;;  %v1059_v22 = vsub.f32 %v5188_v4, %v6796_v33  ;;  %v1204_v33 = vmul.f32 %v1060_v29, %v1060_v29 }
 0x215   : > { %9635 = vst [vmem:[#allocation76_spill] sm:$0xff] %v6783_v31 }
 0x216   : > { %9637 = vst [vmem:[#allocation77_spill] sm:$0xff] %v6786_v12  ;;  %1567 = vadd.xlane.f32.xlu1 %v1566_v35  ;;  %1564 = vadd.xlane.f32.xlu0 %v1563_v32  ;;  %v1058_v35 = vsub.f32 %v5185_v45, %v6783_v31  ;;  %v5186_v32 = vld [vmem:[%s5398_s18 + $0x3b0] sm:$0xff]  ;;  %v1590_v29 = vsel %vm362_vm0, %v1204_v33, 0.0 }
 0x217   : > { %v6788_v52 = vpop.xlane.xlu1 %1357  ;;  %v6790_v28 = vpop.xlane.xlu0 %1354  ;;  %v1057_v7 = vsub.f32 %v5186_v32, %v6786_v12  ;;  %v9646_v45 = vld [vmem:[#allocation80_spill] sm:$0xff]  ;;  %v9648_v32 = vld [vmem:[#allocation81_spill] sm:$0xff] }
 0x218   : > { %9638 = vst [vmem:[#allocation144_spill] sm:$0xff] %v6788_v52  ;;  %9639 = vst [vmem:[#allocation145_spill] sm:$0xff] %v6790_v28  ;;  %v1199_v52 = vmul.f32 %v1055_v5, %v1055_v5  ;;  %v6813_v31 = vmul.f32 0.020408163, %v9646_v45  ;;  %v6816_v15 = vmul.f32 0.020408163, %v9648_v32 }
 0x219   : > { %v1578_v5 = vsel %vm362_vm0, %v1200_v9, 0.0  ;;  %v1201_v12 = vmul.f32 %v1057_v7, %v1057_v7  ;;  %v5190_v45 = vld [vmem:[%s5398_s18 + $0x3d0] sm:$0xff]  ;;  %v1203_v9 = vmul.f32 %v1059_v22, %v1059_v22  ;;  %v9654_v7 = vld [vmem:[#allocation83_spill] sm:$0xff] }
 0x21a   : > { %1573 = vadd.xlane.f32.xlu1 %v1572_v59  ;;  %1570 = vadd.xlane.f32.xlu0 %v1569_v21  ;;  %9647 = vst [vmem:[#allocation80_spill] sm:$0xff] %v6813_v31  ;;  %9649 = vst [vmem:[#allocation81_spill] sm:$0xff] %v6816_v15  ;;  %v1575_v59 = vsel %vm362_vm0, %v1199_v52, 0.0  ;;  %v1202_v21 = vmul.f32 %v1058_v35, %v1058_v35  ;;  %v1062_v4 = vsub.f32 %v5189_v60, %v6813_v31 }
 0x21b   : > { %v6804_v17 = vpop.xlane.xlu1 %1363  ;;  %v6806_v28 = vpop.xlane.xlu0 %1360  ;;  %v1061_v32 = vsub.f32 %v5190_v45, %v6816_v15  ;;  %v6832_v35 = vmul.f32 0.020408163, %v9654_v7  ;;  %v1587_v22 = vsel %vm362_vm0, %v1203_v9, 0.0  ;;  %v5191_v15 = vld [vmem:[%s5398_s18 + $0x3e8] sm:$0xff] }
 0x21c   : > { %9644 = vst [vmem:[#allocation146_spill] sm:$0xff] %v6804_v17  ;;  %9645 = vst [vmem:[#allocation147_spill] sm:$0xff] %v6806_v28  ;;  %v9652_v17 = vld [vmem:[#allocation82_spill] sm:$0xff]  ;;  %v1206_v45 = vmul.f32 %v1062_v4, %v1062_v4 }
 0x21d   : > { %v6829_v52 = vmul.f32 0.020408163, %v9652_v17  ;;  %9655 = vst [vmem:[#allocation83_spill] sm:$0xff] %v6832_v35  ;;  %v1205_v17 = vmul.f32 %v1061_v32, %v1061_v32  ;;  %v9664_v32 = vld [vmem:[#allocation86_spill] sm:$0xff] }
 0x21e   : > { %1579 = vadd.xlane.f32.xlu1 %v1578_v5  ;;  %1576 = vadd.xlane.f32.xlu0 %v1575_v59  ;;  %v1584_v5 = vsel %vm362_vm0, %v1202_v21, 0.0  ;;  %v1581_v59 = vsel %vm362_vm0, %v1201_v12, 0.0  ;;  %v5192_v21 = vld [vmem:[%s5398_s18 + $0x3e0] sm:$0xff]  ;;  %v6857_v9 = vmul.f32 0.020408163, %v9664_v32 }
 0x21f   : > { %v6820_v28 = vpop.xlane.xlu1 %1369  ;;  %v6822_v23 = vpop.xlane.xlu0 %1366  ;;  %9653 = vst [vmem:[#allocation82_spill] sm:$0xff] %v6829_v52  ;;  %v1064_v7 = vsub.f32 %v5191_v15, %v6829_v52  ;;  %v1063_v12 = vsub.f32 %v5192_v21, %v6832_v35  ;;  %v9666_v15 = vld [vmem:[#allocation87_spill] sm:$0xff]  ;;  %v1596_v21 = vsel %vm362_vm0, %v1206_v45, 0.0 }
 0x220   : > { %9650 = vst [vmem:[#allocation148_spill] sm:$0xff] %v6820_v28  ;;  %9651 = vst [vmem:[#allocation149_spill] sm:$0xff] %v6822_v23  ;;  %v9660_v23 = vld [vmem:[#allocation85_spill] sm:$0xff]  ;;  %v6860_v52 = vmul.f32 0.020408163, %v9666_v15  ;;  %v5195_v15 = vld [vmem:[%s5398_s18 + $0x408] sm:$0xff] }
 0x221   : > { %9665 = vst [vmem:[#allocation86_spill] sm:$0xff] %v6857_v9  ;;  %v1068_v45 = vsub.f32 %v5195_v15, %v6857_v9  ;;  %v5197_v9 = vld [vmem:[%s5398_s18 + $0x418] sm:$0xff] }
 0x222   : > { %1585 = vadd.xlane.f32.xlu1 %v1584_v5  ;;  %1582 = vadd.xlane.f32.xlu0 %v1581_v59  ;;  %v9658_v5 = vld [vmem:[#allocation84_spill] sm:$0xff]  ;;  %9667 = vst [vmem:[#allocation87_spill] sm:$0xff] %v6860_v52 }
 0x223   : > { %v6836_v60 = vpop.xlane.xlu1 %1375  ;;  %v6838_v31 = vpop.xlane.xlu0 %1372  ;;  %v6847_v59 = vmul.f32 0.020408163, %v9658_v5  ;;  %v1593_v5 = vsel %vm362_vm0, %v1205_v17, 0.0  ;;  %v5196_v17 = vld [vmem:[%s5398_s18 + $0x400] sm:$0xff] }
 0x224   : > { %9656 = vst [vmem:[#allocation150_spill] sm:$0xff] %v6836_v60  ;;  %9657 = vst [vmem:[#allocation151_spill] sm:$0xff] %v6838_v31  ;;  %v6850_v60 = vmul.f32 0.020408163, %v9660_v23  ;;  %v5193_v23 = vld [vmem:[%s5398_s18 + $0x3f8] sm:$0xff]  ;;  %v1208_v31 = vmul.f32 %v1064_v7, %v1064_v7  ;;  %v1067_v28 = vsub.f32 %v5196_v17, %v6860_v52  ;;  %v1212_v52 = vmul.f32 %v1068_v45, %v1068_v45 }
 0x225   : > { %9659 = vst [vmem:[#allocation84_spill] sm:$0xff] %v6847_v59 }
 0x226   : > { %9661 = vst [vmem:[#allocation85_spill] sm:$0xff] %v6850_v60  ;;  %1591 = vadd.xlane.f32.xlu1 %v1590_v29  ;;  %1588 = vadd.xlane.f32.xlu0 %v1587_v22  ;;  %v1066_v29 = vsub.f32 %v5193_v23, %v6847_v59  ;;  %v5194_v22 = vld [vmem:[%s5398_s18 + $0x3f0] sm:$0xff]  ;;  %v1614_v45 = vsel %vm362_vm0, %v1212_v52, 0.0 }
 0x227   : > { %v6852_v33 = vpop.xlane.xlu1 %1381  ;;  %v6854_v4 = vpop.xlane.xlu0 %1378  ;;  %v1065_v35 = vsub.f32 %v5194_v22, %v6850_v60  ;;  %v9669_v23 = vld [vmem:[#allocation88_spill] sm:$0xff]  ;;  %v9671_v22 = vld [vmem:[#allocation89_spill] sm:$0xff] }
 0x228   : > { %9662 = vst [vmem:[#allocation152_spill] sm:$0xff] %v6852_v33  ;;  %9663 = vst [vmem:[#allocation153_spill] sm:$0xff] %v6854_v4  ;;  %v1207_v33 = vmul.f32 %v1063_v12, %v1063_v12  ;;  %v6877_v59 = vmul.f32 0.020408163, %v9669_v23  ;;  %v6880_v7 = vmul.f32 0.020408163, %v9671_v22 }
 0x229   : > { %v1602_v12 = vsel %vm362_vm0, %v1208_v31, 0.0  ;;  %v1209_v60 = vmul.f32 %v1065_v35, %v1065_v35  ;;  %v5198_v23 = vld [vmem:[%s5398_s18 + $0x410] sm:$0xff]  ;;  %v1211_v31 = vmul.f32 %v1067_v28, %v1067_v28  ;;  %v9674_v35 = vld [vmem:[#allocation90_spill] sm:$0xff] }
 0x22a   : > { %1597 = vadd.xlane.f32.xlu1 %v1596_v21  ;;  %1594 = vadd.xlane.f32.xlu0 %v1593_v5  ;;  %9670 = vst [vmem:[#allocation88_spill] sm:$0xff] %v6877_v59  ;;  %9672 = vst [vmem:[#allocation89_spill] sm:$0xff] %v6880_v7  ;;  %v1599_v21 = vsel %vm362_vm0, %v1207_v33, 0.0  ;;  %v1210_v5 = vmul.f32 %v1066_v29, %v1066_v29  ;;  %v1070_v17 = vsub.f32 %v5197_v9, %v6877_v59 }
 0x22b   : > { %v6868_v32 = vpop.xlane.xlu1 %1387  ;;  %v6870_v4 = vpop.xlane.xlu0 %1384  ;;  %v1069_v22 = vsub.f32 %v5198_v23, %v6880_v7  ;;  %v6893_v33 = vmul.f32 0.020408163, %v6356_v16  ;;  %v6896_v29 = vmul.f32 0.020408163, %v9674_v35  ;;  %v1611_v28 = vsel %vm362_vm0, %v1211_v31, 0.0  ;;  %v5199_v7 = vld [vmem:[%s5398_s18 + $0x428] sm:$0xff] }
 0x22c   : > { %9668 = vst [vmem:[#allocation154_spill] sm:$0xff] %v6870_v4  ;;  %v1214_v23 = vmul.f32 %v1070_v17, %v1070_v17 }
 0x22d   : > { %9673 = vst [vmem:[#allocation155_spill] sm:$0xff] %v6893_v33  ;;  %9675 = vst [vmem:[#allocation90_spill] sm:$0xff] %v6896_v29  ;;  %v1213_v16 = vmul.f32 %v1069_v22, %v1069_v22  ;;  %v1072_v35 = vsub.f32 %v5199_v7, %v6893_v33  ;;  %v6921_v22 = vmul.f32 0.020408163, %v6388_v25  ;;  %v6924_v7 = vmul.f32 0.020408163, %v6390_v40 }
 0x22e   : > { %1603 = vadd.xlane.f32.xlu1 %v1602_v12  ;;  %1600 = vadd.xlane.f32.xlu0 %v1599_v21  ;;  %v1608_v12 = vsel %vm362_vm0, %v1210_v5, 0.0  ;;  %v1605_v21 = vsel %vm362_vm0, %v1209_v60, 0.0  ;;  %v5200_v5 = vld [vmem:[%s5398_s18 + $0x420] sm:$0xff]  ;;  %v5203_v40 = vld [vmem:[%s5398_s18 + $0x448] sm:$0xff] }
 0x22f   : > { %v6884_v4 = vpop.xlane.xlu1 %1393  ;;  %v6886_v15 = vpop.xlane.xlu0 %1390  ;;  %v1071_v60 = vsub.f32 %v5200_v5, %v6896_v29  ;;  %9680 = vst [vmem:[#allocation160_spill] sm:$0xff] %v6921_v22  ;;  %9681 = vst [vmem:[#allocation161_spill] sm:$0xff] %v6924_v7  ;;  %v1617_v31 = vsel %vm362_vm0, %v1213_v16, 0.0  ;;  %v1216_v29 = vmul.f32 %v1072_v35, %v1072_v35  ;;  %v5204_v16 = vld [vmem:[%s5398_s18 + $0x440] sm:$0xff] }
 0x231   : > { %v1215_v33 = vmul.f32 %v1071_v60, %v1071_v60  ;;  %v1626_v60 = vsel %vm362_vm0, %v1216_v29, 0.0 }
 0x232   : > { %1609 = vadd.xlane.f32.xlu1 %v1608_v12  ;;  %1606 = vadd.xlane.f32.xlu0 %v1605_v21  ;;  %v6911_v12 = vmul.f32 0.020408163, %v6372_v51  ;;  %v6914_v21 = vmul.f32 0.020408163, %v6374_v62  ;;  %v1620_v51 = vsel %vm362_vm0, %v1214_v23, 0.0  ;;  %v5201_v62 = vld [vmem:[%s5398_s18 + $0x438] sm:$0xff]  ;;  %v1076_v23 = vsub.f32 %v5203_v40, %v6921_v22 }
 0x233   : > { %v6900_v9 = vpop.xlane.xlu1 %1399  ;;  %v6902_v59 = vpop.xlane.xlu0 %1396  ;;  %v5205_v22 = vld [vmem:[%s5398_s18 + $0x458] sm:$0xff] }
 0x234   : > { %9676 = vst [vmem:[#allocation156_spill] sm:$0xff] %v6902_v59  ;;  %9677 = vst [vmem:[#allocation157_spill] sm:$0xff] %v6911_v12  ;;  %v1075_v59 = vsub.f32 %v5204_v16, %v6924_v7  ;;  %v1220_v7 = vmul.f32 %v1076_v23, %v1076_v23 }
 0x235   : > { %9678 = vst [vmem:[#allocation158_spill] sm:$0xff] %v6914_v21 }
 0x236   : > { %1615 = vadd.xlane.f32.xlu1 %v1614_v45  ;;  %1612 = vadd.xlane.f32.xlu0 %v1611_v28  ;;  %v1074_v45 = vsub.f32 %v5201_v62, %v6911_v12  ;;  %v5202_v28 = vld [vmem:[%s5398_s18 + $0x430] sm:$0xff]  ;;  %v9683_v62 = vld [vmem:[#allocation94_spill] sm:$0xff]  ;;  %v1219_v29 = vmul.f32 %v1075_v59, %v1075_v59  ;;  %v1638_v23 = vsel %vm362_vm0, %v1220_v7, 0.0 }
 0x237   : > { %v6916_v52 = vpop.xlane.xlu1 %1405  ;;  %v6918_v17 = vpop.xlane.xlu0 %1402  ;;  %v1073_v5 = vsub.f32 %v5202_v28, %v6914_v21  ;;  %v6941_v12 = vmul.f32 0.020408163, %v9683_v62  ;;  %v9685_v28 = vld [vmem:[#allocation95_spill] sm:$0xff]  ;;  %v5206_v62 = vld [vmem:[%s5398_s18 + $0x450] sm:$0xff] }
 0x238   : > { %9679 = vst [vmem:[#allocation159_spill] sm:$0xff] %v6918_v17  ;;  %v6944_v35 = vmul.f32 0.020408163, %v9685_v28  ;;  %v1635_v59 = vsel %vm362_vm0, %v1219_v29, 0.0 }
 0x239   : > { %9684 = vst [vmem:[#allocation94_spill] sm:$0xff] %v6941_v12  ;;  %v1217_v21 = vmul.f32 %v1073_v5, %v1073_v5  ;;  %v1078_v16 = vsub.f32 %v5205_v22, %v6941_v12 }
 0x23a   : > { %1621 = vadd.xlane.f32.xlu1 %v1620_v51  ;;  %1618 = vadd.xlane.f32.xlu0 %v1617_v31  ;;  %9686 = vst [vmem:[#allocation95_spill] sm:$0xff] %v6944_v35  ;;  %v1623_v51 = vsel %vm362_vm0, %v1215_v33, 0.0  ;;  %v1218_v31 = vmul.f32 %v1074_v45, %v1074_v45  ;;  %v1077_v28 = vsub.f32 %v5206_v62, %v6944_v35  ;;  %v6957_v33 = vmul.f32 0.020408163, %v6420_v57 }
 0x23b   : > { %v6932_v25 = vpop.xlane.xlu1 %1411  ;;  %v6934_v17 = vpop.xlane.xlu0 %1408  ;;  %v6960_v45 = vmul.f32 0.020408163, %v6422_v30  ;;  %v1222_v57 = vmul.f32 %v1078_v16, %v1078_v16  ;;  %v5207_v30 = vld [vmem:[%s5398_s18 + $0x468] sm:$0xff] }
 0x23c   : > { %9682 = vst [vmem:[#allocation162_spill] sm:$0xff] %v6934_v17  ;;  %9687 = vst [vmem:[#allocation163_spill] sm:$0xff] %v6957_v33  ;;  %v1632_v5 = vsel %vm362_vm0, %v1218_v31, 0.0  ;;  %v1221_v62 = vmul.f32 %v1077_v28, %v1077_v28  ;;  %v1080_v35 = vsub.f32 %v5207_v30, %v6957_v33  ;;  %v5208_v31 = vld [vmem:[%s5398_s18 + $0x460] sm:$0xff]  ;;  %v5209_v30 = vld [vmem:[%s5398_s18 + $0x478] sm:$0xff] }
 0x23d   : > { %9688 = vst [vmem:[#allocation164_spill] sm:$0xff] %v6960_v45  ;;  %v1644_v16 = vsel %vm362_vm0, %v1222_v57, 0.0 }
 0x23e   : > { %1627 = vadd.xlane.f32.xlu1 %v1626_v60  ;;  %1624 = vadd.xlane.f32.xlu0 %v1623_v51  ;;  %v1629_v60 = vsel %vm362_vm0, %v1217_v21, 0.0  ;;  %v1079_v21 = vsub.f32 %v5208_v31, %v6960_v45  ;;  %v1641_v28 = vsel %vm362_vm0, %v1221_v62, 0.0  ;;  %v5210_v31 = vld [vmem:[%s5398_s18 + $0x470] sm:$0xff]  ;;  %v1224_v45 = vmul.f32 %v1080_v35, %v1080_v35 }
 0x23f   : > { %v6948_v17 = vpop.xlane.xlu1 %1417  ;;  %v6950_v40 = vpop.xlane.xlu0 %1414 }
 0x240   : > { %v1223_v12 = vmul.f32 %v1079_v21, %v1079_v21  ;;  %v1650_v57 = vsel %vm362_vm0, %v1224_v45, 0.0  ;;  %v1662_v45 = vmul.f32 0.020408163, %v6468_v46  ;;  %v1664_v46 = vmul.f32 0.020408163, %v6484_v1 }
 0x241   : > { %v1674_v1 = vmul.f32 0.020408163, %v6564_v10 }
 0x242   : > { %1633 = vadd.xlane.f32.xlu1 %v1632_v5  ;;  %1630 = vadd.xlane.f32.xlu0 %v1629_v60  ;;  %v6975_v5 = vmul.f32 0.020408163, %v6436_v49  ;;  %v6978_v60 = vmul.f32 0.020408163, %v6438_v37  ;;  %v1647_v62 = vsel %vm362_vm0, %v1223_v12, 0.0 }
 0x243   : > { %v6964_v22 = vpop.xlane.xlu1 %1423  ;;  %v6966_v51 = vpop.xlane.xlu0 %1420  ;;  %v1818_v10 = vadd.f32 0.001, %v1674_v1  ;;  %v1678_v1 = vmul.f32 0.020408163, %v6596_v6  ;;  %v1669_v6 = vmul.f32 0.020408163, %v6534_v54 }
 0x244   : > { %9689 = vst [vmem:[#allocation165_spill] sm:$0xff] %v6966_v51  ;;  %9690 = vst [vmem:[#allocation166_spill] sm:$0xff] %v6975_v5  ;;  %v1082_v33 = vsub.f32 %v5209_v30, %v6975_v5  ;;  %v1081_v49 = vsub.f32 %v5210_v31, %v6978_v60  ;;  %v2104_v54 = vld [vmem:[%s7025_s21 + $0x68] sm:$0xff] }
 0x245   : > { %9691 = vst [vmem:[#allocation167_spill] sm:$0xff] %v6978_v60 }
 0x246   : > { %1639 = vadd.xlane.f32.xlu1 %v1638_v23  ;;  %1636 = vadd.xlane.f32.xlu0 %v1635_v59  ;;  %v1660_v59 = vmul.f32 0.020408163, %v6452_v58  ;;  %v1225_v51 = vmul.f32 %v1081_v49, %v1081_v49 }
 0x247   : > { %v6980_v7 = vpop.xlane.xlu1 %1429  ;;  %v6982_v29 = vpop.xlane.xlu0 %1426 }
 0x248   : > { %9692 = vst [vmem:[#allocation168_spill] sm:$0xff] %v6982_v29  ;;  %v1226_v29 = vmul.f32 %v1082_v33, %v1082_v33  ;;  %v1804_v21 = vadd.f32 0.001, %v1660_v59  ;;  %v1653_v58 = vsel %vm362_vm0, %v1225_v51, 0.0  ;;  %v1663_v51 = vmul.f32 0.020408163, %v6486_v56 }
 0x24a   : > { %1645 = vadd.xlane.f32.xlu1 %v1644_v16  ;;  %1642 = vadd.xlane.f32.xlu0 %v1641_v28  ;;  %v1661_v16 = vmul.f32 0.020408163, %v6470_v18  ;;  %v1659_v28 = vmul.f32 0.020408163, %v6454_v19  ;;  %v1656_v31 = vsel %vm362_vm0, %v1226_v29, 0.0  ;;  %4785 = vrsqrt.f32 %v1804_v21 }
 0x24b   : > { %v6990_v37 = vpop.xlane.xlu1 %1435  ;;  %v6992_v23 = vpop.xlane.xlu0 %1432  ;;  %v1668_v18 = vmul.f32 0.020408163, %v6516_v3  ;;  %v1806_v29 = vadd.f32 0.001, %v1662_v45  ;;  %v1807_v3 = vadd.f32 0.001, %v1663_v51 }
 0x24c   : > { %v1805_v49 = vadd.f32 0.001, %v1661_v16  ;;  %v1803_v59 = vadd.f32 0.001, %v1659_v28  ;;  %v1672_v16 = vmul.f32 0.020408163, %v6548_v61 }
 0x24d   : > { %v2092_v28 = vld [vmem:[%s7025_s21 + $0x8] sm:$0xff]  ;;  %v2093_v61 = vld [vmem:[%s7025_s21 + $0x10] sm:$0xff] }
 0x24e   : > { %1651 = vadd.xlane.f32.xlu1 %v1650_v57  ;;  %1648 = vadd.xlane.f32.xlu0 %v1647_v62  ;;  %4787 = vrsqrt.f32 %v1805_v49  ;;  %v1812_v62 = vadd.f32 0.001, %v1668_v18  ;;  %v1665_v18 = vmul.f32 0.020408163, %v6502_v48  ;;  %v1666_v48 = vmul.f32 0.020408163, %v6500_v11 }
 0x24f   : > { %v6997_v30 = vpop.xlane.xlu1 %1441  ;;  %v6999_v35 = vpop.xlane.xlu0 %1438  ;;  %4789 = vrsqrt.f32 %v1803_v59  ;;  %v1808_v59 = vadd.f32 0.001, %v1664_v46  ;;  %v2091_v46 = vld [vmem:[%s7025_s21] sm:$0xff]  ;;  %v2100_v11 = vld [vmem:[%s7025_s21 + $0x48] sm:$0xff] }
 0x250   : > { %4791 = vrsqrt.f32 %v1806_v29  ;;  %v1816_v29 = vadd.f32 0.001, %v1672_v16 }
 0x251   : > { %4793 = vrsqrt.f32 %v1812_v62 }
 0x252   : > { %1657 = vadd.xlane.f32.xlu1 %v1656_v31  ;;  %1654 = vadd.xlane.f32.xlu0 %v1653_v58  ;;  %v1670_v31 = vmul.f32 0.020408163, %v6532_v50  ;;  %4795 = vrsqrt.f32 %v1807_v3  ;;  %v1809_v3 = vadd.f32 0.001, %v1665_v18  ;;  %v1810_v18 = vadd.f32 0.001, %v1666_v48 }
 0x253   : > { %v7005_v12 = vpop.xlane.xlu1 %1447  ;;  %v7007_v33 = vpop.xlane.xlu0 %1444 }
 0x254   : > { %v1814_v56 = vadd.f32 0.001, %v1670_v31  ;;  %v4786_v50 = vpop.eup %4785 }
 0x255   : > { %v7036_v51 = vmul.f32 %v4786_v50, %v2092_v28 }
 0x256   : > { %4797 = vrsqrt.f32 %v1814_v56  ;;  %v1676_v56 = vmul.f32 0.020408163, %v6580_v42  ;;  %v1667_v42 = vmul.f32 0.020408163, %v6518_v41  ;;  %v2102_v41 = vld [vmem:[%s7025_s21 + $0x58] sm:$0xff] }
 0x257   : > { %v7011_v57 = vpop.xlane.xlu1 %1453  ;;  %v7013_v19 = vpop.xlane.xlu0 %1450  ;;  %9695 = vst [vmem:[#allocation171_spill] sm:$0xff] %v7036_v51  ;;  %4799 = vrsqrt.f32 %v1808_v59 }
 0x258   : > { %v4788_v62 = vpop.eup %4787  ;;  %4801 = vrsqrt.f32 %v1816_v29  ;;  %v1820_v29 = vadd.f32 0.001, %v1676_v56 }
 0x259   : > { %v4790_v31 = vpop.eup %4789  ;;  %v7047_v16 = vmul.f32 %v4788_v62, %v2093_v61  ;;  %4803 = vrsqrt.f32 %v1809_v3  ;;  %v1811_v3 = vadd.f32 0.001, %v1667_v42  ;;  %v1813_v42 = vadd.f32 0.001, %v1669_v6 }
 0x25a   : > { %v4792_v50 = vpop.eup %4791  ;;  %v7049_v28 = vmul.f32 %v4790_v31, %v2091_v46  ;;  %4805 = vrsqrt.f32 %v1818_v10  ;;  %v2095_v46 = vld [vmem:[%s7025_s21 + $0x20] sm:$0xff] }
 0x25b   : > { %v7017_v58 = vpop.xlane.xlu1 %1459  ;;  %v7019_v21 = vpop.xlane.xlu0 %1456  ;;  %9696 = vst [vmem:[#allocation172_spill] sm:$0xff] %v7047_v16  ;;  %4807 = vrsqrt.f32 %v1810_v18 }
 0x25c   : > { %9693 = vst [vmem:[#allocation169_spill] sm:$0xff] %v7019_v21  ;;  %9697 = vst [vmem:[#allocation173_spill] sm:$0xff] %v7049_v28  ;;  %4809 = vrsqrt.f32 %v1820_v29  ;;  %v1682_v29 = vmul.f32 0.020408163, %v6628_v36  ;;  %v1673_v36 = vmul.f32 0.020408163, %v6566_v14 }
 0x25d   : > { %4811 = vrsqrt.f32 %v1811_v3  ;;  %v2108_v14 = vld [vmem:[%s7025_s21 + $0x88] sm:$0xff] }
 0x25f   : > { %v7030_v45 = vpop.xlane.xlu1 %1465  ;;  %v7032_v49 = vpop.xlane.xlu0 %1462 }
 0x260   : > { %9694 = vst [vmem:[#allocation170_spill] sm:$0xff] %v7032_v49  ;;  %v4794_v49 = vpop.eup %4793 }
 0x261   : > { %v4796_v61 = vpop.eup %4795  ;;  %v7063_v31 = vmul.f32 %v4794_v49, %v2100_v11  ;;  %v1822_v49 = vadd.f32 0.001, %v1678_v1  ;;  %v2096_v11 = vld [vmem:[%s7025_s21 + $0x28] sm:$0xff] }
 0x262   : > { %v7075_v10 = vmul.f32 %v4796_v61, %v2095_v46 }
 0x263   : > { %2818 = vperm.xlu1 %4784, %v7036_v51   ;;  %v7040_v60 = vpop.xlane.xlu1 %1471  ;;  %v7042_v5 = vpop.xlane.xlu0 %1468  ;;  %v2094_v51 = vld [vmem:[%s7025_s21 + $0x18] sm:$0xff]  ;;  %9700 = vst [vmem:[#allocation176_spill] sm:$0xff] %v7063_v31  ;;  %4813 = vrsqrt.f32 %v1822_v49  ;;  %v1684_v49 = vmul.f32 0.020408163, %v6644_v39  ;;  %v1675_v39 = vmul.f32 0.020408163, %v6582_v2 }
 0x264   : > { %v7061_v62 = vmul.f32 %v4792_v50, %v2094_v51  ;;  %v1680_v51 = vmul.f32 0.020408163, %v6612_v27  ;;  %9701 = vst [vmem:[#allocation177_spill] sm:$0xff] %v7075_v10  ;;  %v1671_v27 = vmul.f32 0.020408163, %v6550_v55  ;;  %v2106_v55 = vld [vmem:[%s7025_s21 + $0x78] sm:$0xff]  ;;  %4815 = vrsqrt.f32 %v1813_v42 }
 0x265   : > { %v2110_v2 = vld [vmem:[%s7025_s21 + $0x98] sm:$0xff] }
 0x266   : > { %9699 = vst [vmem:[#allocation175_spill] sm:$0xff] %v7061_v62  ;;  %v1815_v6 = vadd.f32 0.001, %v1671_v27  ;;  %v1817_v27 = vadd.f32 0.001, %v1673_v36 }
 0x267   : > { %v7052_v21 = vpop.xlane.xlu1 %1477  ;;  %2823 = vperm.xlu1 %4784, %v7047_v16   ;;  %v7055_v59 = vpop.xlane.xlu0 %1474  ;;  %v1819_v36 = vadd.f32 0.001, %v1675_v39 }
 0x268   : > { %9698 = vst [vmem:[#allocation174_spill] sm:$0xff] %v7055_v59  ;;  %2813 = vperm.xlu0 %4783, %v7049_v28   ;;  %v4798_v16 = vpop.eup %4797 }
 0x269   : > { %v4800_v56 = vpop.eup %4799  ;;  %v7077_v50 = vmul.f32 %v4798_v16, %v2102_v41  ;;  %v1824_v16 = vadd.f32 0.001, %v1680_v51  ;;  %v2097_v41 = vld [vmem:[%s7025_s21 + $0x30] sm:$0xff] }
 0x26a   : > { %v4802_v28 = vpop.eup %4801  ;;  %v7089_v1 = vmul.f32 %v4800_v56, %v2096_v11 }
 0x26b   : > { %v7066_v59 = vpop.xlane.xlu1 %1483  ;;  %2828 = vperm.xlu1 %4784, %v7061_v62   ;;  %v7069_v48 = vpop.xlane.xlu0 %1480  ;;  %9702 = vst [vmem:[#allocation178_spill] sm:$0xff] %v7077_v50  ;;  %v7091_v46 = vmul.f32 %v4802_v28, %v2104_v54  ;;  %4817 = vrsqrt.f32 %v1824_v16  ;;  %v1826_v28 = vadd.f32 0.001, %v1682_v29  ;;  %v2098_v54 = vld [vmem:[%s7025_s21 + $0x38] sm:$0xff]  ;;  %v1686_v16 = vmul.f32 0.020408163, %v6660_v20 }
 0x26c   : > { %2858 = vperm.xlu0 %4783, %v7063_v31   ;;  %9703 = vst [vmem:[#allocation179_spill] sm:$0xff] %v7089_v1  ;;  %v4804_v61 = vpop.eup %4803  ;;  %4819 = vrsqrt.f32 %v1815_v6  ;;  %v1677_v20 = vmul.f32 0.020408163, %v6598_v13  ;;  %v2112_v13 = vld [vmem:[%s7025_s21 + $0xa8] sm:$0xff] }
 0x26d   : > { %9704 = vst [vmem:[#allocation180_spill] sm:$0xff] %v7091_v46  ;;  %v7103_v51 = vmul.f32 %v4804_v61, %v2097_v41  ;;  %4821 = vrsqrt.f32 %v1826_v28  ;;  %v1688_v28 = vmul.f32 0.020408163, %v6676_v63  ;;  %v1679_v63 = vmul.f32 0.020408163, %v6614_v24  ;;  %v2114_v24 = vld [vmem:[%s7025_s21 + $0xb8] sm:$0xff] }
 0x26e   : > { %4823 = vrsqrt.f32 %v1817_v27  ;;  %v1821_v39 = vadd.f32 0.001, %v1677_v20 }
 0x26f   : > { %v7080_v62 = vpop.xlane.xlu1 %1489  ;;  %2833 = vperm.xlu1 %4784, %v7075_v10   ;;  %v7083_v18 = vpop.xlane.xlu0 %1486  ;;  %9705 = vst [vmem:[#allocation181_spill] sm:$0xff] %v7103_v51  ;;  %v1823_v20 = vadd.f32 0.001, %v1679_v63 }
 0x270   : > { %2868 = vperm.xlu0 %4783, %v7077_v50   ;;  %v4806_v10 = vpop.eup %4805 }
 0x271   : > { %v4808_v56 = vpop.eup %4807  ;;  %v7105_v11 = vmul.f32 %v4806_v10, %v2106_v55  ;;  %v1828_v10 = vadd.f32 0.001, %v1684_v49  ;;  %v2099_v55 = vld [vmem:[%s7025_s21 + $0x40] sm:$0xff] }
 0x272   : > { %v4810_v50 = vpop.eup %4809  ;;  %v7117_v29 = vmul.f32 %v4808_v56, %v2098_v54 }
 0x273   : > { %v7094_v31 = vpop.xlane.xlu1 %1495  ;;  %2838 = vperm.xlu1 %4784, %v7089_v1   ;;  %v7097_v3 = vpop.xlane.xlu0 %1492  ;;  %9706 = vst [vmem:[#allocation182_spill] sm:$0xff] %v7105_v11  ;;  %v7119_v41 = vmul.f32 %v4810_v50, %v2108_v14  ;;  %4825 = vrsqrt.f32 %v1828_v10  ;;  %v1830_v50 = vadd.f32 0.001, %v1686_v16  ;;  %v2101_v14 = vld [vmem:[%s7025_s21 + $0x50] sm:$0xff]  ;;  %v1690_v10 = vmul.f32 0.020408163, %v6692_v8 }
 0x274   : > { %2878 = vperm.xlu0 %4783, %v7091_v46   ;;  %9707 = vst [vmem:[#allocation183_spill] sm:$0xff] %v7117_v29  ;;  %v4812_v61 = vpop.eup %4811  ;;  %4827 = vrsqrt.f32 %v1819_v36  ;;  %v1681_v8 = vmul.f32 0.020408163, %v6630_v44  ;;  %v2116_v44 = vld [vmem:[%s7025_s21 + $0xc8] sm:$0xff] }
 0x275   : > { %9708 = vst [vmem:[#allocation184_spill] sm:$0xff] %v7119_v41  ;;  %v7131_v49 = vmul.f32 %v4812_v61, %v2099_v55  ;;  %4829 = vrsqrt.f32 %v1830_v50  ;;  %v1692_v50 = vmul.f32 0.020408163, %v6708_v34  ;;  %v1683_v34 = vmul.f32 0.020408163, %v6646_v38  ;;  %v2118_v38 = vld [vmem:[%s7025_s21 + $0xd8] sm:$0xff] }
 0x276   : > { %4831 = vrsqrt.f32 %v1821_v39  ;;  %v1825_v63 = vadd.f32 0.001, %v1681_v8 }
 0x277   : > { %v7108_v1 = vpop.xlane.xlu1 %1501  ;;  %2843 = vperm.xlu1 %4784, %v7103_v51   ;;  %v7111_v42 = vpop.xlane.xlu0 %1498  ;;  %9709 = vst [vmem:[#allocation185_spill] sm:$0xff] %v7131_v49  ;;  %v1827_v8 = vadd.f32 0.001, %v1683_v34 }
 0x278   : > { %2888 = vperm.xlu0 %4783, %v7105_v11   ;;  %v4814_v51 = vpop.eup %4813 }
 0x279   : > { %v4816_v56 = vpop.eup %4815  ;;  %v7133_v54 = vmul.f32 %v4814_v51, %v2110_v2  ;;  %v1832_v51 = vadd.f32 0.001, %v1688_v28  ;;  %v2103_v2 = vld [vmem:[%s7025_s21 + $0x60] sm:$0xff] }
 0x27a   : > { %v4818_v11 = vpop.eup %4817  ;;  %v7145_v16 = vmul.f32 %v4816_v56, %v2101_v14 }
 0x27b   : > { %v7122_v46 = vpop.xlane.xlu1 %1507  ;;  %2848 = vperm.xlu1 %4784, %v7117_v29   ;;  %v7125_v6 = vpop.xlane.xlu0 %1504  ;;  %9710 = vst [vmem:[#allocation186_spill] sm:$0xff] %v7133_v54  ;;  %v7147_v55 = vmul.f32 %v4818_v11, %v2112_v13  ;;  %4833 = vrsqrt.f32 %v1832_v51  ;;  %v1834_v11 = vadd.f32 0.001, %v1690_v10  ;;  %v2105_v13 = vld [vmem:[%s7025_s21 + $0x70] sm:$0xff]  ;;  %v1694_v51 = vmul.f32 0.020408163, %v6724_v26 }
 0x27c   : > { %2898 = vperm.xlu0 %4783, %v7119_v41   ;;  %9711 = vst [vmem:[#allocation187_spill] sm:$0xff] %v7145_v16  ;;  %v4820_v61 = vpop.eup %4819  ;;  %4835 = vrsqrt.f32 %v1823_v20  ;;  %v1685_v26 = vmul.f32 0.020408163, %v6662_v43  ;;  %v2120_v43 = vld [vmem:[%s7025_s21 + $0xe8] sm:$0xff] }
 0x27d   : > { %9712 = vst [vmem:[#allocation188_spill] sm:$0xff] %v7147_v55  ;;  %v7159_v28 = vmul.f32 %v4820_v61, %v2103_v2  ;;  %4837 = vrsqrt.f32 %v1834_v11  ;;  %v1696_v11 = vmul.f32 0.020408163, %v6740_v47  ;;  %v1687_v47 = vmul.f32 0.020408163, %v6678_v53  ;;  %v2122_v53 = vld [vmem:[%s7025_s21 + $0xf8] sm:$0xff] }
 0x27e   : > { %4839 = vrsqrt.f32 %v1825_v63  ;;  %v1829_v34 = vadd.f32 0.001, %v1685_v26 }
 0x27f   : > { %v7136_v29 = vpop.xlane.xlu1 %1513  ;;  %2853 = vperm.xlu1 %4784, %v7131_v49   ;;  %v7139_v27 = vpop.xlane.xlu0 %1510  ;;  %9713 = vst [vmem:[#allocation189_spill] sm:$0xff] %v7159_v28  ;;  %v1831_v26 = vadd.f32 0.001, %v1687_v47  ;;  %v2124_v47 = vld [vmem:[%s7025_s21 + $0x108] sm:$0xff] }
 0x280   : > { %2908 = vperm.xlu0 %4783, %v7133_v54   ;;  %v4822_v49 = vpop.eup %4821 }
 0x281   : > { %v4824_v56 = vpop.eup %4823  ;;  %v7161_v14 = vmul.f32 %v4822_v49, %v2114_v24  ;;  %v1836_v49 = vadd.f32 0.001, %v1692_v50  ;;  %v2107_v24 = vld [vmem:[%s7025_s21 + $0x80] sm:$0xff] }
 0x282   : > { %v7173_v10 = vmul.f32 %v4824_v56, %v2105_v13 }
 0x283   : > { %v7150_v41 = vpop.xlane.xlu1 %1519  ;;  %2863 = vperm.xlu1 %4784, %v7145_v16   ;;  %v7153_v36 = vpop.xlane.xlu0 %1516  ;;  %9714 = vst [vmem:[#allocation190_spill] sm:$0xff] %v7161_v14  ;;  %4841 = vrsqrt.f32 %v1836_v49  ;;  %v1698_v49 = vmul.f32 0.020408163, %v6756_v0 }
 0x284   : > { %2918 = vperm.xlu0 %4783, %v7147_v55   ;;  %v4826_v16 = vpop.eup %4825  ;;  %9715 = vst [vmem:[#allocation191_spill] sm:$0xff] %v7173_v10  ;;  %4843 = vrsqrt.f32 %v1827_v8 }
 0x285   : > { %v4828_v61 = vpop.eup %4827  ;;  %v7175_v2 = vmul.f32 %v4826_v16, %v2116_v44  ;;  %v1838_v16 = vadd.f32 0.001, %v1694_v51  ;;  %v2109_v44 = vld [vmem:[%s7025_s21 + $0x90] sm:$0xff] }
 0x286   : > { %v7187_v50 = vmul.f32 %v4828_v61, %v2107_v24 }
 0x287   : > { %v7164_v54 = vpop.xlane.xlu1 %1525  ;;  %2873 = vperm.xlu1 %4784, %v7159_v28   ;;  %v7167_v39 = vpop.xlane.xlu0 %1522  ;;  %9716 = vst [vmem:[#allocation192_spill] sm:$0xff] %v7175_v2  ;;  %4845 = vrsqrt.f32 %v1838_v16  ;;  %v9724_v16 = vld [vmem:[#allocation132_spill] sm:$0xff] }
 0x288   : > { %2928 = vperm.xlu0 %4783, %v7161_v14   ;;  %v4830_v28 = vpop.eup %4829  ;;  %9718 = vst [vmem:[#allocation194_spill] sm:$0xff] %v7187_v50  ;;  %4847 = vrsqrt.f32 %v1829_v34  ;;  %v1689_v0 = vmul.f32 0.020408163, %v9724_v16 }
 0x289   : > { %v4832_v56 = vpop.eup %4831  ;;  %v7189_v13 = vmul.f32 %v4830_v28, %v2118_v38  ;;  %v1840_v28 = vadd.f32 0.001, %v1696_v11  ;;  %v2111_v38 = vld [vmem:[%s7025_s21 + $0xa0] sm:$0xff] }
 0x28a   : > { %v7201_v51 = vmul.f32 %v4832_v56, %v2109_v44  ;;  %v9725_v11 = vld [vmem:[#allocation142_spill] sm:$0xff] }
 0x28b   : > { %v7178_v55 = vpop.xlane.xlu1 %1531  ;;  %2883 = vperm.xlu1 %4784, %v7173_v10   ;;  %v7181_v20 = vpop.xlane.xlu0 %1528  ;;  %9719 = vst [vmem:[#allocation195_spill] sm:$0xff] %v7189_v13  ;;  %4849 = vrsqrt.f32 %v1840_v28  ;;  %v1700_v56 = vmul.f32 0.020408163, %v9725_v11  ;;  %v1833_v28 = vadd.f32 0.001, %v1689_v0  ;;  %v2126_v0 = vld [vmem:[%s7025_s21 + $0x118] sm:$0xff] }
 0x28c   : > { %9717 = vst [vmem:[#allocation193_spill] sm:$0xff] %v7181_v20  ;;  %2938 = vperm.xlu0 %4783, %v7175_v2   ;;  %v4834_v10 = vpop.eup %4833  ;;  %9721 = vst [vmem:[#allocation197_spill] sm:$0xff] %v7201_v51  ;;  %4851 = vrsqrt.f32 %v1831_v26 }
 0x28d   : > { %v4836_v61 = vpop.eup %4835  ;;  %v7203_v24 = vmul.f32 %v4834_v10, %v2120_v43  ;;  %v1842_v10 = vadd.f32 0.001, %v1698_v49  ;;  %v9729_v49 = vld [vmem:[#allocation135_spill] sm:$0xff] }
 0x28e   : > { %v7215_v44 = vmul.f32 %v4836_v61, %v2111_v38  ;;  %v1691_v16 = vmul.f32 0.020408163, %v9729_v49  ;;  %v9730_v61 = vld [vmem:[#allocation144_spill] sm:$0xff] }
 0x28f   : > { %v7192_v14 = vpop.xlane.xlu1 %1537  ;;  %2893 = vperm.xlu1 %4784, %v7187_v50   ;;  %v7195_v63 = vpop.xlane.xlu0 %1534  ;;  %9722 = vst [vmem:[#allocation198_spill] sm:$0xff] %v7203_v24  ;;  %4853 = vrsqrt.f32 %v1842_v10  ;;  %v1702_v38 = vmul.f32 0.020408163, %v9730_v61 }
 0x290   : > { %9720 = vst [vmem:[#allocation196_spill] sm:$0xff] %v7195_v63  ;;  %2948 = vperm.xlu0 %4783, %v7189_v13   ;;  %v4838_v50 = vpop.eup %4837  ;;  %9726 = vst [vmem:[#allocation132_spill] sm:$0xff] %v7215_v44  ;;  %4855 = vrsqrt.f32 %v1833_v28  ;;  %v1835_v10 = vadd.f32 0.001, %v1691_v16  ;;  %v2128_v16 = vld [vmem:[%s7025_s21 + $0x128] sm:$0xff] }
 0x291   : > { %v4840_v43 = vpop.eup %4839  ;;  %v7217_v13 = vmul.f32 %v4838_v50, %v2122_v53  ;;  %v1844_v50 = vadd.f32 0.001, %v1700_v56  ;;  %v9735_v56 = vld [vmem:[#allocation138_spill] sm:$0xff] }
 0x292   : > { %v1693_v49 = vmul.f32 0.020408163, %v9735_v56 }
 0x293   : > { %v7206_v2 = vpop.xlane.xlu1 %1543  ;;  %2903 = vperm.xlu1 %4784, %v7201_v51   ;;  %v7209_v8 = vpop.xlane.xlu0 %1540  ;;  %9727 = vst [vmem:[#allocation142_spill] sm:$0xff] %v7217_v13  ;;  %v2113_v51 = vld [vmem:[%s7025_s21 + $0xb0] sm:$0xff]  ;;  %4857 = vrsqrt.f32 %v1844_v50 }
 0x294   : > { %9723 = vst [vmem:[#allocation199_spill] sm:$0xff] %v7209_v8  ;;  %2958 = vperm.xlu0 %4783, %v7203_v24   ;;  %v4842_v8 = vpop.eup %4841  ;;  %v7229_v53 = vmul.f32 %v4840_v43, %v2113_v51  ;;  %v1846_v51 = vadd.f32 0.001, %v1702_v38  ;;  %4859 = vrsqrt.f32 %v1835_v10  ;;  %v1837_v50 = vadd.f32 0.001, %v1693_v49  ;;  %v9741_v38 = vld [vmem:[#allocation140_spill] sm:$0xff] }
 0x295   : > { %v4844_v11 = vpop.eup %4843  ;;  %v7231_v24 = vmul.f32 %v4842_v8, %v2124_v47  ;;  %v9736_v8 = vld [vmem:[#allocation146_spill] sm:$0xff]  ;;  %v1695_v56 = vmul.f32 0.020408163, %v9741_v38  ;;  %v2130_v49 = vld [vmem:[%s7025_s21 + $0x138] sm:$0xff] }
 0x296   : > { %9731 = vst [vmem:[#allocation135_spill] sm:$0xff] %v7229_v53  ;;  %v1704_v43 = vmul.f32 0.020408163, %v9736_v8  ;;  %4861 = vrsqrt.f32 %v1846_v51 }
 0x297   : > { %v7220_v63 = vpop.xlane.xlu1 %1549  ;;  %2913 = vperm.xlu1 %4784, %v7215_v44   ;;  %v7223_v34 = vpop.xlane.xlu0 %1546  ;;  %9732 = vst [vmem:[#allocation144_spill] sm:$0xff] %v7231_v24  ;;  %v2115_v44 = vld [vmem:[%s7025_s21 + $0xc0] sm:$0xff]  ;;  %4863 = vrsqrt.f32 %v1837_v50  ;;  %v1839_v51 = vadd.f32 0.001, %v1695_v56  ;;  %v2132_v56 = vld [vmem:[%s7025_s21 + $0x148] sm:$0xff] }
 0x298   : > { %9728 = vst [vmem:[#allocation200_spill] sm:$0xff] %v7223_v34  ;;  %2968 = vperm.xlu0 %4783, %v7217_v13   ;;  %v4846_v34 = vpop.eup %4845  ;;  %v7243_v47 = vmul.f32 %v4844_v11, %v2115_v44  ;;  %v1848_v44 = vadd.f32 0.001, %v1704_v43  ;;  %v9747_v43 = vld [vmem:[#allocation141_spill] sm:$0xff] }
 0x299   : > { %v4848_v61 = vpop.eup %4847  ;;  %v7245_v13 = vmul.f32 %v4846_v34, %v2126_v0  ;;  %v9742_v34 = vld [vmem:[#allocation148_spill] sm:$0xff]  ;;  %v1697_v38 = vmul.f32 0.020408163, %v9747_v43 }
 0x29a   : > { %9737 = vst [vmem:[#allocation138_spill] sm:$0xff] %v7243_v47  ;;  %v1706_v11 = vmul.f32 0.020408163, %v9742_v34  ;;  %4865 = vrsqrt.f32 %v1848_v44 }
 0x29b   : > { %v7234_v20 = vpop.xlane.xlu1 %1555  ;;  %2923 = vperm.xlu1 %4784, %v7229_v53   ;;  %v7237_v26 = vpop.xlane.xlu0 %1552  ;;  %9738 = vst [vmem:[#allocation146_spill] sm:$0xff] %v7245_v13  ;;  %v2117_v53 = vld [vmem:[%s7025_s21 + $0xd0] sm:$0xff]  ;;  %4867 = vrsqrt.f32 %v1839_v51  ;;  %v1841_v44 = vadd.f32 0.001, %v1697_v38  ;;  %v2134_v38 = vld [vmem:[%s7025_s21 + $0x158] sm:$0xff] }
 0x29c   : > { %9733 = vst [vmem:[#allocation201_spill] sm:$0xff] %v7234_v20  ;;  %9734 = vst [vmem:[#allocation202_spill] sm:$0xff] %v7237_v26  ;;  %2978 = vperm.xlu0 %4783, %v7231_v24   ;;  %v4850_v26 = vpop.eup %4849  ;;  %v7257_v0 = vmul.f32 %v4848_v61, %v2117_v53  ;;  %v1850_v53 = vadd.f32 0.001, %v1706_v11  ;;  %v9753_v11 = vld [vmem:[#allocation143_spill] sm:$0xff] }
 0x29d   : > { %v4852_v8 = vpop.eup %4851  ;;  %v7259_v24 = vmul.f32 %v4850_v26, %v2128_v16  ;;  %v9748_v26 = vld [vmem:[#allocation150_spill] sm:$0xff]  ;;  %v1699_v43 = vmul.f32 0.020408163, %v9753_v11 }
 0x29e   : > { %9743 = vst [vmem:[#allocation140_spill] sm:$0xff] %v7257_v0  ;;  %v1708_v61 = vmul.f32 0.020408163, %v9748_v26  ;;  %4869 = vrsqrt.f32 %v1850_v53 }
 0x29f   : > { %v7248_v20 = vpop.xlane.xlu1 %1561  ;;  %2933 = vperm.xlu1 %4784, %v7243_v47   ;;  %v7251_v28 = vpop.xlane.xlu0 %1558  ;;  %9744 = vst [vmem:[#allocation148_spill] sm:$0xff] %v7259_v24  ;;  %v2119_v47 = vld [vmem:[%s7025_s21 + $0xe0] sm:$0xff]  ;;  %4871 = vrsqrt.f32 %v1841_v44  ;;  %v1843_v53 = vadd.f32 0.001, %v1699_v43  ;;  %v2136_v43 = vld [vmem:[%s7025_s21 + $0x168] sm:$0xff] }
 0x2a0   : > { %9739 = vst [vmem:[#allocation203_spill] sm:$0xff] %v7248_v20  ;;  %9740 = vst [vmem:[#allocation204_spill] sm:$0xff] %v7251_v28  ;;  %2988 = vperm.xlu0 %4783, %v7245_v13   ;;  %v4854_v28 = vpop.eup %4853  ;;  %v7271_v16 = vmul.f32 %v4852_v8, %v2119_v47  ;;  %v1852_v47 = vadd.f32 0.001, %v1708_v61  ;;  %v9758_v61 = vld [vmem:[#allocation145_spill] sm:$0xff] }
 0x2a1   : > { %v4856_v34 = vpop.eup %4855  ;;  %v7273_v13 = vmul.f32 %v4854_v28, %v2130_v49  ;;  %v9754_v28 = vld [vmem:[#allocation152_spill] sm:$0xff]  ;;  %v1701_v11 = vmul.f32 0.020408163, %v9758_v61 }
 0x2a2   : > { %9749 = vst [vmem:[#allocation141_spill] sm:$0xff] %v7271_v16  ;;  %v1710_v8 = vmul.f32 0.020408163, %v9754_v28  ;;  %4873 = vrsqrt.f32 %v1852_v47 }
 0x2a3   : > { %v7262_v20 = vpop.xlane.xlu1 %1567  ;;  %2943 = vperm.xlu1 %4784, %v7257_v0   ;;  %v7265_v10 = vpop.xlane.xlu0 %1564  ;;  %9750 = vst [vmem:[#allocation150_spill] sm:$0xff] %v7273_v13  ;;  %v2121_v0 = vld [vmem:[%s7025_s21 + $0xf0] sm:$0xff]  ;;  %4875 = vrsqrt.f32 %v1843_v53  ;;  %v1845_v47 = vadd.f32 0.001, %v1701_v11  ;;  %v2138_v11 = vld [vmem:[%s7025_s21 + $0x178] sm:$0xff] }
 0x2a4   : > { %9745 = vst [vmem:[#allocation205_spill] sm:$0xff] %v7262_v20  ;;  %9746 = vst [vmem:[#allocation206_spill] sm:$0xff] %v7265_v10  ;;  %2998 = vperm.xlu0 %4783, %v7259_v24   ;;  %v4858_v10 = vpop.eup %4857  ;;  %v7285_v49 = vmul.f32 %v4856_v34, %v2121_v0  ;;  %v1854_v0 = vadd.f32 0.001, %v1710_v8  ;;  %v9762_v8 = vld [vmem:[#allocation147_spill] sm:$0xff] }
 0x2a5   : > { %v4860_v26 = vpop.eup %4859  ;;  %v7287_v24 = vmul.f32 %v4858_v10, %v2132_v56  ;;  %v1712_v10 = vmul.f32 0.020408163, %v6868_v32  ;;  %v1703_v32 = vmul.f32 0.020408163, %v9762_v8 }
 0x2a6   : > { %9755 = vst [vmem:[#allocation143_spill] sm:$0xff] %v7285_v49  ;;  %4877 = vrsqrt.f32 %v1854_v0 }
 0x2a7   : > { %v7276_v20 = vpop.xlane.xlu1 %1573  ;;  %2953 = vperm.xlu1 %4784, %v7271_v16   ;;  %v7279_v50 = vpop.xlane.xlu0 %1570  ;;  %9756 = vst [vmem:[#allocation152_spill] sm:$0xff] %v7287_v24  ;;  %v2123_v16 = vld [vmem:[%s7025_s21 + $0x100] sm:$0xff]  ;;  %4879 = vrsqrt.f32 %v1845_v47  ;;  %v1847_v0 = vadd.f32 0.001, %v1703_v32  ;;  %v2140_v32 = vld [vmem:[%s7025_s21 + $0x188] sm:$0xff] }
 0x2a8   : > { %9751 = vst [vmem:[#allocation207_spill] sm:$0xff] %v7276_v20  ;;  %9752 = vst [vmem:[#allocation208_spill] sm:$0xff] %v7279_v50  ;;  %3008 = vperm.xlu0 %4783, %v7273_v13   ;;  %v4862_v50 = vpop.eup %4861  ;;  %v7299_v34 = vmul.f32 %v4860_v26, %v2123_v16  ;;  %v1856_v16 = vadd.f32 0.001, %v1712_v10  ;;  %v9766_v10 = vld [vmem:[#allocation149_spill] sm:$0xff] }
 0x2a9   : > { %v4864_v56 = vpop.eup %4863  ;;  %v7301_v28 = vmul.f32 %v4862_v50, %v2134_v38  ;;  %v1714_v50 = vmul.f32 0.020408163, %v6884_v4  ;;  %v1705_v4 = vmul.f32 0.020408163, %v9766_v10 }
 0x2aa   : > { %9759 = vst [vmem:[#allocation145_spill] sm:$0xff] %v7299_v34  ;;  %v4866_v13 = vpop.eup %4865  ;;  %4881 = vrsqrt.f32 %v1856_v16 }
 0x2ab   : > { %v7290_v20 = vpop.xlane.xlu1 %1579  ;;  %2963 = vperm.xlu1 %4784, %v7285_v49   ;;  %v7293_v51 = vpop.xlane.xlu0 %1576  ;;  %9760 = vst [vmem:[#allocation210_spill] sm:$0xff] %v7301_v28  ;;  %v2125_v49 = vld [vmem:[%s7025_s21 + $0x110] sm:$0xff]  ;;  %v7315_v61 = vmul.f32 %v4866_v13, %v2136_v43  ;;  %v1858_v13 = vadd.f32 0.001, %v1714_v50  ;;  %4883 = vrsqrt.f32 %v1847_v0  ;;  %v1849_v16 = vadd.f32 0.001, %v1705_v4 }
 0x2ac   : > { %9757 = vst [vmem:[#allocation209_spill] sm:$0xff] %v7293_v51  ;;  %3018 = vperm.xlu0 %4783, %v7287_v24   ;;  %v7313_v26 = vmul.f32 %v4864_v56, %v2125_v49  ;;  %v4868_v38 = vpop.eup %4867  ;;  %v1716_v49 = vmul.f32 0.020408163, %v6900_v9  ;;  %v9770_v50 = vld [vmem:[#allocation151_spill] sm:$0xff]  ;;  %v2142_v4 = vld [vmem:[%s7025_s21 + $0x198] sm:$0xff] }
 0x2ad   : > { %9764 = vst [vmem:[#allocation212_spill] sm:$0xff] %v7315_v61  ;;  %v4870_v24 = vpop.eup %4869  ;;  %v1707_v9 = vmul.f32 0.020408163, %v9770_v50  ;;  %4885 = vrsqrt.f32 %v1858_v13 }
 0x2ae   : > { %9763 = vst [vmem:[#allocation147_spill] sm:$0xff] %v7313_v26  ;;  %v4872_v43 = vpop.eup %4871  ;;  %v7329_v8 = vmul.f32 %v4870_v24, %v2138_v11  ;;  %v1860_v24 = vadd.f32 0.001, %v1716_v49  ;;  %4887 = vrsqrt.f32 %v1849_v16  ;;  %v9774_v49 = vld [vmem:[#allocation153_spill] sm:$0xff] }
 0x2af   : > { %v7304_v51 = vpop.xlane.xlu1 %1585  ;;  %2973 = vperm.xlu1 %4784, %v7299_v34   ;;  %v7307_v44 = vpop.xlane.xlu0 %1582  ;;  %v2127_v34 = vld [vmem:[%s7025_s21 + $0x120] sm:$0xff]  ;;  %v1851_v13 = vadd.f32 0.001, %v1707_v9  ;;  %v2144_v9 = vld [vmem:[%s7025_s21 + $0x1a8] sm:$0xff] }
 0x2b0   : > { %9761 = vst [vmem:[#allocation211_spill] sm:$0xff] %v7307_v44  ;;  %3028 = vperm.xlu0 %4783, %v7301_v28   ;;  %v7327_v56 = vmul.f32 %v4868_v38, %v2127_v34  ;;  %9768 = vst [vmem:[#allocation214_spill] sm:$0xff] %v7329_v8  ;;  %v4874_v28 = vpop.eup %4873  ;;  %v1718_v34 = vmul.f32 0.020408163, %v6916_v52  ;;  %v1709_v52 = vmul.f32 0.020408163, %v9774_v49  ;;  %4889 = vrsqrt.f32 %v1860_v24 }
 0x2b1   : > { %v4876_v11 = vpop.eup %4875  ;;  %v7343_v10 = vmul.f32 %v4874_v28, %v2140_v32  ;;  %4891 = vrsqrt.f32 %v1851_v13 }
 0x2b2   : > { %9767 = vst [vmem:[#allocation149_spill] sm:$0xff] %v7327_v56  ;;  %v1862_v28 = vadd.f32 0.001, %v1718_v34  ;;  %v1853_v24 = vadd.f32 0.001, %v1709_v52  ;;  %v9778_v34 = vld [vmem:[#allocation154_spill] sm:$0xff] }
 0x2b3   : > { %v7318_v44 = vpop.xlane.xlu1 %1591  ;;  %2983 = vperm.xlu1 %4784, %v7313_v26   ;;  %v7321_v53 = vpop.xlane.xlu0 %1588  ;;  %v2129_v26 = vld [vmem:[%s7025_s21 + $0x130] sm:$0xff]  ;;  %9772 = vst [vmem:[#allocation216_spill] sm:$0xff] %v7343_v10  ;;  %v2146_v52 = vld [vmem:[%s7025_s21 + $0x1b8] sm:$0xff] }
 0x2b4   : > { %9765 = vst [vmem:[#allocation213_spill] sm:$0xff] %v7321_v53  ;;  %3038 = vperm.xlu0 %4783, %v7315_v61   ;;  %v7341_v38 = vmul.f32 %v4872_v43, %v2129_v26  ;;  %v4878_v61 = vpop.eup %4877  ;;  %v1720_v26 = vmul.f32 0.020408163, %v6932_v25  ;;  %v1711_v25 = vmul.f32 0.020408163, %v9778_v34  ;;  %4893 = vrsqrt.f32 %v1862_v28  ;;  %v2137_v34 = vld [vmem:[%s7025_s21 + $0x170] sm:$0xff] }
 0x2b5   : > { %v4880_v32 = vpop.eup %4879  ;;  %v7357_v50 = vmul.f32 %v4878_v61, %v2142_v4  ;;  %4895 = vrsqrt.f32 %v1853_v24 }
 0x2b6   : > { %9771 = vst [vmem:[#allocation151_spill] sm:$0xff] %v7341_v38  ;;  %v1864_v61 = vadd.f32 0.001, %v1720_v26  ;;  %v1855_v28 = vadd.f32 0.001, %v1711_v25 }
 0x2b7   : > { %v7332_v53 = vpop.xlane.xlu1 %1597  ;;  %2993 = vperm.xlu1 %4784, %v7327_v56   ;;  %v7335_v47 = vpop.xlane.xlu0 %1594  ;;  %v2131_v56 = vld [vmem:[%s7025_s21 + $0x140] sm:$0xff]  ;;  %9776 = vst [vmem:[#allocation218_spill] sm:$0xff] %v7357_v50 }
 0x2b8   : > { %9769 = vst [vmem:[#allocation215_spill] sm:$0xff] %v7335_v47  ;;  %3048 = vperm.xlu0 %4783, %v7329_v8   ;;  %v7355_v43 = vmul.f32 %v4876_v11, %v2131_v56  ;;  %v4882_v8 = vpop.eup %4881  ;;  %v1722_v56 = vmul.f32 0.020408163, %v6948_v17  ;;  %v1713_v17 = vmul.f32 0.020408163, %v6886_v15  ;;  %4897 = vrsqrt.f32 %v1864_v61  ;;  %v2148_v15 = vld [vmem:[%s7025_s21 + $0x1c8] sm:$0xff] }
 0x2b9   : > { %v4884_v4 = vpop.eup %4883  ;;  %v7371_v49 = vmul.f32 %v4882_v8, %v2144_v9  ;;  %4899 = vrsqrt.f32 %v1855_v28  ;;  %v9784_v61 = vld [vmem:[#allocation156_spill] sm:$0xff] }
 0x2ba   : > { %9775 = vst [vmem:[#allocation153_spill] sm:$0xff] %v7355_v43  ;;  %v1866_v8 = vadd.f32 0.001, %v1722_v56  ;;  %v1857_v25 = vadd.f32 0.001, %v1713_v17  ;;  %v2150_v17 = vld [vmem:[%s7025_s21 + $0x1d8] sm:$0xff] }
 0x2bb   : > { %v7346_v47 = vpop.xlane.xlu1 %1603  ;;  %3003 = vperm.xlu1 %4784, %v7341_v38   ;;  %v7349_v0 = vpop.xlane.xlu0 %1600  ;;  %v2133_v38 = vld [vmem:[%s7025_s21 + $0x150] sm:$0xff]  ;;  %9780 = vst [vmem:[#allocation220_spill] sm:$0xff] %v7371_v49 }
 0x2bc   : > { %9773 = vst [vmem:[#allocation217_spill] sm:$0xff] %v7349_v0  ;;  %3058 = vperm.xlu0 %4783, %v7343_v10   ;;  %v7369_v11 = vmul.f32 %v4880_v32, %v2133_v38  ;;  %v4886_v10 = vpop.eup %4885  ;;  %v1724_v38 = vmul.f32 0.020408163, %v6964_v22  ;;  %v1715_v22 = vmul.f32 0.020408163, %v9784_v61  ;;  %4901 = vrsqrt.f32 %v1866_v8 }
 0x2bd   : > { %v4888_v32 = vpop.eup %4887  ;;  %v7385_v9 = vmul.f32 %v4886_v10, %v2146_v52  ;;  %4903 = vrsqrt.f32 %v1857_v25 }
 0x2be   : > { %9779 = vst [vmem:[#allocation154_spill] sm:$0xff] %v7369_v11  ;;  %v1868_v10 = vadd.f32 0.001, %v1724_v38  ;;  %v7397_v56 = vmul.f32 %v4888_v32, %v2137_v34  ;;  %v1859_v8 = vadd.f32 0.001, %v1715_v22  ;;  %v9788_v38 = vld [vmem:[#allocation159_spill] sm:$0xff] }
 0x2bf   : > { %v7360_v0 = vpop.xlane.xlu1 %1609  ;;  %3013 = vperm.xlu1 %4784, %v7355_v43   ;;  %v7363_v16 = vpop.xlane.xlu0 %1606  ;;  %v2135_v43 = vld [vmem:[%s7025_s21 + $0x160] sm:$0xff]  ;;  %9782 = vst [vmem:[#allocation222_spill] sm:$0xff] %v7385_v9  ;;  %v1728_v32 = vmul.f32 0.020408163, %v6990_v37  ;;  %v2152_v22 = vld [vmem:[%s7025_s21 + $0x1e8] sm:$0xff] }
 0x2c0   : > { %9777 = vst [vmem:[#allocation219_spill] sm:$0xff] %v7363_v16  ;;  %3068 = vperm.xlu0 %4783, %v7357_v50   ;;  %v7383_v26 = vmul.f32 %v4884_v4, %v2135_v43  ;;  %v1726_v43 = vmul.f32 0.020408163, %v6980_v7  ;;  %9785 = vst [vmem:[#allocation156_spill] sm:$0xff] %v7397_v56  ;;  %v1717_v7 = vmul.f32 0.020408163, %v9788_v38  ;;  %4905 = vrsqrt.f32 %v1868_v10 }
 0x2c1   : > { %4907 = vrsqrt.f32 %v1859_v8 }
 0x2c2   : > { %9781 = vst [vmem:[#allocation221_spill] sm:$0xff] %v7383_v26  ;;  %v1861_v10 = vadd.f32 0.001, %v1717_v7  ;;  %v2154_v7 = vld [vmem:[%s7025_s21 + $0x1f8] sm:$0xff] }
 0x2c3   : > { %v7374_v16 = vpop.xlane.xlu1 %1615  ;;  %3023 = vperm.xlu1 %4784, %v7369_v11   ;;  %v7377_v13 = vpop.xlane.xlu0 %1612 }
 0x2c4   : > { %3078 = vperm.xlu0 %4783, %v7371_v49   ;;  %v4890_v11 = vpop.eup %4889 }
 0x2c5   : > { %v4892_v4 = vpop.eup %4891  ;;  %v7399_v52 = vmul.f32 %v4890_v11, %v2148_v15  ;;  %v1870_v11 = vadd.f32 0.001, %v1726_v43  ;;  %v9792_v43 = vld [vmem:[#allocation162_spill] sm:$0xff] }
 0x2c6   : > { %v4894_v49 = vpop.eup %4893  ;;  %v1719_v37 = vmul.f32 0.020408163, %v9792_v43  ;;  %v2145_v43 = vld [vmem:[%s7025_s21 + $0x1b0] sm:$0xff] }
 0x2c7   : > { %v7388_v50 = vpop.xlane.xlu1 %1621  ;;  %3033 = vperm.xlu1 %4784, %v7383_v26   ;;  %v7391_v24 = vpop.xlane.xlu0 %1618  ;;  %9786 = vst [vmem:[#allocation224_spill] sm:$0xff] %v7399_v52  ;;  %v2139_v26 = vld [vmem:[%s7025_s21 + $0x180] sm:$0xff]  ;;  %v7413_v61 = vmul.f32 %v4894_v49, %v2150_v17  ;;  %4909 = vrsqrt.f32 %v1870_v11  ;;  %v1872_v49 = vadd.f32 0.001, %v1728_v32 }
 0x2c8   : > { %9783 = vst [vmem:[#allocation223_spill] sm:$0xff] %v7391_v24  ;;  %3088 = vperm.xlu0 %4783, %v7385_v9   ;;  %v7411_v34 = vmul.f32 %v4892_v4, %v2139_v26  ;;  %v4896_v15 = vpop.eup %4895  ;;  %v1730_v26 = vmul.f32 0.020408163, %v6997_v30  ;;  %4911 = vrsqrt.f32 %v1861_v10  ;;  %v1863_v11 = vadd.f32 0.001, %v1719_v37 }
 0x2c9   : > { %9790 = vst [vmem:[#allocation226_spill] sm:$0xff] %v7413_v61  ;;  %v4898_v9 = vpop.eup %4897  ;;  %v1721_v30 = vmul.f32 0.020408163, %v6950_v40  ;;  %4913 = vrsqrt.f32 %v1872_v49  ;;  %v2156_v40 = vld [vmem:[%s7025_s21 + $0x208] sm:$0xff]  ;;  %v9798_v49 = vld [vmem:[#allocation165_spill] sm:$0xff] }
 0x2ca   : > { %9789 = vst [vmem:[#allocation159_spill] sm:$0xff] %v7411_v34  ;;  %v4900_v17 = vpop.eup %4899  ;;  %v7427_v38 = vmul.f32 %v4898_v9, %v2152_v22  ;;  %v1874_v9 = vadd.f32 0.001, %v1730_v26  ;;  %4915 = vrsqrt.f32 %v1863_v11  ;;  %v2158_v11 = vld [vmem:[%s7025_s21 + $0x218] sm:$0xff] }
 0x2cb   : > { %v7402_v24 = vpop.xlane.xlu1 %1627  ;;  %3043 = vperm.xlu1 %4784, %v7397_v56   ;;  %v7405_v28 = vpop.xlane.xlu0 %1624  ;;  %v2141_v56 = vld [vmem:[%s7025_s21 + $0x190] sm:$0xff]  ;;  %v1865_v37 = vadd.f32 0.001, %v1721_v30 }
 0x2cc   : > { %9787 = vst [vmem:[#allocation225_spill] sm:$0xff] %v7405_v28  ;;  %3098 = vperm.xlu0 %4783, %v7399_v52   ;;  %v7425_v4 = vmul.f32 %v4896_v15, %v2141_v56  ;;  %9794 = vst [vmem:[#allocation228_spill] sm:$0xff] %v7427_v38  ;;  %v4902_v52 = vpop.eup %4901  ;;  %v1732_v56 = vmul.f32 0.020408163, %v7005_v12  ;;  %v1723_v12 = vmul.f32 0.020408163, %v9798_v49  ;;  %4917 = vrsqrt.f32 %v1874_v9 }
 0x2cd   : > { %v4904_v15 = vpop.eup %4903  ;;  %v7441_v22 = vmul.f32 %v4902_v52, %v2154_v7  ;;  %4919 = vrsqrt.f32 %v1865_v37  ;;  %v9801_v9 = vld [vmem:[#allocation168_spill] sm:$0xff] }
 0x2ce   : > { %9793 = vst [vmem:[#allocation162_spill] sm:$0xff] %v7425_v4  ;;  %v1876_v52 = vadd.f32 0.001, %v1732_v56  ;;  %v7453_v26 = vmul.f32 %v4904_v15, %v2145_v43  ;;  %v1867_v30 = vadd.f32 0.001, %v1723_v12  ;;  %v2160_v12 = vld [vmem:[%s7025_s21 + $0x228] sm:$0xff] }
 0x2cf   : > { %v7416_v28 = vpop.xlane.xlu1 %1633  ;;  %3053 = vperm.xlu1 %4784, %v7411_v34   ;;  %v7419_v25 = vpop.xlane.xlu0 %1630  ;;  %v2143_v34 = vld [vmem:[%s7025_s21 + $0x1a0] sm:$0xff]  ;;  %9796 = vst [vmem:[#allocation230_spill] sm:$0xff] %v7441_v22  ;;  %v1725_v56 = vmul.f32 0.020408163, %v9801_v9 }
 0x2d0   : > { %9791 = vst [vmem:[#allocation227_spill] sm:$0xff] %v7419_v25  ;;  %3108 = vperm.xlu0 %4783, %v7413_v61   ;;  %v7439_v32 = vmul.f32 %v4900_v17, %v2143_v34  ;;  %v1734_v34 = vmul.f32 0.020408163, %v7011_v57  ;;  %9799 = vst [vmem:[#allocation165_spill] sm:$0xff] %v7453_v26  ;;  %4921 = vrsqrt.f32 %v1876_v52  ;;  %v2151_v9 = vld [vmem:[%s7025_s21 + $0x1e0] sm:$0xff] }
 0x2d1   : > { %4923 = vrsqrt.f32 %v1867_v30  ;;  %v1869_v52 = vadd.f32 0.001, %v1725_v56 }
 0x2d2   : > { %9795 = vst [vmem:[#allocation229_spill] sm:$0xff] %v7439_v32  ;;  %v1878_v57 = vadd.f32 0.001, %v1734_v34 }
 0x2d3   : > { %v7430_v25 = vpop.xlane.xlu1 %1639  ;;  %3063 = vperm.xlu1 %4784, %v7425_v4   ;;  %v7433_v8 = vpop.xlane.xlu0 %1636 }
 0x2d4   : > { %3118 = vperm.xlu0 %4783, %v7427_v38   ;;  %v4906_v4 = vpop.eup %4905  ;;  %4925 = vrsqrt.f32 %v1878_v57 }
 0x2d5   : > { %v4908_v17 = vpop.eup %4907  ;;  %v7455_v7 = vmul.f32 %v4906_v4, %v2156_v40  ;;  %v1736_v4 = vmul.f32 0.020408163, %v7017_v58  ;;  %v1727_v58 = vmul.f32 0.020408163, %v6992_v23  ;;  %v2162_v23 = vld [vmem:[%s7025_s21 + $0x238] sm:$0xff]  ;;  %4927 = vrsqrt.f32 %v1869_v52 }
 0x2d6   : > { %v4910_v38 = vpop.eup %4909 }
 0x2d7   : > { %v7444_v61 = vpop.xlane.xlu1 %1645  ;;  %3073 = vperm.xlu1 %4784, %v7439_v32   ;;  %v7447_v10 = vpop.xlane.xlu0 %1642  ;;  %9800 = vst [vmem:[#allocation232_spill] sm:$0xff] %v7455_v7  ;;  %v2147_v32 = vld [vmem:[%s7025_s21 + $0x1c0] sm:$0xff]  ;;  %v7469_v49 = vmul.f32 %v4910_v38, %v2158_v11  ;;  %v1738_v38 = vmul.f32 0.020408163, %v7030_v45  ;;  %v1871_v56 = vadd.f32 0.001, %v1727_v58 }
 0x2d8   : > { %9797 = vst [vmem:[#allocation231_spill] sm:$0xff] %v7447_v10  ;;  %3128 = vperm.xlu0 %4783, %v7441_v22   ;;  %v7467_v43 = vmul.f32 %v4908_v17, %v2147_v32  ;;  %v4912_v40 = vpop.eup %4911  ;;  %v1880_v32 = vadd.f32 0.001, %v1736_v4  ;;  %v1729_v45 = vmul.f32 0.020408163, %v6999_v35  ;;  %v2164_v35 = vld [vmem:[%s7025_s21 + $0x248] sm:$0xff] }
 0x2d9   : > { %9803 = vst [vmem:[#allocation233_spill] sm:$0xff] %v7469_v49  ;;  %v4914_v22 = vpop.eup %4913 }
 0x2da   : > { %9802 = vst [vmem:[#allocation168_spill] sm:$0xff] %v7467_v43  ;;  %v4916_v17 = vpop.eup %4915  ;;  %v7481_v11 = vmul.f32 %v4914_v22, %v2160_v12  ;;  %4929 = vrsqrt.f32 %v1880_v32  ;;  %v1882_v22 = vadd.f32 0.001, %v1738_v38  ;;  %v2153_v12 = vld [vmem:[%s7025_s21 + $0x1f0] sm:$0xff]  ;;  %v1873_v58 = vadd.f32 0.001, %v1729_v45 }
 0x2db   : > { %v7458_v10 = vpop.xlane.xlu1 %1651  ;;  %3083 = vperm.xlu1 %4784, %v7453_v26   ;;  %v7465_v15 = vpop.xlane.xlu0 %1648  ;;  %v2149_v26 = vld [vmem:[%s7025_s21 + $0x1d0] sm:$0xff]  ;;  %v7493_v57 = vmul.f32 %v4916_v17, %v2151_v9  ;;  %4931 = vrsqrt.f32 %v1871_v56  ;;  %v1742_v32 = vmul.f32 0.020408163, %v7052_v21  ;;  %v1733_v21 = vmul.f32 0.020408163, %v7013_v19  ;;  %v2168_v19 = vld [vmem:[%s7025_s21 + $0x268] sm:$0xff] }
 0x2dc   : > { %3138 = vperm.xlu0 %4783, %v7455_v7   ;;  %v7479_v34 = vmul.f32 %v4912_v40, %v2149_v26  ;;  %v1740_v26 = vmul.f32 0.020408163, %v7040_v60  ;;  %v1731_v60 = vmul.f32 0.020408163, %v7007_v33  ;;  %4933 = vrsqrt.f32 %v1882_v22  ;;  %v2166_v33 = vld [vmem:[%s7025_s21 + $0x258] sm:$0xff] }
 0x2dd   : > { %4935 = vrsqrt.f32 %v1873_v58  ;;  %v1744_v22 = vmul.f32 0.020408163, %v7066_v59 }
 0x2de   : > { %9804 = vst [vmem:[#allocation234_spill] sm:$0xff] %v7479_v34  ;;  %v1875_v45 = vadd.f32 0.001, %v1731_v60  ;;  %v1877_v60 = vadd.f32 0.001, %v1733_v21  ;;  %v2170_v21 = vld [vmem:[%s7025_s21 + $0x278] sm:$0xff] }
 0x2df   : > { %v7472_v37 = vpop.xlane.xlu1 %1657  ;;  %3093 = vperm.xlu1 %4784, %v7467_v43   ;;  %v4918_v43 = vpop.eup %4917 }
 0x2e0   : > { %3148 = vperm.xlu0 %4783, %v7469_v49   ;;  %v7484_v7 = vpop.xlane.xlu0 %1654  ;;  %v4920_v4 = vpop.eup %4919  ;;  %v7495_v40 = vmul.f32 %v4918_v43, %v2162_v23  ;;  %v1884_v43 = vadd.f32 0.001, %v1740_v26  ;;  %v2155_v23 = vld [vmem:[%s7025_s21 + $0x200] sm:$0xff] }
 0x2e1   : > { %v7507_v38 = vmul.f32 %v4920_v4, %v2153_v12 }
 0x2e2   : > { %4937 = vrsqrt.f32 %v1884_v43  ;;  %v9813_v43 = vld [vmem:[#allocation169_spill] sm:$0xff] }
 0x2e3   : > { %v7486_v30 = vpop.permute.xlu1 %2818  ;;  %3103 = vperm.xlu1 %4784, %v7479_v34   ;;  %v4922_v34 = vpop.eup %4921  ;;  %9807 = vst [vmem:[#allocation237_spill] sm:$0xff] %v7507_v38  ;;  %4939 = vrsqrt.f32 %v1875_v45  ;;  %v1735_v59 = vmul.f32 0.020408163, %v9813_v43 }
 0x2e4   : > { %3158 = vperm.xlu0 %4783, %v7481_v11   ;;  %v4924_v17 = vpop.eup %4923  ;;  %v7509_v9 = vmul.f32 %v4922_v34, %v2164_v35  ;;  %v1886_v34 = vadd.f32 0.001, %v1742_v32  ;;  %v2157_v35 = vld [vmem:[%s7025_s21 + $0x210] sm:$0xff]  ;;  %v1746_v32 = vmul.f32 0.020408163, %v7080_v62 }
 0x2e5   : > { %v7521_v26 = vmul.f32 %v4924_v17, %v2155_v23 }
 0x2e6   : > { %4941 = vrsqrt.f32 %v1886_v34  ;;  %v1879_v34 = vadd.f32 0.001, %v1735_v59  ;;  %v2172_v59 = vld [vmem:[%s7025_s21 + $0x288] sm:$0xff] }
 0x2e7   : > { %v7498_v49 = vpop.permute.xlu1 %2823  ;;  %3113 = vperm.xlu1 %4784, %v7493_v57   ;;  %v7501_v52 = vpop.permute.xlu0 %2813  ;;  %9809 = vst [vmem:[#allocation239_spill] sm:$0xff] %v7521_v26  ;;  %4943 = vrsqrt.f32 %v1877_v60 }
 0x2e8   : > { %9805 = vst [vmem:[#allocation235_spill] sm:$0xff] %v7498_v49  ;;  %9806 = vst [vmem:[#allocation236_spill] sm:$0xff] %v7501_v52  ;;  %3168 = vperm.xlu0 %4783, %v7495_v40   ;;  %v4926_v49 = vpop.eup %4925 }
 0x2e9   : > { %v4928_v4 = vpop.eup %4927  ;;  %v7523_v12 = vmul.f32 %v4926_v49, %v2166_v33  ;;  %v1888_v49 = vadd.f32 0.001, %v1744_v22  ;;  %v9816_v22 = vld [vmem:[#allocation170_spill] sm:$0xff] }
 0x2ea   : > { %v7535_v17 = vmul.f32 %v4928_v4, %v2157_v35  ;;  %v1737_v62 = vmul.f32 0.020408163, %v9816_v22  ;;  %v1748_v4 = vmul.f32 0.020408163, %v7094_v31  ;;  %v1739_v31 = vmul.f32 0.020408163, %v7042_v5 }
 0x2eb   : > { %v7512_v52 = vpop.permute.xlu1 %2828  ;;  %3123 = vperm.xlu1 %4784, %v7507_v38   ;;  %v7515_v56 = vpop.permute.xlu0 %2858  ;;  %9810 = vst [vmem:[#allocation240_spill] sm:$0xff] %v7523_v12  ;;  %4945 = vrsqrt.f32 %v1888_v49  ;;  %v2163_v22 = vld [vmem:[%s7025_s21 + $0x240] sm:$0xff]  ;;  %v2174_v5 = vld [vmem:[%s7025_s21 + $0x298] sm:$0xff] }
 0x2ec   : > { %9808 = vst [vmem:[#allocation238_spill] sm:$0xff] %v7515_v56  ;;  %3178 = vperm.xlu0 %4783, %v7509_v9   ;;  %v4930_v56 = vpop.eup %4929  ;;  %9814 = vst [vmem:[#allocation169_spill] sm:$0xff] %v7535_v17  ;;  %4947 = vrsqrt.f32 %v1879_v34  ;;  %v1881_v49 = vadd.f32 0.001, %v1737_v62  ;;  %v1883_v62 = vadd.f32 0.001, %v1739_v31 }
 0x2ed   : > { %v4932_v23 = vpop.eup %4931  ;;  %v7537_v33 = vmul.f32 %v4930_v56, %v2168_v19  ;;  %v1890_v56 = vadd.f32 0.001, %v1746_v32  ;;  %v2176_v31 = vld [vmem:[%s7025_s21 + $0x2a8] sm:$0xff] }
 0x2ef   : > { %v7526_v38 = vpop.permute.xlu1 %2833  ;;  %3133 = vperm.xlu1 %4784, %v7521_v26   ;;  %v7529_v58 = vpop.permute.xlu0 %2868  ;;  %4949 = vrsqrt.f32 %v1890_v56  ;;  %v9822_v56 = vld [vmem:[#allocation174_spill] sm:$0xff] }
 0x2f0   : > { %9811 = vst [vmem:[#allocation241_spill] sm:$0xff] %v7526_v38  ;;  %9812 = vst [vmem:[#allocation242_spill] sm:$0xff] %v7529_v58  ;;  %3188 = vperm.xlu0 %4783, %v7523_v12   ;;  %v2159_v38 = vld [vmem:[%s7025_s21 + $0x220] sm:$0xff]  ;;  %v4934_v58 = vpop.eup %4933  ;;  %4951 = vrsqrt.f32 %v1881_v49 }
 0x2f1   : > { %v7549_v35 = vmul.f32 %v4932_v23, %v2159_v38  ;;  %v4936_v19 = vpop.eup %4935  ;;  %v7551_v43 = vmul.f32 %v4934_v58, %v2170_v21  ;;  %v1892_v38 = vadd.f32 0.001, %v1748_v4  ;;  %v1750_v58 = vmul.f32 0.020408163, %v7108_v1 }
 0x2f2   : > { %v1741_v1 = vmul.f32 0.020408163, %v9822_v56  ;;  %v2167_v56 = vld [vmem:[%s7025_s21 + $0x260] sm:$0xff] }
 0x2f3   : > { %v7540_v26 = vpop.permute.xlu1 %2838  ;;  %3143 = vperm.xlu1 %4784, %v7535_v17   ;;  %v7543_v45 = vpop.permute.xlu0 %2878  ;;  %9817 = vst [vmem:[#allocation170_spill] sm:$0xff] %v7551_v43  ;;  %v2161_v17 = vld [vmem:[%s7025_s21 + $0x230] sm:$0xff]  ;;  %4953 = vrsqrt.f32 %v1892_v38 }
 0x2f4   : > { %9815 = vst [vmem:[#allocation243_spill] sm:$0xff] %v7543_v45  ;;  %3198 = vperm.xlu0 %4783, %v7537_v33   ;;  %v4938_v45 = vpop.eup %4937  ;;  %v7563_v32 = vmul.f32 %v4936_v19, %v2161_v17  ;;  %v1894_v17 = vadd.f32 0.001, %v1750_v58  ;;  %4955 = vrsqrt.f32 %v1883_v62  ;;  %v1885_v38 = vadd.f32 0.001, %v1741_v1 }
 0x2f5   : > { %v4940_v23 = vpop.eup %4939  ;;  %v7565_v21 = vmul.f32 %v4938_v45, %v2172_v59  ;;  %v1752_v45 = vmul.f32 0.020408163, %v7122_v46  ;;  %v1743_v46 = vmul.f32 0.020408163, %v7069_v48  ;;  %v1754_v58 = vmul.f32 0.020408163, %v7136_v29 }
 0x2f6   : > { %9820 = vst [vmem:[#allocation246_spill] sm:$0xff] %v7563_v32  ;;  %v7577_v4 = vmul.f32 %v4940_v23, %v2163_v22  ;;  %4957 = vrsqrt.f32 %v1894_v17  ;;  %v2178_v48 = vld [vmem:[%s7025_s21 + $0x2b8] sm:$0xff]  ;;  %v1745_v29 = vmul.f32 0.020408163, %v7083_v18  ;;  %v2180_v18 = vld [vmem:[%s7025_s21 + $0x2c8] sm:$0xff] }
 0x2f7   : > { %v7554_v12 = vpop.permute.xlu1 %2843  ;;  %3153 = vperm.xlu1 %4784, %v7549_v35   ;;  %v7557_v60 = vpop.permute.xlu0 %2888  ;;  %4959 = vrsqrt.f32 %v1885_v38  ;;  %v1887_v1 = vadd.f32 0.001, %v1743_v46 }
 0x2f8   : > { %9818 = vst [vmem:[#allocation244_spill] sm:$0xff] %v7554_v12  ;;  %9819 = vst [vmem:[#allocation245_spill] sm:$0xff] %v7557_v60  ;;  %3208 = vperm.xlu0 %4783, %v7551_v43   ;;  %v4942_v12 = vpop.eup %4941  ;;  %v1889_v46 = vadd.f32 0.001, %v1745_v29 }
 0x2f9   : > { %v4944_v19 = vpop.eup %4943  ;;  %v7579_v59 = vmul.f32 %v4942_v12, %v2174_v5  ;;  %v1896_v12 = vadd.f32 0.001, %v1752_v45 }
 0x2fb   : > { %v7568_v60 = vpop.permute.xlu1 %2848  ;;  %3163 = vperm.xlu1 %4784, %v7563_v32   ;;  %v7571_v34 = vpop.permute.xlu0 %2898  ;;  %v2165_v32 = vld [vmem:[%s7025_s21 + $0x250] sm:$0xff]  ;;  %4961 = vrsqrt.f32 %v1896_v12  ;;  %v1758_v12 = vmul.f32 0.020408163, %v7164_v54  ;;  %v1749_v54 = vmul.f32 0.020408163, %v7111_v42  ;;  %v2184_v42 = vld [vmem:[%s7025_s21 + $0x2e8] sm:$0xff] }
 0x2fc   : > { %9821 = vst [vmem:[#allocation247_spill] sm:$0xff] %v7571_v34  ;;  %3218 = vperm.xlu0 %4783, %v7565_v21   ;;  %v4946_v34 = vpop.eup %4945  ;;  %v7591_v23 = vmul.f32 %v4944_v19, %v2165_v32  ;;  %v1898_v32 = vadd.f32 0.001, %v1754_v58  ;;  %4963 = vrsqrt.f32 %v1887_v1 }
 0x2fd   : > { %v4948_v22 = vpop.eup %4947  ;;  %v7593_v5 = vmul.f32 %v4946_v34, %v2176_v31  ;;  %v1756_v34 = vmul.f32 0.020408163, %v7150_v41  ;;  %v2169_v31 = vld [vmem:[%s7025_s21 + $0x270] sm:$0xff]  ;;  %v1747_v41 = vmul.f32 0.020408163, %v7097_v3  ;;  %v2182_v3 = vld [vmem:[%s7025_s21 + $0x2d8] sm:$0xff] }
 0x2fe   : > { %v7605_v17 = vmul.f32 %v4948_v22, %v2167_v56  ;;  %4965 = vrsqrt.f32 %v1898_v32  ;;  %v1760_v32 = vmul.f32 0.020408163, %v7178_v55  ;;  %v1751_v55 = vmul.f32 0.020408163, %v7125_v6  ;;  %v2186_v6 = vld [vmem:[%s7025_s21 + $0x2f8] sm:$0xff] }
 0x2ff   : > { %v7582_v43 = vpop.permute.xlu1 %2853  ;;  %3173 = vperm.xlu1 %4784, %v7577_v4   ;;  %v7585_v49 = vpop.permute.xlu0 %2908  ;;  %4967 = vrsqrt.f32 %v1889_v46  ;;  %v1891_v29 = vadd.f32 0.001, %v1747_v41  ;;  %v1893_v41 = vadd.f32 0.001, %v1749_v54 }
 0x300   : > { %9823 = vst [vmem:[#allocation174_spill] sm:$0xff] %v7582_v43  ;;  %9824 = vst [vmem:[#allocation248_spill] sm:$0xff] %v7585_v49  ;;  %3228 = vperm.xlu0 %4783, %v7579_v59   ;;  %v4950_v49 = vpop.eup %4949  ;;  %v1895_v54 = vadd.f32 0.001, %v1751_v55 }
 0x301   : > { %v4952_v45 = vpop.eup %4951  ;;  %v7607_v19 = vmul.f32 %v4950_v49, %v2178_v48  ;;  %v1900_v49 = vadd.f32 0.001, %v1756_v34  ;;  %v2171_v48 = vld [vmem:[%s7025_s21 + $0x280] sm:$0xff] }
 0x302   : > { %v7619_v58 = vmul.f32 %v4952_v45, %v2169_v31 }
 0x303   : > { %v7596_v43 = vpop.permute.xlu1 %2863  ;;  %3183 = vperm.xlu1 %4784, %v7591_v23   ;;  %v7599_v62 = vpop.permute.xlu0 %2918  ;;  %4969 = vrsqrt.f32 %v1900_v49  ;;  %v1762_v49 = vmul.f32 0.020408163, %v7192_v14  ;;  %v1753_v14 = vmul.f32 0.020408163, %v7139_v27  ;;  %v2188_v27 = vld [vmem:[%s7025_s21 + $0x308] sm:$0xff] }
 0x304   : > { %9825 = vst [vmem:[#allocation249_spill] sm:$0xff] %v7596_v43  ;;  %9826 = vst [vmem:[#allocation250_spill] sm:$0xff] %v7599_v62  ;;  %3238 = vperm.xlu0 %4783, %v7593_v5   ;;  %v4954_v62 = vpop.eup %4953  ;;  %4971 = vrsqrt.f32 %v1891_v29 }
 0x305   : > { %v4956_v22 = vpop.eup %4955  ;;  %v7621_v56 = vmul.f32 %v4954_v62, %v2180_v18  ;;  %v1902_v62 = vadd.f32 0.001, %v1758_v12  ;;  %v2173_v18 = vld [vmem:[%s7025_s21 + $0x290] sm:$0xff]  ;;  %v1897_v55 = vadd.f32 0.001, %v1753_v14 }
 0x306   : > { %v7633_v34 = vmul.f32 %v4956_v22, %v2171_v48 }
 0x307   : > { %v7610_v43 = vpop.permute.xlu1 %2873  ;;  %3193 = vperm.xlu1 %4784, %v7605_v17   ;;  %v7613_v38 = vpop.permute.xlu0 %2928  ;;  %4973 = vrsqrt.f32 %v1902_v62  ;;  %v1764_v62 = vmul.f32 0.020408163, %v7206_v2  ;;  %v1755_v2 = vmul.f32 0.020408163, %v7153_v36  ;;  %v2190_v36 = vld [vmem:[%s7025_s21 + $0x318] sm:$0xff] }
 0x308   : > { %9827 = vst [vmem:[#allocation251_spill] sm:$0xff] %v7610_v43  ;;  %9828 = vst [vmem:[#allocation252_spill] sm:$0xff] %v7613_v38  ;;  %3248 = vperm.xlu0 %4783, %v7607_v19   ;;  %v4958_v38 = vpop.eup %4957  ;;  %4975 = vrsqrt.f32 %v1893_v41 }
 0x309   : > { %v4960_v45 = vpop.eup %4959  ;;  %v7635_v31 = vmul.f32 %v4958_v38, %v2182_v3  ;;  %v1904_v38 = vadd.f32 0.001, %v1760_v32  ;;  %v2175_v3 = vld [vmem:[%s7025_s21 + $0x2a0] sm:$0xff]  ;;  %v1899_v14 = vadd.f32 0.001, %v1755_v2 }
 0x30a   : > { %v7647_v12 = vmul.f32 %v4960_v45, %v2173_v18 }
 0x30b   : > { %v7624_v43 = vpop.permute.xlu1 %2883  ;;  %3203 = vperm.xlu1 %4784, %v7619_v58   ;;  %v7627_v1 = vpop.permute.xlu0 %2938  ;;  %4977 = vrsqrt.f32 %v1904_v38  ;;  %v1766_v38 = vmul.f32 0.020408163, %v7220_v63  ;;  %v1757_v63 = vmul.f32 0.020408163, %v7167_v39  ;;  %v2192_v39 = vld [vmem:[%s7025_s21 + $0x328] sm:$0xff] }
 0x30c   : > { %9829 = vst [vmem:[#allocation253_spill] sm:$0xff] %v7624_v43  ;;  %9830 = vst [vmem:[#allocation254_spill] sm:$0xff] %v7627_v1  ;;  %3258 = vperm.xlu0 %4783, %v7621_v56   ;;  %v4962_v1 = vpop.eup %4961  ;;  %4979 = vrsqrt.f32 %v1895_v54 }
 0x30d   : > { %v4964_v22 = vpop.eup %4963  ;;  %v7649_v48 = vmul.f32 %v4962_v1, %v2184_v42  ;;  %v1906_v1 = vadd.f32 0.001, %v1762_v49  ;;  %v2177_v42 = vld [vmem:[%s7025_s21 + $0x2b0] sm:$0xff]  ;;  %v1901_v2 = vadd.f32 0.001, %v1757_v63  ;;  %v2194_v63 = vld [vmem:[%s7025_s21 + $0x338] sm:$0xff] }
 0x30e   : > { %v7661_v32 = vmul.f32 %v4964_v22, %v2175_v3 }
 0x30f   : > { %v7638_v43 = vpop.permute.xlu1 %2893  ;;  %3213 = vperm.xlu1 %4784, %v7633_v34   ;;  %v7641_v46 = vpop.permute.xlu0 %2948  ;;  %4981 = vrsqrt.f32 %v1906_v1  ;;  %v9841_v1 = vld [vmem:[#allocation201_spill] sm:$0xff] }
 0x310   : > { %9831 = vst [vmem:[#allocation255_spill] sm:$0xff] %v7638_v43  ;;  %9832 = vst [vmem:[#allocation256_spill] sm:$0xff] %v7641_v46  ;;  %3268 = vperm.xlu0 %4783, %v7635_v31   ;;  %v4966_v46 = vpop.eup %4965  ;;  %4983 = vrsqrt.f32 %v1897_v55 }
 0x311   : > { %v4968_v45 = vpop.eup %4967  ;;  %v7663_v18 = vmul.f32 %v4966_v46, %v2186_v6  ;;  %v1908_v46 = vadd.f32 0.001, %v1764_v62  ;;  %v2179_v6 = vld [vmem:[%s7025_s21 + $0x2c0] sm:$0xff]  ;;  %v1768_v62 = vmul.f32 0.020408163, %v9841_v1 }
 0x312   : > { %v7675_v49 = vmul.f32 %v4968_v45, %v2177_v42 }
 0x313   : > { %v7652_v43 = vpop.permute.xlu1 %2903  ;;  %3223 = vperm.xlu1 %4784, %v7647_v12   ;;  %v7655_v29 = vpop.permute.xlu0 %2958  ;;  %4985 = vrsqrt.f32 %v1908_v46  ;;  %v9846_v46 = vld [vmem:[#allocation193_spill] sm:$0xff] }
 0x314   : > { %9833 = vst [vmem:[#allocation257_spill] sm:$0xff] %v7652_v43  ;;  %9834 = vst [vmem:[#allocation258_spill] sm:$0xff] %v7655_v29  ;;  %3278 = vperm.xlu0 %4783, %v7649_v48   ;;  %v4970_v29 = vpop.eup %4969  ;;  %4987 = vrsqrt.f32 %v1899_v14 }
 0x315   : > { %9837 = vst [vmem:[#allocation261_spill] sm:$0xff] %v7675_v49  ;;  %v4972_v22 = vpop.eup %4971  ;;  %v7677_v3 = vmul.f32 %v4970_v29, %v2188_v27  ;;  %v1910_v29 = vadd.f32 0.001, %v1766_v38  ;;  %v1759_v38 = vmul.f32 0.020408163, %v9846_v46 }
 0x316   : > { %v7689_v45 = vmul.f32 %v4972_v22, %v2179_v6  ;;  %v9847_v22 = vld [vmem:[#allocation203_spill] sm:$0xff] }
 0x317   : > { %v7666_v43 = vpop.permute.xlu1 %2913  ;;  %3233 = vperm.xlu1 %4784, %v7661_v32   ;;  %v7669_v41 = vpop.permute.xlu0 %2968  ;;  %9838 = vst [vmem:[#allocation262_spill] sm:$0xff] %v7677_v3  ;;  %4989 = vrsqrt.f32 %v1910_v29  ;;  %v1770_v6 = vmul.f32 0.020408163, %v9847_v22  ;;  %v1903_v29 = vadd.f32 0.001, %v1759_v38  ;;  %v2196_v38 = vld [vmem:[%s7025_s21 + $0x348] sm:$0xff] }
 0x318   : > { %9835 = vst [vmem:[#allocation259_spill] sm:$0xff] %v7666_v43  ;;  %9836 = vst [vmem:[#allocation260_spill] sm:$0xff] %v7669_v41  ;;  %3288 = vperm.xlu0 %4783, %v7663_v18   ;;  %v4974_v41 = vpop.eup %4973  ;;  %4991 = vrsqrt.f32 %v1901_v2 }
 0x319   : > { %9842 = vst [vmem:[#allocation201_spill] sm:$0xff] %v7689_v45  ;;  %v4976_v42 = vpop.eup %4975  ;;  %v7691_v27 = vmul.f32 %v4974_v41, %v2190_v36  ;;  %v1912_v41 = vadd.f32 0.001, %v1768_v62  ;;  %v9852_v62 = vld [vmem:[#allocation196_spill] sm:$0xff] }
 0x31a   : > { %v1761_v46 = vmul.f32 0.020408163, %v9852_v62 }
 0x31b   : > { %v7680_v43 = vpop.permute.xlu1 %2923  ;;  %3243 = vperm.xlu1 %4784, %v7675_v49   ;;  %v7683_v54 = vpop.permute.xlu0 %2978  ;;  %9843 = vst [vmem:[#allocation265_spill] sm:$0xff] %v7691_v27  ;;  %4993 = vrsqrt.f32 %v1912_v41 }
 0x31c   : > { %9839 = vst [vmem:[#allocation263_spill] sm:$0xff] %v7680_v43  ;;  %9840 = vst [vmem:[#allocation264_spill] sm:$0xff] %v7683_v54  ;;  %3298 = vperm.xlu0 %4783, %v7677_v3   ;;  %v2181_v43 = vld [vmem:[%s7025_s21 + $0x2d0] sm:$0xff]  ;;  %v4978_v54 = vpop.eup %4977  ;;  %4995 = vrsqrt.f32 %v1903_v29  ;;  %v1905_v41 = vadd.f32 0.001, %v1761_v46  ;;  %v2198_v46 = vld [vmem:[%s7025_s21 + $0x358] sm:$0xff] }
 0x31d   : > { %v7703_v36 = vmul.f32 %v4976_v42, %v2181_v43  ;;  %v4980_v1 = vpop.eup %4979  ;;  %v1914_v43 = vadd.f32 0.001, %v1770_v6  ;;  %v9857_v6 = vld [vmem:[#allocation199_spill] sm:$0xff] }
 0x31e   : > { %v1763_v62 = vmul.f32 0.020408163, %v9857_v6 }
 0x31f   : > { %v7694_v49 = vpop.permute.xlu1 %2933  ;;  %3253 = vperm.xlu1 %4784, %v7689_v45   ;;  %v7697_v55 = vpop.permute.xlu0 %2988  ;;  %9848 = vst [vmem:[#allocation193_spill] sm:$0xff] %v7703_v36  ;;  %v2183_v45 = vld [vmem:[%s7025_s21 + $0x2e0] sm:$0xff]  ;;  %4997 = vrsqrt.f32 %v1914_v43 }
 0x320   : > { %9844 = vst [vmem:[#allocation266_spill] sm:$0xff] %v7694_v49  ;;  %9845 = vst [vmem:[#allocation267_spill] sm:$0xff] %v7697_v55  ;;  %3308 = vperm.xlu0 %4783, %v7691_v27   ;;  %v7705_v49 = vmul.f32 %v4978_v54, %v2192_v39  ;;  %v4982_v55 = vpop.eup %4981  ;;  %v9853_v54 = vld [vmem:[#allocation205_spill] sm:$0xff]  ;;  %v7717_v39 = vmul.f32 %v4980_v1, %v2183_v45  ;;  %4999 = vrsqrt.f32 %v1905_v41  ;;  %v1907_v43 = vadd.f32 0.001, %v1763_v62  ;;  %v2200_v62 = vld [vmem:[%s7025_s21 + $0x368] sm:$0xff] }
 0x321   : > { %v1772_v42 = vmul.f32 0.020408163, %v9853_v54  ;;  %v4984_v22 = vpop.eup %4983 }
 0x322   : > { %9849 = vst [vmem:[#allocation203_spill] sm:$0xff] %v7705_v49  ;;  %9854 = vst [vmem:[#allocation196_spill] sm:$0xff] %v7717_v39 }
 0x323   : > { %v7708_v3 = vpop.permute.xlu1 %2943  ;;  %3263 = vperm.xlu1 %4784, %v7703_v36   ;;  %v7711_v14 = vpop.permute.xlu0 %2998  ;;  %v2185_v36 = vld [vmem:[%s7025_s21 + $0x2f0] sm:$0xff]  ;;  %v1916_v45 = vadd.f32 0.001, %v1772_v42 }
 0x324   : > { %9850 = vst [vmem:[#allocation268_spill] sm:$0xff] %v7708_v3  ;;  %9851 = vst [vmem:[#allocation269_spill] sm:$0xff] %v7711_v14  ;;  %3318 = vperm.xlu0 %4783, %v7705_v49   ;;  %v7719_v3 = vmul.f32 %v4982_v55, %v2194_v63  ;;  %v4986_v14 = vpop.eup %4985  ;;  %v9858_v55 = vld [vmem:[#allocation207_spill] sm:$0xff]  ;;  %v7731_v63 = vmul.f32 %v4984_v22, %v2185_v36  ;;  %v9862_v42 = vld [vmem:[#allocation200_spill] sm:$0xff] }
 0x325   : > { %v1774_v1 = vmul.f32 0.020408163, %v9858_v55  ;;  %v4988_v54 = vpop.eup %4987  ;;  %v1765_v6 = vmul.f32 0.020408163, %v9862_v42  ;;  %5001 = vrsqrt.f32 %v1916_v45 }
 0x326   : > { %9859 = vst [vmem:[#allocation199_spill] sm:$0xff] %v7731_v63  ;;  %5003 = vrsqrt.f32 %v1907_v43 }
 0x327   : > { %v7722_v27 = vpop.permute.xlu1 %2953  ;;  %3273 = vperm.xlu1 %4784, %v7717_v39   ;;  %v7725_v2 = vpop.permute.xlu0 %3008  ;;  %v2187_v39 = vld [vmem:[%s7025_s21 + $0x300] sm:$0xff]  ;;  %v1918_v36 = vadd.f32 0.001, %v1774_v1  ;;  %v1909_v45 = vadd.f32 0.001, %v1765_v6  ;;  %v2202_v6 = vld [vmem:[%s7025_s21 + $0x378] sm:$0xff] }
 0x328   : > { %9855 = vst [vmem:[#allocation205_spill] sm:$0xff] %v7722_v27  ;;  %9856 = vst [vmem:[#allocation270_spill] sm:$0xff] %v7725_v2  ;;  %3328 = vperm.xlu0 %4783, %v7719_v3   ;;  %v7733_v27 = vmul.f32 %v4986_v14, %v2196_v38  ;;  %v4990_v2 = vpop.eup %4989  ;;  %v1776_v14 = vmul.f32 0.020408163, %v7290_v20  ;;  %v7745_v22 = vmul.f32 %v4988_v54, %v2187_v39  ;;  %v9866_v1 = vld [vmem:[#allocation202_spill] sm:$0xff] }
 0x329   : > { %v4992_v38 = vpop.eup %4991  ;;  %v7747_v55 = vmul.f32 %v4990_v2, %v2198_v46  ;;  %v1767_v20 = vmul.f32 0.020408163, %v9866_v1  ;;  %5005 = vrsqrt.f32 %v1918_v36  ;;  %v1778_v2 = vmul.f32 0.020408163, %v7304_v51 }
 0x32a   : > { %9863 = vst [vmem:[#allocation200_spill] sm:$0xff] %v7745_v22  ;;  %v1920_v39 = vadd.f32 0.001, %v1776_v14  ;;  %5007 = vrsqrt.f32 %v1909_v45  ;;  %v9870_v14 = vld [vmem:[#allocation204_spill] sm:$0xff] }
 0x32b   : > { %v7736_v49 = vpop.permute.xlu1 %2963  ;;  %3283 = vperm.xlu1 %4784, %v7731_v63   ;;  %v7739_v29 = vpop.permute.xlu0 %3018  ;;  %v1911_v36 = vadd.f32 0.001, %v1767_v20  ;;  %v1769_v51 = vmul.f32 0.020408163, %v9870_v14  ;;  %v2204_v20 = vld [vmem:[%s7025_s21 + $0x388] sm:$0xff] }
 0x32c   : > { %9860 = vst [vmem:[#allocation207_spill] sm:$0xff] %v7736_v49  ;;  %9861 = vst [vmem:[#allocation271_spill] sm:$0xff] %v7739_v29  ;;  %3338 = vperm.xlu0 %4783, %v7733_v27   ;;  %v2189_v49 = vld [vmem:[%s7025_s21 + $0x310] sm:$0xff]  ;;  %v4994_v29 = vpop.eup %4993  ;;  %5009 = vrsqrt.f32 %v1920_v39 }
 0x32d   : > { %v7759_v54 = vmul.f32 %v4992_v38, %v2189_v49  ;;  %v4996_v46 = vpop.eup %4995  ;;  %v7761_v42 = vmul.f32 %v4994_v29, %v2200_v62  ;;  %v1922_v49 = vadd.f32 0.001, %v1778_v2  ;;  %v1780_v29 = vmul.f32 0.020408163, %v7318_v44  ;;  %v9874_v2 = vld [vmem:[#allocation206_spill] sm:$0xff] }
 0x32e   : > { %5011 = vrsqrt.f32 %v1911_v36  ;;  %v1913_v39 = vadd.f32 0.001, %v1769_v51  ;;  %v1771_v44 = vmul.f32 0.020408163, %v9874_v2  ;;  %v2206_v51 = vld [vmem:[%s7025_s21 + $0x398] sm:$0xff] }
 0x32f   : > { %v7750_v63 = vpop.permute.xlu1 %2973  ;;  %3293 = vperm.xlu1 %4784, %v7745_v22   ;;  %v7753_v41 = vpop.permute.xlu0 %3028  ;;  %9867 = vst [vmem:[#allocation202_spill] sm:$0xff] %v7759_v54  ;;  %5013 = vrsqrt.f32 %v1922_v49 }
 0x330   : > { %9864 = vst [vmem:[#allocation272_spill] sm:$0xff] %v7750_v63  ;;  %9865 = vst [vmem:[#allocation273_spill] sm:$0xff] %v7753_v41  ;;  %3348 = vperm.xlu0 %4783, %v7747_v55   ;;  %v2191_v63 = vld [vmem:[%s7025_s21 + $0x320] sm:$0xff]  ;;  %v4998_v41 = vpop.eup %4997  ;;  %5015 = vrsqrt.f32 %v1913_v39  ;;  %v1915_v49 = vadd.f32 0.001, %v1771_v44  ;;  %v2208_v44 = vld [vmem:[%s7025_s21 + $0x3a8] sm:$0xff] }
 0x331   : > { %v7773_v38 = vmul.f32 %v4996_v46, %v2191_v63  ;;  %v5000_v62 = vpop.eup %4999  ;;  %v7775_v1 = vmul.f32 %v4998_v41, %v2202_v6  ;;  %v1924_v63 = vadd.f32 0.001, %v1780_v29  ;;  %v1782_v41 = vmul.f32 0.020408163, %v7332_v53  ;;  %v9878_v29 = vld [vmem:[#allocation208_spill] sm:$0xff] }
 0x332   : > { %v1773_v53 = vmul.f32 0.020408163, %v9878_v29 }
 0x333   : > { %v7764_v22 = vpop.permute.xlu1 %2983  ;;  %3303 = vperm.xlu1 %4784, %v7759_v54   ;;  %v7767_v43 = vpop.permute.xlu0 %3038  ;;  %9871 = vst [vmem:[#allocation204_spill] sm:$0xff] %v7773_v38  ;;  %5017 = vrsqrt.f32 %v1924_v63 }
 0x334   : > { %9868 = vst [vmem:[#allocation274_spill] sm:$0xff] %v7764_v22  ;;  %9869 = vst [vmem:[#allocation275_spill] sm:$0xff] %v7767_v43  ;;  %3358 = vperm.xlu0 %4783, %v7761_v42   ;;  %v2193_v22 = vld [vmem:[%s7025_s21 + $0x330] sm:$0xff]  ;;  %v5002_v43 = vpop.eup %5001  ;;  %5019 = vrsqrt.f32 %v1915_v49  ;;  %v1917_v63 = vadd.f32 0.001, %v1773_v53  ;;  %v2210_v53 = vld [vmem:[%s7025_s21 + $0x3b8] sm:$0xff] }
 0x335   : > { %v7787_v46 = vmul.f32 %v5000_v62, %v2193_v22  ;;  %v5004_v6 = vpop.eup %5003  ;;  %v7789_v14 = vmul.f32 %v5002_v43, %v2204_v20  ;;  %v1926_v22 = vadd.f32 0.001, %v1782_v41  ;;  %v1784_v43 = vmul.f32 0.020408163, %v7346_v47  ;;  %v9882_v41 = vld [vmem:[#allocation209_spill] sm:$0xff] }
 0x336   : > { %v1775_v47 = vmul.f32 0.020408163, %v9882_v41 }
 0x337   : > { %v7778_v54 = vpop.permute.xlu1 %2993  ;;  %3313 = vperm.xlu1 %4784, %v7773_v38   ;;  %v7781_v45 = vpop.permute.xlu0 %3048  ;;  %9875 = vst [vmem:[#allocation206_spill] sm:$0xff] %v7787_v46  ;;  %5021 = vrsqrt.f32 %v1926_v22 }
 0x338   : > { %9872 = vst [vmem:[#allocation276_spill] sm:$0xff] %v7778_v54  ;;  %9873 = vst [vmem:[#allocation277_spill] sm:$0xff] %v7781_v45  ;;  %3368 = vperm.xlu0 %4783, %v7775_v1   ;;  %v2195_v54 = vld [vmem:[%s7025_s21 + $0x340] sm:$0xff]  ;;  %v5006_v45 = vpop.eup %5005  ;;  %5023 = vrsqrt.f32 %v1917_v63  ;;  %v1919_v22 = vadd.f32 0.001, %v1775_v47  ;;  %v2212_v47 = vld [vmem:[%s7025_s21 + $0x3c8] sm:$0xff] }
 0x339   : > { %v7801_v62 = vmul.f32 %v5004_v6, %v2195_v54  ;;  %v5008_v20 = vpop.eup %5007  ;;  %v7803_v2 = vmul.f32 %v5006_v45, %v2206_v51  ;;  %v1928_v54 = vadd.f32 0.001, %v1784_v43  ;;  %v1786_v45 = vmul.f32 0.020408163, %v7360_v0  ;;  %v9886_v43 = vld [vmem:[#allocation211_spill] sm:$0xff] }
 0x33a   : > { %v1777_v0 = vmul.f32 0.020408163, %v9886_v43 }
 0x33b   : > { %v7792_v38 = vpop.permute.xlu1 %3003  ;;  %3323 = vperm.xlu1 %4784, %v7787_v46   ;;  %v7795_v36 = vpop.permute.xlu0 %3058  ;;  %9879 = vst [vmem:[#allocation208_spill] sm:$0xff] %v7801_v62  ;;  %5025 = vrsqrt.f32 %v1928_v54 }
 0x33c   : > { %9876 = vst [vmem:[#allocation278_spill] sm:$0xff] %v7792_v38  ;;  %9877 = vst [vmem:[#allocation279_spill] sm:$0xff] %v7795_v36  ;;  %3378 = vperm.xlu0 %4783, %v7789_v14   ;;  %v2197_v38 = vld [vmem:[%s7025_s21 + $0x350] sm:$0xff]  ;;  %v5010_v36 = vpop.eup %5009  ;;  %5027 = vrsqrt.f32 %v1919_v22  ;;  %v1921_v54 = vadd.f32 0.001, %v1777_v0  ;;  %v2214_v0 = vld [vmem:[%s7025_s21 + $0x3d8] sm:$0xff] }
 0x33d   : > { %v7815_v6 = vmul.f32 %v5008_v20, %v2197_v38  ;;  %v5012_v51 = vpop.eup %5011  ;;  %v7817_v29 = vmul.f32 %v5010_v36, %v2208_v44  ;;  %v1930_v38 = vadd.f32 0.001, %v1786_v45  ;;  %v1788_v36 = vmul.f32 0.020408163, %v7374_v16  ;;  %v9890_v45 = vld [vmem:[#allocation213_spill] sm:$0xff] }
 0x33e   : > { %v1779_v16 = vmul.f32 0.020408163, %v9890_v45 }
 0x33f   : > { %v7806_v46 = vpop.permute.xlu1 %3013  ;;  %3333 = vperm.xlu1 %4784, %v7801_v62   ;;  %v7809_v39 = vpop.permute.xlu0 %3068  ;;  %9883 = vst [vmem:[#allocation209_spill] sm:$0xff] %v7815_v6  ;;  %5029 = vrsqrt.f32 %v1930_v38 }
 0x340   : > { %9880 = vst [vmem:[#allocation280_spill] sm:$0xff] %v7806_v46  ;;  %9881 = vst [vmem:[#allocation281_spill] sm:$0xff] %v7809_v39  ;;  %3388 = vperm.xlu0 %4783, %v7803_v2   ;;  %v2199_v46 = vld [vmem:[%s7025_s21 + $0x360] sm:$0xff]  ;;  %v5014_v39 = vpop.eup %5013  ;;  %5031 = vrsqrt.f32 %v1921_v54  ;;  %v1923_v38 = vadd.f32 0.001, %v1779_v16  ;;  %v2216_v16 = vld [vmem:[%s7025_s21 + $0x3e8] sm:$0xff] }
 0x341   : > { %v7829_v20 = vmul.f32 %v5012_v51, %v2199_v46  ;;  %v5016_v44 = vpop.eup %5015  ;;  %v7831_v41 = vmul.f32 %v5014_v39, %v2210_v53  ;;  %v1932_v46 = vadd.f32 0.001, %v1788_v36  ;;  %v1790_v39 = vmul.f32 0.020408163, %v7388_v50  ;;  %v9894_v36 = vld [vmem:[#allocation215_spill] sm:$0xff] }
 0x342   : > { %v1781_v50 = vmul.f32 0.020408163, %v9894_v36 }
 0x343   : > { %v7820_v62 = vpop.permute.xlu1 %3023  ;;  %3343 = vperm.xlu1 %4784, %v7815_v6   ;;  %v7823_v49 = vpop.permute.xlu0 %3078  ;;  %9887 = vst [vmem:[#allocation211_spill] sm:$0xff] %v7829_v20  ;;  %5033 = vrsqrt.f32 %v1932_v46 }
 0x344   : > { %9884 = vst [vmem:[#allocation282_spill] sm:$0xff] %v7820_v62  ;;  %9885 = vst [vmem:[#allocation283_spill] sm:$0xff] %v7823_v49  ;;  %3398 = vperm.xlu0 %4783, %v7817_v29   ;;  %v2201_v62 = vld [vmem:[%s7025_s21 + $0x370] sm:$0xff]  ;;  %v5018_v49 = vpop.eup %5017  ;;  %5035 = vrsqrt.f32 %v1923_v38  ;;  %v1925_v46 = vadd.f32 0.001, %v1781_v50  ;;  %v2218_v50 = vld [vmem:[%s7025_s21 + $0x3f8] sm:$0xff] }
 0x345   : > { %v7843_v51 = vmul.f32 %v5016_v44, %v2201_v62  ;;  %v5020_v53 = vpop.eup %5019  ;;  %v7845_v43 = vmul.f32 %v5018_v49, %v2212_v47  ;;  %v1934_v62 = vadd.f32 0.001, %v1790_v39  ;;  %v1792_v49 = vmul.f32 0.020408163, %v7402_v24  ;;  %v9898_v39 = vld [vmem:[#allocation217_spill] sm:$0xff] }
 0x346   : > { %v1783_v24 = vmul.f32 0.020408163, %v9898_v39 }
 0x347   : > { %v7834_v6 = vpop.permute.xlu1 %3033  ;;  %3353 = vperm.xlu1 %4784, %v7829_v20   ;;  %v7837_v63 = vpop.permute.xlu0 %3088  ;;  %9891 = vst [vmem:[#allocation213_spill] sm:$0xff] %v7843_v51  ;;  %5037 = vrsqrt.f32 %v1934_v62 }
 0x348   : > { %9888 = vst [vmem:[#allocation284_spill] sm:$0xff] %v7834_v6  ;;  %9889 = vst [vmem:[#allocation285_spill] sm:$0xff] %v7837_v63  ;;  %3408 = vperm.xlu0 %4783, %v7831_v41   ;;  %v2203_v6 = vld [vmem:[%s7025_s21 + $0x380] sm:$0xff]  ;;  %v5022_v63 = vpop.eup %5021  ;;  %5039 = vrsqrt.f32 %v1925_v46  ;;  %v1927_v62 = vadd.f32 0.001, %v1783_v24  ;;  %v2220_v24 = vld [vmem:[%s7025_s21 + $0x408] sm:$0xff] }
 0x349   : > { %v7857_v44 = vmul.f32 %v5020_v53, %v2203_v6  ;;  %v5024_v47 = vpop.eup %5023  ;;  %v7859_v45 = vmul.f32 %v5022_v63, %v2214_v0  ;;  %v1936_v6 = vadd.f32 0.001, %v1792_v49  ;;  %v1794_v63 = vmul.f32 0.020408163, %v7416_v28  ;;  %v9902_v49 = vld [vmem:[#allocation219_spill] sm:$0xff] }
 0x34a   : > { %v1785_v28 = vmul.f32 0.020408163, %v9902_v49  ;;  %v2211_v49 = vld [vmem:[%s7025_s21 + $0x3c0] sm:$0xff] }
 0x34b   : > { %v7848_v20 = vpop.permute.xlu1 %3043  ;;  %3363 = vperm.xlu1 %4784, %v7843_v51   ;;  %v7851_v22 = vpop.permute.xlu0 %3098  ;;  %9895 = vst [vmem:[#allocation215_spill] sm:$0xff] %v7857_v44  ;;  %5041 = vrsqrt.f32 %v1936_v6 }
 0x34c   : > { %9892 = vst [vmem:[#allocation286_spill] sm:$0xff] %v7848_v20  ;;  %9893 = vst [vmem:[#allocation287_spill] sm:$0xff] %v7851_v22  ;;  %3418 = vperm.xlu0 %4783, %v7845_v43   ;;  %v2205_v20 = vld [vmem:[%s7025_s21 + $0x390] sm:$0xff]  ;;  %v5026_v22 = vpop.eup %5025  ;;  %5043 = vrsqrt.f32 %v1927_v62  ;;  %v1929_v6 = vadd.f32 0.001, %v1785_v28 }
 0x34d   : > { %v7871_v53 = vmul.f32 %v5024_v47, %v2205_v20  ;;  %v5028_v0 = vpop.eup %5027  ;;  %v7873_v36 = vmul.f32 %v5026_v22, %v2216_v16  ;;  %v1938_v20 = vadd.f32 0.001, %v1794_v63  ;;  %v1796_v22 = vmul.f32 0.020408163, %v7430_v25 }
 0x34e   : > { %v1787_v25 = vmul.f32 0.020408163, %v7377_v13  ;;  %v2222_v13 = vld [vmem:[%s7025_s21 + $0x418] sm:$0xff] }
 0x34f   : > { %v7862_v51 = vpop.permute.xlu1 %3053  ;;  %3373 = vperm.xlu1 %4784, %v7857_v44   ;;  %v7865_v54 = vpop.permute.xlu0 %3108  ;;  %9899 = vst [vmem:[#allocation217_spill] sm:$0xff] %v7871_v53  ;;  %5045 = vrsqrt.f32 %v1938_v20  ;;  %v9908_v20 = vld [vmem:[#allocation223_spill] sm:$0xff] }
 0x350   : > { %9896 = vst [vmem:[#allocation288_spill] sm:$0xff] %v7862_v51  ;;  %9897 = vst [vmem:[#allocation289_spill] sm:$0xff] %v7865_v54  ;;  %3428 = vperm.xlu0 %4783, %v7859_v45   ;;  %v2207_v51 = vld [vmem:[%s7025_s21 + $0x3a0] sm:$0xff]  ;;  %v5030_v54 = vpop.eup %5029  ;;  %5047 = vrsqrt.f32 %v1929_v6  ;;  %v1931_v28 = vadd.f32 0.001, %v1787_v25  ;;  %v2224_v25 = vld [vmem:[%s7025_s21 + $0x428] sm:$0xff] }
 0x351   : > { %v7885_v47 = vmul.f32 %v5028_v0, %v2207_v51  ;;  %v5032_v16 = vpop.eup %5031  ;;  %v7887_v39 = vmul.f32 %v5030_v54, %v2218_v50  ;;  %v1940_v51 = vadd.f32 0.001, %v1796_v22  ;;  %v1798_v54 = vmul.f32 0.020408163, %v7444_v61 }
 0x352   : > { %v1789_v61 = vmul.f32 0.020408163, %v9908_v20 }
 0x353   : > { %v7876_v44 = vpop.permute.xlu1 %3063  ;;  %3383 = vperm.xlu1 %4784, %v7871_v53   ;;  %v7879_v38 = vpop.permute.xlu0 %3118  ;;  %5049 = vrsqrt.f32 %v1940_v51 }
 0x354   : > { %9900 = vst [vmem:[#allocation290_spill] sm:$0xff] %v7876_v44  ;;  %9901 = vst [vmem:[#allocation291_spill] sm:$0xff] %v7879_v38  ;;  %3438 = vperm.xlu0 %4783, %v7873_v36   ;;  %v2209_v44 = vld [vmem:[%s7025_s21 + $0x3b0] sm:$0xff]  ;;  %v5034_v38 = vpop.eup %5033  ;;  %5051 = vrsqrt.f32 %v1931_v28  ;;  %v1933_v51 = vadd.f32 0.001, %v1789_v61  ;;  %v2226_v61 = vld [vmem:[%s7025_s21 + $0x438] sm:$0xff] }
 0x355   : > { %v7899_v63 = vmul.f32 %v5032_v16, %v2209_v44  ;;  %v5036_v0 = vpop.eup %5035  ;;  %v7901_v50 = vmul.f32 %v5034_v38, %v2220_v24  ;;  %v1942_v44 = vadd.f32 0.001, %v1798_v54  ;;  %v1800_v38 = vmul.f32 0.020408163, %v7458_v10  ;;  %v9912_v54 = vld [vmem:[#allocation225_spill] sm:$0xff] }
 0x356   : > { %v7913_v22 = vmul.f32 %v5036_v0, %v2211_v49  ;;  %v1791_v10 = vmul.f32 0.020408163, %v9912_v54  ;;  %v1802_v0 = vmul.f32 0.020408163, %v7472_v37  ;;  %v2217_v54 = vld [vmem:[%s7025_s21 + $0x3f0] sm:$0xff] }
 0x357   : > { %v7890_v53 = vpop.permute.xlu1 %3073  ;;  %3393 = vperm.xlu1 %4784, %v7885_v47   ;;  %v7893_v46 = vpop.permute.xlu0 %3128  ;;  %9905 = vst [vmem:[#allocation293_spill] sm:$0xff] %v7899_v63  ;;  %5053 = vrsqrt.f32 %v1942_v44 }
 0x358   : > { %9903 = vst [vmem:[#allocation219_spill] sm:$0xff] %v7890_v53  ;;  %9904 = vst [vmem:[#allocation292_spill] sm:$0xff] %v7893_v46  ;;  %3448 = vperm.xlu0 %4783, %v7887_v39   ;;  %v5038_v46 = vpop.eup %5037  ;;  %5055 = vrsqrt.f32 %v1933_v51  ;;  %v1935_v44 = vadd.f32 0.001, %v1791_v10  ;;  %v2228_v10 = vld [vmem:[%s7025_s21 + $0x448] sm:$0xff] }
 0x359   : > { %9909 = vst [vmem:[#allocation223_spill] sm:$0xff] %v7913_v22  ;;  %v5040_v16 = vpop.eup %5039  ;;  %v7915_v24 = vmul.f32 %v5038_v46, %v2222_v13  ;;  %v1944_v46 = vadd.f32 0.001, %v1800_v38  ;;  %v9915_v38 = vld [vmem:[#allocation227_spill] sm:$0xff] }
 0x35a   : > { %v1793_v37 = vmul.f32 0.020408163, %v9915_v38 }
 0x35b   : > { %v7904_v53 = vpop.permute.xlu1 %3083  ;;  %3403 = vperm.xlu1 %4784, %v7899_v63   ;;  %v7907_v62 = vpop.permute.xlu0 %3138  ;;  %5057 = vrsqrt.f32 %v1944_v46  ;;  %v1795_v46 = vmul.f32 0.020408163, %v7433_v8 }
 0x35c   : > { %9906 = vst [vmem:[#allocation294_spill] sm:$0xff] %v7904_v53  ;;  %9907 = vst [vmem:[#allocation295_spill] sm:$0xff] %v7907_v62  ;;  %3458 = vperm.xlu0 %4783, %v7901_v50   ;;  %v2213_v53 = vld [vmem:[%s7025_s21 + $0x3d0] sm:$0xff]  ;;  %v5042_v62 = vpop.eup %5041  ;;  %5059 = vrsqrt.f32 %v1935_v44  ;;  %v1937_v38 = vadd.f32 0.001, %v1793_v37  ;;  %v2230_v37 = vld [vmem:[%s7025_s21 + $0x458] sm:$0xff] }
 0x35d   : > { %v7927_v49 = vmul.f32 %v5040_v16, %v2213_v53  ;;  %v5044_v13 = vpop.eup %5043  ;;  %v7929_v20 = vmul.f32 %v5042_v62, %v2224_v25  ;;  %v1946_v53 = vadd.f32 0.001, %v1802_v0  ;;  %v1939_v8 = vadd.f32 0.001, %v1795_v46 }
 0x35e   : > { %v1799_v46 = vmul.f32 0.020408163, %v7465_v15  ;;  %v1801_v15 = vmul.f32 0.020408163, %v7484_v7 }
 0x35f   : > { %v7918_v63 = vpop.permute.xlu1 %3093  ;;  %3413 = vperm.xlu1 %4784, %v7913_v22   ;;  %v7921_v6 = vpop.permute.xlu0 %3148  ;;  %9913 = vst [vmem:[#allocation225_spill] sm:$0xff] %v7927_v49  ;;  %5061 = vrsqrt.f32 %v1946_v53 }
 0x360   : > { %9910 = vst [vmem:[#allocation296_spill] sm:$0xff] %v7918_v63  ;;  %9911 = vst [vmem:[#allocation297_spill] sm:$0xff] %v7921_v6  ;;  %3468 = vperm.xlu0 %4783, %v7915_v24   ;;  %v2215_v63 = vld [vmem:[%s7025_s21 + $0x3e0] sm:$0xff]  ;;  %v5046_v6 = vpop.eup %5045  ;;  %5063 = vrsqrt.f32 %v1937_v38  ;;  %v2232_v38 = vld [vmem:[%s7025_s21 + $0x468] sm:$0xff] }
 0x361   : > { %v7940_v62 = vmul.f32 %v5044_v13, %v2215_v63  ;;  %v5048_v16 = vpop.eup %5047  ;;  %v7942_v25 = vmul.f32 %v5046_v6, %v2226_v61  ;;  %v2219_v13 = vld [vmem:[%s7025_s21 + $0x400] sm:$0xff]  ;;  %5065 = vrsqrt.f32 %v1939_v8  ;;  %v2234_v8 = vld [vmem:[%s7025_s21 + $0x478] sm:$0xff] }
 0x362   : > { %v7953_v63 = vmul.f32 %v5048_v16, %v2217_v54 }
 0x363   : > { %v7932_v22 = vpop.permute.xlu1 %3103  ;;  %3423 = vperm.xlu1 %4784, %v7927_v49   ;;  %v7935_v28 = vpop.permute.xlu0 %3158  ;;  %9916 = vst [vmem:[#allocation227_spill] sm:$0xff] %v7942_v25 }
 0x364   : > { %9914 = vst [vmem:[#allocation298_spill] sm:$0xff] %v7932_v22  ;;  %3478 = vperm.xlu0 %4783, %v7929_v20   ;;  %v5050_v22 = vpop.eup %5049  ;;  %9919 = vst [vmem:[#allocation301_spill] sm:$0xff] %v7953_v63 }
 0x365   : > { %v5052_v6 = vpop.eup %5051  ;;  %v7955_v0 = vmul.f32 %v5050_v22, %v2228_v10  ;;  %v2221_v10 = vld [vmem:[%s7025_s21 + $0x410] sm:$0xff] }
 0x366   : > { %v5054_v61 = vpop.eup %5053  ;;  %v7966_v16 = vmul.f32 %v5052_v6, %v2219_v13 }
 0x367   : > { %v7945_v49 = vpop.permute.xlu1 %3113  ;;  %3433 = vperm.xlu1 %4784, %v7940_v62   ;;  %v7948_v51 = vpop.permute.xlu0 %3168  ;;  %9920 = vst [vmem:[#allocation302_spill] sm:$0xff] %v7955_v0  ;;  %v7968_v54 = vmul.f32 %v5054_v61, %v2230_v37  ;;  %v2223_v37 = vld [vmem:[%s7025_s21 + $0x420] sm:$0xff] }
 0x368   : > { %9917 = vst [vmem:[#allocation299_spill] sm:$0xff] %v7945_v49  ;;  %9918 = vst [vmem:[#allocation300_spill] sm:$0xff] %v7948_v51  ;;  %3488 = vperm.xlu0 %4783, %v7942_v25   ;;  %v9923_v51 = vld [vmem:[#allocation231_spill] sm:$0xff]  ;;  %v5056_v22 = vpop.eup %5055 }
 0x369   : > { %v1797_v53 = vmul.f32 0.020408163, %v9923_v51  ;;  %9924 = vst [vmem:[#allocation231_spill] sm:$0xff] %v7966_v16  ;;  %9925 = vst [vmem:[#allocation305_spill] sm:$0xff] %v7968_v54  ;;  %v7979_v6 = vmul.f32 %v5056_v22, %v2221_v10 }
 0x36b   : > { %v7958_v49 = vpop.permute.xlu1 %3123  ;;  %3443 = vperm.xlu1 %4784, %v7953_v63   ;;  %v7961_v44 = vpop.permute.xlu0 %3178  ;;  %v1941_v51 = vadd.f32 0.001, %v1797_v53  ;;  %9928 = vst [vmem:[#allocation308_spill] sm:$0xff] %v7979_v6  ;;  %v1943_v53 = vadd.f32 0.001, %v1799_v46 }
 0x36c   : > { %9921 = vst [vmem:[#allocation303_spill] sm:$0xff] %v7958_v49  ;;  %9922 = vst [vmem:[#allocation304_spill] sm:$0xff] %v7961_v44  ;;  %3498 = vperm.xlu0 %4783, %v7955_v0   ;;  %v5058_v49 = vpop.eup %5057 }
 0x36d   : > { %v5060_v13 = vpop.eup %5059  ;;  %v7981_v61 = vmul.f32 %v5058_v49, %v2232_v38  ;;  %5067 = vrsqrt.f32 %v1941_v51  ;;  %v2225_v38 = vld [vmem:[%s7025_s21 + $0x430] sm:$0xff]  ;;  %v9935_v51 = vld [vmem:[#allocation171_spill] sm:$0xff] }
 0x36e   : > { %v7998_v49 = vmul.f32 %v5060_v13, %v2223_v37  ;;  %5069 = vrsqrt.f32 %v1943_v53  ;;  %v2382_v53 = vld [vmem:[%s7996_s24 + $0x18] sm:$0xff] }
 0x36f   : > { %v7971_v25 = vpop.permute.xlu1 %3133  ;;  %3453 = vperm.xlu1 %4784, %v7966_v16   ;;  %v7974_v44 = vpop.permute.xlu0 %3188  ;;  %9929 = vst [vmem:[#allocation309_spill] sm:$0xff] %v7981_v61 }
 0x370   : > { %9926 = vst [vmem:[#allocation306_spill] sm:$0xff] %v7971_v25  ;;  %9927 = vst [vmem:[#allocation307_spill] sm:$0xff] %v7974_v44  ;;  %3508 = vperm.xlu0 %4783, %v7968_v54   ;;  %v5062_v25 = vpop.eup %5061  ;;  %v9939_v54 = vld [vmem:[#allocation28_spill] sm:$0xff] }
 0x371   : > { %9932 = vst [vmem:[#allocation312_spill] sm:$0xff] %v7998_v49  ;;  %v5064_v22 = vpop.eup %5063  ;;  %v8000_v10 = vmul.f32 %v5062_v25, %v2234_v8  ;;  %v2227_v8 = vld [vmem:[%s7025_s21 + $0x440] sm:$0xff] }
 0x372   : > { %v8012_v13 = vmul.f32 %v5064_v22, %v2225_v38  ;;  %v5066_v25 = vpop.eup %5065 }
 0x373   : > { %v7984_v0 = vpop.permute.xlu1 %3143  ;;  %3463 = vperm.xlu1 %4784, %v7979_v6   ;;  %v7987_v44 = vpop.permute.xlu0 %3198  ;;  %9933 = vst [vmem:[#allocation313_spill] sm:$0xff] %v8000_v10  ;;  %v1945_v6 = vadd.f32 0.001, %v1801_v15  ;;  %v8023_v15 = vmul.f32 %v5066_v25, %v2227_v8  ;;  %v2231_v8 = vld [vmem:[%s7025_s21 + $0x460] sm:$0xff] }
 0x374   : > { %9930 = vst [vmem:[#allocation310_spill] sm:$0xff] %v7984_v0  ;;  %9931 = vst [vmem:[#allocation311_spill] sm:$0xff] %v7987_v44  ;;  %3518 = vperm.xlu0 %4783, %v7981_v61   ;;  %v9934_v44 = vld [vmem:[#allocation25_spill] sm:$0xff]  ;;  %v2380_v61 = vld [vmem:[%s7996_s24 + $0x8] sm:$0xff] }
 0x375   : > { %v2524_v46 = vmul.f32 %v9935_v51, %v9934_v44  ;;  %9938 = vst [vmem:[#allocation314_spill] sm:$0xff] %v8012_v13  ;;  %v9940_v44 = vld [vmem:[#allocation175_spill] sm:$0xff]  ;;  %5071 = vrsqrt.f32 %v1945_v6  ;;  %9943 = vst [vmem:[#allocation315_spill] sm:$0xff] %v8023_v15 }
 0x376   : > { %v2526_v51 = vmul.f32 %v9940_v44, %v9939_v54 }
 0x377   : > { %v8005_v7 = vpop.permute.xlu1 %3153  ;;  %3473 = vperm.xlu1 %4784, %v7998_v49   ;;  %v8008_v0 = vpop.permute.xlu0 %3208  ;;  %v2668_v37 = vsub.f32 %v2380_v61, %v2524_v46  ;;  %v2229_v61 = vld [vmem:[%s7025_s21 + $0x450] sm:$0xff]  ;;  %v9944_v46 = vld [vmem:[#allocation29_spill] sm:$0xff] }
 0x378   : > { %9936 = vst [vmem:[#allocation25_spill] sm:$0xff] %v8005_v7  ;;  %9937 = vst [vmem:[#allocation171_spill] sm:$0xff] %v8008_v0  ;;  %3528 = vperm.xlu0 %4783, %v8000_v10   ;;  %v5068_v22 = vpop.eup %5067  ;;  %v2670_v38 = vsub.f32 %v2382_v53, %v2526_v51  ;;  %v9945_v10 = vld [vmem:[#allocation179_spill] sm:$0xff] }
 0x379   : > { %v2528_v49 = vmul.f32 %v9945_v10, %v9944_v46  ;;  %v8034_v6 = vmul.f32 %v5068_v22, %v2229_v61  ;;  %v5070_v25 = vpop.eup %5069  ;;  %v9949_v51 = vld [vmem:[#allocation31_spill] sm:$0xff]  ;;  %v2386_v46 = vld [vmem:[%s7996_s24 + $0x38] sm:$0xff]  ;;  %v9955_v61 = vld [vmem:[#allocation176_spill] sm:$0xff] }
 0x37a   : > { %v9950_v53 = vld [vmem:[#allocation183_spill] sm:$0xff] }
 0x37b   : > { %v8017_v7 = vpop.permute.xlu1 %3163  ;;  %3483 = vperm.xlu1 %4784, %v8012_v13   ;;  %v8020_v0 = vpop.permute.xlu0 %3218  ;;  %9948 = vst [vmem:[#allocation316_spill] sm:$0xff] %v8034_v6 }
 0x37c   : > { %9941 = vst [vmem:[#allocation28_spill] sm:$0xff] %v8017_v7  ;;  %9942 = vst [vmem:[#allocation175_spill] sm:$0xff] %v8020_v0  ;;  %3682 = vperm.xlu0 %4783, %v2668_v37   ;;  %v2384_v0 = vld [vmem:[%s7996_s24 + $0x28] sm:$0xff]  ;;  %v2530_v7 = vmul.f32 %v9950_v53, %v9949_v51 }
 0x37d   : > { %v2672_v37 = vsub.f32 %v2384_v0, %v2528_v49  ;;  %v2233_v0 = vld [vmem:[%s7025_s21 + $0x470] sm:$0xff]  ;;  %v9954_v49 = vld [vmem:[#allocation33_spill] sm:$0xff]  ;;  %v2388_v53 = vld [vmem:[%s7996_s24 + $0x48] sm:$0xff] }
 0x37f   : > { %v8028_v54 = vpop.permute.xlu1 %3173  ;;  %3493 = vperm.xlu1 %4784, %v8023_v15   ;;  %v8031_v44 = vpop.permute.xlu0 %3228 }
 0x380   : > { %9946 = vst [vmem:[#allocation29_spill] sm:$0xff] %v8028_v54  ;;  %9947 = vst [vmem:[#allocation179_spill] sm:$0xff] %v8031_v44  ;;  %3692 = vperm.xlu0 %4783, %v2670_v38   ;;  %v8045_v44 = vmul.f32 %v5070_v25, %v2231_v8  ;;  %v5072_v22 = vpop.eup %5071  ;;  %v2674_v38 = vsub.f32 %v2386_v46, %v2530_v7  ;;  %v2532_v54 = vmul.f32 %v9955_v61, %v9954_v49  ;;  %v9959_v25 = vld [vmem:[#allocation24_spill] sm:$0xff]  ;;  %v2379_v46 = vld [vmem:[%s7996_s24] sm:$0xff] }
 0x382   : > { %9953 = vst [vmem:[#allocation317_spill] sm:$0xff] %v8045_v44  ;;  %v2676_v7 = vsub.f32 %v2388_v53, %v2532_v54  ;;  %v2381_v54 = vld [vmem:[%s7996_s24 + $0x10] sm:$0xff]  ;;  %v9967_v53 = vld [vmem:[#allocation37_spill] sm:$0xff] }
 0x383   : > { %v8039_v13 = vpop.permute.xlu1 %3183  ;;  %3503 = vperm.xlu1 %4784, %v8034_v6   ;;  %v8042_v10 = vpop.permute.xlu0 %3238  ;;  %v9962_v6 = vld [vmem:[#allocation178_spill] sm:$0xff] }
 0x384   : > { %9951 = vst [vmem:[#allocation31_spill] sm:$0xff] %v8039_v13  ;;  %9952 = vst [vmem:[#allocation183_spill] sm:$0xff] %v8042_v10  ;;  %3702 = vperm.xlu0 %4783, %v2672_v37   ;;  %v8056_v10 = vmul.f32 %v5072_v22, %v2233_v0  ;;  %v9960_v37 = vld [vmem:[#allocation173_spill] sm:$0xff]  ;;  %v9961_v13 = vld [vmem:[#allocation35_spill] sm:$0xff] }
 0x385   : > { %v2523_v8 = vmul.f32 %v9960_v37, %v9959_v25  ;;  %v2534_v49 = vmul.f32 %v9962_v6, %v9961_v13  ;;  %v9966_v0 = vld [vmem:[#allocation172_spill] sm:$0xff] }
 0x386   : > { %9958 = vst [vmem:[#allocation318_spill] sm:$0xff] %v8056_v10  ;;  %v9968_v37 = vld [vmem:[#allocation180_spill] sm:$0xff] }
 0x387   : > { %v8050_v15 = vpop.permute.xlu1 %3193  ;;  %3513 = vperm.xlu1 %4784, %v8045_v44   ;;  %v8053_v51 = vpop.permute.xlu0 %3248  ;;  %v2667_v22 = vsub.f32 %v2379_v46, %v2523_v8  ;;  %v2536_v16 = vmul.f32 %v9968_v37, %v9967_v53  ;;  %v9972_v8 = vld [vmem:[#allocation177_spill] sm:$0xff] }
 0x388   : > { %9956 = vst [vmem:[#allocation33_spill] sm:$0xff] %v8050_v15  ;;  %9957 = vst [vmem:[#allocation176_spill] sm:$0xff] %v8053_v51  ;;  %3712 = vperm.xlu0 %4783, %v2674_v38   ;;  %v2390_v51 = vld [vmem:[%s7996_s24 + $0x58] sm:$0xff]  ;;  %v9965_v38 = vld [vmem:[#allocation27_spill] sm:$0xff] }
 0x389   : > { %v2525_v44 = vmul.f32 %v9966_v0, %v9965_v38  ;;  %v2678_v25 = vsub.f32 %v2390_v51, %v2534_v49  ;;  %v2383_v51 = vld [vmem:[%s7996_s24 + $0x20] sm:$0xff]  ;;  %v9973_v49 = vld [vmem:[#allocation39_spill] sm:$0xff] }
 0x38a   : > { %v9974_v38 = vld [vmem:[#allocation182_spill] sm:$0xff] }
 0x38b   : > { %v8063_v61 = vpop.permute.xlu1 %3203  ;;  %3523 = vperm.xlu1 %4784, %v8056_v10   ;;  %v8066_v15 = vpop.permute.xlu0 %3258  ;;  %v2538_v0 = vmul.f32 %v9974_v38, %v9973_v49 }
 0x38c   : > { %9963 = vst [vmem:[#allocation24_spill] sm:$0xff] %v8063_v61  ;;  %9964 = vst [vmem:[#allocation173_spill] sm:$0xff] %v8066_v15  ;;  %3722 = vperm.xlu0 %4783, %v2676_v7   ;;  %v2392_v15 = vld [vmem:[%s7996_s24 + $0x68] sm:$0xff]  ;;  %v2669_v61 = vsub.f32 %v2381_v54, %v2525_v44  ;;  %v9971_v7 = vld [vmem:[#allocation30_spill] sm:$0xff] }
 0x38d   : > { %v2527_v46 = vmul.f32 %v9972_v8, %v9971_v7  ;;  %v2680_v10 = vsub.f32 %v2392_v15, %v2536_v16  ;;  %v9978_v44 = vld [vmem:[#allocation181_spill] sm:$0xff]  ;;  %v2385_v16 = vld [vmem:[%s7996_s24 + $0x30] sm:$0xff] }
 0x38e   : > { %v9979_v15 = vld [vmem:[#allocation41_spill] sm:$0xff]  ;;  %v9980_v7 = vld [vmem:[#allocation184_spill] sm:$0xff] }
 0x38f   : > { %v8074_v13 = vpop.permute.xlu1 %3213  ;;  %3677 = vperm.xlu1 %4784, %v2667_v22   ;;  %v8076_v6 = vpop.permute.xlu0 %3268  ;;  %v2394_v22 = vld [vmem:[%s7996_s24 + $0x78] sm:$0xff]  ;;  %v2671_v37 = vsub.f32 %v2383_v51, %v2527_v46  ;;  %v2540_v8 = vmul.f32 %v9980_v7, %v9979_v15 }
 0x390   : > { %9969 = vst [vmem:[#allocation35_spill] sm:$0xff] %v8074_v13  ;;  %9970 = vst [vmem:[#allocation178_spill] sm:$0xff] %v8076_v6  ;;  %3732 = vperm.xlu0 %4783, %v2678_v25   ;;  %v9977_v25 = vld [vmem:[#allocation32_spill] sm:$0xff]  ;;  %v2682_v6 = vsub.f32 %v2394_v22, %v2538_v0  ;;  %v9984_v46 = vld [vmem:[#allocation185_spill] sm:$0xff] }
 0x391   : > { %v2529_v54 = vmul.f32 %v9978_v44, %v9977_v25  ;;  %v2387_v0 = vld [vmem:[%s7996_s24 + $0x40] sm:$0xff]  ;;  %v9985_v22 = vld [vmem:[#allocation43_spill] sm:$0xff] }
 0x392   : > { %v9986_v25 = vld [vmem:[#allocation186_spill] sm:$0xff] }
 0x393   : > { %v8084_v63 = vpop.permute.xlu1 %3223  ;;  %3687 = vperm.xlu1 %4784, %v2669_v61   ;;  %v8086_v53 = vpop.permute.xlu0 %3278  ;;  %v2396_v61 = vld [vmem:[%s7996_s24 + $0x88] sm:$0xff]  ;;  %v2673_v38 = vsub.f32 %v2385_v16, %v2529_v54  ;;  %v2542_v44 = vmul.f32 %v9986_v25, %v9985_v22 }
 0x394   : > { %9975 = vst [vmem:[#allocation27_spill] sm:$0xff] %v8084_v63  ;;  %9976 = vst [vmem:[#allocation172_spill] sm:$0xff] %v8086_v53  ;;  %3742 = vperm.xlu0 %4783, %v2680_v10   ;;  %v9983_v10 = vld [vmem:[#allocation34_spill] sm:$0xff]  ;;  %v2684_v53 = vsub.f32 %v2396_v61, %v2540_v8  ;;  %v9990_v54 = vld [vmem:[#allocation187_spill] sm:$0xff] }
 0x395   : > { %v2531_v51 = vmul.f32 %v9984_v46, %v9983_v10  ;;  %v2389_v8 = vld [vmem:[%s7996_s24 + $0x50] sm:$0xff]  ;;  %v9991_v61 = vld [vmem:[#allocation45_spill] sm:$0xff] }
 0x396   : > { %v9992_v10 = vld [vmem:[#allocation188_spill] sm:$0xff] }
 0x397   : > { %v8094_v13 = vpop.permute.xlu1 %3233  ;;  %3697 = vperm.xlu1 %4784, %v2671_v37   ;;  %v8096_v49 = vpop.permute.xlu0 %3288  ;;  %v2398_v37 = vld [vmem:[%s7996_s24 + $0x98] sm:$0xff]  ;;  %v2675_v7 = vsub.f32 %v2387_v0, %v2531_v51  ;;  %v2544_v46 = vmul.f32 %v9992_v10, %v9991_v61 }
 0x398   : > { %9981 = vst [vmem:[#allocation37_spill] sm:$0xff] %v8094_v13  ;;  %9982 = vst [vmem:[#allocation180_spill] sm:$0xff] %v8096_v49  ;;  %3752 = vperm.xlu0 %4783, %v2682_v6   ;;  %v9989_v6 = vld [vmem:[#allocation36_spill] sm:$0xff]  ;;  %v2686_v49 = vsub.f32 %v2398_v37, %v2542_v44  ;;  %v9996_v51 = vld [vmem:[#allocation189_spill] sm:$0xff] }
 0x399   : > { %v2533_v16 = vmul.f32 %v9990_v54, %v9989_v6  ;;  %v2391_v44 = vld [vmem:[%s7996_s24 + $0x60] sm:$0xff]  ;;  %v9997_v37 = vld [vmem:[#allocation47_spill] sm:$0xff] }
 0x39a   : > { %v9998_v6 = vld [vmem:[#allocation190_spill] sm:$0xff] }
 0x39b   : > { %v8104_v63 = vpop.permute.xlu1 %3243  ;;  %3707 = vperm.xlu1 %4784, %v2673_v38   ;;  %v8106_v15 = vpop.permute.xlu0 %3298  ;;  %v2400_v38 = vld [vmem:[%s7996_s24 + $0xa8] sm:$0xff]  ;;  %v2677_v25 = vsub.f32 %v2389_v8, %v2533_v16  ;;  %v2546_v54 = vmul.f32 %v9998_v6, %v9997_v37 }
 0x39c   : > { %9987 = vst [vmem:[#allocation30_spill] sm:$0xff] %v8104_v63  ;;  %9988 = vst [vmem:[#allocation177_spill] sm:$0xff] %v8106_v15  ;;  %3762 = vperm.xlu0 %4783, %v2684_v53   ;;  %v9995_v53 = vld [vmem:[#allocation38_spill] sm:$0xff]  ;;  %v2688_v15 = vsub.f32 %v2400_v38, %v2544_v46  ;;  %v10002_v16 = vld [vmem:[#allocation191_spill] sm:$0xff] }
 0x39d   : > { %v2535_v0 = vmul.f32 %v9996_v51, %v9995_v53  ;;  %v2393_v46 = vld [vmem:[%s7996_s24 + $0x70] sm:$0xff]  ;;  %v10003_v38 = vld [vmem:[#allocation49_spill] sm:$0xff] }
 0x39e   : > { %v10004_v53 = vld [vmem:[#allocation192_spill] sm:$0xff] }
 0x39f   : > { %v8114_v13 = vpop.permute.xlu1 %3253  ;;  %3717 = vperm.xlu1 %4784, %v2675_v7   ;;  %v8116_v22 = vpop.permute.xlu0 %3308  ;;  %v2402_v7 = vld [vmem:[%s7996_s24 + $0xb8] sm:$0xff]  ;;  %v2679_v10 = vsub.f32 %v2391_v44, %v2535_v0  ;;  %v2548_v51 = vmul.f32 %v10004_v53, %v10003_v38  ;;  %v10008_v0 = vld [vmem:[#allocation194_spill] sm:$0xff] }
 0x3a0   : > { %9993 = vst [vmem:[#allocation39_spill] sm:$0xff] %v8114_v13  ;;  %9994 = vst [vmem:[#allocation182_spill] sm:$0xff] %v8116_v22  ;;  %3772 = vperm.xlu0 %4783, %v2686_v49   ;;  %v10001_v49 = vld [vmem:[#allocation40_spill] sm:$0xff]  ;;  %v2690_v22 = vsub.f32 %v2402_v7, %v2546_v54  ;;  %v2395_v54 = vld [vmem:[%s7996_s24 + $0x80] sm:$0xff] }
 0x3a1   : > { %v2537_v8 = vmul.f32 %v10002_v16, %v10001_v49  ;;  %v10009_v7 = vld [vmem:[#allocation51_spill] sm:$0xff] }
 0x3a2   : > { %v10010_v49 = vld [vmem:[#allocation195_spill] sm:$0xff] }
 0x3a3   : > { %v8124_v63 = vpop.permute.xlu1 %3263  ;;  %3727 = vperm.xlu1 %4784, %v2677_v25   ;;  %v8126_v61 = vpop.permute.xlu0 %3318  ;;  %v2404_v25 = vld [vmem:[%s7996_s24 + $0xc8] sm:$0xff]  ;;  %v2681_v6 = vsub.f32 %v2393_v46, %v2537_v8  ;;  %v2550_v16 = vmul.f32 %v10010_v49, %v10009_v7  ;;  %v10014_v8 = vld [vmem:[#allocation197_spill] sm:$0xff] }
 0x3a4   : > { %9999 = vst [vmem:[#allocation32_spill] sm:$0xff] %v8124_v63  ;;  %10000 = vst [vmem:[#allocation181_spill] sm:$0xff] %v8126_v61  ;;  %3782 = vperm.xlu0 %4783, %v2688_v15   ;;  %v10007_v15 = vld [vmem:[#allocation42_spill] sm:$0xff]  ;;  %v2692_v61 = vsub.f32 %v2404_v25, %v2548_v51  ;;  %v2397_v51 = vld [vmem:[%s7996_s24 + $0x90] sm:$0xff] }
 0x3a5   : > { %v2539_v44 = vmul.f32 %v10008_v0, %v10007_v15  ;;  %v10015_v25 = vld [vmem:[#allocation53_spill] sm:$0xff]  ;;  %v10016_v15 = vld [vmem:[#allocation198_spill] sm:$0xff] }
 0x3a6   : > { %v2552_v0 = vmul.f32 %v10016_v15, %v10015_v25 }
 0x3a7   : > { %v8134_v13 = vpop.permute.xlu1 %3273  ;;  %3737 = vperm.xlu1 %4784, %v2679_v10   ;;  %v8136_v37 = vpop.permute.xlu0 %3328  ;;  %v2406_v10 = vld [vmem:[%s7996_s24 + $0xd8] sm:$0xff]  ;;  %v2683_v53 = vsub.f32 %v2395_v54, %v2539_v44  ;;  %v10020_v44 = vld [vmem:[#allocation132_spill] sm:$0xff] }
 0x3a8   : > { %10005 = vst [vmem:[#allocation41_spill] sm:$0xff] %v8134_v13  ;;  %10006 = vst [vmem:[#allocation184_spill] sm:$0xff] %v8136_v37  ;;  %3792 = vperm.xlu0 %4783, %v2690_v22   ;;  %v10013_v22 = vld [vmem:[#allocation44_spill] sm:$0xff]  ;;  %v2694_v37 = vsub.f32 %v2406_v10, %v2550_v16  ;;  %v2399_v16 = vld [vmem:[%s7996_s24 + $0xa0] sm:$0xff] }
 0x3a9   : > { %v2541_v46 = vmul.f32 %v10014_v8, %v10013_v22  ;;  %v10021_v10 = vld [vmem:[#allocation55_spill] sm:$0xff]  ;;  %v10022_v22 = vld [vmem:[#allocation142_spill] sm:$0xff] }
 0x3aa   : > { %v2554_v8 = vmul.f32 %v10022_v22, %v10021_v10 }
 0x3ab   : > { %v8144_v63 = vpop.permute.xlu1 %3283  ;;  %3747 = vperm.xlu1 %4784, %v2681_v6   ;;  %v8146_v38 = vpop.permute.xlu0 %3338  ;;  %v2408_v6 = vld [vmem:[%s7996_s24 + $0xe8] sm:$0xff]  ;;  %v2685_v49 = vsub.f32 %v2397_v51, %v2541_v46 }
 0x3ac   : > { %10011 = vst [vmem:[#allocation34_spill] sm:$0xff] %v8144_v63  ;;  %10012 = vst [vmem:[#allocation185_spill] sm:$0xff] %v8146_v38  ;;  %3802 = vperm.xlu0 %4783, %v2692_v61   ;;  %v10019_v61 = vld [vmem:[#allocation46_spill] sm:$0xff]  ;;  %v2696_v38 = vsub.f32 %v2408_v6, %v2552_v0  ;;  %v10026_v46 = vld [vmem:[#allocation135_spill] sm:$0xff] }
 0x3ad   : > { %v2543_v54 = vmul.f32 %v10020_v44, %v10019_v61  ;;  %v2401_v0 = vld [vmem:[%s7996_s24 + $0xb0] sm:$0xff]  ;;  %v10027_v6 = vld [vmem:[#allocation57_spill] sm:$0xff] }
 0x3ae   : > { %v10028_v61 = vld [vmem:[#allocation144_spill] sm:$0xff] }
 0x3af   : > { %v8154_v13 = vpop.permute.xlu1 %3293  ;;  %3757 = vperm.xlu1 %4784, %v2683_v53   ;;  %v8156_v7 = vpop.permute.xlu0 %3348  ;;  %v2410_v53 = vld [vmem:[%s7996_s24 + $0xf8] sm:$0xff]  ;;  %v2687_v15 = vsub.f32 %v2399_v16, %v2543_v54  ;;  %v2556_v44 = vmul.f32 %v10028_v61, %v10027_v6  ;;  %v10032_v54 = vld [vmem:[#allocation138_spill] sm:$0xff] }
 0x3b0   : > { %10017 = vst [vmem:[#allocation43_spill] sm:$0xff] %v8154_v13  ;;  %10018 = vst [vmem:[#allocation186_spill] sm:$0xff] %v8156_v7  ;;  %3812 = vperm.xlu0 %4783, %v2694_v37   ;;  %v10025_v37 = vld [vmem:[#allocation48_spill] sm:$0xff]  ;;  %v2698_v7 = vsub.f32 %v2410_v53, %v2554_v8  ;;  %v2403_v8 = vld [vmem:[%s7996_s24 + $0xc0] sm:$0xff] }
 0x3b1   : > { %v2545_v51 = vmul.f32 %v10026_v46, %v10025_v37  ;;  %v10033_v53 = vld [vmem:[#allocation59_spill] sm:$0xff]  ;;  %v10034_v37 = vld [vmem:[#allocation146_spill] sm:$0xff] }
 0x3b2   : > { %v2558_v46 = vmul.f32 %v10034_v37, %v10033_v53 }
 0x3b3   : > { %v8164_v63 = vpop.permute.xlu1 %3303  ;;  %3767 = vperm.xlu1 %4784, %v2685_v49   ;;  %v8166_v25 = vpop.permute.xlu0 %3358  ;;  %v2412_v49 = vld [vmem:[%s7996_s24 + $0x108] sm:$0xff]  ;;  %v2689_v22 = vsub.f32 %v2401_v0, %v2545_v51  ;;  %v10038_v51 = vld [vmem:[#allocation140_spill] sm:$0xff] }
 0x3b4   : > { %10023 = vst [vmem:[#allocation36_spill] sm:$0xff] %v8164_v63  ;;  %10024 = vst [vmem:[#allocation187_spill] sm:$0xff] %v8166_v25  ;;  %3822 = vperm.xlu0 %4783, %v2696_v38   ;;  %v10031_v38 = vld [vmem:[#allocation50_spill] sm:$0xff]  ;;  %v2700_v25 = vsub.f32 %v2412_v49, %v2556_v44  ;;  %v2405_v44 = vld [vmem:[%s7996_s24 + $0xd0] sm:$0xff] }
 0x3b5   : > { %v2547_v16 = vmul.f32 %v10032_v54, %v10031_v38  ;;  %v10039_v49 = vld [vmem:[#allocation61_spill] sm:$0xff]  ;;  %v10040_v38 = vld [vmem:[#allocation148_spill] sm:$0xff] }
 0x3b6   : > { %v2560_v54 = vmul.f32 %v10040_v38, %v10039_v49 }
 0x3b7   : > { %v8174_v13 = vpop.permute.xlu1 %3313  ;;  %3777 = vperm.xlu1 %4784, %v2687_v15   ;;  %v8176_v10 = vpop.permute.xlu0 %3368  ;;  %v2414_v15 = vld [vmem:[%s7996_s24 + $0x118] sm:$0xff]  ;;  %v2691_v61 = vsub.f32 %v2403_v8, %v2547_v16 }
 0x3b8   : > { %10029 = vst [vmem:[#allocation45_spill] sm:$0xff] %v8174_v13  ;;  %10030 = vst [vmem:[#allocation188_spill] sm:$0xff] %v8176_v10  ;;  %3832 = vperm.xlu0 %4783, %v2698_v7   ;;  %v10037_v7 = vld [vmem:[#allocation52_spill] sm:$0xff]  ;;  %v2702_v10 = vsub.f32 %v2414_v15, %v2558_v46  ;;  %v10044_v16 = vld [vmem:[#allocation141_spill] sm:$0xff] }
 0x3b9   : > { %v2549_v0 = vmul.f32 %v10038_v51, %v10037_v7  ;;  %v2407_v46 = vld [vmem:[%s7996_s24 + $0xe0] sm:$0xff]  ;;  %v10045_v15 = vld [vmem:[#allocation63_spill] sm:$0xff] }
 0x3ba   : > { %v10046_v7 = vld [vmem:[#allocation150_spill] sm:$0xff] }
 0x3bb   : > { %v8184_v63 = vpop.permute.xlu1 %3323  ;;  %3787 = vperm.xlu1 %4784, %v2689_v22   ;;  %v8186_v6 = vpop.permute.xlu0 %3378  ;;  %v2416_v22 = vld [vmem:[%s7996_s24 + $0x128] sm:$0xff]  ;;  %v2693_v37 = vsub.f32 %v2405_v44, %v2549_v0  ;;  %v2562_v51 = vmul.f32 %v10046_v7, %v10045_v15 }
 0x3bc   : > { %10035 = vst [vmem:[#allocation38_spill] sm:$0xff] %v8184_v63  ;;  %10036 = vst [vmem:[#allocation189_spill] sm:$0xff] %v8186_v6  ;;  %3842 = vperm.xlu0 %4783, %v2700_v25   ;;  %v10043_v25 = vld [vmem:[#allocation54_spill] sm:$0xff]  ;;  %v2704_v6 = vsub.f32 %v2416_v22, %v2560_v54  ;;  %v10050_v0 = vld [vmem:[#allocation143_spill] sm:$0xff] }
 0x3bd   : > { %v2551_v8 = vmul.f32 %v10044_v16, %v10043_v25  ;;  %v2409_v54 = vld [vmem:[%s7996_s24 + $0xf0] sm:$0xff]  ;;  %v10051_v22 = vld [vmem:[#allocation65_spill] sm:$0xff] }
 0x3be   : > { %v10052_v25 = vld [vmem:[#allocation152_spill] sm:$0xff] }
 0x3bf   : > { %v8194_v13 = vpop.permute.xlu1 %3333  ;;  %3797 = vperm.xlu1 %4784, %v2691_v61   ;;  %v8196_v53 = vpop.permute.xlu0 %3388  ;;  %v2418_v61 = vld [vmem:[%s7996_s24 + $0x138] sm:$0xff]  ;;  %v2695_v38 = vsub.f32 %v2407_v46, %v2551_v8  ;;  %v2564_v16 = vmul.f32 %v10052_v25, %v10051_v22 }
 0x3c0   : > { %10041 = vst [vmem:[#allocation47_spill] sm:$0xff] %v8194_v13  ;;  %10042 = vst [vmem:[#allocation190_spill] sm:$0xff] %v8196_v53  ;;  %3852 = vperm.xlu0 %4783, %v2702_v10   ;;  %v10049_v10 = vld [vmem:[#allocation56_spill] sm:$0xff]  ;;  %v2706_v53 = vsub.f32 %v2418_v61, %v2562_v51  ;;  %v10056_v8 = vld [vmem:[#allocation145_spill] sm:$0xff] }
 0x3c1   : > { %v2553_v44 = vmul.f32 %v10050_v0, %v10049_v10  ;;  %v2411_v51 = vld [vmem:[%s7996_s24 + $0x100] sm:$0xff]  ;;  %v10057_v61 = vld [vmem:[#allocation67_spill] sm:$0xff] }
 0x3c2   : > { %v10058_v10 = vld [vmem:[#allocation210_spill] sm:$0xff] }
 0x3c3   : > { %v8204_v63 = vpop.permute.xlu1 %3343  ;;  %3807 = vperm.xlu1 %4784, %v2693_v37   ;;  %v8206_v49 = vpop.permute.xlu0 %3398  ;;  %v2420_v37 = vld [vmem:[%s7996_s24 + $0x148] sm:$0xff]  ;;  %v2697_v7 = vsub.f32 %v2409_v54, %v2553_v44  ;;  %v2566_v0 = vmul.f32 %v10058_v10, %v10057_v61 }
 0x3c4   : > { %10047 = vst [vmem:[#allocation40_spill] sm:$0xff] %v8204_v63  ;;  %10048 = vst [vmem:[#allocation191_spill] sm:$0xff] %v8206_v49  ;;  %3862 = vperm.xlu0 %4783, %v2704_v6   ;;  %v10055_v6 = vld [vmem:[#allocation58_spill] sm:$0xff]  ;;  %v2708_v49 = vsub.f32 %v2420_v37, %v2564_v16  ;;  %v10062_v44 = vld [vmem:[#allocation147_spill] sm:$0xff] }
 0x3c5   : > { %v2555_v46 = vmul.f32 %v10056_v8, %v10055_v6  ;;  %v2413_v16 = vld [vmem:[%s7996_s24 + $0x110] sm:$0xff]  ;;  %v10063_v37 = vld [vmem:[#allocation69_spill] sm:$0xff] }
 0x3c6   : > { %v10064_v6 = vld [vmem:[#allocation212_spill] sm:$0xff] }
 0x3c7   : > { %v8214_v13 = vpop.permute.xlu1 %3353  ;;  %3817 = vperm.xlu1 %4784, %v2695_v38   ;;  %v8216_v15 = vpop.permute.xlu0 %3408  ;;  %v2422_v38 = vld [vmem:[%s7996_s24 + $0x158] sm:$0xff]  ;;  %v2699_v25 = vsub.f32 %v2411_v51, %v2555_v46  ;;  %v2568_v8 = vmul.f32 %v10064_v6, %v10063_v37 }
 0x3c8   : > { %10053 = vst [vmem:[#allocation49_spill] sm:$0xff] %v8214_v13  ;;  %10054 = vst [vmem:[#allocation192_spill] sm:$0xff] %v8216_v15  ;;  %3872 = vperm.xlu0 %4783, %v2706_v53   ;;  %v10061_v53 = vld [vmem:[#allocation60_spill] sm:$0xff]  ;;  %v2710_v15 = vsub.f32 %v2422_v38, %v2566_v0  ;;  %v10068_v46 = vld [vmem:[#allocation149_spill] sm:$0xff] }
 0x3c9   : > { %v2557_v54 = vmul.f32 %v10062_v44, %v10061_v53  ;;  %v2415_v0 = vld [vmem:[%s7996_s24 + $0x120] sm:$0xff] }
 0x3ca   : > { %v10069_v38 = vld [vmem:[#allocation2_spill] sm:$0xff] }
 0x3cb   : > { %v8224_v63 = vpop.permute.xlu1 %3363  ;;  %3827 = vperm.xlu1 %4784, %v2697_v7   ;;  %v8226_v22 = vpop.permute.xlu0 %3418  ;;  %v2424_v7 = vld [vmem:[%s7996_s24 + $0x168] sm:$0xff]  ;;  %v2701_v10 = vsub.f32 %v2413_v16, %v2557_v54  ;;  %v10070_v53 = vld [vmem:[#allocation214_spill] sm:$0xff] }
 0x3cc   : > { %10059 = vst [vmem:[#allocation42_spill] sm:$0xff] %v8224_v63  ;;  %10060 = vst [vmem:[#allocation194_spill] sm:$0xff] %v8226_v22  ;;  %3882 = vperm.xlu0 %4783, %v2708_v49   ;;  %v10067_v49 = vld [vmem:[#allocation62_spill] sm:$0xff]  ;;  %v2712_v22 = vsub.f32 %v2424_v7, %v2568_v8  ;;  %v2570_v44 = vmul.f32 %v10070_v53, %v10069_v38  ;;  %v10074_v54 = vld [vmem:[#allocation151_spill] sm:$0xff] }
 0x3cd   : > { %v2559_v51 = vmul.f32 %v10068_v46, %v10067_v49  ;;  %v2417_v8 = vld [vmem:[%s7996_s24 + $0x130] sm:$0xff] }
 0x3ce   : > { %v10075_v7 = vld [vmem:[#allocation4_spill] sm:$0xff] }
 0x3cf   : > { %v8234_v13 = vpop.permute.xlu1 %3373  ;;  %3837 = vperm.xlu1 %4784, %v2699_v25   ;;  %v8236_v61 = vpop.permute.xlu0 %3428  ;;  %v2426_v25 = vld [vmem:[%s7996_s24 + $0x178] sm:$0xff]  ;;  %v2703_v6 = vsub.f32 %v2415_v0, %v2559_v51  ;;  %v10076_v49 = vld [vmem:[#allocation216_spill] sm:$0xff] }
 0x3d0   : > { %10065 = vst [vmem:[#allocation51_spill] sm:$0xff] %v8234_v13  ;;  %10066 = vst [vmem:[#allocation195_spill] sm:$0xff] %v8236_v61  ;;  %3892 = vperm.xlu0 %4783, %v2710_v15   ;;  %v10073_v15 = vld [vmem:[#allocation64_spill] sm:$0xff]  ;;  %v2714_v61 = vsub.f32 %v2426_v25, %v2570_v44  ;;  %v2572_v46 = vmul.f32 %v10076_v49, %v10075_v7  ;;  %v10080_v51 = vld [vmem:[#allocation153_spill] sm:$0xff] }
 0x3d1   : > { %v2561_v16 = vmul.f32 %v10074_v54, %v10073_v15  ;;  %v2419_v44 = vld [vmem:[%s7996_s24 + $0x140] sm:$0xff] }
 0x3d2   : > { %v10081_v25 = vld [vmem:[#allocation6_spill] sm:$0xff] }
 0x3d3   : > { %v8244_v63 = vpop.permute.xlu1 %3383  ;;  %3847 = vperm.xlu1 %4784, %v2701_v10   ;;  %v8246_v37 = vpop.permute.xlu0 %3438  ;;  %v2428_v10 = vld [vmem:[%s7996_s24 + $0x188] sm:$0xff]  ;;  %v2705_v53 = vsub.f32 %v2417_v8, %v2561_v16  ;;  %v10082_v15 = vld [vmem:[#allocation218_spill] sm:$0xff] }
 0x3d4   : > { %10071 = vst [vmem:[#allocation44_spill] sm:$0xff] %v8244_v63  ;;  %10072 = vst [vmem:[#allocation197_spill] sm:$0xff] %v8246_v37  ;;  %3902 = vperm.xlu0 %4783, %v2712_v22   ;;  %v10079_v22 = vld [vmem:[#allocation66_spill] sm:$0xff]  ;;  %v2716_v37 = vsub.f32 %v2428_v10, %v2572_v46  ;;  %v2574_v54 = vmul.f32 %v10082_v15, %v10081_v25  ;;  %v2421_v46 = vld [vmem:[%s7996_s24 + $0x150] sm:$0xff] }
 0x3d5   : > { %v2563_v0 = vmul.f32 %v10080_v51, %v10079_v22  ;;  %v10086_v16 = vld [vmem:[#allocation154_spill] sm:$0xff]  ;;  %v10087_v10 = vld [vmem:[#allocation8_spill] sm:$0xff] }
 0x3d6   : > { %v10088_v22 = vld [vmem:[#allocation220_spill] sm:$0xff] }
 0x3d7   : > { %v8254_v13 = vpop.permute.xlu1 %3393  ;;  %3857 = vperm.xlu1 %4784, %v2703_v6   ;;  %v8256_v38 = vpop.permute.xlu0 %3448  ;;  %v2430_v6 = vld [vmem:[%s7996_s24 + $0x198] sm:$0xff]  ;;  %v2707_v49 = vsub.f32 %v2419_v44, %v2563_v0  ;;  %v2576_v51 = vmul.f32 %v10088_v22, %v10087_v10 }
 0x3d8   : > { %10077 = vst [vmem:[#allocation53_spill] sm:$0xff] %v8254_v13  ;;  %10078 = vst [vmem:[#allocation198_spill] sm:$0xff] %v8256_v38  ;;  %3912 = vperm.xlu0 %4783, %v2714_v61   ;;  %v10085_v61 = vld [vmem:[#allocation68_spill] sm:$0xff]  ;;  %v2718_v38 = vsub.f32 %v2430_v6, %v2574_v54  ;;  %v10092_v0 = vld [vmem:[#allocation221_spill] sm:$0xff] }
 0x3d9   : > { %v2565_v8 = vmul.f32 %v10086_v16, %v10085_v61  ;;  %v2423_v54 = vld [vmem:[%s7996_s24 + $0x160] sm:$0xff] }
 0x3da   : > { %v10093_v6 = vld [vmem:[#allocation10_spill] sm:$0xff] }
 0x3db   : > { %v8264_v63 = vpop.permute.xlu1 %3403  ;;  %3867 = vperm.xlu1 %4784, %v2705_v53   ;;  %v8266_v7 = vpop.permute.xlu0 %3458  ;;  %v2432_v53 = vld [vmem:[%s7996_s24 + $0x1a8] sm:$0xff]  ;;  %v2709_v15 = vsub.f32 %v2421_v46, %v2565_v8  ;;  %v10094_v61 = vld [vmem:[#allocation222_spill] sm:$0xff]  ;;  %v10098_v8 = vld [vmem:[#allocation156_spill] sm:$0xff] }
 0x3dc   : > { %10083 = vst [vmem:[#allocation46_spill] sm:$0xff] %v8264_v63  ;;  %10084 = vst [vmem:[#allocation132_spill] sm:$0xff] %v8266_v7  ;;  %3922 = vperm.xlu0 %4783, %v2716_v37   ;;  %v10091_v37 = vld [vmem:[#allocation70_spill] sm:$0xff]  ;;  %v2720_v7 = vsub.f32 %v2432_v53, %v2576_v51  ;;  %v2578_v16 = vmul.f32 %v10094_v61, %v10093_v6  ;;  %v2425_v51 = vld [vmem:[%s7996_s24 + $0x170] sm:$0xff] }
 0x3dd   : > { %v2567_v44 = vmul.f32 %v10092_v0, %v10091_v37  ;;  %v10099_v53 = vld [vmem:[#allocation12_spill] sm:$0xff] }
 0x3de   : > { %v10100_v37 = vld [vmem:[#allocation224_spill] sm:$0xff] }
 0x3df   : > { %v8274_v13 = vpop.permute.xlu1 %3413  ;;  %3877 = vperm.xlu1 %4784, %v2707_v49   ;;  %v8276_v25 = vpop.permute.xlu0 %3468  ;;  %v2434_v49 = vld [vmem:[%s7996_s24 + $0x1b8] sm:$0xff]  ;;  %v2711_v22 = vsub.f32 %v2423_v54, %v2567_v44  ;;  %v2580_v0 = vmul.f32 %v10100_v37, %v10099_v53  ;;  %v10104_v44 = vld [vmem:[#allocation159_spill] sm:$0xff] }
 0x3e0   : > { %10089 = vst [vmem:[#allocation55_spill] sm:$0xff] %v8274_v13  ;;  %10090 = vst [vmem:[#allocation142_spill] sm:$0xff] %v8276_v25  ;;  %3932 = vperm.xlu0 %4783, %v2718_v38   ;;  %v10097_v38 = vld [vmem:[#allocation3_spill] sm:$0xff]  ;;  %v2722_v25 = vsub.f32 %v2434_v49, %v2578_v16  ;;  %v2427_v16 = vld [vmem:[%s7996_s24 + $0x180] sm:$0xff] }
 0x3e1   : > { %v2569_v46 = vmul.f32 %v10098_v8, %v10097_v38  ;;  %v10105_v49 = vld [vmem:[#allocation14_spill] sm:$0xff] }
 0x3e2   : > { %v10106_v38 = vld [vmem:[#allocation226_spill] sm:$0xff] }
 0x3e3   : > { %v8284_v63 = vpop.permute.xlu1 %3423  ;;  %3887 = vperm.xlu1 %4784, %v2709_v15   ;;  %v8286_v10 = vpop.permute.xlu0 %3478  ;;  %v2436_v15 = vld [vmem:[%s7996_s24 + $0x1c8] sm:$0xff]  ;;  %v2713_v61 = vsub.f32 %v2425_v51, %v2569_v46  ;;  %v2582_v8 = vmul.f32 %v10106_v38, %v10105_v49  ;;  %v10110_v46 = vld [vmem:[#allocation162_spill] sm:$0xff] }
 0x3e4   : > { %10095 = vst [vmem:[#allocation48_spill] sm:$0xff] %v8284_v63  ;;  %10096 = vst [vmem:[#allocation135_spill] sm:$0xff] %v8286_v10  ;;  %3942 = vperm.xlu0 %4783, %v2720_v7   ;;  %v10103_v7 = vld [vmem:[#allocation5_spill] sm:$0xff]  ;;  %v2724_v10 = vsub.f32 %v2436_v15, %v2580_v0  ;;  %v2429_v0 = vld [vmem:[%s7996_s24 + $0x190] sm:$0xff] }
 0x3e5   : > { %v2571_v54 = vmul.f32 %v10104_v44, %v10103_v7  ;;  %v10111_v15 = vld [vmem:[#allocation16_spill] sm:$0xff] }
 0x3e6   : > { %v10112_v7 = vld [vmem:[#allocation228_spill] sm:$0xff] }
 0x3e7   : > { %v8294_v13 = vpop.permute.xlu1 %3433  ;;  %3897 = vperm.xlu1 %4784, %v2711_v22   ;;  %v8296_v6 = vpop.permute.xlu0 %3488  ;;  %v2438_v22 = vld [vmem:[%s7996_s24 + $0x1d8] sm:$0xff]  ;;  %v2715_v37 = vsub.f32 %v2427_v16, %v2571_v54  ;;  %v2584_v44 = vmul.f32 %v10112_v7, %v10111_v15 }
 0x3e8   : > { %10101 = vst [vmem:[#allocation57_spill] sm:$0xff] %v8294_v13  ;;  %10102 = vst [vmem:[#allocation144_spill] sm:$0xff] %v8296_v6  ;;  %3952 = vperm.xlu0 %4783, %v2722_v25   ;;  %v10109_v25 = vld [vmem:[#allocation7_spill] sm:$0xff]  ;;  %v2726_v6 = vsub.f32 %v2438_v22, %v2582_v8  ;;  %v10115_v54 = vld [vmem:[#allocation229_spill] sm:$0xff] }
 0x3e9   : > { %v2573_v51 = vmul.f32 %v10110_v46, %v10109_v25  ;;  %v2431_v8 = vld [vmem:[%s7996_s24 + $0x1a0] sm:$0xff]  ;;  %v2442_v15 = vld [vmem:[%s7996_s24 + $0x1f8] sm:$0xff] }
 0x3ea   : > { %v10116_v22 = vld [vmem:[#allocation18_spill] sm:$0xff] }
 0x3eb   : > { %v8304_v63 = vpop.permute.xlu1 %3443  ;;  %3907 = vperm.xlu1 %4784, %v2713_v61   ;;  %v8306_v53 = vpop.permute.xlu0 %3498  ;;  %v2440_v61 = vld [vmem:[%s7996_s24 + $0x1e8] sm:$0xff]  ;;  %v2717_v38 = vsub.f32 %v2429_v0, %v2573_v51  ;;  %v10117_v25 = vld [vmem:[#allocation230_spill] sm:$0xff]  ;;  %v10121_v0 = vld [vmem:[#allocation165_spill] sm:$0xff] }
 0x3ec   : > { %10107 = vst [vmem:[#allocation50_spill] sm:$0xff] %v8304_v63  ;;  %10108 = vst [vmem:[#allocation138_spill] sm:$0xff] %v8306_v53  ;;  %3962 = vperm.xlu0 %4783, %v2724_v10   ;;  %v10114_v10 = vld [vmem:[#allocation9_spill] sm:$0xff]  ;;  %v2728_v53 = vsub.f32 %v2440_v61, %v2584_v44  ;;  %v2586_v46 = vmul.f32 %v10117_v25, %v10116_v22  ;;  %v10120_v51 = vld [vmem:[#allocation11_spill] sm:$0xff] }
 0x3ed   : > { %v2575_v16 = vmul.f32 %v10115_v54, %v10114_v10  ;;  %v2577_v7 = vmul.f32 %v10121_v0, %v10120_v51  ;;  %v2433_v44 = vld [vmem:[%s7996_s24 + $0x1b0] sm:$0xff]  ;;  %v2444_v25 = vld [vmem:[%s7996_s24 + $0x208] sm:$0xff]  ;;  %v2435_v0 = vld [vmem:[%s7996_s24 + $0x1c0] sm:$0xff] }
 0x3ee   : > { %v2730_v10 = vsub.f32 %v2442_v15, %v2586_v46  ;;  %v10122_v61 = vld [vmem:[#allocation20_spill] sm:$0xff]  ;;  %v5211_v51 = vld [vmem:[%s5398_s18 + $0x8] sm:$0xff] }
 0x3ef   : > { %v8314_v13 = vpop.permute.xlu1 %3453  ;;  %3917 = vperm.xlu1 %4784, %v2715_v37   ;;  %v8316_v49 = vpop.permute.xlu0 %3508  ;;  %v10123_v54 = vld [vmem:[#allocation232_spill] sm:$0xff]  ;;  %v3532_v46 = vmul.f32 %v5211_v51, %v7486_v30 }
 0x3f0   : > { %10113 = vst [vmem:[#allocation59_spill] sm:$0xff] %v8316_v49  ;;  %3972 = vperm.xlu0 %4783, %v2726_v6   ;;  %v2719_v6 = vsub.f32 %v2431_v8, %v2575_v16  ;;  %v2588_v49 = vmul.f32 %v10123_v54, %v10122_v61  ;;  %v10126_v16 = vld [vmem:[#allocation168_spill] sm:$0xff]  ;;  %v10127_v61 = vld [vmem:[#allocation22_spill] sm:$0xff]  ;;  %v10128_v54 = vld [vmem:[#allocation233_spill] sm:$0xff] }
 0x3f1   : > { %v2437_v51 = vld [vmem:[%s7996_s24 + $0x1d0] sm:$0xff] }
 0x3f2   : > { %v2732_v15 = vsub.f32 %v2444_v25, %v2588_v49  ;;  %v10130_v49 = vld [vmem:[#allocation15_spill] sm:$0xff]  ;;  %v5212_v25 = vld [vmem:[%s5398_s18 + $0x18] sm:$0xff] }
 0x3f3   : > { %v8324_v63 = vpop.permute.xlu1 %3463  ;;  %3927 = vperm.xlu1 %4784, %v2717_v38   ;;  %v8326_v37 = vpop.permute.xlu0 %3518 }
 0x3f4   : > { %10118 = vst [vmem:[#allocation146_spill] sm:$0xff] %v8324_v63  ;;  %10119 = vst [vmem:[#allocation52_spill] sm:$0xff] %v8326_v37  ;;  %3982 = vperm.xlu0 %4783, %v2728_v53   ;;  %v2721_v53 = vsub.f32 %v2433_v44, %v2577_v7  ;;  %v10125_v37 = vld [vmem:[#allocation13_spill] sm:$0xff] }
 0x3f5   : > { %v2579_v8 = vmul.f32 %v10126_v16, %v10125_v37 }
 0x3f7   : > { %v8334_v22 = vpop.permute.xlu1 %3473  ;;  %3937 = vperm.xlu1 %4784, %v2719_v6   ;;  %v8336_v38 = vpop.permute.xlu0 %3528  ;;  %v2446_v6 = vld [vmem:[%s7996_s24 + $0x218] sm:$0xff]  ;;  %v2723_v30 = vsub.f32 %v2435_v0, %v2579_v8 }
 0x3f8   : > { %10124 = vst [vmem:[#allocation140_spill] sm:$0xff] %v8334_v22  ;;  %3992 = vperm.xlu0 %4783, %v2730_v10   ;;  %v2590_v22 = vmul.f32 %v10128_v54, %v10127_v61  ;;  %v10131_v10 = vld [vmem:[#allocation234_spill] sm:$0xff]  ;;  %v10132_v61 = vld [vmem:[#allocation91_spill] sm:$0xff] }
 0x3f9   : > { %v2581_v44 = vmul.f32 %v10131_v10, %v10130_v49  ;;  %v2592_v54 = vmul.f32 %v7481_v11, %v10132_v61  ;;  %v5214_v61 = vld [vmem:[%s5398_s18 + $0x38] sm:$0xff] }
 0x3fa   : > { %v2734_v16 = vsub.f32 %v2446_v6, %v2590_v22  ;;  %v2439_v6 = vld [vmem:[%s7996_s24 + $0x1e0] sm:$0xff] }
 0x3fb   : > { %v8346_v63 = vpop.permute.xlu1 %3483  ;;  %3947 = vperm.xlu1 %4784, %v2721_v53   ;;  %v3683_v37 = vpop.permute.xlu0 %3682  ;;  %v3534_v53 = vmul.f32 %v5212_v25, %v7512_v52  ;;  %v2725_v0 = vsub.f32 %v2437_v51, %v2581_v44  ;;  %v2450_v25 = vld [vmem:[%s7996_s24 + $0x238] sm:$0xff] }
 0x3fc   : > { %10129 = vst [vmem:[#allocation61_spill] sm:$0xff] %v8346_v63  ;;  %v4396_v7 = vadd.f32 %v3683_v37, %v3532_v46  ;;  %4002 = vperm.xlu0 %4783, %v2732_v15   ;;  %v2448_v46 = vld [vmem:[%s7996_s24 + $0x228] sm:$0xff]  ;;  %v10133_v37 = vld [vmem:[#allocation17_spill] sm:$0xff] }
 0x3fd   : > { %v2583_v52 = vmul.f32 %v7493_v57, %v10133_v37  ;;  %v2736_v11 = vsub.f32 %v2448_v46, %v2592_v54  ;;  %v10136_v51 = vld [vmem:[#allocation237_spill] sm:$0xff]  ;;  %v3538_v54 = vmul.f32 %v5214_v61, %v7568_v60  ;;  %v10137_v46 = vld [vmem:[#allocation96_spill] sm:$0xff] }
 0x3fe   : > { %4540 = vst.msk [vmem:[%s8352_s27 + $0x8] sm:$0xff] %vm362_vm0, %v4396_v7  ;;  %v5213_v7 = vld [vmem:[%s5398_s18 + $0x28] sm:$0xff]  ;;  %v2454_v61 = vld [vmem:[%s7996_s24 + $0x258] sm:$0xff] }
 0x3ff   : > { %v8364_v63 = vpop.permute.xlu1 %3493  ;;  %3957 = vperm.xlu1 %4784, %v2723_v30   ;;  %v3693_v8 = vpop.permute.xlu0 %3692  ;;  %v3536_v22 = vmul.f32 %v5213_v7, %v7540_v26  ;;  %v10134_v30 = vld [vmem:[#allocation92_spill] sm:$0xff]  ;;  %v2727_v57 = vsub.f32 %v2439_v6, %v2583_v52  ;;  %v2452_v52 = vld [vmem:[%s7996_s24 + $0x248] sm:$0xff] }
 0x400   : > { %v4398_v15 = vadd.f32 %v3693_v8, %v3534_v53  ;;  %4012 = vperm.xlu0 %4783, %v2734_v16   ;;  %v2594_v49 = vmul.f32 %v7495_v40, %v10134_v30  ;;  %v10135_v16 = vld [vmem:[#allocation19_spill] sm:$0xff]  ;;  %v2441_v8 = vld [vmem:[%s7996_s24 + $0x1f0] sm:$0xff] }
 0x401   : > { %v2585_v26 = vmul.f32 %v10136_v51, %v10135_v16  ;;  %v10139_v6 = vld [vmem:[#allocation239_spill] sm:$0xff] }
 0x402   : > { %4542 = vst.msk [vmem:[%s8352_s27 + $0x18] sm:$0xff] %vm362_vm0, %v4398_v15  ;;  %v2738_v40 = vsub.f32 %v2450_v25, %v2594_v49  ;;  %v2596_v15 = vmul.f32 %v7509_v9, %v10137_v46  ;;  %v5215_v30 = vld [vmem:[%s5398_s18 + $0x48] sm:$0xff]  ;;  %v2443_v25 = vld [vmem:[%s7996_s24 + $0x200] sm:$0xff]  ;;  %v10144_v46 = vld [vmem:[#allocation169_spill] sm:$0xff] }
 0x403   : > { %v8376_v10 = vpop.permute.xlu1 %3503  ;;  %3967 = vperm.xlu1 %4784, %v2725_v0   ;;  %v3703_v44 = vpop.permute.xlu0 %3702 }
 0x404   : > { %v4400_v53 = vadd.f32 %v3703_v44, %v3536_v22  ;;  %4022 = vperm.xlu0 %4783, %v2736_v11   ;;  %v2729_v22 = vsub.f32 %v2441_v8, %v2585_v26  ;;  %v10138_v11 = vld [vmem:[#allocation21_spill] sm:$0xff]  ;;  %v10140_v44 = vld [vmem:[#allocation238_spill] sm:$0xff]  ;;  %v2740_v9 = vsub.f32 %v2452_v52, %v2596_v15  ;;  %v10143_v8 = vld [vmem:[#allocation23_spill] sm:$0xff] }
 0x405   : > { %v2587_v60 = vmul.f32 %v10139_v6, %v10138_v11  ;;  %v3540_v49 = vmul.f32 %v5215_v30, %v10140_v44  ;;  %v10145_v11 = vld [vmem:[#allocation236_spill] sm:$0xff]  ;;  %v5217_v52 = vld [vmem:[%s5398_s18 + $0x58] sm:$0xff]  ;;  %v10146_v6 = vld [vmem:[#allocation242_spill] sm:$0xff] }
 0x406   : > { %4544 = vst.msk [vmem:[%s8352_s27 + $0x28] sm:$0xff] %vm362_vm0, %v4400_v53  ;;  %v10141_v53 = vld [vmem:[#allocation98_spill] sm:$0xff]  ;;  %v3542_v30 = vmul.f32 %v5217_v52, %v10146_v6  ;;  %v2445_v44 = vld [vmem:[%s7996_s24 + $0x210] sm:$0xff]  ;;  %v10150_v52 = vld [vmem:[#allocation243_spill] sm:$0xff] }
 0x407   : > { %v8388_v0 = vpop.permute.xlu1 %3513  ;;  %3977 = vperm.xlu1 %4784, %v2727_v57   ;;  %v3713_v37 = vpop.permute.xlu0 %3712  ;;  %v10142_v57 = vld [vmem:[#allocation240_spill] sm:$0xff]  ;;  %v10151_v6 = vld [vmem:[#allocation102_spill] sm:$0xff] }
 0x408   : > { %v4402_v7 = vadd.f32 %v3713_v37, %v3538_v54  ;;  %4032 = vperm.xlu0 %4783, %v2738_v40   ;;  %v2598_v16 = vmul.f32 %v10142_v57, %v10141_v53  ;;  %v2731_v40 = vsub.f32 %v2443_v25, %v2587_v60  ;;  %v2589_v37 = vmul.f32 %v10144_v46, %v10143_v8  ;;  %v10147_v53 = vld [vmem:[#allocation100_spill] sm:$0xff]  ;;  %v2456_v25 = vld [vmem:[%s7996_s24 + $0x268] sm:$0xff]  ;;  %v10148_v46 = vld [vmem:[#allocation26_spill] sm:$0xff] }
 0x409   : > { %v2600_v60 = vmul.f32 %v7537_v33, %v10147_v53 }
 0x40a   : > { %4546 = vst.msk [vmem:[%s8352_s27 + $0x38] sm:$0xff] %vm362_vm0, %v4402_v7  ;;  %v5216_v7 = vld [vmem:[%s5398_s18] sm:$0xff]  ;;  %v2733_v8 = vsub.f32 %v2445_v44, %v2589_v37  ;;  %v2458_v44 = vld [vmem:[%s7996_s24 + $0x278] sm:$0xff] }
 0x40b   : > { %3987 = vperm.xlu1 %4784, %v2729_v22   ;;  %v8400_v51 = vpop.permute.xlu1 %3523  ;;  %v3723_v26 = vpop.permute.xlu0 %3722  ;;  %v3531_v15 = vmul.f32 %v5216_v7, %v10145_v11  ;;  %v2742_v22 = vsub.f32 %v2454_v61, %v2598_v16  ;;  %v5218_v16 = vld [vmem:[%s5398_s18 + $0x10] sm:$0xff]  ;;  %v10149_v61 = vld [vmem:[#allocation235_spill] sm:$0xff]  ;;  %v10152_v37 = vld [vmem:[#allocation170_spill] sm:$0xff] }
 0x40c   : > { %v4404_v54 = vadd.f32 %v3723_v26, %v3540_v49  ;;  %4042 = vperm.xlu0 %4783, %v2740_v9   ;;  %v3533_v7 = vmul.f32 %v5218_v16, %v10149_v61  ;;  %v5219_v11 = vld [vmem:[%s5398_s18 + $0x68] sm:$0xff]  ;;  %v5221_v61 = vld [vmem:[%s5398_s18 + $0x78] sm:$0xff] }
 0x40d   : > { %v3544_v33 = vmul.f32 %v5219_v11, %v10150_v52  ;;  %v10156_v11 = vld [vmem:[#allocation245_spill] sm:$0xff] }
 0x40e   : > { %4548 = vst.msk [vmem:[%s8352_s27 + $0x48] sm:$0xff] %vm362_vm0, %v4404_v54  ;;  %v2591_v54 = vmul.f32 %v7549_v35, %v10148_v46  ;;  %v10154_v46 = vld [vmem:[#allocation246_spill] sm:$0xff]  ;;  %v3546_v52 = vmul.f32 %v5221_v61, %v10156_v11  ;;  %v2462_v11 = vld [vmem:[%s7996_s24 + $0x298] sm:$0xff] }
 0x40f   : > { %3997 = vperm.xlu1 %4784, %v2731_v40   ;;  %v3678_v49 = vpop.permute.xlu1 %3677  ;;  %v3733_v9 = vpop.permute.xlu0 %3732  ;;  %v2744_v40 = vsub.f32 %v2456_v25, %v2600_v60  ;;  %v5220_v60 = vld [vmem:[%s5398_s18 + $0x20] sm:$0xff]  ;;  %v10155_v25 = vld [vmem:[#allocation241_spill] sm:$0xff] }
 0x410   : > { %v4395_v57 = vadd.f32 %v3678_v49, %v3531_v15  ;;  %v4406_v26 = vadd.f32 %v3733_v9, %v3542_v30  ;;  %4052 = vperm.xlu0 %4783, %v2742_v22   ;;  %v2447_v15 = vld [vmem:[%s7996_s24 + $0x220] sm:$0xff]  ;;  %v2602_v30 = vmul.f32 %v10152_v37, %v10151_v6  ;;  %v3535_v16 = vmul.f32 %v5220_v60, %v10155_v25  ;;  %v2460_v6 = vld [vmem:[%s7996_s24 + $0x288] sm:$0xff] }
 0x411   : > { %v2735_v9 = vsub.f32 %v2447_v15, %v2591_v54  ;;  %v10160_v60 = vld [vmem:[#allocation247_spill] sm:$0xff]  ;;  %v2451_v25 = vld [vmem:[%s7996_s24 + $0x240] sm:$0xff] }
 0x412   : > { %4539 = vst.msk [vmem:[%s8352_s27] sm:$0xff] %vm362_vm0, %v4395_v57  ;;  %4550 = vst.msk [vmem:[%s8352_s27 + $0x58] sm:$0xff] %vm362_vm0, %v4406_v26  ;;  %v10153_v57 = vld [vmem:[#allocation93_spill] sm:$0xff] }
 0x413   : > { %4007 = vperm.xlu1 %4784, %v2733_v8   ;;  %v3688_v35 = vpop.permute.xlu1 %3687  ;;  %v3743_v22 = vpop.permute.xlu0 %3742  ;;  %v2593_v26 = vmul.f32 %v10154_v46, %v10153_v57  ;;  %v2746_v8 = vsub.f32 %v2458_v44, %v2602_v30  ;;  %v5222_v30 = vld [vmem:[%s5398_s18 + $0x30] sm:$0xff]  ;;  %v5223_v46 = vld [vmem:[%s5398_s18 + $0x88] sm:$0xff] }
 0x414   : > { %v4397_v53 = vadd.f32 %v3688_v35, %v3533_v7  ;;  %v4408_v49 = vadd.f32 %v3743_v22, %v3544_v33  ;;  %4062 = vperm.xlu0 %4783, %v2744_v40   ;;  %v2449_v7 = vld [vmem:[%s7996_s24 + $0x230] sm:$0xff] }
 0x415   : > { %v10157_v33 = vld [vmem:[#allocation104_spill] sm:$0xff]  ;;  %v2737_v22 = vsub.f32 %v2449_v7, %v2593_v26 }
 0x416   : > { %4541 = vst.msk [vmem:[%s8352_s27 + $0x10] sm:$0xff] %vm362_vm0, %v4397_v53  ;;  %4552 = vst.msk [vmem:[%s8352_s27 + $0x68] sm:$0xff] %vm362_vm0, %v4408_v49  ;;  %v2604_v54 = vmul.f32 %v7565_v21, %v10157_v33  ;;  %v10158_v53 = vld [vmem:[#allocation97_spill] sm:$0xff]  ;;  %v10159_v44 = vld [vmem:[#allocation244_spill] sm:$0xff]  ;;  %v3548_v21 = vmul.f32 %v5223_v46, %v10160_v60 }
 0x417   : > { %4017 = vperm.xlu1 %4784, %v2735_v9   ;;  %v3698_v40 = vpop.permute.xlu1 %3697  ;;  %v3753_v15 = vpop.permute.xlu0 %3752  ;;  %v2595_v49 = vmul.f32 %v7577_v4, %v10158_v53  ;;  %v3537_v57 = vmul.f32 %v5222_v30, %v10159_v44  ;;  %v10162_v33 = vld [vmem:[#allocation99_spill] sm:$0xff]  ;;  %v2453_v53 = vld [vmem:[%s7996_s24 + $0x250] sm:$0xff] }
 0x418   : > { %v4399_v37 = vadd.f32 %v3698_v40, %v3535_v16  ;;  %v4410_v35 = vadd.f32 %v3753_v15, %v3546_v52  ;;  %4072 = vperm.xlu0 %4783, %v2746_v8   ;;  %v2748_v9 = vsub.f32 %v2460_v6, %v2604_v54  ;;  %v10161_v16 = vld [vmem:[#allocation106_spill] sm:$0xff]  ;;  %v2597_v40 = vmul.f32 %v7591_v23, %v10162_v33  ;;  %v10165_v30 = vld [vmem:[#allocation108_spill] sm:$0xff] }
 0x419   : > { %v2606_v26 = vmul.f32 %v7579_v59, %v10161_v16  ;;  %v2739_v7 = vsub.f32 %v2451_v25, %v2595_v49  ;;  %v5224_v54 = vld [vmem:[%s5398_s18 + $0x40] sm:$0xff]  ;;  %v2608_v49 = vmul.f32 %v7593_v5, %v10165_v30  ;;  %v5226_v16 = vld [vmem:[%s5398_s18 + $0x50] sm:$0xff] }
 0x41a   : > { %4543 = vst.msk [vmem:[%s8352_s27 + $0x20] sm:$0xff] %vm362_vm0, %v4399_v37  ;;  %4554 = vst.msk [vmem:[%s8352_s27 + $0x78] sm:$0xff] %vm362_vm0, %v4410_v35  ;;  %v10163_v15 = vld [vmem:[#allocation174_spill] sm:$0xff]  ;;  %v5225_v37 = vld [vmem:[%s5398_s18 + $0x98] sm:$0xff] }
 0x41b   : > { %4027 = vperm.xlu1 %4784, %v2737_v22   ;;  %v3708_v4 = vpop.permute.xlu1 %3707  ;;  %v3763_v61 = vpop.permute.xlu0 %3762  ;;  %v3539_v6 = vmul.f32 %v5224_v54, %v10163_v15  ;;  %v10164_v35 = vld [vmem:[#allocation248_spill] sm:$0xff]  ;;  %v2750_v22 = vsub.f32 %v2462_v11, %v2606_v26  ;;  %v10167_v26 = vld [vmem:[#allocation249_spill] sm:$0xff]  ;;  %v10168_v11 = vld [vmem:[#allocation250_spill] sm:$0xff] }
 0x41c   : > { %v4401_v52 = vadd.f32 %v3708_v4, %v3537_v57  ;;  %v4412_v8 = vadd.f32 %v3763_v61, %v3548_v21  ;;  %4082 = vperm.xlu0 %4783, %v2748_v9   ;;  %v3550_v59 = vmul.f32 %v5225_v37, %v10164_v35  ;;  %v2464_v57 = vld [vmem:[%s7996_s24 + $0x2a8] sm:$0xff]  ;;  %v2741_v21 = vsub.f32 %v2453_v53, %v2597_v40  ;;  %v10166_v9 = vld [vmem:[#allocation101_spill] sm:$0xff] }
 0x41d   : > { %v2599_v25 = vmul.f32 %v7605_v17, %v10166_v9  ;;  %v3541_v4 = vmul.f32 %v5226_v16, %v10167_v26  ;;  %v5227_v61 = vld [vmem:[%s5398_s18 + $0xa8] sm:$0xff]  ;;  %v2466_v54 = vld [vmem:[%s7996_s24 + $0x2b8] sm:$0xff] }
 0x41e   : > { %4545 = vst.msk [vmem:[%s8352_s27 + $0x30] sm:$0xff] %vm362_vm0, %v4401_v52  ;;  %4556 = vst.msk [vmem:[%s8352_s27 + $0x88] sm:$0xff] %vm362_vm0, %v4412_v8  ;;  %v3552_v5 = vmul.f32 %v5227_v61, %v10168_v11  ;;  %v2752_v52 = vsub.f32 %v2464_v57, %v2608_v49  ;;  %v2455_v8 = vld [vmem:[%s7996_s24 + $0x260] sm:$0xff]  ;;  %v10170_v35 = vld [vmem:[#allocation103_spill] sm:$0xff] }
 0x41f   : > { %4037 = vperm.xlu1 %4784, %v2739_v7   ;;  %v3718_v23 = vpop.permute.xlu1 %3717  ;;  %v3773_v44 = vpop.permute.xlu0 %3772  ;;  %v10169_v7 = vld [vmem:[#allocation110_spill] sm:$0xff]  ;;  %v2743_v37 = vsub.f32 %v2455_v8, %v2599_v25  ;;  %v10171_v53 = vld [vmem:[#allocation251_spill] sm:$0xff]  ;;  %v5229_v49 = vld [vmem:[%s5398_s18 + $0xb8] sm:$0xff] }
 0x420   : > { %v4403_v46 = vadd.f32 %v3718_v23, %v3539_v6  ;;  %v4414_v60 = vadd.f32 %v3773_v44, %v3550_v59  ;;  %4092 = vperm.xlu0 %4783, %v2750_v22   ;;  %v2610_v33 = vmul.f32 %v7607_v19, %v10169_v7  ;;  %v2601_v59 = vmul.f32 %v7619_v58, %v10170_v35  ;;  %v5228_v22 = vld [vmem:[%s5398_s18 + $0x60] sm:$0xff]  ;;  %v10172_v23 = vld [vmem:[#allocation252_spill] sm:$0xff]  ;;  %v2468_v9 = vld [vmem:[%s7996_s24 + $0x2c8] sm:$0xff] }
 0x421   : > { %v3543_v30 = vmul.f32 %v5228_v22, %v10171_v53  ;;  %v3554_v19 = vmul.f32 %v5229_v49, %v10172_v23  ;;  %v2457_v57 = vld [vmem:[%s7996_s24 + $0x270] sm:$0xff]  ;;  %v5231_v8 = vld [vmem:[%s5398_s18 + $0xc8] sm:$0xff]  ;;  %v10176_v7 = vld [vmem:[#allocation254_spill] sm:$0xff] }
 0x422   : > { %4547 = vst.msk [vmem:[%s8352_s27 + $0x40] sm:$0xff] %vm362_vm0, %v4403_v46  ;;  %4558 = vst.msk [vmem:[%s8352_s27 + $0x98] sm:$0xff] %vm362_vm0, %v4414_v60  ;;  %v2754_v44 = vsub.f32 %v2466_v54, %v2610_v33  ;;  %v10173_v46 = vld [vmem:[#allocation112_spill] sm:$0xff]  ;;  %v2745_v26 = vsub.f32 %v2457_v57, %v2601_v59  ;;  %v10178_v22 = vld [vmem:[#allocation107_spill] sm:$0xff] }
 0x423   : > { %4047 = vperm.xlu1 %4784, %v2741_v21   ;;  %v3728_v17 = vpop.permute.xlu1 %3727  ;;  %v3783_v40 = vpop.permute.xlu0 %3782  ;;  %v2612_v60 = vmul.f32 %v7621_v56, %v10173_v46  ;;  %v5230_v11 = vld [vmem:[%s5398_s18 + $0x70] sm:$0xff]  ;;  %v3556_v56 = vmul.f32 %v5231_v8, %v10176_v7  ;;  %v2605_v53 = vmul.f32 %v7647_v12, %v10178_v22  ;;  %v10179_v49 = vld [vmem:[#allocation255_spill] sm:$0xff]  ;;  %v10184_v7 = vld [vmem:[#allocation258_spill] sm:$0xff] }
 0x424   : > { %v4405_v15 = vadd.f32 %v3728_v17, %v3541_v4  ;;  %v4416_v6 = vadd.f32 %v3783_v40, %v3552_v5  ;;  %4102 = vperm.xlu0 %4783, %v2752_v52   ;;  %v10174_v4 = vld [vmem:[#allocation105_spill] sm:$0xff]  ;;  %v2459_v17 = vld [vmem:[%s7996_s24 + $0x280] sm:$0xff]  ;;  %v2461_v46 = vld [vmem:[%s7996_s24 + $0x290] sm:$0xff] }
 0x425   : > { %v2603_v61 = vmul.f32 %v7633_v34, %v10174_v4  ;;  %v10175_v5 = vld [vmem:[#allocation253_spill] sm:$0xff]  ;;  %v2756_v33 = vsub.f32 %v2468_v9, %v2612_v60  ;;  %v10177_v40 = vld [vmem:[#allocation114_spill] sm:$0xff]  ;;  %v10181_v60 = vld [vmem:[#allocation116_spill] sm:$0xff] }
 0x426   : > { %4549 = vst.msk [vmem:[%s8352_s27 + $0x50] sm:$0xff] %vm362_vm0, %v4405_v15  ;;  %4560 = vst.msk [vmem:[%s8352_s27 + $0xa8] sm:$0xff] %vm362_vm0, %v4416_v6  ;;  %v3545_v52 = vmul.f32 %v5230_v11, %v10175_v5  ;;  %v2614_v54 = vmul.f32 %v7635_v31, %v10177_v40  ;;  %v2470_v6 = vld [vmem:[%s7996_s24 + $0x2d8] sm:$0xff]  ;;  %v2472_v9 = vld [vmem:[%s7996_s24 + $0x2e8] sm:$0xff] }
 0x427   : > { %4057 = vperm.xlu1 %4784, %v2743_v37   ;;  %v3738_v58 = vpop.permute.xlu1 %3737  ;;  %v3793_v21 = vpop.permute.xlu0 %3792  ;;  %v2747_v59 = vsub.f32 %v2459_v17, %v2603_v61  ;;  %v10182_v4 = vld [vmem:[#allocation109_spill] sm:$0xff]  ;;  %v5234_v11 = vld [vmem:[%s5398_s18 + $0x90] sm:$0xff]  ;;  %v5235_v8 = vld [vmem:[%s5398_s18 + $0xe8] sm:$0xff] }
 0x428   : > { %v4407_v25 = vadd.f32 %v3738_v58, %v3543_v30  ;;  %v4418_v16 = vadd.f32 %v3793_v21, %v3554_v19  ;;  %4112 = vperm.xlu0 %4783, %v2754_v44   ;;  %v5232_v30 = vld [vmem:[%s5398_s18 + $0x80] sm:$0xff]  ;;  %v5233_v19 = vld [vmem:[%s5398_s18 + $0xd8] sm:$0xff]  ;;  %v10180_v44 = vld [vmem:[#allocation256_spill] sm:$0xff]  ;;  %v2758_v57 = vsub.f32 %v2470_v6, %v2614_v54  ;;  %v2616_v58 = vmul.f32 %v7649_v48, %v10181_v60 }
 0x429   : > { %v3547_v23 = vmul.f32 %v5232_v30, %v10179_v49  ;;  %v3558_v31 = vmul.f32 %v5233_v19, %v10180_v44  ;;  %v2607_v61 = vmul.f32 %v7661_v32, %v10182_v4  ;;  %v10183_v5 = vld [vmem:[#allocation257_spill] sm:$0xff]  ;;  %v3560_v48 = vmul.f32 %v5235_v8, %v10184_v7  ;;  %v10185_v17 = vld [vmem:[#allocation118_spill] sm:$0xff]  ;;  %v10188_v30 = vld [vmem:[#allocation259_spill] sm:$0xff] }
 0x42a   : > { %4551 = vst.msk [vmem:[%s8352_s27 + $0x60] sm:$0xff] %vm362_vm0, %v4407_v25  ;;  %4562 = vst.msk [vmem:[%s8352_s27 + $0xb8] sm:$0xff] %vm362_vm0, %v4418_v16  ;;  %v2618_v40 = vmul.f32 %v7663_v18, %v10185_v17  ;;  %v10189_v19 = vld [vmem:[#allocation260_spill] sm:$0xff]  ;;  %v10193_v4 = vld [vmem:[#allocation201_spill] sm:$0xff] }
 0x42b   : > { %4067 = vperm.xlu1 %4784, %v2745_v26   ;;  %v3748_v34 = vpop.permute.xlu1 %3747  ;;  %v3803_v15 = vpop.permute.xlu0 %3802  ;;  %v2749_v26 = vsub.f32 %v2461_v46, %v2605_v53  ;;  %v5236_v53 = vld [vmem:[%s5398_s18 + $0xa0] sm:$0xff]  ;;  %v5239_v8 = vld [vmem:[%s5398_s18 + $0x108] sm:$0xff]  ;;  %v10195_v7 = vld [vmem:[#allocation264_spill] sm:$0xff] }
 0x42c   : > { %v4409_v37 = vadd.f32 %v3748_v34, %v3545_v52  ;;  %v4420_v35 = vadd.f32 %v3803_v15, %v3556_v56  ;;  %4122 = vperm.xlu0 %4783, %v2756_v33   ;;  %v3549_v52 = vmul.f32 %v5234_v11, %v10183_v5  ;;  %v2760_v56 = vsub.f32 %v2472_v9, %v2616_v58  ;;  %v2463_v33 = vld [vmem:[%s7996_s24 + $0x2a0] sm:$0xff]  ;;  %v2474_v34 = vld [vmem:[%s7996_s24 + $0x2f8] sm:$0xff]  ;;  %v5238_v11 = vld [vmem:[%s5398_s18 + $0xb0] sm:$0xff] }
 0x42d   : > { %v3551_v49 = vmul.f32 %v5236_v53, %v10188_v30  ;;  %v2762_v44 = vsub.f32 %v2474_v34, %v2618_v40  ;;  %v10191_v46 = vld [vmem:[#allocation262_spill] sm:$0xff]  ;;  %v10194_v5 = vld [vmem:[#allocation263_spill] sm:$0xff]  ;;  %v10197_v40 = vld [vmem:[#allocation265_spill] sm:$0xff] }
 0x42e   : > { %4553 = vst.msk [vmem:[%s8352_s27 + $0x70] sm:$0xff] %vm362_vm0, %v4409_v37  ;;  %4564 = vst.msk [vmem:[%s8352_s27 + $0xc8] sm:$0xff] %vm362_vm0, %v4420_v35  ;;  %v2751_v37 = vsub.f32 %v2463_v33, %v2607_v61  ;;  %v10186_v35 = vld [vmem:[#allocation111_spill] sm:$0xff]  ;;  %v2467_v33 = vld [vmem:[%s7996_s24 + $0x2c0] sm:$0xff] }
 0x42f   : > { %4077 = vperm.xlu1 %4784, %v2747_v59   ;;  %v3758_v12 = vpop.permute.xlu1 %3757  ;;  %v3813_v21 = vpop.permute.xlu0 %3812  ;;  %v10187_v59 = vld [vmem:[#allocation261_spill] sm:$0xff]  ;;  %v10196_v17 = vld [vmem:[#allocation122_spill] sm:$0xff] }
 0x430   : > { %v4411_v25 = vadd.f32 %v3758_v12, %v3547_v23  ;;  %v4422_v16 = vadd.f32 %v3813_v21, %v3558_v31  ;;  %4132 = vperm.xlu0 %4783, %v2758_v57   ;;  %v2609_v22 = vmul.f32 %v10187_v59, %v10186_v35  ;;  %v5237_v23 = vld [vmem:[%s5398_s18 + $0xf8] sm:$0xff]  ;;  %v2465_v31 = vld [vmem:[%s7996_s24 + $0x2b0] sm:$0xff]  ;;  %v2476_v21 = vld [vmem:[%s7996_s24 + $0x308] sm:$0xff] }
 0x431   : > { %v3562_v18 = vmul.f32 %v5237_v23, %v10189_v19  ;;  %v10190_v57 = vld [vmem:[#allocation120_spill] sm:$0xff]  ;;  %v10198_v59 = vld [vmem:[#allocation115_spill] sm:$0xff]  ;;  %v5240_v30 = vld [vmem:[%s5398_s18 + $0xc0] sm:$0xff] }
 0x432   : > { %4555 = vst.msk [vmem:[%s8352_s27 + $0x80] sm:$0xff] %vm362_vm0, %v4411_v25  ;;  %4566 = vst.msk [vmem:[%s8352_s27 + $0xd8] sm:$0xff] %vm362_vm0, %v4422_v16  ;;  %v2620_v60 = vmul.f32 %v10191_v46, %v10190_v57  ;;  %v2753_v16 = vsub.f32 %v2465_v31, %v2609_v22  ;;  %v10199_v22 = vld [vmem:[#allocation193_spill] sm:$0xff]  ;;  %v2469_v57 = vld [vmem:[%s7996_s24 + $0x2d0] sm:$0xff] }
 0x433   : > { %4087 = vperm.xlu1 %4784, %v2749_v26   ;;  %v3768_v32 = vpop.permute.xlu1 %3767  ;;  %v3823_v54 = vpop.permute.xlu0 %3822  ;;  %v10192_v26 = vld [vmem:[#allocation113_spill] sm:$0xff]  ;;  %v2613_v53 = vmul.f32 %v10199_v22, %v10198_v59  ;;  %v10202_v46 = vld [vmem:[#allocation124_spill] sm:$0xff]  ;;  %v10209_v59 = vld [vmem:[#allocation119_spill] sm:$0xff] }
 0x434   : > { %v4413_v15 = vadd.f32 %v3768_v32, %v3549_v52  ;;  %v4424_v6 = vadd.f32 %v3823_v54, %v3560_v48  ;;  %4142 = vperm.xlu0 %4783, %v2760_v56   ;;  %v2611_v61 = vmul.f32 %v10193_v4, %v10192_v26  ;;  %v3553_v52 = vmul.f32 %v5238_v11, %v10194_v5  ;;  %v5241_v19 = vld [vmem:[%s5398_s18 + $0x118] sm:$0xff]  ;;  %v5242_v5 = vld [vmem:[%s5398_s18 + $0xd0] sm:$0xff]  ;;  %v10210_v22 = vld [vmem:[#allocation199_spill] sm:$0xff] }
 0x435   : > { %v3564_v48 = vmul.f32 %v5239_v8, %v10195_v7  ;;  %v2764_v56 = vsub.f32 %v2476_v21, %v2620_v60  ;;  %v2622_v32 = vmul.f32 %v10197_v40, %v10196_v17  ;;  %v10203_v60 = vld [vmem:[#allocation203_spill] sm:$0xff]  ;;  %v2757_v26 = vsub.f32 %v2469_v57, %v2613_v53  ;;  %v10204_v4 = vld [vmem:[#allocation117_spill] sm:$0xff]  ;;  %v2471_v17 = vld [vmem:[%s7996_s24 + $0x2e0] sm:$0xff] }
 0x436   : > { %4557 = vst.msk [vmem:[%s8352_s27 + $0x90] sm:$0xff] %vm362_vm0, %v4413_v15  ;;  %4568 = vst.msk [vmem:[%s8352_s27 + $0xe8] sm:$0xff] %vm362_vm0, %v4424_v6  ;;  %v2478_v15 = vld [vmem:[%s7996_s24 + $0x318] sm:$0xff]  ;;  %v2755_v35 = vsub.f32 %v2467_v33, %v2611_v61  ;;  %v10205_v61 = vld [vmem:[#allocation196_spill] sm:$0xff]  ;;  %v2617_v53 = vmul.f32 %v10210_v22, %v10209_v59 }
 0x437   : > { %4097 = vperm.xlu1 %4784, %v2751_v37   ;;  %v3778_v58 = vpop.permute.xlu1 %3777  ;;  %v3833_v12 = vpop.permute.xlu0 %3832  ;;  %v2766_v31 = vsub.f32 %v2478_v15, %v2622_v32  ;;  %v2615_v11 = vmul.f32 %v10205_v61, %v10204_v4  ;;  %v5243_v7 = vld [vmem:[%s5398_s18 + $0x128] sm:$0xff]  ;;  %v10208_v40 = vld [vmem:[#allocation126_spill] sm:$0xff]  ;;  %v2482_v15 = vld [vmem:[%s7996_s24 + $0x338] sm:$0xff] }
 0x438   : > { %v4415_v9 = vadd.f32 %v3778_v58, %v3551_v49  ;;  %v4426_v25 = vadd.f32 %v3833_v12, %v3562_v18  ;;  %4152 = vperm.xlu0 %4783, %v2762_v44   ;;  %v10200_v49 = vld [vmem:[#allocation266_spill] sm:$0xff]  ;;  %v10201_v18 = vld [vmem:[#allocation267_spill] sm:$0xff]  ;;  %v2624_v58 = vmul.f32 %v10203_v60, %v10202_v46  ;;  %v2626_v32 = vmul.f32 %v7719_v3, %v10208_v40  ;;  %v10213_v57 = vld [vmem:[#allocation128_spill] sm:$0xff] }
 0x439   : > { %v3555_v23 = vmul.f32 %v5240_v30, %v10200_v49  ;;  %v3566_v44 = vmul.f32 %v5241_v19, %v10201_v18  ;;  %v5244_v30 = vld [vmem:[%s5398_s18 + $0xe0] sm:$0xff]  ;;  %v10211_v49 = vld [vmem:[#allocation205_spill] sm:$0xff]  ;;  %v2628_v46 = vmul.f32 %v7733_v27, %v10213_v57  ;;  %v5246_v61 = vld [vmem:[%s5398_s18 + $0xf0] sm:$0xff] }
 0x43a   : > { %4559 = vst.msk [vmem:[%s8352_s27 + $0xa0] sm:$0xff] %vm362_vm0, %v4415_v9  ;;  %4570 = vst.msk [vmem:[%s8352_s27 + $0xf8] sm:$0xff] %vm362_vm0, %v4426_v25  ;;  %v2480_v9 = vld [vmem:[%s7996_s24 + $0x328] sm:$0xff]  ;;  %v5245_v19 = vld [vmem:[%s5398_s18 + $0x138] sm:$0xff] }
 0x43b   : > { %4107 = vperm.xlu1 %4784, %v2753_v16   ;;  %v3788_v54 = vpop.permute.xlu1 %3787  ;;  %v3843_v34 = vpop.permute.xlu0 %3842  ;;  %v2768_v33 = vsub.f32 %v2480_v9, %v2624_v58  ;;  %v10212_v18 = vld [vmem:[#allocation270_spill] sm:$0xff]  ;;  %v10221_v22 = vld [vmem:[#allocation272_spill] sm:$0xff]  ;;  %v2488_v57 = vld [vmem:[%s7996_s24 + $0x368] sm:$0xff] }
 0x43c   : > { %v4417_v6 = vadd.f32 %v3788_v54, %v3553_v52  ;;  %v4428_v37 = vadd.f32 %v3843_v34, %v3564_v48  ;;  %4162 = vperm.xlu0 %4783, %v2764_v56   ;;  %v10206_v52 = vld [vmem:[#allocation268_spill] sm:$0xff]  ;;  %v10207_v48 = vld [vmem:[#allocation269_spill] sm:$0xff]  ;;  %v3570_v3 = vmul.f32 %v5245_v19, %v10212_v18  ;;  %v5248_v59 = vld [vmem:[%s5398_s18 + $0x100] sm:$0xff] }
 0x43d   : > { %v3557_v8 = vmul.f32 %v5242_v5, %v10206_v52  ;;  %v3568_v56 = vmul.f32 %v5243_v7, %v10207_v48  ;;  %v5247_v52 = vld [vmem:[%s5398_s18 + $0x148] sm:$0xff]  ;;  %v2475_v48 = vld [vmem:[%s7996_s24 + $0x300] sm:$0xff]  ;;  %v2477_v19 = vld [vmem:[%s7996_s24 + $0x310] sm:$0xff] }
 0x43e   : > { %4561 = vst.msk [vmem:[%s8352_s27 + $0xb0] sm:$0xff] %vm362_vm0, %v4417_v6  ;;  %4572 = vst.msk [vmem:[%s8352_s27 + $0x108] sm:$0xff] %vm362_vm0, %v4428_v37  ;;  %v10223_v18 = vld [vmem:[#allocation133_spill] sm:$0xff] }
 0x43f   : > { %4117 = vperm.xlu1 %4784, %v2755_v35   ;;  %v3798_v12 = vpop.permute.xlu1 %3797  ;;  %v3853_v21 = vpop.permute.xlu0 %3852  ;;  %v2759_v35 = vsub.f32 %v2471_v17, %v2615_v11  ;;  %v10216_v11 = vld [vmem:[#allocation207_spill] sm:$0xff] }
 0x440   : > { %v4419_v25 = vadd.f32 %v3798_v12, %v3555_v23  ;;  %v4430_v16 = vadd.f32 %v3853_v21, %v3566_v44  ;;  %4172 = vperm.xlu0 %4783, %v2766_v31   ;;  %v3559_v23 = vmul.f32 %v5244_v30, %v10211_v49  ;;  %v2770_v44 = vsub.f32 %v2482_v15, %v2626_v32  ;;  %v2473_v31 = vld [vmem:[%s7996_s24 + $0x2f0] sm:$0xff]  ;;  %v2484_v12 = vld [vmem:[%s7996_s24 + $0x348] sm:$0xff]  ;;  %v2486_v32 = vld [vmem:[%s7996_s24 + $0x358] sm:$0xff] }
 0x441   : > { %v3561_v5 = vmul.f32 %v5246_v61, %v10216_v11  ;;  %v2772_v7 = vsub.f32 %v2484_v12, %v2628_v46  ;;  %v5249_v30 = vld [vmem:[%s5398_s18 + $0x158] sm:$0xff]  ;;  %v10227_v61 = vld [vmem:[#allocation275_spill] sm:$0xff] }
 0x442   : > { %4563 = vst.msk [vmem:[%s8352_s27 + $0xc0] sm:$0xff] %vm362_vm0, %v4419_v25  ;;  %4574 = vst.msk [vmem:[%s8352_s27 + $0x118] sm:$0xff] %vm362_vm0, %v4430_v16  ;;  %v2761_v25 = vsub.f32 %v2473_v31, %v2617_v53  ;;  %v10214_v16 = vld [vmem:[#allocation121_spill] sm:$0xff]  ;;  %v3563_v53 = vmul.f32 %v5248_v59, %v10221_v22  ;;  %v2481_v22 = vld [vmem:[%s7996_s24 + $0x330] sm:$0xff] }
 0x443   : > { %4127 = vperm.xlu1 %4784, %v2757_v26   ;;  %v3808_v54 = vpop.permute.xlu1 %3807  ;;  %v3863_v34 = vpop.permute.xlu0 %3862  ;;  %v10215_v26 = vld [vmem:[#allocation200_spill] sm:$0xff]  ;;  %v10222_v49 = vld [vmem:[#allocation273_spill] sm:$0xff] }
 0x444   : > { %v4421_v6 = vadd.f32 %v3808_v54, %v3557_v8  ;;  %v4432_v37 = vadd.f32 %v3863_v34, %v3568_v56  ;;  %4182 = vperm.xlu0 %4783, %v2768_v33   ;;  %v2619_v4 = vmul.f32 %v10215_v26, %v10214_v16  ;;  %v10217_v8 = vld [vmem:[#allocation271_spill] sm:$0xff]  ;;  %v10218_v56 = vld [vmem:[#allocation130_spill] sm:$0xff]  ;;  %v10224_v12 = vld [vmem:[#allocation125_spill] sm:$0xff] }
 0x445   : > { %v3572_v27 = vmul.f32 %v5247_v52, %v10217_v8  ;;  %v2630_v33 = vmul.f32 %v7747_v55, %v10218_v56  ;;  %v3574_v55 = vmul.f32 %v5249_v30, %v10222_v49  ;;  %v10226_v16 = vld [vmem:[#allocation274_spill] sm:$0xff]  ;;  %v10228_v52 = vld [vmem:[#allocation136_spill] sm:$0xff] }
 0x446   : > { %4565 = vst.msk [vmem:[%s8352_s27 + $0xd0] sm:$0xff] %vm362_vm0, %v4421_v6  ;;  %4576 = vst.msk [vmem:[%s8352_s27 + $0x128] sm:$0xff] %vm362_vm0, %v4432_v37  ;;  %v2763_v15 = vsub.f32 %v2475_v48, %v2619_v4  ;;  %v10219_v6 = vld [vmem:[#allocation123_spill] sm:$0xff]  ;;  %v10220_v37 = vld [vmem:[#allocation202_spill] sm:$0xff]  ;;  %v2634_v8 = vmul.f32 %v7775_v1, %v10228_v52 }
 0x447   : > { %4137 = vperm.xlu1 %4784, %v2759_v35   ;;  %v3818_v60 = vpop.permute.xlu1 %3817  ;;  %v3873_v58 = vpop.permute.xlu0 %3872  ;;  %v2621_v35 = vmul.f32 %v10220_v37, %v10219_v6  ;;  %v5251_v4 = vld [vmem:[%s5398_s18 + $0x168] sm:$0xff]  ;;  %v2490_v48 = vld [vmem:[%s7996_s24 + $0x378] sm:$0xff] }
 0x448   : > { %v4423_v21 = vadd.f32 %v3818_v60, %v3559_v23  ;;  %v4434_v9 = vadd.f32 %v3873_v58, %v3570_v3  ;;  %4192 = vperm.xlu0 %4783, %v2770_v44   ;;  %v2774_v23 = vsub.f32 %v2486_v32, %v2630_v33  ;;  %v2632_v3 = vmul.f32 %v7761_v42, %v10223_v18  ;;  %v10230_v32 = vld [vmem:[#allocation206_spill] sm:$0xff]  ;;  %v5253_v37 = vld [vmem:[%s5398_s18 + $0x178] sm:$0xff] }
 0x449   : > { %v2765_v58 = vsub.f32 %v2477_v19, %v2621_v35  ;;  %v3576_v42 = vmul.f32 %v5251_v4, %v10227_v61  ;;  %v10232_v35 = vld [vmem:[#allocation277_spill] sm:$0xff]  ;;  %v2778_v59 = vsub.f32 %v2490_v48, %v2634_v8  ;;  %v10239_v8 = vld [vmem:[#allocation131_spill] sm:$0xff]  ;;  %v5256_v48 = vld [vmem:[%s5398_s18 + $0x140] sm:$0xff] }
 0x44a   : > { %4567 = vst.msk [vmem:[%s8352_s27 + $0xe0] sm:$0xff] %vm362_vm0, %v4423_v21  ;;  %4578 = vst.msk [vmem:[%s8352_s27 + $0x138] sm:$0xff] %vm362_vm0, %v4434_v9  ;;  %v10225_v21 = vld [vmem:[#allocation204_spill] sm:$0xff]  ;;  %v2776_v11 = vsub.f32 %v2488_v57, %v2632_v3  ;;  %v3578_v1 = vmul.f32 %v5253_v37, %v10232_v35  ;;  %v2496_v35 = vld [vmem:[%s7996_s24 + $0x3a8] sm:$0xff] }
 0x44b   : > { %4147 = vperm.xlu1 %4784, %v2761_v25   ;;  %v3828_v17 = vpop.permute.xlu1 %3827  ;;  %v3883_v40 = vpop.permute.xlu0 %3882  ;;  %v2623_v9 = vmul.f32 %v10225_v21, %v10224_v12  ;;  %v5250_v25 = vld [vmem:[%s5398_s18 + $0x110] sm:$0xff]  ;;  %v5255_v12 = vld [vmem:[%s5398_s18 + $0x188] sm:$0xff] }
 0x44c   : > { %v4425_v54 = vadd.f32 %v3828_v17, %v3561_v5  ;;  %v4436_v34 = vadd.f32 %v3883_v40, %v3572_v27  ;;  %4202 = vperm.xlu0 %4783, %v2772_v7   ;;  %v3565_v26 = vmul.f32 %v5250_v25, %v10226_v16  ;;  %v2479_v5 = vld [vmem:[%s7996_s24 + $0x320] sm:$0xff]  ;;  %v10229_v40 = vld [vmem:[#allocation127_spill] sm:$0xff]  ;;  %v10238_v16 = vld [vmem:[#allocation72_spill] sm:$0xff] }
 0x44d   : > { %v2767_v17 = vsub.f32 %v2479_v5, %v2623_v9  ;;  %v10237_v21 = vld [vmem:[#allocation279_spill] sm:$0xff]  ;;  %v2483_v25 = vld [vmem:[%s7996_s24 + $0x340] sm:$0xff] }
 0x44e   : > { %4569 = vst.msk [vmem:[%s8352_s27 + $0xf0] sm:$0xff] %vm362_vm0, %v4425_v54  ;;  %4580 = vst.msk [vmem:[%s8352_s27 + $0x148] sm:$0xff] %vm362_vm0, %v4436_v34  ;;  %v2625_v54 = vmul.f32 %v10230_v32, %v10229_v40  ;;  %v5252_v34 = vld [vmem:[%s5398_s18 + $0x120] sm:$0xff]  ;;  %v10242_v40 = vld [vmem:[#allocation281_spill] sm:$0xff] }
 0x44f   : > { %4157 = vperm.xlu1 %4784, %v2763_v15   ;;  %v3838_v44 = vpop.permute.xlu1 %3837  ;;  %v3893_v31 = vpop.permute.xlu0 %3892  ;;  %v10231_v15 = vld [vmem:[#allocation276_spill] sm:$0xff] }
 0x450   : > { %v4427_v46 = vadd.f32 %v3838_v44, %v3563_v53  ;;  %v4438_v60 = vadd.f32 %v3893_v31, %v3574_v55  ;;  %4212 = vperm.xlu0 %4783, %v2774_v23   ;;  %v3567_v6 = vmul.f32 %v5252_v34, %v10231_v15  ;;  %v10233_v53 = vld [vmem:[#allocation139_spill] sm:$0xff]  ;;  %v2769_v3 = vsub.f32 %v2481_v22, %v2625_v54  ;;  %v10234_v44 = vld [vmem:[#allocation129_spill] sm:$0xff]  ;;  %v10235_v31 = vld [vmem:[#allocation208_spill] sm:$0xff] }
 0x451   : > { %v2636_v30 = vmul.f32 %v7789_v14, %v10233_v53  ;;  %v2492_v23 = vld [vmem:[%s7996_s24 + $0x388] sm:$0xff]  ;;  %v2627_v57 = vmul.f32 %v10235_v31, %v10234_v44  ;;  %v3580_v14 = vmul.f32 %v5255_v12, %v10237_v21  ;;  %v2485_v54 = vld [vmem:[%s7996_s24 + $0x350] sm:$0xff]  ;;  %v10243_v34 = vld [vmem:[#allocation74_spill] sm:$0xff] }
 0x452   : > { %4571 = vst.msk [vmem:[%s8352_s27 + $0x100] sm:$0xff] %vm362_vm0, %v4427_v46  ;;  %4582 = vst.msk [vmem:[%s8352_s27 + $0x158] sm:$0xff] %vm362_vm0, %v4438_v60  ;;  %v5254_v46 = vld [vmem:[%s5398_s18 + $0x130] sm:$0xff]  ;;  %v10236_v60 = vld [vmem:[#allocation278_spill] sm:$0xff]  ;;  %v2640_v15 = vmul.f32 %v7817_v29, %v10243_v34 }
 0x453   : > { %4167 = vperm.xlu1 %4784, %v2765_v58   ;;  %v3848_v27 = vpop.permute.xlu1 %3847  ;;  %v3903_v7 = vpop.permute.xlu0 %3902  ;;  %v3569_v58 = vmul.f32 %v5254_v46, %v10236_v60  ;;  %v2780_v9 = vsub.f32 %v2492_v23, %v2636_v30  ;;  %v2771_v52 = vsub.f32 %v2483_v25, %v2627_v57  ;;  %v10244_v53 = vld [vmem:[#allocation134_spill] sm:$0xff]  ;;  %v10245_v30 = vld [vmem:[#allocation211_spill] sm:$0xff]  ;;  %v10248_v57 = vld [vmem:[#allocation76_spill] sm:$0xff] }
 0x454   : > { %v4429_v56 = vadd.f32 %v3848_v27, %v3565_v26  ;;  %v4440_v33 = vadd.f32 %v3903_v7, %v3576_v42  ;;  %4222 = vperm.xlu0 %4783, %v2776_v11   ;;  %v2638_v26 = vmul.f32 %v7803_v2, %v10238_v16  ;;  %v2494_v42 = vld [vmem:[%s7996_s24 + $0x398] sm:$0xff]  ;;  %v10246_v23 = vld [vmem:[#allocation282_spill] sm:$0xff]  ;;  %v2784_v44 = vsub.f32 %v2496_v35, %v2640_v15  ;;  %v5262_v15 = vld [vmem:[%s5398_s18 + $0x170] sm:$0xff] }
 0x455   : > { %v10240_v27 = vld [vmem:[#allocation209_spill] sm:$0xff]  ;;  %v2487_v31 = vld [vmem:[%s7996_s24 + $0x360] sm:$0xff]  ;;  %v2642_v46 = vmul.f32 %v7831_v41, %v10248_v57  ;;  %v5263_v35 = vld [vmem:[%s5398_s18 + $0x1c8] sm:$0xff] }
 0x456   : > { %4573 = vst.msk [vmem:[%s8352_s27 + $0x110] sm:$0xff] %vm362_vm0, %v4429_v56  ;;  %4584 = vst.msk [vmem:[%s8352_s27 + $0x168] sm:$0xff] %vm362_vm0, %v4440_v33  ;;  %v2629_v7 = vmul.f32 %v10240_v27, %v10239_v8  ;;  %v10241_v56 = vld [vmem:[#allocation280_spill] sm:$0xff]  ;;  %v2782_v32 = vsub.f32 %v2494_v42, %v2638_v26  ;;  %v2498_v12 = vld [vmem:[%s7996_s24 + $0x3b8] sm:$0xff] }
 0x457   : > { %4177 = vperm.xlu1 %4784, %v2767_v17   ;;  %v3858_v49 = vpop.permute.xlu1 %3857  ;;  %v3913_v55 = vpop.permute.xlu0 %3912  ;;  %v3571_v33 = vmul.f32 %v5256_v48, %v10241_v56  ;;  %v5257_v17 = vld [vmem:[%s5398_s18 + $0x198] sm:$0xff]  ;;  %v2489_v8 = vld [vmem:[%s7996_s24 + $0x370] sm:$0xff]  ;;  %v10253_v27 = vld [vmem:[#allocation78_spill] sm:$0xff] }
 0x458   : > { %v4431_v19 = vadd.f32 %v3858_v49, %v3567_v6  ;;  %v4442_v18 = vadd.f32 %v3913_v55, %v3578_v1  ;;  %4232 = vperm.xlu0 %4783, %v2778_v59   ;;  %v3582_v2 = vmul.f32 %v5257_v17, %v10242_v40  ;;  %v2773_v22 = vsub.f32 %v2485_v54, %v2629_v7  ;;  %v5258_v55 = vld [vmem:[%s5398_s18 + $0x150] sm:$0xff]  ;;  %v10249_v25 = vld [vmem:[#allocation137_spill] sm:$0xff]  ;;  %v10255_v54 = vld [vmem:[#allocation215_spill] sm:$0xff] }
 0x459   : > { %v2631_v49 = vmul.f32 %v10245_v30, %v10244_v53  ;;  %v10250_v16 = vld [vmem:[#allocation213_spill] sm:$0xff]  ;;  %v2644_v7 = vmul.f32 %v7845_v43, %v10253_v27  ;;  %v10258_v53 = vld [vmem:[#allocation80_spill] sm:$0xff]  ;;  %v5264_v57 = vld [vmem:[%s5398_s18 + $0x180] sm:$0xff] }
 0x45a   : > { %4575 = vst.msk [vmem:[%s8352_s27 + $0x120] sm:$0xff] %vm362_vm0, %v4431_v19  ;;  %4586 = vst.msk [vmem:[%s8352_s27 + $0x178] sm:$0xff] %vm362_vm0, %v4442_v18  ;;  %v3573_v19 = vmul.f32 %v5258_v55, %v10246_v23  ;;  %v5259_v18 = vld [vmem:[%s5398_s18 + $0x1a8] sm:$0xff]  ;;  %v2633_v26 = vmul.f32 %v10250_v16, %v10249_v25  ;;  %v2646_v30 = vmul.f32 %v7859_v45, %v10258_v53  ;;  %v2502_v23 = vld [vmem:[%s7996_s24 + $0x3d8] sm:$0xff] }
 0x45b   : > { %4187 = vperm.xlu1 %4784, %v2769_v3   ;;  %v3868_v4 = vpop.permute.xlu1 %3867  ;;  %v3923_v61 = vpop.permute.xlu0 %3922  ;;  %v10247_v3 = vld [vmem:[#allocation283_spill] sm:$0xff]  ;;  %v10271_v53 = vld [vmem:[#allocation292_spill] sm:$0xff] }
 0x45c   : > { %v4433_v11 = vadd.f32 %v3868_v4, %v3569_v58  ;;  %v4444_v5 = vadd.f32 %v3923_v61, %v3580_v14  ;;  %4242 = vperm.xlu0 %4783, %v2780_v9   ;;  %v3584_v29 = vmul.f32 %v5259_v18, %v10247_v3  ;;  %v2775_v9 = vsub.f32 %v2487_v31, %v2631_v49  ;;  %v5260_v4 = vld [vmem:[%s5398_s18 + $0x160] sm:$0xff]  ;;  %v10251_v61 = vld [vmem:[#allocation284_spill] sm:$0xff] }
 0x45d   : > { %v3575_v42 = vmul.f32 %v5260_v4, %v10251_v61  ;;  %v2504_v4 = vld [vmem:[%s7996_s24 + $0x3e8] sm:$0xff] }
 0x45e   : > { %4577 = vst.msk [vmem:[%s8352_s27 + $0x130] sm:$0xff] %vm362_vm0, %v4433_v11  ;;  %4588 = vst.msk [vmem:[%s8352_s27 + $0x188] sm:$0xff] %vm362_vm0, %v4444_v5  ;;  %v5261_v11 = vld [vmem:[%s5398_s18 + $0x1b8] sm:$0xff] }
 0x45f   : > { %4197 = vperm.xlu1 %4784, %v2771_v52   ;;  %v3878_v6 = vpop.permute.xlu1 %3877  ;;  %v3933_v37 = vpop.permute.xlu0 %3932  ;;  %v10252_v5 = vld [vmem:[#allocation285_spill] sm:$0xff]  ;;  %v2786_v52 = vsub.f32 %v2498_v12, %v2642_v46  ;;  %v10261_v46 = vld [vmem:[#allocation288_spill] sm:$0xff] }
 0x460   : > { %v4435_v1 = vadd.f32 %v3878_v6, %v3571_v33  ;;  %v4446_v59 = vadd.f32 %v3933_v37, %v3582_v2  ;;  %4252 = vperm.xlu0 %4783, %v2782_v32   ;;  %v3586_v41 = vmul.f32 %v5261_v11, %v10252_v5  ;;  %v2500_v33 = vld [vmem:[%s7996_s24 + $0x3c8] sm:$0xff]  ;;  %v2777_v2 = vsub.f32 %v2489_v8, %v2633_v26  ;;  %v10256_v6 = vld [vmem:[#allocation286_spill] sm:$0xff]  ;;  %v10262_v12 = vld [vmem:[#allocation289_spill] sm:$0xff] }
 0x461   : > { %v10254_v32 = vld [vmem:[#allocation71_spill] sm:$0xff]  ;;  %v3577_v37 = vmul.f32 %v5262_v15, %v10256_v6  ;;  %v10265_v8 = vld [vmem:[#allocation290_spill] sm:$0xff]  ;;  %v10268_v6 = vld [vmem:[#allocation77_spill] sm:$0xff] }
 0x462   : > { %4579 = vst.msk [vmem:[%s8352_s27 + $0x140] sm:$0xff] %vm362_vm0, %v4435_v1  ;;  %4590 = vst.msk [vmem:[%s8352_s27 + $0x198] sm:$0xff] %vm362_vm0, %v4446_v59  ;;  %v2635_v34 = vmul.f32 %v10255_v54, %v10254_v32  ;;  %v10257_v1 = vld [vmem:[#allocation287_spill] sm:$0xff]  ;;  %v2788_v59 = vsub.f32 %v2500_v33, %v2644_v7  ;;  %v2495_v33 = vld [vmem:[%s7996_s24 + $0x3a0] sm:$0xff] }
 0x463   : > { %4207 = vperm.xlu1 %4784, %v2773_v22   ;;  %v3888_v60 = vpop.permute.xlu1 %3887  ;;  %v3943_v58 = vpop.permute.xlu0 %3942  ;;  %v3588_v43 = vmul.f32 %v5263_v35, %v10257_v1  ;;  %v2491_v22 = vld [vmem:[%s7996_s24 + $0x380] sm:$0xff]  ;;  %v10264_v5 = vld [vmem:[#allocation75_spill] sm:$0xff]  ;;  %v2506_v32 = vld [vmem:[%s7996_s24 + $0x3f8] sm:$0xff] }
 0x464   : > { %v4437_v21 = vadd.f32 %v3888_v60, %v3573_v19  ;;  %v4448_v14 = vadd.f32 %v3943_v58, %v3584_v29  ;;  %4262 = vperm.xlu0 %4783, %v2784_v44   ;;  %v2779_v3 = vsub.f32 %v2491_v22, %v2635_v34  ;;  %v10259_v29 = vld [vmem:[#allocation73_spill] sm:$0xff]  ;;  %v3579_v60 = vmul.f32 %v5264_v57, %v10261_v46  ;;  %v5267_v7 = vld [vmem:[%s5398_s18 + $0x1e8] sm:$0xff]  ;;  %v5268_v1 = vld [vmem:[%s5398_s18 + $0x1a0] sm:$0xff] }
 0x465   : > { %v10260_v44 = vld [vmem:[#allocation217_spill] sm:$0xff]  ;;  %v10273_v57 = vld [vmem:[#allocation79_spill] sm:$0xff] }
 0x466   : > { %4581 = vst.msk [vmem:[%s8352_s27 + $0x150] sm:$0xff] %vm362_vm0, %v4437_v21  ;;  %4592 = vst.msk [vmem:[%s8352_s27 + $0x1a8] sm:$0xff] %vm362_vm0, %v4448_v14  ;;  %v2637_v31 = vmul.f32 %v10260_v44, %v10259_v29  ;;  %v5265_v58 = vld [vmem:[%s5398_s18 + $0x1d8] sm:$0xff]  ;;  %v2790_v21 = vsub.f32 %v2502_v23, %v2646_v30  ;;  %v2493_v14 = vld [vmem:[%s7996_s24 + $0x390] sm:$0xff] }
 0x467   : > { %4217 = vperm.xlu1 %4784, %v2775_v9   ;;  %v3898_v48 = vpop.permute.xlu1 %3897  ;;  %v3953_v56 = vpop.permute.xlu0 %3952  ;;  %v3590_v45 = vmul.f32 %v5265_v58, %v10262_v12  ;;  %v10263_v9 = vld [vmem:[#allocation82_spill] sm:$0xff]  ;;  %v5269_v22 = vld [vmem:[%s5398_s18 + $0x1f8] sm:$0xff]  ;;  %v10274_v46 = vld [vmem:[#allocation223_spill] sm:$0xff] }
 0x468   : > { %v4439_v17 = vadd.f32 %v3898_v48, %v3575_v42  ;;  %v4450_v40 = vadd.f32 %v3953_v56, %v3586_v41  ;;  %4272 = vperm.xlu0 %4783, %v2786_v52   ;;  %v2648_v25 = vmul.f32 %v7873_v36, %v10263_v9  ;;  %v2781_v11 = vsub.f32 %v2493_v14, %v2637_v31  ;;  %v5266_v52 = vld [vmem:[%s5398_s18 + $0x190] sm:$0xff]  ;;  %v10266_v48 = vld [vmem:[#allocation291_spill] sm:$0xff]  ;;  %v10275_v12 = vld [vmem:[#allocation294_spill] sm:$0xff] }
 0x469   : > { %v2639_v41 = vmul.f32 %v7885_v47, %v10264_v5  ;;  %v3581_v27 = vmul.f32 %v5266_v52, %v10265_v8  ;;  %v3592_v36 = vmul.f32 %v5267_v7, %v10266_v48  ;;  %v5270_v58 = vld [vmem:[%s5398_s18 + $0x1b0] sm:$0xff]  ;;  %v10276_v14 = vld [vmem:[#allocation295_spill] sm:$0xff]  ;;  %v10278_v52 = vld [vmem:[#allocation81_spill] sm:$0xff] }
 0x46a   : > { %4583 = vst.msk [vmem:[%s8352_s27 + $0x160] sm:$0xff] %vm362_vm0, %v4439_v17  ;;  %4594 = vst.msk [vmem:[%s8352_s27 + $0x1b8] sm:$0xff] %vm362_vm0, %v4450_v40  ;;  %v2792_v56 = vsub.f32 %v2504_v4, %v2648_v25  ;;  %v10267_v17 = vld [vmem:[#allocation84_spill] sm:$0xff]  ;;  %v2499_v25 = vld [vmem:[%s7996_s24 + $0x3c0] sm:$0xff] }
 0x46b   : > { %4227 = vperm.xlu1 %4784, %v2777_v2   ;;  %v3908_v49 = vpop.permute.xlu1 %3907  ;;  %v3963_v55 = vpop.permute.xlu0 %3962  ;;  %v2650_v40 = vmul.f32 %v7887_v39, %v10267_v17  ;;  %v2783_v15 = vsub.f32 %v2495_v33, %v2639_v41  ;;  %v3594_v39 = vmul.f32 %v5269_v22, %v10271_v53  ;;  %v10279_v8 = vld [vmem:[#allocation225_spill] sm:$0xff]  ;;  %v5272_v7 = vld [vmem:[%s5398_s18 + $0x1c0] sm:$0xff]  ;;  %v10280_v48 = vld [vmem:[#allocation296_spill] sm:$0xff] }
 0x46c   : > { %v4441_v19 = vadd.f32 %v3908_v49, %v3577_v37  ;;  %v4452_v18 = vadd.f32 %v3963_v55, %v3588_v43  ;;  %4282 = vperm.xlu0 %4783, %v2788_v59   ;;  %v10269_v37 = vld [vmem:[#allocation293_spill] sm:$0xff]  ;;  %v10270_v43 = vld [vmem:[#allocation219_spill] sm:$0xff]  ;;  %v2497_v49 = vld [vmem:[%s7996_s24 + $0x3b0] sm:$0xff] }
 0x46d   : > { %v2641_v35 = vmul.f32 %v10269_v37, %v10268_v6  ;;  %v3583_v59 = vmul.f32 %v5268_v1, %v10270_v43  ;;  %v2794_v30 = vsub.f32 %v2506_v32, %v2650_v40  ;;  %v10272_v55 = vld [vmem:[#allocation86_spill] sm:$0xff]  ;;  %v10281_v33 = vld [vmem:[#allocation297_spill] sm:$0xff]  ;;  %v2501_v40 = vld [vmem:[%s7996_s24 + $0x3d0] sm:$0xff] }
 0x46e   : > { %4585 = vst.msk [vmem:[%s8352_s27 + $0x170] sm:$0xff] %vm362_vm0, %v4441_v19  ;;  %4596 = vst.msk [vmem:[%s8352_s27 + $0x1c8] sm:$0xff] %vm362_vm0, %v4452_v18  ;;  %v2652_v23 = vmul.f32 %v7901_v50, %v10272_v55  ;;  %v5274_v43 = vld [vmem:[%s5398_s18 + $0x1d0] sm:$0xff]  ;;  %v5275_v53 = vld [vmem:[%s5398_s18 + $0x228] sm:$0xff] }
 0x46f   : > { %4237 = vperm.xlu1 %4784, %v2779_v3   ;;  %v3918_v16 = vpop.permute.xlu1 %3917  ;;  %v3973_v26 = vpop.permute.xlu0 %3972  ;;  %v2508_v3 = vld [vmem:[%s7996_s24 + $0x408] sm:$0xff]  ;;  %v2785_v31 = vsub.f32 %v2497_v49, %v2641_v35  ;;  %v10285_v49 = vld [vmem:[#allocation157_spill] sm:$0xff] }
 0x470   : > { %v4443_v61 = vadd.f32 %v3918_v16, %v3579_v60  ;;  %v4454_v42 = vadd.f32 %v3973_v26, %v3590_v45  ;;  %4292 = vperm.xlu0 %4783, %v2790_v21   ;;  %v2643_v60 = vmul.f32 %v10274_v46, %v10273_v57  ;;  %v3585_v45 = vmul.f32 %v5270_v58, %v10275_v12  ;;  %v5271_v21 = vld [vmem:[%s5398_s18 + $0x208] sm:$0xff]  ;;  %v10277_v16 = vld [vmem:[#allocation88_spill] sm:$0xff]  ;;  %v5276_v46 = vld [vmem:[%s5398_s18 + $0x1e0] sm:$0xff] }
 0x471   : > { %v3596_v50 = vmul.f32 %v5271_v21, %v10276_v14  ;;  %v2796_v9 = vsub.f32 %v2508_v3, %v2652_v23  ;;  %v2654_v26 = vmul.f32 %v7915_v24, %v10277_v16  ;;  %v10283_v35 = vld [vmem:[#allocation83_spill] sm:$0xff]  ;;  %v5277_v12 = vld [vmem:[%s5398_s18 + $0x238] sm:$0xff] }
 0x472   : > { %4587 = vst.msk [vmem:[%s8352_s27 + $0x180] sm:$0xff] %vm362_vm0, %v4443_v61  ;;  %4598 = vst.msk [vmem:[%s8352_s27 + $0x1d8] sm:$0xff] %vm362_vm0, %v4454_v42  ;;  %v2510_v42 = vld [vmem:[%s7996_s24 + $0x418] sm:$0xff]  ;;  %v2787_v41 = vsub.f32 %v2499_v25, %v2643_v60  ;;  %v2647_v1 = vmul.f32 %v7940_v62, %v10283_v35  ;;  %v10286_v55 = vld [vmem:[#allocation227_spill] sm:$0xff] }
 0x473   : > { %4247 = vperm.xlu1 %4784, %v2781_v11   ;;  %v3928_v47 = vpop.permute.xlu1 %3927  ;;  %v3983_v2 = vpop.permute.xlu0 %3982  ;;  %v2798_v17 = vsub.f32 %v2510_v42, %v2654_v26  ;;  %v2658_v23 = vmul.f32 %v10286_v55, %v10285_v49  ;;  %v10289_v60 = vld [vmem:[#allocation299_spill] sm:$0xff]  ;;  %v10292_v25 = vld [vmem:[#allocation302_spill] sm:$0xff]  ;;  %v10299_v35 = vld [vmem:[#allocation89_spill] sm:$0xff] }
 0x474   : > { %v4445_v54 = vadd.f32 %v3928_v47, %v3581_v27  ;;  %v4456_v34 = vadd.f32 %v3983_v2, %v3592_v36  ;;  %4302 = vperm.xlu0 %4783, %v2792_v56   ;;  %v2645_v27 = vmul.f32 %v10279_v8, %v10278_v52  ;;  %v3587_v36 = vmul.f32 %v5272_v7, %v10280_v48  ;;  %v5273_v56 = vld [vmem:[%s5398_s18 + $0x218] sm:$0xff]  ;;  %v10282_v47 = vld [vmem:[#allocation155_spill] sm:$0xff]  ;;  %v2509_v55 = vld [vmem:[%s7996_s24 + $0x410] sm:$0xff] }
 0x475   : > { %v3598_v24 = vmul.f32 %v5273_v56, %v10281_v33  ;;  %v2656_v2 = vmul.f32 %v7929_v20, %v10282_v47  ;;  %v3600_v20 = vmul.f32 %v5275_v53, %v7935_v28  ;;  %v3591_v58 = vmul.f32 %v5276_v46, %v10289_v60  ;;  %v10294_v52 = vld [vmem:[#allocation231_spill] sm:$0xff]  ;;  %v10296_v56 = vld [vmem:[#allocation304_spill] sm:$0xff]  ;;  %v10298_v47 = vld [vmem:[#allocation305_spill] sm:$0xff] }
 0x476   : > { %4589 = vst.msk [vmem:[%s8352_s27 + $0x190] sm:$0xff] %vm362_vm0, %v4445_v54  ;;  %4600 = vst.msk [vmem:[%s8352_s27 + $0x1e8] sm:$0xff] %vm362_vm0, %v4456_v34  ;;  %v2512_v34 = vld [vmem:[%s7996_s24 + $0x428] sm:$0xff]  ;;  %v2789_v37 = vsub.f32 %v2501_v40, %v2645_v27  ;;  %v5278_v27 = vld [vmem:[%s5398_s18 + $0x1f0] sm:$0xff] }
 0x477   : > { %4257 = vperm.xlu1 %4784, %v2783_v15   ;;  %v3938_v19 = vpop.permute.xlu1 %3937  ;;  %v3993_v18 = vpop.permute.xlu0 %3992  ;;  %v10295_v7 = vld [vmem:[#allocation303_spill] sm:$0xff]  ;;  %v10297_v40 = vld [vmem:[#allocation94_spill] sm:$0xff]  ;;  %v10306_v46 = vld [vmem:[#allocation312_spill] sm:$0xff] }
 0x478   : > { %v4447_v29 = vadd.f32 %v3938_v19, %v3583_v59  ;;  %v4458_v44 = vadd.f32 %v3993_v18, %v3594_v39  ;;  %4312 = vperm.xlu0 %4783, %v2794_v30   ;;  %v10284_v59 = vld [vmem:[#allocation298_spill] sm:$0xff]  ;;  %v2800_v39 = vsub.f32 %v2512_v34, %v2656_v2  ;;  %v2514_v18 = vld [vmem:[%s7996_s24 + $0x438] sm:$0xff]  ;;  %v3593_v48 = vmul.f32 %v5278_v27, %v10295_v7 }
 0x479   : > { %v3589_v22 = vmul.f32 %v5274_v43, %v10284_v59  ;;  %v2503_v30 = vld [vmem:[%s7996_s24 + $0x3e0] sm:$0xff]  ;;  %v2802_v14 = vsub.f32 %v2514_v18, %v2658_v23  ;;  %v2662_v2 = vmul.f32 %v10298_v47, %v10297_v40  ;;  %v2518_v34 = vld [vmem:[%s7996_s24 + $0x458] sm:$0xff]  ;;  %v10303_v23 = vld [vmem:[#allocation163_spill] sm:$0xff] }
 0x47a   : > { %4591 = vst.msk [vmem:[%s8352_s27 + $0x1a0] sm:$0xff] %vm362_vm0, %v4447_v29  ;;  %4602 = vst.msk [vmem:[%s8352_s27 + $0x1f8] sm:$0xff] %vm362_vm0, %v4458_v44  ;;  %v2791_v28 = vsub.f32 %v2503_v30, %v2647_v1  ;;  %v10287_v44 = vld [vmem:[#allocation85_spill] sm:$0xff]  ;;  %v10300_v1 = vld [vmem:[#allocation308_spill] sm:$0xff] }
 0x47b   : > { %4267 = vperm.xlu1 %4784, %v2785_v31   ;;  %v3948_v4 = vpop.permute.xlu1 %3947  ;;  %v4003_v61 = vpop.permute.xlu0 %4002  ;;  %v10288_v31 = vld [vmem:[#allocation301_spill] sm:$0xff]  ;;  %v2653_v43 = vmul.f32 %v10300_v1, %v10299_v35  ;;  %v5280_v59 = vld [vmem:[%s5398_s18 + $0x200] sm:$0xff]  ;;  %v2806_v49 = vsub.f32 %v2518_v34, %v2662_v2  ;;  %v2513_v47 = vld [vmem:[%s7996_s24 + $0x430] sm:$0xff] }
 0x47c   : > { %v4449_v11 = vadd.f32 %v3948_v4, %v3585_v45  ;;  %v4460_v5 = vadd.f32 %v4003_v61, %v3596_v50  ;;  %4322 = vperm.xlu0 %4783, %v2796_v9   ;;  %v2649_v57 = vmul.f32 %v10288_v31, %v10287_v44  ;;  %v10290_v45 = vld [vmem:[#allocation300_spill] sm:$0xff]  ;;  %v2516_v61 = vld [vmem:[%s7996_s24 + $0x448] sm:$0xff]  ;;  %v10312_v27 = vld [vmem:[#allocation314_spill] sm:$0xff] }
 0x47d   : > { %v3602_v21 = vmul.f32 %v5277_v12, %v10290_v45  ;;  %v2505_v50 = vld [vmem:[%s7996_s24 + $0x3f0] sm:$0xff]  ;;  %v2797_v31 = vsub.f32 %v2509_v55, %v2653_v43  ;;  %v10307_v12 = vld [vmem:[#allocation310_spill] sm:$0xff] }
 0x47e   : > { %4593 = vst.msk [vmem:[%s8352_s27 + $0x1b0] sm:$0xff] %vm362_vm0, %v4449_v11  ;;  %4604 = vst.msk [vmem:[%s8352_s27 + $0x208] sm:$0xff] %vm362_vm0, %v4460_v5  ;;  %v10291_v9 = vld [vmem:[#allocation160_spill] sm:$0xff]  ;;  %v2793_v5 = vsub.f32 %v2505_v50, %v2649_v57  ;;  %v10305_v57 = vld [vmem:[#allocation90_spill] sm:$0xff] }
 0x47f   : > { %4277 = vperm.xlu1 %4784, %v2787_v41   ;;  %v3958_v32 = vpop.permute.xlu1 %3957  ;;  %v4013_v54 = vpop.permute.xlu0 %4012  ;;  %v2660_v16 = vmul.f32 %v10292_v25, %v10291_v9  ;;  %v10293_v41 = vld [vmem:[#allocation87_spill] sm:$0xff]  ;;  %v2655_v60 = vmul.f32 %v10306_v46, %v10305_v57  ;;  %v2511_v25 = vld [vmem:[%s7996_s24 + $0x420] sm:$0xff]  ;;  %v5286_v1 = vld [vmem:[%s5398_s18 + $0x230] sm:$0xff] }
 0x480   : > { %v4451_v15 = vadd.f32 %v3958_v32, %v3587_v36  ;;  %v4462_v6 = vadd.f32 %v4013_v54, %v3598_v24  ;;  %4332 = vperm.xlu0 %4783, %v2798_v17   ;;  %v2651_v8 = vmul.f32 %v10294_v52, %v10293_v41  ;;  %v5279_v36 = vld [vmem:[%s5398_s18 + $0x248] sm:$0xff]  ;;  %v2507_v17 = vld [vmem:[%s7996_s24 + $0x400] sm:$0xff]  ;;  %v10317_v43 = vld [vmem:[#allocation28_spill] sm:$0xff] }
 0x481   : > { %v3604_v33 = vmul.f32 %v5279_v36, %v10296_v56  ;;  %v2804_v24 = vsub.f32 %v2516_v61, %v2660_v16  ;;  %v10309_v16 = vld [vmem:[#allocation166_spill] sm:$0xff]  ;;  %v2799_v52 = vsub.f32 %v2511_v25, %v2655_v60  ;;  %v10313_v36 = vld [vmem:[#allocation25_spill] sm:$0xff]  ;;  %v10322_v57 = vld [vmem:[#allocation179_spill] sm:$0xff] }
 0x482   : > { %4595 = vst.msk [vmem:[%s8352_s27 + $0x1c0] sm:$0xff] %vm362_vm0, %v4451_v15  ;;  %4606 = vst.msk [vmem:[%s8352_s27 + $0x218] sm:$0xff] %vm362_vm0, %v4462_v6  ;;  %v2517_v60 = vld [vmem:[%s7996_s24 + $0x450] sm:$0xff] }
 0x483   : > { %4287 = vperm.xlu1 %4784, %v2789_v37   ;;  %v3968_v62 = vpop.permute.xlu1 %3967  ;;  %v4023_v19 = vpop.permute.xlu0 %4022  ;;  %v2795_v37 = vsub.f32 %v2507_v17, %v2651_v8  ;;  %v10311_v8 = vld [vmem:[#allocation158_spill] sm:$0xff] }
 0x484   : > { %v4453_v3 = vadd.f32 %v3968_v62, %v3589_v22  ;;  %v4464_v29 = vadd.f32 %v4023_v19, %v3600_v20  ;;  %4342 = vperm.xlu0 %4783, %v2800_v39   ;;  %v10301_v22 = vld [vmem:[#allocation306_spill] sm:$0xff]  ;;  %v5281_v20 = vld [vmem:[%s5398_s18 + $0x258] sm:$0xff]  ;;  %v10302_v39 = vld [vmem:[#allocation307_spill] sm:$0xff]  ;;  %v2657_v7 = vmul.f32 %v10312_v27, %v10311_v8 }
 0x485   : > { %v3595_v53 = vmul.f32 %v5280_v59, %v10301_v22  ;;  %v3606_v30 = vmul.f32 %v5281_v20, %v10302_v39  ;;  %v10304_v62 = vld [vmem:[#allocation309_spill] sm:$0xff]  ;;  %v3601_v59 = vmul.f32 %v5286_v1, %v10317_v43  ;;  %v5287_v22 = vld [vmem:[%s5398_s18 + $0x288] sm:$0xff]  ;;  %v2515_v39 = vld [vmem:[%s7996_s24 + $0x440] sm:$0xff] }
 0x486   : > { %4597 = vst.msk [vmem:[%s8352_s27 + $0x1d0] sm:$0xff] %vm362_vm0, %v4453_v3  ;;  %4608 = vst.msk [vmem:[%s8352_s27 + $0x228] sm:$0xff] %vm362_vm0, %v4464_v29  ;;  %v2664_v19 = vmul.f32 %v10304_v62, %v10303_v23  ;;  %v2520_v29 = vld [vmem:[%s7996_s24 + $0x468] sm:$0xff]  ;;  %v10331_v1 = vld [vmem:[#allocation24_spill] sm:$0xff] }
 0x487   : > { %4297 = vperm.xlu1 %4784, %v2791_v28   ;;  %v3978_v26 = vpop.permute.xlu1 %3977  ;;  %v4033_v4 = vpop.permute.xlu0 %4032 }
 0x488   : > { %v4455_v42 = vadd.f32 %v3978_v26, %v3591_v58  ;;  %v4466_v11 = vadd.f32 %v4033_v4, %v3602_v21  ;;  %4352 = vperm.xlu0 %4783, %v2802_v14   ;;  %v5282_v58 = vld [vmem:[%s5398_s18 + $0x210] sm:$0xff]  ;;  %v5283_v21 = vld [vmem:[%s5398_s18 + $0x268] sm:$0xff]  ;;  %v2808_v9 = vsub.f32 %v2520_v29, %v2664_v19  ;;  %v10310_v26 = vld [vmem:[#allocation313_spill] sm:$0xff] }
 0x489   : > { %v3597_v45 = vmul.f32 %v5282_v58, %v10307_v12  ;;  %v10308_v14 = vld [vmem:[#allocation311_spill] sm:$0xff]  ;;  %v2666_v4 = vmul.f32 %v10310_v26, %v10309_v16  ;;  %v5288_v29 = vld [vmem:[%s5398_s18 + $0x240] sm:$0xff]  ;;  %v5290_v16 = vld [vmem:[%s5398_s18 + $0x250] sm:$0xff] }
 0x48a   : > { %4599 = vst.msk [vmem:[%s8352_s27 + $0x1e0] sm:$0xff] %vm362_vm0, %v4455_v42  ;;  %4610 = vst.msk [vmem:[%s8352_s27 + $0x238] sm:$0xff] %vm362_vm0, %v4466_v11  ;;  %v3608_v50 = vmul.f32 %v5283_v21, %v10308_v14  ;;  %v2522_v11 = vld [vmem:[%s7996_s24 + $0x478] sm:$0xff]  ;;  %v10319_v19 = vld [vmem:[#allocation95_spill] sm:$0xff] }
 0x48b   : > { %4307 = vperm.xlu1 %4784, %v2793_v5   ;;  %v3988_v32 = vpop.permute.xlu1 %3987  ;;  %v4043_v54 = vpop.permute.xlu0 %4042  ;;  %v2810_v40 = vsub.f32 %v2522_v11, %v2666_v4  ;;  %v10325_v26 = vld [vmem:[#allocation31_spill] sm:$0xff] }
 0x48c   : > { %v4457_v15 = vadd.f32 %v3988_v32, %v3593_v48  ;;  %v4468_v6 = vadd.f32 %v4043_v54, %v3604_v33  ;;  %4362 = vperm.xlu0 %4783, %v2804_v24   ;;  %v5284_v48 = vld [vmem:[%s5398_s18 + $0x220] sm:$0xff]  ;;  %v5285_v33 = vld [vmem:[%s5398_s18 + $0x278] sm:$0xff]  ;;  %v10314_v24 = vld [vmem:[#allocation171_spill] sm:$0xff]  ;;  %v3605_v4 = vmul.f32 %v5290_v16, %v10325_v26 }
 0x48d   : > { %v3599_v56 = vmul.f32 %v5284_v48, %v10313_v36  ;;  %v3610_v17 = vmul.f32 %v5285_v33, %v10314_v24  ;;  %v10327_v48 = vld [vmem:[#allocation167_spill] sm:$0xff]  ;;  %v10328_v36 = vld [vmem:[#allocation318_spill] sm:$0xff]  ;;  %v10329_v24 = vld [vmem:[#allocation33_spill] sm:$0xff] }
 0x48e   : > { %4601 = vst.msk [vmem:[%s8352_s27 + $0x1f0] sm:$0xff] %vm362_vm0, %v4457_v15  ;;  %4612 = vst.msk [vmem:[%s8352_s27 + $0x248] sm:$0xff] %vm362_vm0, %v4468_v6  ;;  %v2801_v15 = vsub.f32 %v2513_v47, %v2657_v7  ;;  %v10315_v6 = vld [vmem:[#allocation161_spill] sm:$0xff]  ;;  %v5292_v33 = vld [vmem:[%s5398_s18 + $0x260] sm:$0xff] }
 0x48f   : > { %4317 = vperm.xlu1 %4784, %v2795_v37   ;;  %v3998_v18 = vpop.permute.xlu1 %3997  ;;  %v4053_v3 = vpop.permute.xlu0 %4052  ;;  %v10316_v37 = vld [vmem:[#allocation315_spill] sm:$0xff]  ;;  %v10330_v47 = vld [vmem:[#allocation176_spill] sm:$0xff]  ;;  %v10337_v16 = vld [vmem:[#allocation37_spill] sm:$0xff] }
 0x490   : > { %v4459_v28 = vadd.f32 %v3998_v18, %v3595_v53  ;;  %v4470_v44 = vadd.f32 %v4053_v3, %v3606_v30  ;;  %4372 = vperm.xlu0 %4783, %v2806_v49   ;;  %v2659_v35 = vmul.f32 %v10316_v37, %v10315_v6  ;;  %v10318_v53 = vld [vmem:[#allocation175_spill] sm:$0xff]  ;;  %v10320_v18 = vld [vmem:[#allocation316_spill] sm:$0xff] }
 0x491   : > { %v3612_v20 = vmul.f32 %v5287_v22, %v10318_v53  ;;  %v2661_v3 = vmul.f32 %v10320_v18, %v10319_v19  ;;  %v10332_v22 = vld [vmem:[#allocation173_spill] sm:$0xff]  ;;  %v10334_v18 = vld [vmem:[#allocation178_spill] sm:$0xff] }
 0x492   : > { %4603 = vst.msk [vmem:[%s8352_s27 + $0x200] sm:$0xff] %vm362_vm0, %v4459_v28  ;;  %4614 = vst.msk [vmem:[%s8352_s27 + $0x258] sm:$0xff] %vm362_vm0, %v4470_v44  ;;  %v2803_v62 = vsub.f32 %v2515_v39, %v2659_v35  ;;  %v10321_v28 = vld [vmem:[#allocation29_spill] sm:$0xff]  ;;  %v5294_v35 = vld [vmem:[%s5398_s18 + $0x270] sm:$0xff] }
 0x493   : > { %4327 = vperm.xlu1 %4784, %v2797_v31   ;;  %v4008_v61 = vpop.permute.xlu1 %4007  ;;  %v4063_v42 = vpop.permute.xlu0 %4062  ;;  %v3603_v44 = vmul.f32 %v5288_v29, %v10321_v28  ;;  %v5289_v31 = vld [vmem:[%s5398_s18 + $0x298] sm:$0xff]  ;;  %v2805_v14 = vsub.f32 %v2517_v60, %v2661_v3  ;;  %v3609_v43 = vmul.f32 %v5294_v35, %v10331_v1 }
 0x494   : > { %v4461_v5 = vadd.f32 %v4008_v61, %v3597_v45  ;;  %v4472_v41 = vadd.f32 %v4063_v42, %v3608_v50  ;;  %4382 = vperm.xlu0 %4783, %v2808_v9   ;;  %v3614_v46 = vmul.f32 %v5289_v31, %v10322_v57  ;;  %v10323_v50 = vld [vmem:[#allocation164_spill] sm:$0xff]  ;;  %v10324_v9 = vld [vmem:[#allocation317_spill] sm:$0xff]  ;;  %v5291_v61 = vld [vmem:[%s5398_s18 + $0x2a8] sm:$0xff] }
 0x495   : > { %v2663_v25 = vmul.f32 %v10324_v9, %v10323_v50  ;;  %v10326_v42 = vld [vmem:[#allocation183_spill] sm:$0xff]  ;;  %v5297_v19 = vld [vmem:[%s5398_s18 + $0x2d8] sm:$0xff]  ;;  %v5298_v57 = vld [vmem:[%s5398_s18 + $0x290] sm:$0xff] }
 0x496   : > { %4605 = vst.msk [vmem:[%s8352_s27 + $0x210] sm:$0xff] %vm362_vm0, %v4461_v5  ;;  %4616 = vst.msk [vmem:[%s8352_s27 + $0x268] sm:$0xff] %vm362_vm0, %v4472_v41  ;;  %v3616_v11 = vmul.f32 %v5291_v61, %v10326_v42  ;;  %v2519_v5 = vld [vmem:[%s7996_s24 + $0x460] sm:$0xff]  ;;  %v3622_v3 = vmul.f32 %v5297_v19, %v10334_v18  ;;  %v10338_v61 = vld [vmem:[#allocation180_spill] sm:$0xff] }
 0x497   : > { %4337 = vperm.xlu1 %4784, %v2799_v52   ;;  %v4018_v2 = vpop.permute.xlu1 %4017  ;;  %v4073_v32 = vpop.permute.xlu0 %4072  ;;  %v2807_v7 = vsub.f32 %v2519_v5, %v2663_v25  ;;  %v5300_v25 = vld [vmem:[%s5398_s18 + $0x2a0] sm:$0xff]  ;;  %v10345_v19 = vld [vmem:[#allocation41_spill] sm:$0xff] }
 0x498   : > { %v4463_v54 = vadd.f32 %v4018_v2, %v3599_v56  ;;  %v4474_v34 = vadd.f32 %v4073_v32, %v3610_v17  ;;  %4392 = vperm.xlu0 %4783, %v2810_v40   ;;  %v2665_v56 = vmul.f32 %v10328_v36, %v10327_v48  ;;  %v3607_v17 = vmul.f32 %v5292_v33, %v10329_v24  ;;  %v5293_v40 = vld [vmem:[%s5398_s18 + $0x2b8] sm:$0xff]  ;;  %v2521_v32 = vld [vmem:[%s7996_s24 + $0x470] sm:$0xff]  ;;  %v5303_v48 = vld [vmem:[%s5398_s18 + $0x308] sm:$0xff] }
 0x499   : > { %v3618_v2 = vmul.f32 %v5293_v40, %v10330_v47  ;;  %v3615_v26 = vmul.f32 %v5300_v25, %v10337_v16  ;;  %v10340_v36 = vld [vmem:[#allocation177_spill] sm:$0xff]  ;;  %v5304_v47 = vld [vmem:[%s5398_s18 + $0x2c0] sm:$0xff] }
 0x49a   : > { %4607 = vst.msk [vmem:[%s8352_s27 + $0x220] sm:$0xff] %vm362_vm0, %v4463_v54  ;;  %4618 = vst.msk [vmem:[%s8352_s27 + $0x278] sm:$0xff] %vm362_vm0, %v4474_v34  ;;  %v2809_v37 = vsub.f32 %v2521_v32, %v2665_v56  ;;  %v3628_v56 = vmul.f32 %v5303_v48, %v10340_v36  ;;  %v10351_v48 = vld [vmem:[#allocation36_spill] sm:$0xff] }
 0x49b   : > { %4347 = vperm.xlu1 %4784, %v2801_v15   ;;  %v4028_v30 = vpop.permute.xlu1 %4027  ;;  %v4083_v49 = vpop.permute.xlu0 %4082 }
 0x49c   : > { %v4465_v55 = vadd.f32 %v4028_v30, %v3601_v59  ;;  %v4476_v23 = vadd.f32 %v4083_v49, %v3612_v20  ;;  %v5295_v59 = vld [vmem:[%s5398_s18 + $0x2c8] sm:$0xff] }
 0x49d   : > { %v3620_v53 = vmul.f32 %v5295_v59, %v10332_v22  ;;  %v10343_v59 = vld [vmem:[#allocation32_spill] sm:$0xff] }
 0x49e   : > { %4609 = vst.msk [vmem:[%s8352_s27 + $0x230] sm:$0xff] %vm362_vm0, %v4465_v55  ;;  %4620 = vst.msk [vmem:[%s8352_s27 + $0x288] sm:$0xff] %vm362_vm0, %v4476_v23  ;;  %v5296_v55 = vld [vmem:[%s5398_s18 + $0x280] sm:$0xff]  ;;  %v10333_v23 = vld [vmem:[#allocation35_spill] sm:$0xff] }
 0x49f   : > { %4357 = vperm.xlu1 %4784, %v2803_v62   ;;  %v4038_v58 = vpop.permute.xlu1 %4037  ;;  %v4093_v12 = vpop.permute.xlu0 %4092  ;;  %v3611_v62 = vmul.f32 %v5296_v55, %v10333_v23 }
 0x4a0   : > { %v4467_v45 = vadd.f32 %v4038_v58, %v3603_v44  ;;  %v4478_v21 = vadd.f32 %v4093_v12, %v3614_v46  ;;  %v10335_v46 = vld [vmem:[#allocation27_spill] sm:$0xff]  ;;  %v10336_v12 = vld [vmem:[#allocation172_spill] sm:$0xff] }
 0x4a1   : > { %v3613_v60 = vmul.f32 %v5298_v57, %v10335_v46  ;;  %v5299_v58 = vld [vmem:[%s5398_s18 + $0x2e8] sm:$0xff] }
 0x4a2   : > { %4611 = vst.msk [vmem:[%s8352_s27 + $0x240] sm:$0xff] %vm362_vm0, %v4467_v45  ;;  %4622 = vst.msk [vmem:[%s8352_s27 + $0x298] sm:$0xff] %vm362_vm0, %v4478_v21  ;;  %v3624_v45 = vmul.f32 %v5299_v58, %v10336_v12  ;;  %v10347_v58 = vld [vmem:[#allocation34_spill] sm:$0xff] }
 0x4a3   : > { %4367 = vperm.xlu1 %4784, %v2805_v14   ;;  %v4048_v41 = vpop.permute.xlu1 %4047  ;;  %v4103_v52 = vpop.permute.xlu0 %4102 }
 0x4a4   : > { %v4469_v8 = vadd.f32 %v4048_v41, %v3605_v4  ;;  %v4480_v27 = vadd.f32 %v4103_v52, %v3616_v11  ;;  %v5301_v4 = vld [vmem:[%s5398_s18 + $0x2f8] sm:$0xff] }
 0x4a5   : > { %v3626_v42 = vmul.f32 %v5301_v4, %v10338_v61  ;;  %v10349_v4 = vld [vmem:[#allocation43_spill] sm:$0xff] }
 0x4a6   : > { %4613 = vst.msk [vmem:[%s8352_s27 + $0x250] sm:$0xff] %vm362_vm0, %v4469_v8  ;;  %4624 = vst.msk [vmem:[%s8352_s27 + $0x2a8] sm:$0xff] %vm362_vm0, %v4480_v27  ;;  %v5302_v8 = vld [vmem:[%s5398_s18 + $0x2b0] sm:$0xff]  ;;  %v10339_v27 = vld [vmem:[#allocation30_spill] sm:$0xff] }
 0x4a7   : > { %4377 = vperm.xlu1 %4784, %v2807_v7   ;;  %v4058_v54 = vpop.permute.xlu1 %4057  ;;  %v4113_v34 = vpop.permute.xlu0 %4112  ;;  %v3617_v7 = vmul.f32 %v5302_v8, %v10339_v27 }
 0x4a8   : > { %v4471_v15 = vadd.f32 %v4058_v54, %v3607_v17  ;;  %v4482_v6 = vadd.f32 %v4113_v34, %v3618_v2  ;;  %v10341_v2 = vld [vmem:[#allocation39_spill] sm:$0xff]  ;;  %v5305_v54 = vld [vmem:[%s5398_s18 + $0x318] sm:$0xff]  ;;  %v10342_v34 = vld [vmem:[#allocation182_spill] sm:$0xff] }
 0x4a9   : > { %v3619_v32 = vmul.f32 %v5304_v47, %v10341_v2 }
 0x4aa   : > { %4615 = vst.msk [vmem:[%s8352_s27 + $0x260] sm:$0xff] %vm362_vm0, %v4471_v15  ;;  %4626 = vst.msk [vmem:[%s8352_s27 + $0x2b8] sm:$0xff] %vm362_vm0, %v4482_v6  ;;  %v3630_v15 = vmul.f32 %v5305_v54, %v10342_v34  ;;  %v10353_v54 = vld [vmem:[#allocation45_spill] sm:$0xff] }
 0x4ab   : > { %v4068_v20 = vpop.permute.xlu1 %4067  ;;  %4387 = vperm.xlu1 %4784, %v2809_v37   ;;  %v4123_v39 = vpop.permute.xlu0 %4122 }
 0x4ac   : > { %v4473_v30 = vadd.f32 %v4068_v20, %v3609_v43  ;;  %v4484_v49 = vadd.f32 %v4123_v39, %v3620_v53  ;;  %v5306_v43 = vld [vmem:[%s5398_s18 + $0x2d0] sm:$0xff]  ;;  %v5307_v53 = vld [vmem:[%s5398_s18 + $0x328] sm:$0xff]  ;;  %v10344_v20 = vld [vmem:[#allocation181_spill] sm:$0xff] }
 0x4ad   : > { %v3621_v22 = vmul.f32 %v5306_v43, %v10343_v59  ;;  %v3632_v39 = vmul.f32 %v5307_v53, %v10344_v20  ;;  %v10355_v53 = vld [vmem:[#allocation38_spill] sm:$0xff] }
 0x4ae   : > { %4617 = vst.msk [vmem:[%s8352_s27 + $0x270] sm:$0xff] %vm362_vm0, %v4473_v30  ;;  %4628 = vst.msk [vmem:[%s8352_s27 + $0x2c8] sm:$0xff] %vm362_vm0, %v4484_v49 }
 0x4af   : > { %v4078_v29 = vpop.permute.xlu1 %4077  ;;  %v4133_v28 = vpop.permute.xlu0 %4132 }
 0x4b0   : > { %v4475_v44 = vadd.f32 %v4078_v29, %v3611_v62  ;;  %v4486_v31 = vadd.f32 %v4133_v28, %v3622_v3  ;;  %v5308_v62 = vld [vmem:[%s5398_s18 + $0x2e0] sm:$0xff]  ;;  %v5309_v3 = vld [vmem:[%s5398_s18 + $0x338] sm:$0xff]  ;;  %v10346_v29 = vld [vmem:[#allocation184_spill] sm:$0xff] }
 0x4b1   : > { %v3623_v18 = vmul.f32 %v5308_v62, %v10345_v19  ;;  %v3634_v28 = vmul.f32 %v5309_v3, %v10346_v29  ;;  %v10357_v3 = vld [vmem:[#allocation47_spill] sm:$0xff] }
 0x4b2   : > { %4619 = vst.msk [vmem:[%s8352_s27 + $0x280] sm:$0xff] %vm362_vm0, %v4475_v44  ;;  %4630 = vst.msk [vmem:[%s8352_s27 + $0x2d8] sm:$0xff] %vm362_vm0, %v4486_v31 }
 0x4b3   : > { %v4088_v21 = vpop.permute.xlu1 %4087  ;;  %v4143_v14 = vpop.permute.xlu0 %4142 }
 0x4b4   : > { %v4477_v50 = vadd.f32 %v4088_v21, %v3613_v60  ;;  %v4488_v9 = vadd.f32 %v4143_v14, %v3624_v45  ;;  %v5310_v60 = vld [vmem:[%s5398_s18 + $0x2f0] sm:$0xff]  ;;  %v5311_v45 = vld [vmem:[%s5398_s18 + $0x348] sm:$0xff]  ;;  %v10348_v21 = vld [vmem:[#allocation185_spill] sm:$0xff] }
 0x4b5   : > { %v3625_v12 = vmul.f32 %v5310_v60, %v10347_v58  ;;  %v3636_v14 = vmul.f32 %v5311_v45, %v10348_v21  ;;  %v10359_v45 = vld [vmem:[#allocation40_spill] sm:$0xff] }
 0x4b6   : > { %4621 = vst.msk [vmem:[%s8352_s27 + $0x290] sm:$0xff] %vm362_vm0, %v4477_v50  ;;  %4632 = vst.msk [vmem:[%s8352_s27 + $0x2e8] sm:$0xff] %vm362_vm0, %v4488_v9 }
 0x4b7   : > { %v4098_v11 = vpop.permute.xlu1 %4097  ;;  %v4153_v5 = vpop.permute.xlu0 %4152 }
 0x4b8   : > { %v4479_v41 = vadd.f32 %v4098_v11, %v3615_v26  ;;  %v4490_v52 = vadd.f32 %v4153_v5, %v3626_v42  ;;  %v5312_v26 = vld [vmem:[%s5398_s18 + $0x300] sm:$0xff]  ;;  %v5313_v42 = vld [vmem:[%s5398_s18 + $0x358] sm:$0xff] }
 0x4b9   : > { %v3627_v61 = vmul.f32 %v5312_v26, %v10349_v4  ;;  %v10350_v11 = vld [vmem:[#allocation186_spill] sm:$0xff] }
 0x4ba   : > { %4623 = vst.msk [vmem:[%s8352_s27 + $0x2a0] sm:$0xff] %vm362_vm0, %v4479_v41  ;;  %4634 = vst.msk [vmem:[%s8352_s27 + $0x2f8] sm:$0xff] %vm362_vm0, %v4490_v52  ;;  %v3638_v5 = vmul.f32 %v5313_v42, %v10350_v11  ;;  %v10361_v42 = vld [vmem:[#allocation49_spill] sm:$0xff] }
 0x4bb   : > { %v4108_v33 = vpop.permute.xlu1 %4107  ;;  %v4163_v24 = vpop.permute.xlu0 %4162 }
 0x4bc   : > { %v4481_v17 = vadd.f32 %v4108_v33, %v3617_v7  ;;  %v4492_v40 = vadd.f32 %v4163_v24, %v3628_v56  ;;  %v5314_v7 = vld [vmem:[%s5398_s18 + $0x310] sm:$0xff]  ;;  %v5315_v56 = vld [vmem:[%s5398_s18 + $0x368] sm:$0xff] }
 0x4bd   : > { %v3629_v36 = vmul.f32 %v5314_v7, %v10351_v48  ;;  %v10352_v33 = vld [vmem:[#allocation187_spill] sm:$0xff] }
 0x4be   : > { %4625 = vst.msk [vmem:[%s8352_s27 + $0x2b0] sm:$0xff] %vm362_vm0, %v4481_v17  ;;  %4636 = vst.msk [vmem:[%s8352_s27 + $0x308] sm:$0xff] %vm362_vm0, %v4492_v40  ;;  %v3640_v24 = vmul.f32 %v5315_v56, %v10352_v33  ;;  %v10363_v56 = vld [vmem:[#allocation42_spill] sm:$0xff] }
 0x4bf   : > { %v4118_v6 = vpop.permute.xlu1 %4117  ;;  %v4173_v37 = vpop.permute.xlu0 %4172 }
 0x4c0   : > { %v4483_v35 = vadd.f32 %v4118_v6, %v3619_v32  ;;  %v4494_v1 = vadd.f32 %v4173_v37, %v3630_v15  ;;  %v5316_v32 = vld [vmem:[%s5398_s18 + $0x320] sm:$0xff]  ;;  %v5317_v15 = vld [vmem:[%s5398_s18 + $0x378] sm:$0xff]  ;;  %v10354_v6 = vld [vmem:[#allocation188_spill] sm:$0xff] }
 0x4c1   : > { %v3631_v34 = vmul.f32 %v5316_v32, %v10353_v54  ;;  %v3642_v37 = vmul.f32 %v5317_v15, %v10354_v6  ;;  %v10365_v15 = vld [vmem:[#allocation51_spill] sm:$0xff] }
 0x4c2   : > { %4627 = vst.msk [vmem:[%s8352_s27 + $0x2c0] sm:$0xff] %vm362_vm0, %v4483_v35  ;;  %4638 = vst.msk [vmem:[%s8352_s27 + $0x318] sm:$0xff] %vm362_vm0, %v4494_v1 }
 0x4c3   : > { %v4128_v30 = vpop.permute.xlu1 %4127  ;;  %v4183_v49 = vpop.permute.xlu0 %4182 }
 0x4c4   : > { %v4485_v55 = vadd.f32 %v4128_v30, %v3621_v22  ;;  %v4496_v23 = vadd.f32 %v4183_v49, %v3632_v39  ;;  %v5318_v22 = vld [vmem:[%s5398_s18 + $0x330] sm:$0xff]  ;;  %v5319_v39 = vld [vmem:[%s5398_s18 + $0x388] sm:$0xff]  ;;  %v10356_v30 = vld [vmem:[#allocation189_spill] sm:$0xff] }
 0x4c5   : > { %v3633_v20 = vmul.f32 %v5318_v22, %v10355_v53  ;;  %v3644_v49 = vmul.f32 %v5319_v39, %v10356_v30  ;;  %v10367_v39 = vld [vmem:[#allocation44_spill] sm:$0xff] }
 0x4c6   : > { %4629 = vst.msk [vmem:[%s8352_s27 + $0x2d0] sm:$0xff] %vm362_vm0, %v4485_v55  ;;  %4640 = vst.msk [vmem:[%s8352_s27 + $0x328] sm:$0xff] %vm362_vm0, %v4496_v23 }
 0x4c7   : > { %v4138_v44 = vpop.permute.xlu1 %4137  ;;  %v4193_v31 = vpop.permute.xlu0 %4192 }
 0x4c8   : > { %v4487_v57 = vadd.f32 %v4138_v44, %v3623_v18  ;;  %v4498_v46 = vadd.f32 %v4193_v31, %v3634_v28  ;;  %v5320_v18 = vld [vmem:[%s5398_s18 + $0x340] sm:$0xff]  ;;  %v5321_v28 = vld [vmem:[%s5398_s18 + $0x398] sm:$0xff] }
 0x4c9   : > { %v3635_v29 = vmul.f32 %v5320_v18, %v10357_v3  ;;  %v10358_v44 = vld [vmem:[#allocation190_spill] sm:$0xff] }
 0x4ca   : > { %4631 = vst.msk [vmem:[%s8352_s27 + $0x2e0] sm:$0xff] %vm362_vm0, %v4487_v57  ;;  %4642 = vst.msk [vmem:[%s8352_s27 + $0x338] sm:$0xff] %vm362_vm0, %v4498_v46  ;;  %v3646_v31 = vmul.f32 %v5321_v28, %v10358_v44  ;;  %v10369_v28 = vld [vmem:[#allocation53_spill] sm:$0xff] }
 0x4cb   : > { %v4148_v50 = vpop.permute.xlu1 %4147  ;;  %v4203_v9 = vpop.permute.xlu0 %4202 }
 0x4cc   : > { %v4489_v25 = vadd.f32 %v4148_v50, %v3625_v12  ;;  %v4500_v16 = vadd.f32 %v4203_v9, %v3636_v14  ;;  %v5322_v12 = vld [vmem:[%s5398_s18 + $0x350] sm:$0xff]  ;;  %v5323_v14 = vld [vmem:[%s5398_s18 + $0x3a8] sm:$0xff] }
 0x4cd   : > { %v3637_v21 = vmul.f32 %v5322_v12, %v10359_v45  ;;  %v10360_v50 = vld [vmem:[#allocation191_spill] sm:$0xff] }
 0x4ce   : > { %4633 = vst.msk [vmem:[%s8352_s27 + $0x2f0] sm:$0xff] %vm362_vm0, %v4489_v25  ;;  %4644 = vst.msk [vmem:[%s8352_s27 + $0x348] sm:$0xff] %vm362_vm0, %v4500_v16  ;;  %v3648_v9 = vmul.f32 %v5323_v14, %v10360_v50  ;;  %v10371_v14 = vld [vmem:[#allocation46_spill] sm:$0xff] }
 0x4cf   : > { %v4158_v41 = vpop.permute.xlu1 %4157  ;;  %v4213_v52 = vpop.permute.xlu0 %4212 }
 0x4d0   : > { %v4491_v8 = vadd.f32 %v4158_v41, %v3627_v61  ;;  %v4502_v27 = vadd.f32 %v4213_v52, %v3638_v5  ;;  %v5324_v61 = vld [vmem:[%s5398_s18 + $0x360] sm:$0xff]  ;;  %v5325_v5 = vld [vmem:[%s5398_s18 + $0x3b8] sm:$0xff]  ;;  %v10362_v41 = vld [vmem:[#allocation192_spill] sm:$0xff] }
 0x4d1   : > { %v3639_v11 = vmul.f32 %v5324_v61, %v10361_v42  ;;  %v3650_v52 = vmul.f32 %v5325_v5, %v10362_v41  ;;  %v10373_v5 = vld [vmem:[#allocation55_spill] sm:$0xff] }
 0x4d2   : > { %4635 = vst.msk [vmem:[%s8352_s27 + $0x300] sm:$0xff] %vm362_vm0, %v4491_v8  ;;  %4646 = vst.msk [vmem:[%s8352_s27 + $0x358] sm:$0xff] %vm362_vm0, %v4502_v27 }
 0x4d3   : > { %v4168_v17 = vpop.permute.xlu1 %4167  ;;  %v4223_v40 = vpop.permute.xlu0 %4222 }
 0x4d4   : > { %v4493_v47 = vadd.f32 %v4168_v17, %v3629_v36  ;;  %v4504_v2 = vadd.f32 %v4223_v40, %v3640_v24  ;;  %v5326_v36 = vld [vmem:[%s5398_s18 + $0x370] sm:$0xff]  ;;  %v5327_v24 = vld [vmem:[%s5398_s18 + $0x3c8] sm:$0xff]  ;;  %v10364_v17 = vld [vmem:[#allocation194_spill] sm:$0xff] }
 0x4d5   : > { %v3641_v33 = vmul.f32 %v5326_v36, %v10363_v56  ;;  %v3652_v40 = vmul.f32 %v5327_v24, %v10364_v17  ;;  %v10375_v24 = vld [vmem:[#allocation48_spill] sm:$0xff] }
 0x4d6   : > { %4637 = vst.msk [vmem:[%s8352_s27 + $0x310] sm:$0xff] %vm362_vm0, %v4493_v47  ;;  %4648 = vst.msk [vmem:[%s8352_s27 + $0x368] sm:$0xff] %vm362_vm0, %v4504_v2 }
 0x4d7   : > { %v4178_v35 = vpop.permute.xlu1 %4177  ;;  %v4233_v1 = vpop.permute.xlu0 %4232 }
 0x4d8   : > { %v4495_v43 = vadd.f32 %v4178_v35, %v3631_v34  ;;  %v4506_v59 = vadd.f32 %v4233_v1, %v3642_v37  ;;  %v5328_v34 = vld [vmem:[%s5398_s18 + $0x380] sm:$0xff]  ;;  %v5329_v37 = vld [vmem:[%s5398_s18 + $0x3d8] sm:$0xff]  ;;  %v10366_v35 = vld [vmem:[#allocation195_spill] sm:$0xff] }
 0x4d9   : > { %v3643_v6 = vmul.f32 %v5328_v34, %v10365_v15  ;;  %v3654_v1 = vmul.f32 %v5329_v37, %v10366_v35  ;;  %v10377_v37 = vld [vmem:[#allocation57_spill] sm:$0xff] }
 0x4da   : > { %4639 = vst.msk [vmem:[%s8352_s27 + $0x320] sm:$0xff] %vm362_vm0, %v4495_v43  ;;  %4650 = vst.msk [vmem:[%s8352_s27 + $0x378] sm:$0xff] %vm362_vm0, %v4506_v59 }
 0x4db   : > { %v4188_v55 = vpop.permute.xlu1 %4187  ;;  %v4243_v23 = vpop.permute.xlu0 %4242 }
 0x4dc   : > { %v4497_v62 = vadd.f32 %v4188_v55, %v3633_v20  ;;  %v4508_v19 = vadd.f32 %v4243_v23, %v3644_v49  ;;  %v5330_v20 = vld [vmem:[%s5398_s18 + $0x390] sm:$0xff]  ;;  %v5331_v49 = vld [vmem:[%s5398_s18 + $0x3e8] sm:$0xff]  ;;  %v10368_v55 = vld [vmem:[#allocation197_spill] sm:$0xff] }
 0x4dd   : > { %v3645_v30 = vmul.f32 %v5330_v20, %v10367_v39  ;;  %v3656_v23 = vmul.f32 %v5331_v49, %v10368_v55  ;;  %v10379_v49 = vld [vmem:[#allocation50_spill] sm:$0xff] }
 0x4de   : > { %4641 = vst.msk [vmem:[%s8352_s27 + $0x330] sm:$0xff] %vm362_vm0, %v4497_v62  ;;  %4652 = vst.msk [vmem:[%s8352_s27 + $0x388] sm:$0xff] %vm362_vm0, %v4508_v19 }
 0x4df   : > { %v4198_v57 = vpop.permute.xlu1 %4197  ;;  %v4253_v46 = vpop.permute.xlu0 %4252 }
 0x4e0   : > { %v4499_v60 = vadd.f32 %v4198_v57, %v3635_v29  ;;  %v4510_v58 = vadd.f32 %v4253_v46, %v3646_v31  ;;  %v5332_v29 = vld [vmem:[%s5398_s18 + $0x3a0] sm:$0xff]  ;;  %v5333_v31 = vld [vmem:[%s5398_s18 + $0x3f8] sm:$0xff] }
 0x4e1   : > { %v3647_v44 = vmul.f32 %v5332_v29, %v10369_v28  ;;  %v10370_v57 = vld [vmem:[#allocation198_spill] sm:$0xff] }
 0x4e2   : > { %4643 = vst.msk [vmem:[%s8352_s27 + $0x340] sm:$0xff] %vm362_vm0, %v4499_v60  ;;  %4654 = vst.msk [vmem:[%s8352_s27 + $0x398] sm:$0xff] %vm362_vm0, %v4510_v58  ;;  %v3658_v46 = vmul.f32 %v5333_v31, %v10370_v57  ;;  %v5345_v57 = vld [vmem:[%s5398_s18 + $0x458] sm:$0xff] }
 0x4e3   : > { %v4208_v25 = vpop.permute.xlu1 %4207  ;;  %v4263_v16 = vpop.permute.xlu0 %4262 }
 0x4e4   : > { %v4501_v26 = vadd.f32 %v4208_v25, %v3637_v21  ;;  %v4512_v4 = vadd.f32 %v4263_v16, %v3648_v9  ;;  %v5334_v21 = vld [vmem:[%s5398_s18 + $0x3b0] sm:$0xff]  ;;  %v5335_v9 = vld [vmem:[%s5398_s18 + $0x408] sm:$0xff] }
 0x4e5   : > { %v3649_v50 = vmul.f32 %v5334_v21, %v10371_v14  ;;  %v10372_v25 = vld [vmem:[#allocation132_spill] sm:$0xff] }
 0x4e6   : > { %4645 = vst.msk [vmem:[%s8352_s27 + $0x350] sm:$0xff] %vm362_vm0, %v4501_v26  ;;  %4656 = vst.msk [vmem:[%s8352_s27 + $0x3a8] sm:$0xff] %vm362_vm0, %v4512_v4  ;;  %v3660_v16 = vmul.f32 %v5335_v9, %v10372_v25  ;;  %v5346_v14 = vld [vmem:[%s5398_s18 + $0x410] sm:$0xff]  ;;  %v5347_v25 = vld [vmem:[%s5398_s18 + $0x468] sm:$0xff] }
 0x4e7   : > { %v4218_v8 = vpop.permute.xlu1 %4217  ;;  %v4273_v27 = vpop.permute.xlu0 %4272 }
 0x4e8   : > { %v4503_v7 = vadd.f32 %v4218_v8, %v3639_v11  ;;  %v4514_v48 = vadd.f32 %v4273_v27, %v3650_v52  ;;  %v5336_v11 = vld [vmem:[%s5398_s18 + $0x3c0] sm:$0xff]  ;;  %v5337_v52 = vld [vmem:[%s5398_s18 + $0x418] sm:$0xff] }
 0x4e9   : > { %v3651_v41 = vmul.f32 %v5336_v11, %v10373_v5  ;;  %v10374_v8 = vld [vmem:[#allocation142_spill] sm:$0xff]  ;;  %v10384_v5 = vld [vmem:[#allocation140_spill] sm:$0xff] }
 0x4ea   : > { %4647 = vst.msk [vmem:[%s8352_s27 + $0x360] sm:$0xff] %vm362_vm0, %v4503_v7  ;;  %4658 = vst.msk [vmem:[%s8352_s27 + $0x3b8] sm:$0xff] %vm362_vm0, %v4514_v48  ;;  %v3662_v27 = vmul.f32 %v5337_v52, %v10374_v8  ;;  %v5348_v11 = vld [vmem:[%s5398_s18 + $0x420] sm:$0xff]  ;;  %v5349_v52 = vld [vmem:[%s5398_s18 + $0x478] sm:$0xff] }
 0x4eb   : > { %v4228_v47 = vpop.permute.xlu1 %4227  ;;  %v4283_v2 = vpop.permute.xlu0 %4282  ;;  %v3674_v8 = vmul.f32 %v5349_v52, %v8336_v38 }
 0x4ec   : > { %v4505_v32 = vadd.f32 %v4228_v47, %v3641_v33  ;;  %v4516_v54 = vadd.f32 %v4283_v2, %v3652_v40  ;;  %v5338_v33 = vld [vmem:[%s5398_s18 + $0x3d0] sm:$0xff]  ;;  %v5339_v40 = vld [vmem:[%s5398_s18 + $0x428] sm:$0xff] }
 0x4ed   : > { %v3653_v17 = vmul.f32 %v5338_v33, %v10375_v24  ;;  %v10376_v47 = vld [vmem:[#allocation135_spill] sm:$0xff]  ;;  %v10385_v33 = vld [vmem:[#allocation61_spill] sm:$0xff] }
 0x4ee   : > { %4649 = vst.msk [vmem:[%s8352_s27 + $0x370] sm:$0xff] %vm362_vm0, %v4505_v32  ;;  %4660 = vst.msk [vmem:[%s8352_s27 + $0x3c8] sm:$0xff] %vm362_vm0, %v4516_v54  ;;  %v3664_v2 = vmul.f32 %v5339_v40, %v10376_v47  ;;  %v5351_v40 = vld [vmem:[%s5398_s18 + $0x440] sm:$0xff] }
 0x4ef   : > { %v4238_v43 = vpop.permute.xlu1 %4237  ;;  %v4293_v59 = vpop.permute.xlu0 %4292  ;;  %v3667_v47 = vmul.f32 %v5351_v40, %v8364_v63 }
 0x4f0   : > { %v4507_v22 = vadd.f32 %v4238_v43, %v3643_v6  ;;  %v4518_v53 = vadd.f32 %v4293_v59, %v3654_v1  ;;  %v5340_v6 = vld [vmem:[%s5398_s18 + $0x3e0] sm:$0xff]  ;;  %v5341_v1 = vld [vmem:[%s5398_s18 + $0x438] sm:$0xff]  ;;  %v10378_v43 = vld [vmem:[#allocation144_spill] sm:$0xff] }
 0x4f1   : > { %v3655_v35 = vmul.f32 %v5340_v6, %v10377_v37  ;;  %v3666_v59 = vmul.f32 %v5341_v1, %v10378_v43  ;;  %v5353_v37 = vld [vmem:[%s5398_s18 + $0x460] sm:$0xff]  ;;  %v5354_v43 = vld [vmem:[%s5398_s18 + $0x470] sm:$0xff] }
 0x4f2   : > { %4651 = vst.msk [vmem:[%s8352_s27 + $0x380] sm:$0xff] %vm362_vm0, %v4507_v22  ;;  %4662 = vst.msk [vmem:[%s8352_s27 + $0x3d8] sm:$0xff] %vm362_vm0, %v4518_v53 }
 0x4f3   : > { %v4248_v62 = vpop.permute.xlu1 %4247  ;;  %v4303_v19 = vpop.permute.xlu0 %4302 }
 0x4f4   : > { %v4509_v18 = vadd.f32 %v4248_v62, %v3645_v30  ;;  %v4520_v3 = vadd.f32 %v4303_v19, %v3656_v23  ;;  %v5342_v30 = vld [vmem:[%s5398_s18 + $0x3f0] sm:$0xff]  ;;  %v5343_v23 = vld [vmem:[%s5398_s18 + $0x448] sm:$0xff]  ;;  %v10380_v62 = vld [vmem:[#allocation138_spill] sm:$0xff] }
 0x4f5   : > { %v3657_v55 = vmul.f32 %v5342_v30, %v10379_v49  ;;  %v3668_v19 = vmul.f32 %v5343_v23, %v10380_v62 }
 0x4f6   : > { %4653 = vst.msk [vmem:[%s8352_s27 + $0x390] sm:$0xff] %vm362_vm0, %v4509_v18  ;;  %4664 = vst.msk [vmem:[%s8352_s27 + $0x3e8] sm:$0xff] %vm362_vm0, %v4520_v3 }
 0x4f7   : > { %v4258_v60 = vpop.permute.xlu1 %4257  ;;  %v4313_v58 = vpop.permute.xlu0 %4312 }
 0x4f8   : > { %v4511_v12 = vadd.f32 %v4258_v60, %v3647_v44  ;;  %v4522_v45 = vadd.f32 %v4313_v58, %v3658_v46  ;;  %v5344_v44 = vld [vmem:[%s5398_s18 + $0x400] sm:$0xff]  ;;  %v10381_v46 = vld [vmem:[#allocation59_spill] sm:$0xff] }
 0x4f9   : > { %v3659_v31 = vmul.f32 %v5344_v44, %v8314_v13  ;;  %v3670_v60 = vmul.f32 %v5345_v57, %v10381_v46  ;;  %v10383_v13 = vld [vmem:[#allocation52_spill] sm:$0xff] }
 0x4fa   : > { %4655 = vst.msk [vmem:[%s8352_s27 + $0x3a0] sm:$0xff] %vm362_vm0, %v4511_v12  ;;  %4666 = vst.msk [vmem:[%s8352_s27 + $0x3f8] sm:$0xff] %vm362_vm0, %v4522_v45 }
 0x4fb   : > { %v4268_v26 = vpop.permute.xlu1 %4267  ;;  %v4323_v4 = vpop.permute.xlu0 %4322 }
 0x4fc   : > { %v4513_v61 = vadd.f32 %v4268_v26, %v3649_v50  ;;  %v4524_v42 = vadd.f32 %v4323_v4, %v3660_v16  ;;  %v10382_v50 = vld [vmem:[#allocation146_spill] sm:$0xff]  ;;  %v3672_v16 = vmul.f32 %v5347_v25, %v10383_v13 }
 0x4fd   : > { %v3661_v9 = vmul.f32 %v5346_v14, %v10382_v50 }
 0x4fe   : > { %4657 = vst.msk [vmem:[%s8352_s27 + $0x3b0] sm:$0xff] %vm362_vm0, %v4513_v61  ;;  %4668 = vst.msk [vmem:[%s8352_s27 + $0x408] sm:$0xff] %vm362_vm0, %v4524_v42 }
 0x4ff   : > { %v4278_v7 = vpop.permute.xlu1 %4277  ;;  %v4333_v48 = vpop.permute.xlu0 %4332 }
 0x500   : > { %v4515_v36 = vadd.f32 %v4278_v7, %v3651_v41  ;;  %v4526_v56 = vadd.f32 %v4333_v48, %v3662_v27  ;;  %v3663_v41 = vmul.f32 %v5348_v11, %v10384_v5 }
 0x502   : > { %4659 = vst.msk [vmem:[%s8352_s27 + $0x3c0] sm:$0xff] %vm362_vm0, %v4515_v36  ;;  %4670 = vst.msk [vmem:[%s8352_s27 + $0x418] sm:$0xff] %vm362_vm0, %v4526_v56  ;;  %v5350_v56 = vld [vmem:[%s5398_s18 + $0x430] sm:$0xff] }
 0x503   : > { %v4288_v32 = vpop.permute.xlu1 %4287  ;;  %v4343_v54 = vpop.permute.xlu0 %4342  ;;  %v3665_v24 = vmul.f32 %v5350_v56, %v10385_v33 }
 0x504   : > { %v4517_v34 = vadd.f32 %v4288_v32, %v3653_v17  ;;  %v4528_v15 = vadd.f32 %v4343_v54, %v3664_v2  ;;  %v5352_v54 = vld [vmem:[%s5398_s18 + $0x450] sm:$0xff] }
 0x506   : > { %4661 = vst.msk [vmem:[%s8352_s27 + $0x3d0] sm:$0xff] %vm362_vm0, %v4517_v34  ;;  %4672 = vst.msk [vmem:[%s8352_s27 + $0x428] sm:$0xff] %vm362_vm0, %v4528_v15  ;;  %v3669_v34 = vmul.f32 %v5352_v54, %v8376_v10 }
 0x507   : > { %v4298_v22 = vpop.permute.xlu1 %4297  ;;  %v4353_v53 = vpop.permute.xlu0 %4352 }
 0x508   : > { %v4519_v20 = vadd.f32 %v4298_v22, %v3655_v35  ;;  %v4530_v39 = vadd.f32 %v4353_v53, %v3666_v59  ;;  %v3671_v35 = vmul.f32 %v5353_v37, %v8388_v0  ;;  %v3673_v59 = vmul.f32 %v5354_v43, %v8400_v51 }
 0x50a   : > { %4663 = vst.msk [vmem:[%s8352_s27 + $0x3e0] sm:$0xff] %vm362_vm0, %v4519_v20  ;;  %4674 = vst.msk [vmem:[%s8352_s27 + $0x438] sm:$0xff] %vm362_vm0, %v4530_v39 }
 0x50b   : > { %v4308_v18 = vpop.permute.xlu1 %4307  ;;  %v4363_v3 = vpop.permute.xlu0 %4362 }
 0x50c   : > { %v4521_v29 = vadd.f32 %v4308_v18, %v3657_v55  ;;  %v4532_v28 = vadd.f32 %v4363_v3, %v3668_v19 }
 0x50e   : > { %4665 = vst.msk [vmem:[%s8352_s27 + $0x3f0] sm:$0xff] %vm362_vm0, %v4521_v29  ;;  %4676 = vst.msk [vmem:[%s8352_s27 + $0x448] sm:$0xff] %vm362_vm0, %v4532_v28 }
 0x50f   : > { %v4318_v58 = vpop.permute.xlu1 %4317  ;;  %v4373_v12 = vpop.permute.xlu0 %4372 }
 0x510   : > { %v4523_v45 = vadd.f32 %v4318_v58, %v3659_v31  ;;  %v4534_v21 = vadd.f32 %v4373_v12, %v3670_v60 }
 0x512   : > { %4667 = vst.msk [vmem:[%s8352_s27 + $0x400] sm:$0xff] %vm362_vm0, %v4523_v45  ;;  %4678 = vst.msk [vmem:[%s8352_s27 + $0x458] sm:$0xff] %vm362_vm0, %v4534_v21 }
 0x513   : > { %v4328_v26 = vpop.permute.xlu1 %4327  ;;  %v4383_v4 = vpop.permute.xlu0 %4382 }
 0x514   : > { %v4525_v61 = vadd.f32 %v4328_v26, %v3661_v9  ;;  %v4536_v42 = vadd.f32 %v4383_v4, %v3672_v16 }
 0x516   : > { %4669 = vst.msk [vmem:[%s8352_s27 + $0x410] sm:$0xff] %vm362_vm0, %v4525_v61  ;;  %4680 = vst.msk [vmem:[%s8352_s27 + $0x468] sm:$0xff] %vm362_vm0, %v4536_v42 }
 0x517   : > { %v4338_v27 = vpop.permute.xlu1 %4337  ;;  %v4393_v7 = vpop.permute.xlu0 %4392 }
 0x518   : > { %v4527_v48 = vadd.f32 %v4338_v27, %v3663_v41  ;;  %v4538_v36 = vadd.f32 %v4393_v7, %v3674_v8 }
 0x51a   : > { %4671 = vst.msk [vmem:[%s8352_s27 + $0x420] sm:$0xff] %vm362_vm0, %v4527_v48  ;;  %4682 = vst.msk [vmem:[%s8352_s27 + $0x478] sm:$0xff] %vm362_vm0, %v4538_v36 }
 0x51b   : > { %v4348_v38 = vpop.permute.xlu1 %4347 }
 0x51c   : > { %v4529_v17 = vadd.f32 %v4348_v38, %v3665_v24 }
 0x51e   : > { %4673 = vst.msk [vmem:[%s8352_s27 + $0x430] sm:$0xff] %vm362_vm0, %v4529_v17 }
 0x51f   : > { %v4358_v2 = vpop.permute.xlu1 %4357 }
 0x520   : > { %v4531_v32 = vadd.f32 %v4358_v2, %v3667_v47 }
 0x522   : > { %4675 = vst.msk [vmem:[%s8352_s27 + $0x440] sm:$0xff] %vm362_vm0, %v4531_v32 }
 0x523   : > { %v4368_v15 = vpop.permute.xlu1 %4367 }
 0x524   : > { %v4533_v6 = vadd.f32 %v4368_v15, %v3669_v34 }
 0x526   : > { %4677 = vst.msk [vmem:[%s8352_s27 + $0x450] sm:$0xff] %vm362_vm0, %v4533_v6 }
 0x527   : > { %v4378_v1 = vpop.permute.xlu1 %4377 }
 0x528   : > { %v4535_v63 = vadd.f32 %v4378_v1, %v3671_v35 }
 0x52a   : > { %4679 = vst.msk [vmem:[%s8352_s27 + $0x460] sm:$0xff] %vm362_vm0, %v4535_v63 }
 0x52b   : > { %v4388_v22 = vpop.permute.xlu1 %4387 }
 0x52c   : > { %v4537_v53 = vadd.f32 %v4388_v22, %v3673_v59 }
 0x52e   : > { %4681 = vst.msk [vmem:[%s8352_s27 + $0x470] sm:$0xff] %vm362_vm0, %v4537_v53 }
 0x52f PF: > { %s13_s12 = sadd.s32 1, %s5361_s12  }
 0x530   : > { %p10_p4 = scmp.ge.s32.totalorder %s13_s12, 4  }
 0x532   :  { %12 = sbr.rel (!%p10_p4) target bundleno = 1 (0x1), region = 68 }

</bundles_post_ra>
